<compile_context>
chip_gen: v7x
topology: tpu7x:2x2x1
jax: 0.10.0
libtpu: 0.0.40
codegen_flags: <defaults>
</compile_context>

<pallas_src>
import functools

import jax
import jax.numpy as jnp
from jax.experimental import pallas as pl
from jax.experimental.pallas import tpu as pltpu

LANE = 128


def _round_up(n, m):
    return (n + m - 1) // m * m


# ----------------------------- activations ---------------------------------
def _relu6(x):
    return jnp.clip(x, 0.0, 6.0)


def _hard_swish(x):
    return x * _relu6(x + 3.0) * (1.0 / 6.0)


def _act(x, activate):
    return _relu6(x) if activate == "relu" else _hard_swish(x)


# ------------------------------- kernel -------------------------------------
def _se_ib_kernel(
    x_ref,        # (1, H, W, cin_p)                   bf16
    wf_ref,       # (cin_p, cmid_p [+ cout_p])         bf16  [expand | shortcut] 1x1, BN folded
    wdw_ref,      # (k*k, 1, cmid_p)                   f32   depthwise taps, BN folded
    wse1_ref,     # (cmid_p, cse_p)                    bf16
    wse2_ref,     # (cse_p, cmid_p)                    bf16
    wp_ref,       # (cmid_p, cout_p)                   bf16  point 1x1, BN folded
    b_ref,        # (8, maxc)                          f32   packed biases
    o_ref,        # (1, Ho, Wo, cout_p)                f32
    xpad_ref,     # scratch (Hp, Wtot, cmid_p)         bf16  padded depthwise input
    *, kernel_size, stride, activate, use_se, has_shortcut,
    cmid_p, cout_p, cse_p, w_lo,
):
    _, H, W, cin_p = x_ref.shape
    _, Ho, Wo, _ = o_ref.shape
    k = kernel_size
    pad = (k - 1) // 2
    Hp, Wtot, _ = xpad_ref.shape

    bias = b_ref[...]                                      # (8, maxc) f32

    # ---- fused 1x1 expand conv (+ 1x1 shortcut conv when stride==1) --------
    x2d = x_ref[...].reshape(H * W, cin_p)                 # bf16
    h0 = jnp.dot(x2d, wf_ref[...], preferred_element_type=jnp.float32)
    h1 = _act(h0[:, :cmid_p] + bias[0, :cmid_p], activate)     # (H*W, cmid_p)
    if has_shortcut:
        # Park the shortcut in the already-allocated output block so it is not
        # a live f32 temporary across the depthwise / SE / point conv.
        sc = h0[:, cmid_p:cmid_p + cout_p] + bias[5, :cout_p]
        o_ref[...] = sc.reshape(1, H, W, cout_p).astype(o_ref.dtype)

    # ---- depthwise kxk conv (VPU) ----
    # bf16 scratch; f32 tap accumulation. Halos are zeroed every step with
    # sublane-tile-aligned block stores (w_lo is one full bf16 sublane tile) so
    # the interior h1 store and halo zeroing are unmasked vector stores.
    if pad > 0:
        xpad_ref[:pad, :, :] = jnp.zeros((pad, Wtot, cmid_p), jnp.bfloat16)
        xpad_ref[pad + H:, :, :] = jnp.zeros((Hp - pad - H, Wtot, cmid_p),
                                             jnp.bfloat16)
        xpad_ref[pad:pad + H, :w_lo, :] = jnp.zeros((H, w_lo, cmid_p),
                                                    jnp.bfloat16)
        xpad_ref[pad:pad + H, w_lo + W:, :] = jnp.zeros(
            (H, Wtot - w_lo - W, cmid_p), jnp.bfloat16)
    xpad_ref[pad:pad + H, w_lo:w_lo + W, :] = (
        h1.reshape(H, W, cmid_p).astype(jnp.bfloat16))

    acc = jnp.zeros((Ho, Wo, cmid_p), jnp.float32)
    for dh in range(k):
        for dw in range(k):
            w_tap = wdw_ref[dh * k + dw]                   # (1, cmid_p) f32
            if stride == 1:
                patch = xpad_ref[dh:dh + Ho,
                                 w_lo - pad + dw:w_lo - pad + dw + Wo, :]
            else:
                # TODO(synk): stride>1 path (strided reads, no shortcut) is not
                # exercised by the demo (stride=1).
                patch = xpad_ref[pl.ds(dh, Ho, stride=stride),
                                 pl.ds(w_lo - pad + dw, Wo, stride=stride), :]
            acc = acc + patch * w_tap                      # bf16 * f32 -> f32
    h2 = _act(acc + bias[1, :cmid_p], activate)            # (Ho, Wo, cmid_p)

    # ---- Squeeze-and-Excite (AvgPool2d with se_kernel_size == spatial size) ----
    if use_se:
        se = jnp.mean(h2, axis=(0, 1)).reshape(1, cmid_p)
        se = jnp.dot(se.astype(jnp.bfloat16), wse1_ref[...],
                     preferred_element_type=jnp.float32)
        se = _relu6(se + bias[2, :cse_p])
        se = jnp.dot(se.astype(jnp.bfloat16), wse2_ref[...],
                     preferred_element_type=jnp.float32)
        se = _hard_swish(se + bias[3, :cmid_p])
        h2 = h2 * se.reshape(1, 1, cmid_p)

    # ---- 1x1 point conv + bias + activation (+ shortcut) ----
    h3 = jnp.dot(h2.reshape(Ho * Wo, cmid_p).astype(jnp.bfloat16), wp_ref[...],
                 preferred_element_type=jnp.float32)
    out = _act(h3 + bias[4, :cout_p], activate).reshape(1, Ho, Wo, cout_p)

    if has_shortcut:
        o_ref[...] = (o_ref[...] + out).astype(o_ref.dtype)
    else:
        o_ref[...] = out.astype(o_ref.dtype)


# -------------------------- parameter preparation ---------------------------
def prepare_params(p, cin, cmid, cout, kernel_size, stride, divide=4):
    """Fold BN scales into conv weights, pad channels to the 128-lane width,
    pack the per-channel bias vectors, and cast matmul weights to bf16.
    Shortcut columns are only packed when stride == 1."""
    k = kernel_size
    has_shortcut = stride == 1
    cse = cmid // divide
    cin_p, cmid_p = _round_up(cin, LANE), _round_up(cmid, LANE)
    cout_p, cse_p = _round_up(cout, LANE), _round_up(cse, LANE)
    maxc = max(cmid_p, cout_p, cse_p)

    wf_cols = cmid_p + (cout_p if has_shortcut else 0)
    wf = jnp.zeros((cin_p, wf_cols), jnp.float32)
    wf = wf.at[:cin, :cmid].set(p["w1"] * p["s1"])
    if has_shortcut:
        wf = wf.at[:cin, cmid_p:cmid_p + cout].set(p["wsc"] * p["ssc"])

    wdw = jnp.zeros((k * k, 1, cmid_p), jnp.float32).at[:, 0, :cmid].set(
        p["wdw"] * p["sdw"])
    wse1 = jnp.zeros((cmid_p, cse_p), jnp.float32).at[:cmid, :cse].set(p["wse1"])
    wse2 = jnp.zeros((cse_p, cmid_p), jnp.float32).at[:cse, :cmid].set(p["wse2"])
    wp = jnp.zeros((cmid_p, cout_p), jnp.float32).at[:cmid, :cout].set(
        p["wp"] * p["sp"])

    bias = jnp.zeros((8, maxc), jnp.float32)
    bias = bias.at[0, :cmid].set(p["b1"][0])
    bias = bias.at[1, :cmid].set(p["bdw"][0])
    bias = bias.at[2, :cse].set(p["bse1"][0])
    bias = bias.at[3, :cmid].set(p["bse2"][0])
    bias = bias.at[4, :cout].set(p["bp"][0])
    if has_shortcut:
        bias = bias.at[5, :cout].set(p["bsc"][0])

    return dict(
        wf=wf.astype(jnp.bfloat16), wdw=wdw,
        wse1=wse1.astype(jnp.bfloat16), wse2=wse2.astype(jnp.bfloat16),
        wp=wp.astype(jnp.bfloat16), bias=bias,
        dims=(cin_p, cmid_p, cout_p, cse_p), cout=cout)


# ------------------------------- wrapper -------------------------------------
def se_inverted_bottleneck(xp, prep, *, kernel_size, stride, activate, use_se):
    """xp: (B, H, W, cin_p) bfloat16, lane-padded NHWC activations.
    Returns (B, Ho, Wo, cout_p) float32 with the valid channels first."""
    B, H, W, cin_p = xp.shape
    cin_p_w, cmid_p, cout_p, cse_p = prep["dims"]
    assert cin_p == cin_p_w and xp.dtype == jnp.bfloat16
    k = kernel_size
    pad = (k - 1) // 2
    Hp = H + 2 * pad
    Ho = (Hp - k) // stride + 1
    Wo = (W + 2 * pad - k) // stride + 1
    has_shortcut = stride == 1

    SUB = 16                                    # bf16 sublane tile
    w_lo = SUB if pad > 0 else 0                # aligned left halo of scratch
    Wtot = _round_up(w_lo + W + pad, SUB) if pad > 0 else W

    kernel = functools.partial(
        _se_ib_kernel, kernel_size=k, stride=stride, activate=activate,
        use_se=use_se, has_shortcut=has_shortcut,
        cmid_p=cmid_p, cout_p=cout_p, cse_p=cse_p, w_lo=w_lo)

    weights = (prep["wf"], prep["wdw"], prep["wse1"], prep["wse2"],
               prep["wp"], prep["bias"])

    x_block = (1, H, W, cin_p)
    o_block = (1, Ho, Wo, cout_p)
    scratch = pltpu.VMEM((Hp, Wtot, cmid_p), jnp.bfloat16)

    # VMEM budget derived per TPU generation (never ask for all of VMEM).
    blk = 2 * H * W * cin_p * 2 + 2 * Ho * Wo * cout_p * 4
    wbytes = 2 * sum(int(w.size) * w.dtype.itemsize for w in weights)
    sbytes = Hp * Wtot * cmid_p * 2
    ibytes = 10 * H * W * (cmid_p + cout_p) * 4      # in-kernel f32 temporaries
    est = blk + wbytes + sbytes + ibytes
    try:
        cap = int(pltpu.get_tpu_info().vmem_capacity_bytes)
    except Exception:
        cap = 64 * 1024 * 1024                       # v7x per-TC capacity
    vmem_limit = int(max(16 * 1024 * 1024,
                         min(est, cap - 16 * 1024 * 1024)))

    def build(single_buffer_weights):
        wopt = ({"pipeline_mode": pl.Buffered(1)}
                if single_buffer_weights else {})
        in_specs = [
            pl.BlockSpec(x_block, lambda b: (b, 0, 0, 0)),
            pl.BlockSpec(prep["wf"].shape, lambda b: (0, 0), **wopt),
            pl.BlockSpec(prep["wdw"].shape, lambda b: (0, 0, 0), **wopt),
            pl.BlockSpec(prep["wse1"].shape, lambda b: (0, 0), **wopt),
            pl.BlockSpec(prep["wse2"].shape, lambda b: (0, 0), **wopt),
            pl.BlockSpec(prep["wp"].shape, lambda b: (0, 0), **wopt),
            pl.BlockSpec(prep["bias"].shape, lambda b: (0, 0), **wopt),
        ]
        return pl.pallas_call(
            kernel,
            out_shape=jax.ShapeDtypeStruct((B, Ho, Wo, cout_p), jnp.float32),
            grid=(B,),
            in_specs=in_specs,
            out_specs=pl.BlockSpec(o_block, lambda b: (b, 0, 0, 0)),
            scratch_shapes=[scratch],
            compiler_params=pltpu.CompilerParams(
                dimension_semantics=("parallel",),
                vmem_limit_bytes=vmem_limit),
        )

    try:
        # Weights / biases have constant index maps -> single-buffer them.
        out = jax.block_until_ready(build(True)(xp, *weights))
    except Exception:
        # Fallback if Buffered(1) is not accepted by this Pallas version.
        out = build(False)(xp, *weights)
    return out


# -------------------------- parameter construction --------------------------
def _bn_fold(key, c, conv_bias, eps=1e-5):
    kg, kb, km, kv = jax.random.split(key, 4)
    gamma = 1.0 + 0.1 * jax.random.normal(kg, (c,), jnp.float32)
    beta = 0.1 * jax.random.normal(kb, (c,), jnp.float32)
    mean = 0.1 * jax.random.normal(km, (c,), jnp.float32)
    var = 1.0 + 0.1 * jnp.abs(jax.random.normal(kv, (c,), jnp.float32))
    scale = gamma / jnp.sqrt(var + eps)
    shift = beta + (conv_bias - mean) * scale
    return scale.reshape(1, c), shift.reshape(1, c)


def _conv1x1_bn(key, cin, cout):
    kw, kb, kbn = jax.random.split(key, 3)
    w = 0.1 * jax.random.normal(kw, (cin, cout), jnp.float32)
    bias = 0.1 * jax.random.normal(kb, (cout,), jnp.float32)
    s, b = _bn_fold(kbn, cout, bias)
    return w, s, b


def init_params(key, cin, cmid, cout, k, divide=4):
    ks = jax.random.split(key, 8)
    w1, s1, b1 = _conv1x1_bn(ks[0], cin, cmid)
    # depthwise conv weights: torch weight (cmid, 1, k, k) -> (k*k, cmid)
    wdw = 0.1 * jax.random.normal(ks[1], (k * k, cmid), jnp.float32)
    bdw_conv = 0.1 * jax.random.normal(ks[2], (cmid,), jnp.float32)
    sdw, bdw = _bn_fold(ks[3], cmid, bdw_conv)
    # SE block linears (torch weight (out,in) -> stored transposed (in,out))
    cse = cmid // divide
    k4, k5 = jax.random.split(ks[4], 2)
    wse1 = 0.1 * jax.random.normal(k4, (cmid, cse), jnp.float32)
    bse1 = 0.1 * jax.random.normal(k5, (1, cse), jnp.float32)
    k6, k7 = jax.random.split(ks[5], 2)
    wse2 = 0.1 * jax.random.normal(k6, (cse, cmid), jnp.float32)
    bse2 = 0.1 * jax.random.normal(k7, (1, cmid), jnp.float32)
    wp, sp, bp = _conv1x1_bn(ks[6], cmid, cout)
    wsc, ssc, bsc = _conv1x1_bn(ks[7], cin, cout)
    return dict(w1=w1, s1=s1, b1=b1, wdw=wdw, sdw=sdw, bdw=bdw,
                wse1=wse1, bse1=bse1, wse2=wse2, bse2=bse2,
                wp=wp, sp=sp, bp=bp, wsc=wsc, ssc=ssc, bsc=bsc)


# ---------------------------- pure-JAX reference ----------------------------
def reference(x, p, *, kernel_size, stride, activate, use_se):
    """Reference using the same folded-BN / bf16-matmul-input / bf16-depthwise-
    input math as the kernel."""
    B, H, W, Cin = x.shape
    k = kernel_size
    Cmid = p["w1"].shape[1]
    pad = (k - 1) // 2
    Ho = (H + 2 * pad - k) // stride + 1
    Wo = (W + 2 * pad - k) // stride + 1
    xb = x.astype(jnp.bfloat16)

    w1f = (p["w1"] * p["s1"]).astype(jnp.bfloat16)
    h1 = _act(jnp.einsum("bhwc,cd->bhwd", xb, w1f,
                         preferred_element_type=jnp.float32) + p["b1"][0],
              activate)

    wdwf = p["wdw"] * p["sdw"]
    hp = jnp.pad(h1.astype(jnp.bfloat16),
                 ((0, 0), (pad, pad), (pad, pad), (0, 0)))
    acc = jnp.zeros((B, Ho, Wo, Cmid), jnp.float32)
    for dh in range(k):
        for dw in range(k):
            patch = hp[:, dh:dh + (Ho - 1) * stride + 1:stride,
                       dw:dw + (Wo - 1) * stride + 1:stride, :]
            acc = acc + patch * wdwf[dh * k + dw]
    h2 = _act(acc + p["bdw"][0], activate)

    if use_se:
        se = jnp.mean(h2, axis=(1, 2))
        se = _relu6(jnp.einsum("bc,cd->bd", se.astype(jnp.bfloat16),
                               p["wse1"].astype(jnp.bfloat16),
                               preferred_element_type=jnp.float32)
                    + p["bse1"][0])
        se = _hard_swish(jnp.einsum("bc,cd->bd", se.astype(jnp.bfloat16),
                                    p["wse2"].astype(jnp.bfloat16),
                                    preferred_element_type=jnp.float32)
                         + p["bse2"][0])
        h2 = h2 * se[:, None, None, :]

    wpf = (p["wp"] * p["sp"]).astype(jnp.bfloat16)
    h3 = _act(jnp.einsum("bhwc,cd->bhwd", h2.astype(jnp.bfloat16), wpf,
                         preferred_element_type=jnp.float32) + p["bp"][0],
              activate)
    if stride == 1:
        wscf = (p["wsc"] * p["ssc"]).astype(jnp.bfloat16)
        sc = jnp.einsum("bhwc,cd->bhwd", xb, wscf,
                        preferred_element_type=jnp.float32) + p["bsc"][0]
        h3 = h3 + sc
    return h3


# --------------------------------- main --------------------------------------
if __name__ == "__main__":
    key = jax.random.PRNGKey(0)
    kx, kp = jax.random.split(key, 2)

    # se_kernel_size == spatial size (16), so AvgPool2d output is 1x1 and
    # view(b, -1) gives (B, Cmid), as the module requires.
    B, H, W = 2, 16, 16
    Cin, Cmid, Cout = 8, 16, 8
    kernel_size, stride = 3, 1
    activate, use_se = "hswish", True

    x = jax.random.normal(kx, (B, H, W, Cin), jnp.float32)
    params = init_params(kp, Cin, Cmid, Cout, kernel_size)
    prep = prepare_params(params, Cin, Cmid, Cout, kernel_size, stride)

    # In a fused pipeline the previous block would already emit lane-padded
    # bf16 NHWC activations; this one-time layout conversion stands in for it.
    cin_p = prep["dims"][0]
    xp = jnp.pad(x.astype(jnp.bfloat16),
                 ((0, 0), (0, 0), (0, 0), (0, cin_p - Cin)))

    out_p = se_inverted_bottleneck(
        xp, prep, kernel_size=kernel_size, stride=stride,
        activate=activate, use_se=use_se)
    out_p = jax.block_until_ready(out_p)
    out = out_p[..., :Cout]          # strip lane padding for the check only

    ref = reference(x, params, kernel_size=kernel_size, stride=stride,
                    activate=activate, use_se=use_se)
    assert out.shape == ref.shape, (out.shape, ref.shape)
    err = float(jnp.max(jnp.abs(out - ref)))
    assert jnp.allclose(out, ref, atol=2e-3, rtol=2e-3), err
    print("KERNEL_OK")
</pallas_src>

<mosaic_0001>
module attributes {stable_mosaic.version = 11 : i64} {
  func.func @_se_ib_kernel(%arg0: i32, %arg1: memref<1x16x16x128xbf16, #tpu.memory_space<vmem>>, %arg2: memref<128x256xbf16, #tpu.memory_space<vmem>>, %arg3: memref<9x1x128xf32, #tpu.memory_space<vmem>>, %arg4: memref<128x128xbf16, #tpu.memory_space<vmem>>, %arg5: memref<128x128xbf16, #tpu.memory_space<vmem>>, %arg6: memref<128x128xbf16, #tpu.memory_space<vmem>>, %arg7: memref<8x128xf32, #tpu.memory_space<vmem>>, %arg8: memref<1x16x16x128xf32, #tpu.memory_space<vmem>>, %arg9: memref<18x48x128xbf16, #tpu.memory_space<vmem>>) attributes {dimension_semantics = [#tpu.dimension_semantics<parallel>], iteration_bounds = array<i64: 2>, scalar_prefetch = 0 : i64, scratch_operands = 1 : i64, tpu.core_type = #tpu.core_type<tc>, window_params = [{transform_indices = @transform_0, window_bounds = array<i64: 1, 16, 16, 128>}, {pipeline_mode = #tpu.pipeline_mode<synchronous>, transform_indices = @transform_1, window_bounds = array<i64: 128, 256>}, {pipeline_mode = #tpu.pipeline_mode<synchronous>, transform_indices = @transform_2, window_bounds = array<i64: 9, 1, 128>}, {pipeline_mode = #tpu.pipeline_mode<synchronous>, transform_indices = @transform_3, window_bounds = array<i64: 128, 128>}, {pipeline_mode = #tpu.pipeline_mode<synchronous>, transform_indices = @transform_4, window_bounds = array<i64: 128, 128>}, {pipeline_mode = #tpu.pipeline_mode<synchronous>, transform_indices = @transform_5, window_bounds = array<i64: 128, 128>}, {pipeline_mode = #tpu.pipeline_mode<synchronous>, transform_indices = @transform_6, window_bounds = array<i64: 8, 128>}, {transform_indices = @transform_7, window_bounds = array<i64: 1, 16, 16, 128>}]} {
    %c0 = arith.constant 0 : index
    %c0_0 = arith.constant 0 : index
    %0 = vector.load %arg7[%c0, %c0_0] : memref<8x128xf32, #tpu.memory_space<vmem>>, vector<8x128xf32>
    %c0_1 = arith.constant 0 : index
    %c0_2 = arith.constant 0 : index
    %c0_3 = arith.constant 0 : index
    %c0_4 = arith.constant 0 : index
    %1 = vector.load %arg1[%c0_1, %c0_2, %c0_3, %c0_4] : memref<1x16x16x128xbf16, #tpu.memory_space<vmem>>, vector<1x16x16x128xbf16>
    %2 = vector.shape_cast %1 : vector<1x16x16x128xbf16> to vector<256x128xbf16>
    %c0_5 = arith.constant 0 : index
    %c0_6 = arith.constant 0 : index
    %3 = vector.load %arg2[%c0_5, %c0_6] : memref<128x256xbf16, #tpu.memory_space<vmem>>, vector<128x256xbf16>
    %cst = arith.constant dense<0.000000e+00> : vector<256x256xf32>
    %4 = tpu.matmul %2, %3, %cst {dimension_numbers = #tpu.dot_dimension_numbers<[1], [0], [0], [1], [0, 0, 1, 1], [], []>} : vector<256x128xbf16>, vector<128x256xbf16>, vector<256x256xf32> -> vector<256x256xf32>
    %5 = vector.extract_strided_slice %4 {offsets = [0, 0], sizes = [256, 128], strides = [1, 1]} : vector<256x256xf32> to vector<256x128xf32>
    %6 = vector.extract_strided_slice %0 {offsets = [0, 0], sizes = [1, 128], strides = [1, 1]} : vector<8x128xf32> to vector<1x128xf32>
    %7 = vector.shape_cast %6 : vector<1x128xf32> to vector<128xf32>
    %8 = vector.shape_cast %7 : vector<128xf32> to vector<1x128xf32>
    %9 = vector.broadcast %8 : vector<1x128xf32> to vector<256x128xf32>
    %10 = arith.addf %5, %9 : vector<256x128xf32>
    %cst_7 = arith.constant 3.000000e+00 : f32
    %11 = vector.broadcast %cst_7 : f32 to vector<256x128xf32>
    %12 = arith.addf %10, %11 : vector<256x128xf32>
    %cst_8 = arith.constant 0.000000e+00 : f32
    %cst_9 = arith.constant 6.000000e+00 : f32
    %13 = vector.broadcast %cst_8 : f32 to vector<256x128xf32>
    %14 = arith.maximumf %13, %12 : vector<256x128xf32>
    %15 = vector.broadcast %cst_9 : f32 to vector<256x128xf32>
    %16 = arith.minimumf %15, %14 : vector<256x128xf32>
    %17 = arith.mulf %10, %16 : vector<256x128xf32>
    %cst_10 = arith.constant 0.166666672 : f32
    %18 = vector.broadcast %cst_10 : f32 to vector<256x128xf32>
    %19 = arith.mulf %17, %18 : vector<256x128xf32>
    %20 = vector.extract_strided_slice %4 {offsets = [0, 128], sizes = [256, 128], strides = [1, 1]} : vector<256x256xf32> to vector<256x128xf32>
    %21 = vector.extract_strided_slice %0 {offsets = [5, 0], sizes = [1, 128], strides = [1, 1]} : vector<8x128xf32> to vector<1x128xf32>
    %22 = vector.shape_cast %21 : vector<1x128xf32> to vector<128xf32>
    %23 = vector.shape_cast %22 : vector<128xf32> to vector<1x128xf32>
    %24 = vector.broadcast %23 : vector<1x128xf32> to vector<256x128xf32>
    %25 = arith.addf %20, %24 : vector<256x128xf32>
    %26 = vector.shape_cast %25 : vector<256x128xf32> to vector<1x16x16x128xf32>
    %c0_11 = arith.constant 0 : index
    %c0_12 = arith.constant 0 : index
    %c0_13 = arith.constant 0 : index
    %c0_14 = arith.constant 0 : index
    %27 = vector.load %arg8[%c0_11, %c0_12, %c0_13, %c0_14] : memref<1x16x16x128xf32, #tpu.memory_space<vmem>>, vector<1x16x16x128xf32>
    tpu.vector_store %arg8[%c0_11, %c0_12, %c0_13, %c0_14], %26 {strides = array<i32>} : memref<1x16x16x128xf32, #tpu.memory_space<vmem>>, vector<1x16x16x128xf32>,
    %cst_15 = arith.constant 0.000000e+00 : bf16
    %28 = vector.broadcast %cst_15 : bf16 to vector<1x48x128xbf16>
    %c0_16 = arith.constant 0 : index
    %c0_17 = arith.constant 0 : index
    %c0_18 = arith.constant 0 : index
    %29 = vector.load %arg9[%c0_16, %c0_17, %c0_18] : memref<18x48x128xbf16, #tpu.memory_space<vmem>>, vector<1x48x128xbf16>
    tpu.vector_store %arg9[%c0_16, %c0_17, %c0_18], %28 {strides = array<i32>} : memref<18x48x128xbf16, #tpu.memory_space<vmem>>, vector<1x48x128xbf16>,
    %cst_19 = arith.constant 0.000000e+00 : bf16
    %30 = vector.broadcast %cst_19 : bf16 to vector<1x48x128xbf16>
    %c17 = arith.constant 17 : index
    %c0_20 = arith.constant 0 : index
    %c0_21 = arith.constant 0 : index
    %31 = vector.load %arg9[%c17, %c0_20, %c0_21] : memref<18x48x128xbf16, #tpu.memory_space<vmem>>, vector<1x48x128xbf16>
    tpu.vector_store %arg9[%c17, %c0_20, %c0_21], %30 {strides = array<i32>} : memref<18x48x128xbf16, #tpu.memory_space<vmem>>, vector<1x48x128xbf16>,
    %cst_22 = arith.constant 0.000000e+00 : bf16
    %32 = vector.broadcast %cst_22 : bf16 to vector<16x16x128xbf16>
    %c1 = arith.constant 1 : index
    %c0_23 = arith.constant 0 : index
    %c0_24 = arith.constant 0 : index
    %33 = vector.load %arg9[%c1, %c0_23, %c0_24] : memref<18x48x128xbf16, #tpu.memory_space<vmem>>, vector<16x16x128xbf16>
    tpu.vector_store %arg9[%c1, %c0_23, %c0_24], %32 {strides = array<i32>} : memref<18x48x128xbf16, #tpu.memory_space<vmem>>, vector<16x16x128xbf16>,
    %cst_25 = arith.constant 0.000000e+00 : bf16
    %34 = vector.broadcast %cst_25 : bf16 to vector<16x16x128xbf16>
    %c1_26 = arith.constant 1 : index
    %c32 = arith.constant 32 : index
    %c0_27 = arith.constant 0 : index
    %35 = vector.load %arg9[%c1_26, %c32, %c0_27] : memref<18x48x128xbf16, #tpu.memory_space<vmem>>, vector<16x16x128xbf16>
    tpu.vector_store %arg9[%c1_26, %c32, %c0_27], %34 {strides = array<i32>} : memref<18x48x128xbf16, #tpu.memory_space<vmem>>, vector<16x16x128xbf16>,
    %36 = vector.shape_cast %19 : vector<256x128xf32> to vector<16x16x128xf32>
    %37 = arith.truncf %36 : vector<16x16x128xf32> to vector<16x16x128xbf16>
    %c1_28 = arith.constant 1 : index
    %c16 = arith.constant 16 : index
    %c0_29 = arith.constant 0 : index
    %38 = vector.load %arg9[%c1_28, %c16, %c0_29] : memref<18x48x128xbf16, #tpu.memory_space<vmem>>, vector<16x16x128xbf16>
    tpu.vector_store %arg9[%c1_28, %c16, %c0_29], %37 {strides = array<i32>} : memref<18x48x128xbf16, #tpu.memory_space<vmem>>, vector<16x16x128xbf16>,
    %cst_30 = arith.constant 0.000000e+00 : f32
    %39 = vector.broadcast %cst_30 : f32 to vector<16x16x128xf32>
    %c0_31 = arith.constant 0 : index
    %c0_32 = arith.constant 0 : index
    %c0_33 = arith.constant 0 : index
    %40 = vector.load %arg3[%c0_31, %c0_32, %c0_33] : memref<9x1x128xf32, #tpu.memory_space<vmem>>, vector<1x1x128xf32>
    %41 = vector.shape_cast %40 : vector<1x1x128xf32> to vector<1x128xf32>
    %c0_34 = arith.constant 0 : index
    %c15 = arith.constant 15 : index
    %c0_35 = arith.constant 0 : index
    %42 = vector.load %arg9[%c0_34, %c15, %c0_35] : memref<18x48x128xbf16, #tpu.memory_space<vmem>>, vector<16x16x128xbf16>
    %43 = arith.extf %42 : vector<16x16x128xbf16> to vector<16x16x128xf32>
    %44 = vector.shape_cast %41 : vector<1x128xf32> to vector<1x1x128xf32>
    %45 = vector.broadcast %44 : vector<1x1x128xf32> to vector<16x16x128xf32>
    %46 = arith.mulf %43, %45 : vector<16x16x128xf32>
    %47 = arith.addf %39, %46 : vector<16x16x128xf32>
    %c1_36 = arith.constant 1 : index
    %c0_37 = arith.constant 0 : index
    %c0_38 = arith.constant 0 : index
    %48 = vector.load %arg3[%c1_36, %c0_37, %c0_38] : memref<9x1x128xf32, #tpu.memory_space<vmem>>, vector<1x1x128xf32>
    %49 = vector.shape_cast %48 : vector<1x1x128xf32> to vector<1x128xf32>
    %c0_39 = arith.constant 0 : index
    %c16_40 = arith.constant 16 : index
    %c0_41 = arith.constant 0 : index
    %50 = vector.load %arg9[%c0_39, %c16_40, %c0_41] : memref<18x48x128xbf16, #tpu.memory_space<vmem>>, vector<16x16x128xbf16>
    %51 = arith.extf %50 : vector<16x16x128xbf16> to vector<16x16x128xf32>
    %52 = vector.shape_cast %49 : vector<1x128xf32> to vector<1x1x128xf32>
    %53 = vector.broadcast %52 : vector<1x1x128xf32> to vector<16x16x128xf32>
    %54 = arith.mulf %51, %53 : vector<16x16x128xf32>
    %55 = arith.addf %47, %54 : vector<16x16x128xf32>
    %c2 = arith.constant 2 : index
    %c0_42 = arith.constant 0 : index
    %c0_43 = arith.constant 0 : index
    %56 = vector.load %arg3[%c2, %c0_42, %c0_43] : memref<9x1x128xf32, #tpu.memory_space<vmem>>, vector<1x1x128xf32>
    %57 = vector.shape_cast %56 : vector<1x1x128xf32> to vector<1x128xf32>
    %c0_44 = arith.constant 0 : index
    %c17_45 = arith.constant 17 : index
    %c0_46 = arith.constant 0 : index
    %58 = vector.load %arg9[%c0_44, %c17_45, %c0_46] : memref<18x48x128xbf16, #tpu.memory_space<vmem>>, vector<16x16x128xbf16>
    %59 = arith.extf %58 : vector<16x16x128xbf16> to vector<16x16x128xf32>
    %60 = vector.shape_cast %57 : vector<1x128xf32> to vector<1x1x128xf32>
    %61 = vector.broadcast %60 : vector<1x1x128xf32> to vector<16x16x128xf32>
    %62 = arith.mulf %59, %61 : vector<16x16x128xf32>
    %63 = arith.addf %55, %62 : vector<16x16x128xf32>
    %c3 = arith.constant 3 : index
    %c0_47 = arith.constant 0 : index
    %c0_48 = arith.constant 0 : index
    %64 = vector.load %arg3[%c3, %c0_47, %c0_48] : memref<9x1x128xf32, #tpu.memory_space<vmem>>, vector<1x1x128xf32>
    %65 = vector.shape_cast %64 : vector<1x1x128xf32> to vector<1x128xf32>
    %c1_49 = arith.constant 1 : index
    %c15_50 = arith.constant 15 : index
    %c0_51 = arith.constant 0 : index
    %66 = vector.load %arg9[%c1_49, %c15_50, %c0_51] : memref<18x48x128xbf16, #tpu.memory_space<vmem>>, vector<16x16x128xbf16>
    %67 = arith.extf %66 : vector<16x16x128xbf16> to vector<16x16x128xf32>
    %68 = vector.shape_cast %65 : vector<1x128xf32> to vector<1x1x128xf32>
    %69 = vector.broadcast %68 : vector<1x1x128xf32> to vector<16x16x128xf32>
    %70 = arith.mulf %67, %69 : vector<16x16x128xf32>
    %71 = arith.addf %63, %70 : vector<16x16x128xf32>
    %c4 = arith.constant 4 : index
    %c0_52 = arith.constant 0 : index
    %c0_53 = arith.constant 0 : index
    %72 = vector.load %arg3[%c4, %c0_52, %c0_53] : memref<9x1x128xf32, #tpu.memory_space<vmem>>, vector<1x1x128xf32>
    %73 = vector.shape_cast %72 : vector<1x1x128xf32> to vector<1x128xf32>
    %c1_54 = arith.constant 1 : index
    %c16_55 = arith.constant 16 : index
    %c0_56 = arith.constant 0 : index
    %74 = vector.load %arg9[%c1_54, %c16_55, %c0_56] : memref<18x48x128xbf16, #tpu.memory_space<vmem>>, vector<16x16x128xbf16>
    %75 = arith.extf %74 : vector<16x16x128xbf16> to vector<16x16x128xf32>
    %76 = vector.shape_cast %73 : vector<1x128xf32> to vector<1x1x128xf32>
    %77 = vector.broadcast %76 : vector<1x1x128xf32> to vector<16x16x128xf32>
    %78 = arith.mulf %75, %77 : vector<16x16x128xf32>
    %79 = arith.addf %71, %78 : vector<16x16x128xf32>
    %c5 = arith.constant 5 : index
    %c0_57 = arith.constant 0 : index
    %c0_58 = arith.constant 0 : index
    %80 = vector.load %arg3[%c5, %c0_57, %c0_58] : memref<9x1x128xf32, #tpu.memory_space<vmem>>, vector<1x1x128xf32>
    %81 = vector.shape_cast %80 : vector<1x1x128xf32> to vector<1x128xf32>
    %c1_59 = arith.constant 1 : index
    %c17_60 = arith.constant 17 : index
    %c0_61 = arith.constant 0 : index
    %82 = vector.load %arg9[%c1_59, %c17_60, %c0_61] : memref<18x48x128xbf16, #tpu.memory_space<vmem>>, vector<16x16x128xbf16>
    %83 = arith.extf %82 : vector<16x16x128xbf16> to vector<16x16x128xf32>
    %84 = vector.shape_cast %81 : vector<1x128xf32> to vector<1x1x128xf32>
    %85 = vector.broadcast %84 : vector<1x1x128xf32> to vector<16x16x128xf32>
    %86 = arith.mulf %83, %85 : vector<16x16x128xf32>
    %87 = arith.addf %79, %86 : vector<16x16x128xf32>
    %c6 = arith.constant 6 : index
    %c0_62 = arith.constant 0 : index
    %c0_63 = arith.constant 0 : index
    %88 = vector.load %arg3[%c6, %c0_62, %c0_63] : memref<9x1x128xf32, #tpu.memory_space<vmem>>, vector<1x1x128xf32>
    %89 = vector.shape_cast %88 : vector<1x1x128xf32> to vector<1x128xf32>
    %c2_64 = arith.constant 2 : index
    %c15_65 = arith.constant 15 : index
    %c0_66 = arith.constant 0 : index
    %90 = vector.load %arg9[%c2_64, %c15_65, %c0_66] : memref<18x48x128xbf16, #tpu.memory_space<vmem>>, vector<16x16x128xbf16>
    %91 = arith.extf %90 : vector<16x16x128xbf16> to vector<16x16x128xf32>
    %92 = vector.shape_cast %89 : vector<1x128xf32> to vector<1x1x128xf32>
    %93 = vector.broadcast %92 : vector<1x1x128xf32> to vector<16x16x128xf32>
    %94 = arith.mulf %91, %93 : vector<16x16x128xf32>
    %95 = arith.addf %87, %94 : vector<16x16x128xf32>
    %c7 = arith.constant 7 : index
    %c0_67 = arith.constant 0 : index
    %c0_68 = arith.constant 0 : index
    %96 = vector.load %arg3[%c7, %c0_67, %c0_68] : memref<9x1x128xf32, #tpu.memory_space<vmem>>, vector<1x1x128xf32>
    %97 = vector.shape_cast %96 : vector<1x1x128xf32> to vector<1x128xf32>
    %c2_69 = arith.constant 2 : index
    %c16_70 = arith.constant 16 : index
    %c0_71 = arith.constant 0 : index
    %98 = vector.load %arg9[%c2_69, %c16_70, %c0_71] : memref<18x48x128xbf16, #tpu.memory_space<vmem>>, vector<16x16x128xbf16>
    %99 = arith.extf %98 : vector<16x16x128xbf16> to vector<16x16x128xf32>
    %100 = vector.shape_cast %97 : vector<1x128xf32> to vector<1x1x128xf32>
    %101 = vector.broadcast %100 : vector<1x1x128xf32> to vector<16x16x128xf32>
    %102 = arith.mulf %99, %101 : vector<16x16x128xf32>
    %103 = arith.addf %95, %102 : vector<16x16x128xf32>
    %c8 = arith.constant 8 : index
    %c0_72 = arith.constant 0 : index
    %c0_73 = arith.constant 0 : index
    %104 = vector.load %arg3[%c8, %c0_72, %c0_73] : memref<9x1x128xf32, #tpu.memory_space<vmem>>, vector<1x1x128xf32>
    %105 = vector.shape_cast %104 : vector<1x1x128xf32> to vector<1x128xf32>
    %c2_74 = arith.constant 2 : index
    %c17_75 = arith.constant 17 : index
    %c0_76 = arith.constant 0 : index
    %106 = vector.load %arg9[%c2_74, %c17_75, %c0_76] : memref<18x48x128xbf16, #tpu.memory_space<vmem>>, vector<16x16x128xbf16>
    %107 = arith.extf %106 : vector<16x16x128xbf16> to vector<16x16x128xf32>
    %108 = vector.shape_cast %105 : vector<1x128xf32> to vector<1x1x128xf32>
    %109 = vector.broadcast %108 : vector<1x1x128xf32> to vector<16x16x128xf32>
    %110 = arith.mulf %107, %109 : vector<16x16x128xf32>
    %111 = arith.addf %103, %110 : vector<16x16x128xf32>
    %112 = vector.extract_strided_slice %0 {offsets = [1, 0], sizes = [1, 128], strides = [1, 1]} : vector<8x128xf32> to vector<1x128xf32>
    %113 = vector.shape_cast %112 : vector<1x128xf32> to vector<128xf32>
    %114 = vector.shape_cast %113 : vector<128xf32> to vector<1x1x128xf32>
    %115 = vector.broadcast %114 : vector<1x1x128xf32> to vector<16x16x128xf32>
    %116 = arith.addf %111, %115 : vector<16x16x128xf32>
    %cst_77 = arith.constant 3.000000e+00 : f32
    %117 = vector.broadcast %cst_77 : f32 to vector<16x16x128xf32>
    %118 = arith.addf %116, %117 : vector<16x16x128xf32>
    %cst_78 = arith.constant 0.000000e+00 : f32
    %cst_79 = arith.constant 6.000000e+00 : f32
    %119 = vector.broadcast %cst_78 : f32 to vector<16x16x128xf32>
    %120 = arith.maximumf %119, %118 : vector<16x16x128xf32>
    %121 = vector.broadcast %cst_79 : f32 to vector<16x16x128xf32>
    %122 = arith.minimumf %121, %120 : vector<16x16x128xf32>
    %123 = arith.mulf %116, %122 : vector<16x16x128xf32>
    %cst_80 = arith.constant 0.166666672 : f32
    %124 = vector.broadcast %cst_80 : f32 to vector<16x16x128xf32>
    %125 = arith.mulf %123, %124 : vector<16x16x128xf32>
    %cst_81 = arith.constant dense<0.000000e+00> : vector<128xf32>
    %126 = vector.multi_reduction <add>, %125, %cst_81 [0, 1] : vector<16x16x128xf32> to vector<128xf32>
    %cst_82 = arith.constant 2.560000e+02 : f32
    %127 = vector.broadcast %cst_82 : f32 to vector<128xf32>
    %128 = arith.divf %126, %127 : vector<128xf32>
    %129 = vector.shape_cast %128 : vector<128xf32> to vector<1x128xf32>
    %130 = arith.truncf %129 : vector<1x128xf32> to vector<1x128xbf16>
    %c0_83 = arith.constant 0 : index
    %c0_84 = arith.constant 0 : index
    %131 = vector.load %arg4[%c0_83, %c0_84] : memref<128x128xbf16, #tpu.memory_space<vmem>>, vector<128x128xbf16>
    %cst_85 = arith.constant dense<0.000000e+00> : vector<1x128xf32>
    %132 = tpu.matmul %130, %131, %cst_85 {dimension_numbers = #tpu.dot_dimension_numbers<[1], [0], [0], [1], [0, 0, 1, 1], [], []>} : vector<1x128xbf16>, vector<128x128xbf16>, vector<1x128xf32> -> vector<1x128xf32>
    %133 = vector.extract_strided_slice %0 {offsets = [2, 0], sizes = [1, 128], strides = [1, 1]} : vector<8x128xf32> to vector<1x128xf32>
    %134 = vector.shape_cast %133 : vector<1x128xf32> to vector<128xf32>
    %135 = vector.shape_cast %134 : vector<128xf32> to vector<1x128xf32>
    %136 = arith.addf %132, %135 : vector<1x128xf32>
    %cst_86 = arith.constant 0.000000e+00 : f32
    %cst_87 = arith.constant 6.000000e+00 : f32
    %137 = vector.broadcast %cst_86 : f32 to vector<1x128xf32>
    %138 = arith.maximumf %137, %136 : vector<1x128xf32>
    %139 = vector.broadcast %cst_87 : f32 to vector<1x128xf32>
    %140 = arith.minimumf %139, %138 : vector<1x128xf32>
    %141 = arith.truncf %140 : vector<1x128xf32> to vector<1x128xbf16>
    %c0_88 = arith.constant 0 : index
    %c0_89 = arith.constant 0 : index
    %142 = vector.load %arg5[%c0_88, %c0_89] : memref<128x128xbf16, #tpu.memory_space<vmem>>, vector<128x128xbf16>
    %cst_90 = arith.constant dense<0.000000e+00> : vector<1x128xf32>
    %143 = tpu.matmul %141, %142, %cst_90 {dimension_numbers = #tpu.dot_dimension_numbers<[1], [0], [0], [1], [0, 0, 1, 1], [], []>} : vector<1x128xbf16>, vector<128x128xbf16>, vector<1x128xf32> -> vector<1x128xf32>
    %144 = vector.extract_strided_slice %0 {offsets = [3, 0], sizes = [1, 128], strides = [1, 1]} : vector<8x128xf32> to vector<1x128xf32>
    %145 = vector.shape_cast %144 : vector<1x128xf32> to vector<128xf32>
    %146 = vector.shape_cast %145 : vector<128xf32> to vector<1x128xf32>
    %147 = arith.addf %143, %146 : vector<1x128xf32>
    %cst_91 = arith.constant 3.000000e+00 : f32
    %148 = vector.broadcast %cst_91 : f32 to vector<1x128xf32>
    %149 = arith.addf %147, %148 : vector<1x128xf32>
    %cst_92 = arith.constant 0.000000e+00 : f32
    %cst_93 = arith.constant 6.000000e+00 : f32
    %150 = vector.broadcast %cst_92 : f32 to vector<1x128xf32>
    %151 = arith.maximumf %150, %149 : vector<1x128xf32>
    %152 = vector.broadcast %cst_93 : f32 to vector<1x128xf32>
    %153 = arith.minimumf %152, %151 : vector<1x128xf32>
    %154 = arith.mulf %147, %153 : vector<1x128xf32>
    %cst_94 = arith.constant 0.166666672 : f32
    %155 = vector.broadcast %cst_94 : f32 to vector<1x128xf32>
    %156 = arith.mulf %154, %155 : vector<1x128xf32>
    %157 = vector.shape_cast %156 : vector<1x128xf32> to vector<1x1x128xf32>
    %158 = vector.broadcast %157 : vector<1x1x128xf32> to vector<16x16x128xf32>
    %159 = arith.mulf %125, %158 : vector<16x16x128xf32>
    %160 = vector.shape_cast %159 : vector<16x16x128xf32> to vector<256x128xf32>
    %161 = arith.truncf %160 : vector<256x128xf32> to vector<256x128xbf16>
    %c0_95 = arith.constant 0 : index
    %c0_96 = arith.constant 0 : index
    %162 = vector.load %arg6[%c0_95, %c0_96] : memref<128x128xbf16, #tpu.memory_space<vmem>>, vector<128x128xbf16>
    %cst_97 = arith.constant dense<0.000000e+00> : vector<256x128xf32>
    %163 = tpu.matmul %161, %162, %cst_97 {dimension_numbers = #tpu.dot_dimension_numbers<[1], [0], [0], [1], [0, 0, 1, 1], [], []>} : vector<256x128xbf16>, vector<128x128xbf16>, vector<256x128xf32> -> vector<256x128xf32>
    %164 = vector.extract_strided_slice %0 {offsets = [4, 0], sizes = [1, 128], strides = [1, 1]} : vector<8x128xf32> to vector<1x128xf32>
    %165 = vector.shape_cast %164 : vector<1x128xf32> to vector<128xf32>
    %166 = vector.shape_cast %165 : vector<128xf32> to vector<1x128xf32>
    %167 = vector.broadcast %166 : vector<1x128xf32> to vector<256x128xf32>
    %168 = arith.addf %163, %167 : vector<256x128xf32>
    %cst_98 = arith.constant 3.000000e+00 : f32
    %169 = vector.broadcast %cst_98 : f32 to vector<256x128xf32>
    %170 = arith.addf %168, %169 : vector<256x128xf32>
    %cst_99 = arith.constant 0.000000e+00 : f32
    %cst_100 = arith.constant 6.000000e+00 : f32
    %171 = vector.broadcast %cst_99 : f32 to vector<256x128xf32>
    %172 = arith.maximumf %171, %170 : vector<256x128xf32>
    %173 = vector.broadcast %cst_100 : f32 to vector<256x128xf32>
    %174 = arith.minimumf %173, %172 : vector<256x128xf32>
    %175 = arith.mulf %168, %174 : vector<256x128xf32>
    %cst_101 = arith.constant 0.166666672 : f32
    %176 = vector.broadcast %cst_101 : f32 to vector<256x128xf32>
    %177 = arith.mulf %175, %176 : vector<256x128xf32>
    %178 = vector.shape_cast %177 : vector<256x128xf32> to vector<1x16x16x128xf32>
    %c0_102 = arith.constant 0 : index
    %c0_103 = arith.constant 0 : index
    %c0_104 = arith.constant 0 : index
    %c0_105 = arith.constant 0 : index
    %179 = vector.load %arg8[%c0_102, %c0_103, %c0_104, %c0_105] : memref<1x16x16x128xf32, #tpu.memory_space<vmem>>, vector<1x16x16x128xf32>
    %180 = arith.addf %179, %178 : vector<1x16x16x128xf32>
    %c0_106 = arith.constant 0 : index
    %c0_107 = arith.constant 0 : index
    %c0_108 = arith.constant 0 : index
    %c0_109 = arith.constant 0 : index
    %181 = vector.load %arg8[%c0_106, %c0_107, %c0_108, %c0_109] : memref<1x16x16x128xf32, #tpu.memory_space<vmem>>, vector<1x16x16x128xf32>
    tpu.vector_store %arg8[%c0_106, %c0_107, %c0_108, %c0_109], %180 {strides = array<i32>} : memref<1x16x16x128xf32, #tpu.memory_space<vmem>>, vector<1x16x16x128xf32>,
    return
  }
  func.func @transform_0(%arg0: i32) -> (i32, i32, i32, i32) {
    %c0_i32 = arith.constant 0 : i32
    %c0_i32_0 = arith.constant 0 : i32
    %c0_i32_1 = arith.constant 0 : i32
    %c0_i32_2 = arith.constant 0 : i32
    return %arg0, %c0_i32, %c0_i32_0, %c0_i32_1 : i32, i32, i32, i32
  }
  func.func @transform_1(%arg0: i32) -> (i32, i32) {
    %c0_i32 = arith.constant 0 : i32
    %c0_i32_0 = arith.constant 0 : i32
    %c0_i32_1 = arith.constant 0 : i32
    return %c0_i32, %c0_i32_0 : i32, i32
  }
  func.func @transform_2(%arg0: i32) -> (i32, i32, i32) {
    %c0_i32 = arith.constant 0 : i32
    %c0_i32_0 = arith.constant 0 : i32
    %c0_i32_1 = arith.constant 0 : i32
    %c0_i32_2 = arith.constant 0 : i32
    return %c0_i32, %c0_i32_0, %c0_i32_1 : i32, i32, i32
  }
  func.func @transform_3(%arg0: i32) -> (i32, i32) {
    %c0_i32 = arith.constant 0 : i32
    %c0_i32_0 = arith.constant 0 : i32
    %c0_i32_1 = arith.constant 0 : i32
    return %c0_i32, %c0_i32_0 : i32, i32
  }
  func.func @transform_4(%arg0: i32) -> (i32, i32) {
    %c0_i32 = arith.constant 0 : i32
    %c0_i32_0 = arith.constant 0 : i32
    %c0_i32_1 = arith.constant 0 : i32
    return %c0_i32, %c0_i32_0 : i32, i32
  }
  func.func @transform_5(%arg0: i32) -> (i32, i32) {
    %c0_i32 = arith.constant 0 : i32
    %c0_i32_0 = arith.constant 0 : i32
    %c0_i32_1 = arith.constant 0 : i32
    return %c0_i32, %c0_i32_0 : i32, i32
  }
  func.func @transform_6(%arg0: i32) -> (i32, i32) {
    %c0_i32 = arith.constant 0 : i32
    %c0_i32_0 = arith.constant 0 : i32
    %c0_i32_1 = arith.constant 0 : i32
    return %c0_i32, %c0_i32_0 : i32, i32
  }
  func.func @transform_7(%arg0: i32) -> (i32, i32, i32, i32) {
    %c0_i32 = arith.constant 0 : i32
    %c0_i32_0 = arith.constant 0 : i32
    %c0_i32_1 = arith.constant 0 : i32
    %c0_i32_2 = arith.constant 0 : i32
    return %arg0, %c0_i32, %c0_i32_0, %c0_i32_1 : i32, i32, i32, i32
  }
}

module attributes {stable_mosaic.version = 11 : i64} {
  func.func @_se_ib_kernel(%arg0: i32, %arg1: memref<1x16x16x128xbf16, #tpu.memory_space<vmem>>, %arg2: memref<128x256xbf16, #tpu.memory_space<vmem>>, %arg3: memref<9x1x128xf32, #tpu.memory_space<vmem>>, %arg4: memref<128x128xbf16, #tpu.memory_space<vmem>>, %arg5: memref<128x128xbf16, #tpu.memory_space<vmem>>, %arg6: memref<128x128xbf16, #tpu.memory_space<vmem>>, %arg7: memref<8x128xf32, #tpu.memory_space<vmem>>, %arg8: memref<1x16x16x128xf32, #tpu.memory_space<vmem>>, %arg9: memref<18x48x128xbf16, #tpu.memory_space<vmem>>) attributes {dimension_semantics = [#tpu.dimension_semantics<parallel>], iteration_bounds = array<i64: 2>, scalar_prefetch = 0 : i64, scratch_operands = 1 : i64, tpu.core_type = #tpu.core_type<tc>, window_params = [{transform_indices = @transform_0, window_bounds = array<i64: 1, 16, 16, 128>}, {pipeline_mode = #tpu.pipeline_mode<synchronous>, transform_indices = @transform_1, window_bounds = array<i64: 128, 256>}, {pipeline_mode = #tpu.pipeline_mode<synchronous>, transform_indices = @transform_2, window_bounds = array<i64: 9, 1, 128>}, {pipeline_mode = #tpu.pipeline_mode<synchronous>, transform_indices = @transform_3, window_bounds = array<i64: 128, 128>}, {pipeline_mode = #tpu.pipeline_mode<synchronous>, transform_indices = @transform_4, window_bounds = array<i64: 128, 128>}, {pipeline_mode = #tpu.pipeline_mode<synchronous>, transform_indices = @transform_5, window_bounds = array<i64: 128, 128>}, {pipeline_mode = #tpu.pipeline_mode<synchronous>, transform_indices = @transform_6, window_bounds = array<i64: 8, 128>}, {transform_indices = @transform_7, window_bounds = array<i64: 1, 16, 16, 128>}]} {
    %c0 = arith.constant 0 : index
    %c0_0 = arith.constant 0 : index
    %0 = vector.load %arg7[%c0, %c0_0] : memref<8x128xf32, #tpu.memory_space<vmem>>, vector<8x128xf32>
    %c0_1 = arith.constant 0 : index
    %c0_2 = arith.constant 0 : index
    %c0_3 = arith.constant 0 : index
    %c0_4 = arith.constant 0 : index
    %1 = vector.load %arg1[%c0_1, %c0_2, %c0_3, %c0_4] : memref<1x16x16x128xbf16, #tpu.memory_space<vmem>>, vector<1x16x16x128xbf16>
    %2 = vector.shape_cast %1 : vector<1x16x16x128xbf16> to vector<256x128xbf16>
    %c0_5 = arith.constant 0 : index
    %c0_6 = arith.constant 0 : index
    %3 = vector.load %arg2[%c0_5, %c0_6] : memref<128x256xbf16, #tpu.memory_space<vmem>>, vector<128x256xbf16>
    %cst = arith.constant dense<0.000000e+00> : vector<256x256xf32>
    %4 = tpu.matmul %2, %3, %cst {dimension_numbers = #tpu.dot_dimension_numbers<[1], [0], [0], [1], [0, 0, 1, 1], [], []>} : vector<256x128xbf16>, vector<128x256xbf16>, vector<256x256xf32> -> vector<256x256xf32>
    %5 = vector.extract_strided_slice %4 {offsets = [0, 0], sizes = [256, 128], strides = [1, 1]} : vector<256x256xf32> to vector<256x128xf32>
    %6 = vector.extract_strided_slice %0 {offsets = [0, 0], sizes = [1, 128], strides = [1, 1]} : vector<8x128xf32> to vector<1x128xf32>
    %7 = vector.shape_cast %6 : vector<1x128xf32> to vector<128xf32>
    %8 = vector.shape_cast %7 : vector<128xf32> to vector<1x128xf32>
    %9 = vector.broadcast %8 : vector<1x128xf32> to vector<256x128xf32>
    %10 = arith.addf %5, %9 : vector<256x128xf32>
    %cst_7 = arith.constant 3.000000e+00 : f32
    %11 = vector.broadcast %cst_7 : f32 to vector<256x128xf32>
    %12 = arith.addf %10, %11 : vector<256x128xf32>
    %cst_8 = arith.constant 0.000000e+00 : f32
    %cst_9 = arith.constant 6.000000e+00 : f32
    %13 = vector.broadcast %cst_8 : f32 to vector<256x128xf32>
    %14 = arith.maximumf %13, %12 : vector<256x128xf32>
    %15 = vector.broadcast %cst_9 : f32 to vector<256x128xf32>
    %16 = arith.minimumf %15, %14 : vector<256x128xf32>
    %17 = arith.mulf %10, %16 : vector<256x128xf32>
    %cst_10 = arith.constant 0.166666672 : f32
    %18 = vector.broadcast %cst_10 : f32 to vector<256x128xf32>
    %19 = arith.mulf %17, %18 : vector<256x128xf32>
    %20 = vector.extract_strided_slice %4 {offsets = [0, 128], sizes = [256, 128], strides = [1, 1]} : vector<256x256xf32> to vector<256x128xf32>
    %21 = vector.extract_strided_slice %0 {offsets = [5, 0], sizes = [1, 128], strides = [1, 1]} : vector<8x128xf32> to vector<1x128xf32>
    %22 = vector.shape_cast %21 : vector<1x128xf32> to vector<128xf32>
    %23 = vector.shape_cast %22 : vector<128xf32> to vector<1x128xf32>
    %24 = vector.broadcast %23 : vector<1x128xf32> to vector<256x128xf32>
    %25 = arith.addf %20, %24 : vector<256x128xf32>
    %26 = vector.shape_cast %25 : vector<256x128xf32> to vector<1x16x16x128xf32>
    %c0_11 = arith.constant 0 : index
    %c0_12 = arith.constant 0 : index
    %c0_13 = arith.constant 0 : index
    %c0_14 = arith.constant 0 : index
    %27 = vector.load %arg8[%c0_11, %c0_12, %c0_13, %c0_14] : memref<1x16x16x128xf32, #tpu.memory_space<vmem>>, vector<1x16x16x128xf32>
    tpu.vector_store %arg8[%c0_11, %c0_12, %c0_13, %c0_14], %26 {strides = array<i32>} : memref<1x16x16x128xf32, #tpu.memory_space<vmem>>, vector<1x16x16x128xf32>,
    %cst_15 = arith.constant 0.000000e+00 : bf16
    %28 = vector.broadcast %cst_15 : bf16 to vector<1x48x128xbf16>
    %c0_16 = arith.constant 0 : index
    %c0_17 = arith.constant 0 : index
    %c0_18 = arith.constant 0 : index
    %29 = vector.load %arg9[%c0_16, %c0_17, %c0_18] : memref<18x48x128xbf16, #tpu.memory_space<vmem>>, vector<1x48x128xbf16>
    tpu.vector_store %arg9[%c0_16, %c0_17, %c0_18], %28 {strides = array<i32>} : memref<18x48x128xbf16, #tpu.memory_space<vmem>>, vector<1x48x128xbf16>,
    %cst_19 = arith.constant 0.000000e+00 : bf16
    %30 = vector.broadcast %cst_19 : bf16 to vector<1x48x128xbf16>
    %c17 = arith.constant 17 : index
    %c0_20 = arith.constant 0 : index
    %c0_21 = arith.constant 0 : index
    %31 = vector.load %arg9[%c17, %c0_20, %c0_21] : memref<18x48x128xbf16, #tpu.memory_space<vmem>>, vector<1x48x128xbf16>
    tpu.vector_store %arg9[%c17, %c0_20, %c0_21], %30 {strides = array<i32>} : memref<18x48x128xbf16, #tpu.memory_space<vmem>>, vector<1x48x128xbf16>,
    %cst_22 = arith.constant 0.000000e+00 : bf16
    %32 = vector.broadcast %cst_22 : bf16 to vector<16x16x128xbf16>
    %c1 = arith.constant 1 : index
    %c0_23 = arith.constant 0 : index
    %c0_24 = arith.constant 0 : index
    %33 = vector.load %arg9[%c1, %c0_23, %c0_24] : memref<18x48x128xbf16, #tpu.memory_space<vmem>>, vector<16x16x128xbf16>
    tpu.vector_store %arg9[%c1, %c0_23, %c0_24], %32 {strides = array<i32>} : memref<18x48x128xbf16, #tpu.memory_space<vmem>>, vector<16x16x128xbf16>,
    %cst_25 = arith.constant 0.000000e+00 : bf16
    %34 = vector.broadcast %cst_25 : bf16 to vector<16x16x128xbf16>
    %c1_26 = arith.constant 1 : index
    %c32 = arith.constant 32 : index
    %c0_27 = arith.constant 0 : index
    %35 = vector.load %arg9[%c1_26, %c32, %c0_27] : memref<18x48x128xbf16, #tpu.memory_space<vmem>>, vector<16x16x128xbf16>
    tpu.vector_store %arg9[%c1_26, %c32, %c0_27], %34 {strides = array<i32>} : memref<18x48x128xbf16, #tpu.memory_space<vmem>>, vector<16x16x128xbf16>,
    %36 = vector.shape_cast %19 : vector<256x128xf32> to vector<16x16x128xf32>
    %37 = arith.truncf %36 : vector<16x16x128xf32> to vector<16x16x128xbf16>
    %c1_28 = arith.constant 1 : index
    %c16 = arith.constant 16 : index
    %c0_29 = arith.constant 0 : index
    %38 = vector.load %arg9[%c1_28, %c16, %c0_29] : memref<18x48x128xbf16, #tpu.memory_space<vmem>>, vector<16x16x128xbf16>
    tpu.vector_store %arg9[%c1_28, %c16, %c0_29], %37 {strides = array<i32>} : memref<18x48x128xbf16, #tpu.memory_space<vmem>>, vector<16x16x128xbf16>,
    %cst_30 = arith.constant 0.000000e+00 : f32
    %39 = vector.broadcast %cst_30 : f32 to vector<16x16x128xf32>
    %c0_31 = arith.constant 0 : index
    %c0_32 = arith.constant 0 : index
    %c0_33 = arith.constant 0 : index
    %40 = vector.load %arg3[%c0_31, %c0_32, %c0_33] : memref<9x1x128xf32, #tpu.memory_space<vmem>>, vector<1x1x128xf32>
    %41 = vector.shape_cast %40 : vector<1x1x128xf32> to vector<1x128xf32>
    %c0_34 = arith.constant 0 : index
    %c15 = arith.constant 15 : index
    %c0_35 = arith.constant 0 : index
    %42 = vector.load %arg9[%c0_34, %c15, %c0_35] : memref<18x48x128xbf16, #tpu.memory_space<vmem>>, vector<16x16x128xbf16>
    %43 = arith.extf %42 : vector<16x16x128xbf16> to vector<16x16x128xf32>
    %44 = vector.shape_cast %41 : vector<1x128xf32> to vector<1x1x128xf32>
    %45 = vector.broadcast %44 : vector<1x1x128xf32> to vector<16x16x128xf32>
    %46 = arith.mulf %43, %45 : vector<16x16x128xf32>
    %47 = arith.addf %39, %46 : vector<16x16x128xf32>
    %c1_36 = arith.constant 1 : index
    %c0_37 = arith.constant 0 : index
    %c0_38 = arith.constant 0 : index
    %48 = vector.load %arg3[%c1_36, %c0_37, %c0_38] : memref<9x1x128xf32, #tpu.memory_space<vmem>>, vector<1x1x128xf32>
    %49 = vector.shape_cast %48 : vector<1x1x128xf32> to vector<1x128xf32>
    %c0_39 = arith.constant 0 : index
    %c16_40 = arith.constant 16 : index
    %c0_41 = arith.constant 0 : index
    %50 = vector.load %arg9[%c0_39, %c16_40, %c0_41] : memref<18x48x128xbf16, #tpu.memory_space<vmem>>, vector<16x16x128xbf16>
    %51 = arith.extf %50 : vector<16x16x128xbf16> to vector<16x16x128xf32>
    %52 = vector.shape_cast %49 : vector<1x128xf32> to vector<1x1x128xf32>
    %53 = vector.broadcast %52 : vector<1x1x128xf32> to vector<16x16x128xf32>
    %54 = arith.mulf %51, %53 : vector<16x16x128xf32>
    %55 = arith.addf %47, %54 : vector<16x16x128xf32>
    %c2 = arith.constant 2 : index
    %c0_42 = arith.constant 0 : index
    %c0_43 = arith.constant 0 : index
    %56 = vector.load %arg3[%c2, %c0_42, %c0_43] : memref<9x1x128xf32, #tpu.memory_space<vmem>>, vector<1x1x128xf32>
    %57 = vector.shape_cast %56 : vector<1x1x128xf32> to vector<1x128xf32>
    %c0_44 = arith.constant 0 : index
    %c17_45 = arith.constant 17 : index
    %c0_46 = arith.constant 0 : index
    %58 = vector.load %arg9[%c0_44, %c17_45, %c0_46] : memref<18x48x128xbf16, #tpu.memory_space<vmem>>, vector<16x16x128xbf16>
    %59 = arith.extf %58 : vector<16x16x128xbf16> to vector<16x16x128xf32>
    %60 = vector.shape_cast %57 : vector<1x128xf32> to vector<1x1x128xf32>
    %61 = vector.broadcast %60 : vector<1x1x128xf32> to vector<16x16x128xf32>
    %62 = arith.mulf %59, %61 : vector<16x16x128xf32>
    %63 = arith.addf %55, %62 : vector<16x16x128xf32>
    %c3 = arith.constant 3 : index
    %c0_47 = arith.constant 0 : index
    %c0_48 = arith.constant 0 : index
    %64 = vector.load %arg3[%c3, %c0_47, %c0_48] : memref<9x1x128xf32, #tpu.memory_space<vmem>>, vector<1x1x128xf32>
    %65 = vector.shape_cast %64 : vector<1x1x128xf32> to vector<1x128xf32>
    %c1_49 = arith.constant 1 : index
    %c15_50 = arith.constant 15 : index
    %c0_51 = arith.constant 0 : index
    %66 = vector.load %arg9[%c1_49, %c15_50, %c0_51] : memref<18x48x128xbf16, #tpu.memory_space<vmem>>, vector<16x16x128xbf16>
    %67 = arith.extf %66 : vector<16x16x128xbf16> to vector<16x16x128xf32>
    %68 = vector.shape_cast %65 : vector<1x128xf32> to vector<1x1x128xf32>
    %69 = vector.broadcast %68 : vector<1x1x128xf32> to vector<16x16x128xf32>
    %70 = arith.mulf %67, %69 : vector<16x16x128xf32>
    %71 = arith.addf %63, %70 : vector<16x16x128xf32>
    %c4 = arith.constant 4 : index
    %c0_52 = arith.constant 0 : index
    %c0_53 = arith.constant 0 : index
    %72 = vector.load %arg3[%c4, %c0_52, %c0_53] : memref<9x1x128xf32, #tpu.memory_space<vmem>>, vector<1x1x128xf32>
    %73 = vector.shape_cast %72 : vector<1x1x128xf32> to vector<1x128xf32>
    %c1_54 = arith.constant 1 : index
    %c16_55 = arith.constant 16 : index
    %c0_56 = arith.constant 0 : index
    %74 = vector.load %arg9[%c1_54, %c16_55, %c0_56] : memref<18x48x128xbf16, #tpu.memory_space<vmem>>, vector<16x16x128xbf16>
    %75 = arith.extf %74 : vector<16x16x128xbf16> to vector<16x16x128xf32>
    %76 = vector.shape_cast %73 : vector<1x128xf32> to vector<1x1x128xf32>
    %77 = vector.broadcast %76 : vector<1x1x128xf32> to vector<16x16x128xf32>
    %78 = arith.mulf %75, %77 : vector<16x16x128xf32>
    %79 = arith.addf %71, %78 : vector<16x16x128xf32>
    %c5 = arith.constant 5 : index
    %c0_57 = arith.constant 0 : index
    %c0_58 = arith.constant 0 : index
    %80 = vector.load %arg3[%c5, %c0_57, %c0_58] : memref<9x1x128xf32, #tpu.memory_space<vmem>>, vector<1x1x128xf32>
    %81 = vector.shape_cast %80 : vector<1x1x128xf32> to vector<1x128xf32>
    %c1_59 = arith.constant 1 : index
    %c17_60 = arith.constant 17 : index
    %c0_61 = arith.constant 0 : index
    %82 = vector.load %arg9[%c1_59, %c17_60, %c0_61] : memref<18x48x128xbf16, #tpu.memory_space<vmem>>, vector<16x16x128xbf16>
    %83 = arith.extf %82 : vector<16x16x128xbf16> to vector<16x16x128xf32>
    %84 = vector.shape_cast %81 : vector<1x128xf32> to vector<1x1x128xf32>
    %85 = vector.broadcast %84 : vector<1x1x128xf32> to vector<16x16x128xf32>
    %86 = arith.mulf %83, %85 : vector<16x16x128xf32>
    %87 = arith.addf %79, %86 : vector<16x16x128xf32>
    %c6 = arith.constant 6 : index
    %c0_62 = arith.constant 0 : index
    %c0_63 = arith.constant 0 : index
    %88 = vector.load %arg3[%c6, %c0_62, %c0_63] : memref<9x1x128xf32, #tpu.memory_space<vmem>>, vector<1x1x128xf32>
    %89 = vector.shape_cast %88 : vector<1x1x128xf32> to vector<1x128xf32>
    %c2_64 = arith.constant 2 : index
    %c15_65 = arith.constant 15 : index
    %c0_66 = arith.constant 0 : index
    %90 = vector.load %arg9[%c2_64, %c15_65, %c0_66] : memref<18x48x128xbf16, #tpu.memory_space<vmem>>, vector<16x16x128xbf16>
    %91 = arith.extf %90 : vector<16x16x128xbf16> to vector<16x16x128xf32>
    %92 = vector.shape_cast %89 : vector<1x128xf32> to vector<1x1x128xf32>
    %93 = vector.broadcast %92 : vector<1x1x128xf32> to vector<16x16x128xf32>
    %94 = arith.mulf %91, %93 : vector<16x16x128xf32>
    %95 = arith.addf %87, %94 : vector<16x16x128xf32>
    %c7 = arith.constant 7 : index
    %c0_67 = arith.constant 0 : index
    %c0_68 = arith.constant 0 : index
    %96 = vector.load %arg3[%c7, %c0_67, %c0_68] : memref<9x1x128xf32, #tpu.memory_space<vmem>>, vector<1x1x128xf32>
    %97 = vector.shape_cast %96 : vector<1x1x128xf32> to vector<1x128xf32>
    %c2_69 = arith.constant 2 : index
    %c16_70 = arith.constant 16 : index
    %c0_71 = arith.constant 0 : index
    %98 = vector.load %arg9[%c2_69, %c16_70, %c0_71] : memref<18x48x128xbf16, #tpu.memory_space<vmem>>, vector<16x16x128xbf16>
    %99 = arith.extf %98 : vector<16x16x128xbf16> to vector<16x16x128xf32>
    %100 = vector.shape_cast %97 : vector<1x128xf32> to vector<1x1x128xf32>
    %101 = vector.broadcast %100 : vector<1x1x128xf32> to vector<16x16x128xf32>
    %102 = arith.mulf %99, %101 : vector<16x16x128xf32>
    %103 = arith.addf %95, %102 : vector<16x16x128xf32>
    %c8 = arith.constant 8 : index
    %c0_72 = arith.constant 0 : index
    %c0_73 = arith.constant 0 : index
    %104 = vector.load %arg3[%c8, %c0_72, %c0_73] : memref<9x1x128xf32, #tpu.memory_space<vmem>>, vector<1x1x128xf32>
    %105 = vector.shape_cast %104 : vector<1x1x128xf32> to vector<1x128xf32>
    %c2_74 = arith.constant 2 : index
    %c17_75 = arith.constant 17 : index
    %c0_76 = arith.constant 0 : index
    %106 = vector.load %arg9[%c2_74, %c17_75, %c0_76] : memref<18x48x128xbf16, #tpu.memory_space<vmem>>, vector<16x16x128xbf16>
    %107 = arith.extf %106 : vector<16x16x128xbf16> to vector<16x16x128xf32>
    %108 = vector.shape_cast %105 : vector<1x128xf32> to vector<1x1x128xf32>
    %109 = vector.broadcast %108 : vector<1x1x128xf32> to vector<16x16x128xf32>
    %110 = arith.mulf %107, %109 : vector<16x16x128xf32>
    %111 = arith.addf %103, %110 : vector<16x16x128xf32>
    %112 = vector.extract_strided_slice %0 {offsets = [1, 0], sizes = [1, 128], strides = [1, 1]} : vector<8x128xf32> to vector<1x128xf32>
    %113 = vector.shape_cast %112 : vector<1x128xf32> to vector<128xf32>
    %114 = vector.shape_cast %113 : vector<128xf32> to vector<1x1x128xf32>
    %115 = vector.broadcast %114 : vector<1x1x128xf32> to vector<16x16x128xf32>
    %116 = arith.addf %111, %115 : vector<16x16x128xf32>
    %cst_77 = arith.constant 3.000000e+00 : f32
    %117 = vector.broadcast %cst_77 : f32 to vector<16x16x128xf32>
    %118 = arith.addf %116, %117 : vector<16x16x128xf32>
    %cst_78 = arith.constant 0.000000e+00 : f32
    %cst_79 = arith.constant 6.000000e+00 : f32
    %119 = vector.broadcast %cst_78 : f32 to vector<16x16x128xf32>
    %120 = arith.maximumf %119, %118 : vector<16x16x128xf32>
    %121 = vector.broadcast %cst_79 : f32 to vector<16x16x128xf32>
    %122 = arith.minimumf %121, %120 : vector<16x16x128xf32>
    %123 = arith.mulf %116, %122 : vector<16x16x128xf32>
    %cst_80 = arith.constant 0.166666672 : f32
    %124 = vector.broadcast %cst_80 : f32 to vector<16x16x128xf32>
    %125 = arith.mulf %123, %124 : vector<16x16x128xf32>
    %cst_81 = arith.constant dense<0.000000e+00> : vector<128xf32>
    %126 = vector.multi_reduction <add>, %125, %cst_81 [0, 1] : vector<16x16x128xf32> to vector<128xf32>
    %cst_82 = arith.constant 2.560000e+02 : f32
    %127 = vector.broadcast %cst_82 : f32 to vector<128xf32>
    %128 = arith.divf %126, %127 : vector<128xf32>
    %129 = vector.shape_cast %128 : vector<128xf32> to vector<1x128xf32>
    %130 = arith.truncf %129 : vector<1x128xf32> to vector<1x128xbf16>
    %c0_83 = arith.constant 0 : index
    %c0_84 = arith.constant 0 : index
    %131 = vector.load %arg4[%c0_83, %c0_84] : memref<128x128xbf16, #tpu.memory_space<vmem>>, vector<128x128xbf16>
    %cst_85 = arith.constant dense<0.000000e+00> : vector<1x128xf32>
    %132 = tpu.matmul %130, %131, %cst_85 {dimension_numbers = #tpu.dot_dimension_numbers<[1], [0], [0], [1], [0, 0, 1, 1], [], []>} : vector<1x128xbf16>, vector<128x128xbf16>, vector<1x128xf32> -> vector<1x128xf32>
    %133 = vector.extract_strided_slice %0 {offsets = [2, 0], sizes = [1, 128], strides = [1, 1]} : vector<8x128xf32> to vector<1x128xf32>
    %134 = vector.shape_cast %133 : vector<1x128xf32> to vector<128xf32>
    %135 = vector.shape_cast %134 : vector<128xf32> to vector<1x128xf32>
    %136 = arith.addf %132, %135 : vector<1x128xf32>
    %cst_86 = arith.constant 0.000000e+00 : f32
    %cst_87 = arith.constant 6.000000e+00 : f32
    %137 = vector.broadcast %cst_86 : f32 to vector<1x128xf32>
    %138 = arith.maximumf %137, %136 : vector<1x128xf32>
    %139 = vector.broadcast %cst_87 : f32 to vector<1x128xf32>
    %140 = arith.minimumf %139, %138 : vector<1x128xf32>
    %141 = arith.truncf %140 : vector<1x128xf32> to vector<1x128xbf16>
    %c0_88 = arith.constant 0 : index
    %c0_89 = arith.constant 0 : index
    %142 = vector.load %arg5[%c0_88, %c0_89] : memref<128x128xbf16, #tpu.memory_space<vmem>>, vector<128x128xbf16>
    %cst_90 = arith.constant dense<0.000000e+00> : vector<1x128xf32>
    %143 = tpu.matmul %141, %142, %cst_90 {dimension_numbers = #tpu.dot_dimension_numbers<[1], [0], [0], [1], [0, 0, 1, 1], [], []>} : vector<1x128xbf16>, vector<128x128xbf16>, vector<1x128xf32> -> vector<1x128xf32>
    %144 = vector.extract_strided_slice %0 {offsets = [3, 0], sizes = [1, 128], strides = [1, 1]} : vector<8x128xf32> to vector<1x128xf32>
    %145 = vector.shape_cast %144 : vector<1x128xf32> to vector<128xf32>
    %146 = vector.shape_cast %145 : vector<128xf32> to vector<1x128xf32>
    %147 = arith.addf %143, %146 : vector<1x128xf32>
    %cst_91 = arith.constant 3.000000e+00 : f32
    %148 = vector.broadcast %cst_91 : f32 to vector<1x128xf32>
    %149 = arith.addf %147, %148 : vector<1x128xf32>
    %cst_92 = arith.constant 0.000000e+00 : f32
    %cst_93 = arith.constant 6.000000e+00 : f32
    %150 = vector.broadcast %cst_92 : f32 to vector<1x128xf32>
    %151 = arith.maximumf %150, %149 : vector<1x128xf32>
    %152 = vector.broadcast %cst_93 : f32 to vector<1x128xf32>
    %153 = arith.minimumf %152, %151 : vector<1x128xf32>
    %154 = arith.mulf %147, %153 : vector<1x128xf32>
    %cst_94 = arith.constant 0.166666672 : f32
    %155 = vector.broadcast %cst_94 : f32 to vector<1x128xf32>
    %156 = arith.mulf %154, %155 : vector<1x128xf32>
    %157 = vector.shape_cast %156 : vector<1x128xf32> to vector<1x1x128xf32>
    %158 = vector.broadcast %157 : vector<1x1x128xf32> to vector<16x16x128xf32>
    %159 = arith.mulf %125, %158 : vector<16x16x128xf32>
    %160 = vector.shape_cast %159 : vector<16x16x128xf32> to vector<256x128xf32>
    %161 = arith.truncf %160 : vector<256x128xf32> to vector<256x128xbf16>
    %c0_95 = arith.constant 0 : index
    %c0_96 = arith.constant 0 : index
    %162 = vector.load %arg6[%c0_95, %c0_96] : memref<128x128xbf16, #tpu.memory_space<vmem>>, vector<128x128xbf16>
    %cst_97 = arith.constant dense<0.000000e+00> : vector<256x128xf32>
    %163 = tpu.matmul %161, %162, %cst_97 {dimension_numbers = #tpu.dot_dimension_numbers<[1], [0], [0], [1], [0, 0, 1, 1], [], []>} : vector<256x128xbf16>, vector<128x128xbf16>, vector<256x128xf32> -> vector<256x128xf32>
    %164 = vector.extract_strided_slice %0 {offsets = [4, 0], sizes = [1, 128], strides = [1, 1]} : vector<8x128xf32> to vector<1x128xf32>
    %165 = vector.shape_cast %164 : vector<1x128xf32> to vector<128xf32>
    %166 = vector.shape_cast %165 : vector<128xf32> to vector<1x128xf32>
    %167 = vector.broadcast %166 : vector<1x128xf32> to vector<256x128xf32>
    %168 = arith.addf %163, %167 : vector<256x128xf32>
    %cst_98 = arith.constant 3.000000e+00 : f32
    %169 = vector.broadcast %cst_98 : f32 to vector<256x128xf32>
    %170 = arith.addf %168, %169 : vector<256x128xf32>
    %cst_99 = arith.constant 0.000000e+00 : f32
    %cst_100 = arith.constant 6.000000e+00 : f32
    %171 = vector.broadcast %cst_99 : f32 to vector<256x128xf32>
    %172 = arith.maximumf %171, %170 : vector<256x128xf32>
    %173 = vector.broadcast %cst_100 : f32 to vector<256x128xf32>
    %174 = arith.minimumf %173, %172 : vector<256x128xf32>
    %175 = arith.mulf %168, %174 : vector<256x128xf32>
    %cst_101 = arith.constant 0.166666672 : f32
    %176 = vector.broadcast %cst_101 : f32 to vector<256x128xf32>
    %177 = arith.mulf %175, %176 : vector<256x128xf32>
    %178 = vector.shape_cast %177 : vector<256x128xf32> to vector<1x16x16x128xf32>
    %c0_102 = arith.constant 0 : index
    %c0_103 = arith.constant 0 : index
    %c0_104 = arith.constant 0 : index
    %c0_105 = arith.constant 0 : index
    %179 = vector.load %arg8[%c0_102, %c0_103, %c0_104, %c0_105] : memref<1x16x16x128xf32, #tpu.memory_space<vmem>>, vector<1x16x16x128xf32>
    %180 = arith.addf %179, %178 : vector<1x16x16x128xf32>
    %c0_106 = arith.constant 0 : index
    %c0_107 = arith.constant 0 : index
    %c0_108 = arith.constant 0 : index
    %c0_109 = arith.constant 0 : index
    %181 = vector.load %arg8[%c0_106, %c0_107, %c0_108, %c0_109] : memref<1x16x16x128xf32, #tpu.memory_space<vmem>>, vector<1x16x16x128xf32>
    tpu.vector_store %arg8[%c0_106, %c0_107, %c0_108, %c0_109], %180 {strides = array<i32>} : memref<1x16x16x128xf32, #tpu.memory_space<vmem>>, vector<1x16x16x128xf32>,
    return
  }
  func.func @transform_0(%arg0: i32) -> (i32, i32, i32, i32) {
    %c0_i32 = arith.constant 0 : i32
    %c0_i32_0 = arith.constant 0 : i32
    %c0_i32_1 = arith.constant 0 : i32
    %c0_i32_2 = arith.constant 0 : i32
    return %arg0, %c0_i32, %c0_i32_0, %c0_i32_1 : i32, i32, i32, i32
  }
  func.func @transform_1(%arg0: i32) -> (i32, i32) {
    %c0_i32 = arith.constant 0 : i32
    %c0_i32_0 = arith.constant 0 : i32
    %c0_i32_1 = arith.constant 0 : i32
    return %c0_i32, %c0_i32_0 : i32, i32
  }
  func.func @transform_2(%arg0: i32) -> (i32, i32, i32) {
    %c0_i32 = arith.constant 0 : i32
    %c0_i32_0 = arith.constant 0 : i32
    %c0_i32_1 = arith.constant 0 : i32
    %c0_i32_2 = arith.constant 0 : i32
    return %c0_i32, %c0_i32_0, %c0_i32_1 : i32, i32, i32
  }
  func.func @transform_3(%arg0: i32) -> (i32, i32) {
    %c0_i32 = arith.constant 0 : i32
    %c0_i32_0 = arith.constant 0 : i32
    %c0_i32_1 = arith.constant 0 : i32
    return %c0_i32, %c0_i32_0 : i32, i32
  }
  func.func @transform_4(%arg0: i32) -> (i32, i32) {
    %c0_i32 = arith.constant 0 : i32
    %c0_i32_0 = arith.constant 0 : i32
    %c0_i32_1 = arith.constant 0 : i32
    return %c0_i32, %c0_i32_0 : i32, i32
  }
  func.func @transform_5(%arg0: i32) -> (i32, i32) {
    %c0_i32 = arith.constant 0 : i32
    %c0_i32_0 = arith.constant 0 : i32
    %c0_i32_1 = arith.constant 0 : i32
    return %c0_i32, %c0_i32_0 : i32, i32
  }
  func.func @transform_6(%arg0: i32) -> (i32, i32) {
    %c0_i32 = arith.constant 0 : i32
    %c0_i32_0 = arith.constant 0 : i32
    %c0_i32_1 = arith.constant 0 : i32
    return %c0_i32, %c0_i32_0 : i32, i32
  }
  func.func @transform_7(%arg0: i32) -> (i32, i32, i32, i32) {
    %c0_i32 = arith.constant 0 : i32
    %c0_i32_0 = arith.constant 0 : i32
    %c0_i32_1 = arith.constant 0 : i32
    %c0_i32_2 = arith.constant 0 : i32
    return %arg0, %c0_i32, %c0_i32_0, %c0_i32_1 : i32, i32, i32, i32
  }
}

</mosaic_0001>

<bundles_post_ra>
// kernel: tpu_custom_call.1
= control target key start
LH: loop header
LB: loop body
LE: loop exit
PB: predicated region body
PF: predicated region fallthrough
CT: control target
= control target key end

     0   :  { %s9300_s0 = inlined_call_operand.hbm [shape: bf16[2,16,16,128], index: 0, kind: input, shape index: {}]   ;;  %s9301_s1 = inlined_call_operand.hbm [shape: bf16[128,256], index: 1, kind: input, shape index: {}]   ;;  %s9302_s2 = inlined_call_operand.hbm [shape: f32[9,1,128], index: 2, kind: input, shape index: {}]   ;;  %s9303_s3 = inlined_call_operand.hbm [shape: bf16[128,128], index: 3, kind: input, shape index: {}]   ;;  %s9304_s4 = inlined_call_operand.hbm [shape: bf16[128,128], index: 4, kind: input, shape index: {}]   ;;  %s9305_s5 = inlined_call_operand.hbm [shape: bf16[128,128], index: 5, kind: input, shape index: {}]   ;;  %s9306_s6 = inlined_call_operand.vmem [shape: f32[8,128], index: 6, kind: input, shape index: {}]   ;;  %s9307_s7 = inlined_call_operand.hbm [shape: f32[2,16,16,128], index: 7, kind: output, shape index: {}]  }
   0x1   :  { %9394 = sst [smem:[#allocation82_spill]] %s9301_s1 }
   0x2   :  { %12 = vsyncpa [#allocation4], 0 }
   0x3   :  { %14 = vsyncpa [#allocation4 + $0x1], 0 }
   0x4   :  { %15 = vsyncpa [#allocation7], 0 }
   0x5   :  { %16 = vsyncpa [#allocation10], 0 }
   0x6   :  { %17 = vsyncpa [#allocation13], 0 }
   0x7   :  { %18 = vsyncpa [#allocation5], 0 }
   0x8   :  { %20 = vsyncpa [#allocation5 + $0x1], 0  ;;  %s5984_s24 = smov 0   ;;  %s5986_s25 = smov 0  }
   0x9   :  { %s5988_s26 = smov 0   ;;  %s5990_s27 = smov 0  }
   0xa LB: > { %s5926_s28 = smov [#allocation6]   ;;  %s6005_s30 = sadd.s32 4294967295, %s5924_s27   ;;  %s5924_s27 = sphi %s5990_s27, %s9714_s27   ;;  %s5920_s26 = sphi %s5988_s26, %s9713_s26   ;;  %s5916_s25 = sphi %s5986_s25, %s9712_s25   ;;  %s5912_s24 = sphi %s5984_s24, %s9711_s24  }
   0xb   : > { %s221_s29 = sshll.u32 %s5926_s28, 4  ;;  %p5259_p0 = scmp.ge.s32.totalorder %s5924_s27, 1  ;;  %s6010_s29 = int_to_ptr.vmem [resolvable:$true] %s221_s29 }
   0xc   : > { %p9308_p1 = scmp.eq.s32.totalorder %s6005_s30, 0  ;;  %p209_p2 = scmp.lt.s32.totalorder %s5924_s27, 3 }
   0xd   : > { %s5927_s9 = smov [#allocation9]   ;;  %s5928_s12 = smov [#allocation8]  }
   0xe   : > { %p6012_p3 = pnand %p5259_p0, %p209_p2  ;;  %s247_s10 = sshll.u32 %s5927_s9, 4  ;;  %s6025_s10 = int_to_ptr.vmem [resolvable:$true] %s247_s10 }
   0xf   : > { %s6027_s13 = sshll.u32 %s5928_s12, 4  ;;  %s9397_s1 = sld [smem:[#allocation82_spill]]  ;;  %s235_s13 = int_to_ptr.vmem [resolvable:$true] %s6027_s13 }
  0x10   : > { %s9395_s8 = scalar_select %p6012_p3, 1, 0 }
  0x11   : > { %p5503_p5 = pneg %p6012_p3 }
  0x13   : > { %p6021_p6 = pnand %p5503_p5, %p9308_p1 }
  0x15   : > { %s5676_s16 = scalar_lea.hbm %s9397_s1, 2048  ;;  %p6037_p8 = pneg %p6021_p6 }
  0x16   : > { %p5677_p7 = scmp.ne.s32.totalorder %s9397_s1, %s5676_s16  ;;  %p5683_p11 = scmp.lt.u32.totalorder %s5676_s16, %s9397_s1 }
  0x18   : > { %p5679_p9 = pnand %p6037_p8, %p5677_p7 }
  0x1a   : > { %p5680_p10 = pneg %p5679_p9 }
  0x1c   : > { %p5685_p12 = pnand %p5683_p11, %p5680_p10 }
  0x1e   : > { %5688 = shalt.err (!%p5685_p12)
}
  0x1f   : > { %s5689_s22 = scalar_lea.vmem %s6010_s29, 2048  ;;  %p5697_p5 = scmp.lt.s32.totalorder %s6010_s29, %s6010_s29 }
  0x20   : > { %p5690_p13 = scmp.ne.s32.totalorder %s6010_s29, %s5689_s22  ;;  %p5698_p4 = scmp.lt.s32.totalorder %s5689_s22, %s5689_s22 }
  0x22   : > { %p5692_p0 = pnand %p5690_p13, %p6037_p8  ;;  %p5699_p7 = por %p5698_p4, %p5697_p5 }
  0x24   : > { %p5693_p2 = pneg %p5692_p0 }
  0x26   : > { %p5700_p9 = pnand %p5699_p7, %p5693_p2 }
  0x28   : > { %5703 = shalt.err (!%p5700_p9)
}
  0x29   : > { %s5929_s23 = smov 128   ;;  %s5930_s28 = smov 8  }
  0x2a   : > { %5506 = dma.hbm_to_vmem [thread:$0]  (!%p6021_p6), %s9397_s1, 2048, %s6010_s29, [#allocation7], %s5929_s23, %s5929_s23, %s5930_s28  }
  0x2b   : > { %s5704_s16 = scalar_lea.hbm %s9303_s3, 1024 }
  0x2c   : > { %p5705_p4 = scmp.ne.s32.totalorder %s9303_s3, %s5704_s16  ;;  %p5711_p12 = scmp.lt.u32.totalorder %s5704_s16, %s9303_s3 }
  0x2e   : > { %p5707_p10 = pnand %p5705_p4, %p6037_p8 }
  0x30   : > { %p5708_p11 = pneg %p5707_p10 }
  0x32   : > { %p5713_p13 = pnand %p5711_p12, %p5708_p11 }
  0x34   : > { %5716 = shalt.err (!%p5713_p13)
}
  0x35   : > { %s5717_s29 = scalar_lea.vmem %s6025_s10, 1024  ;;  %p5725_p7 = scmp.lt.s32.totalorder %s6025_s10, %s6025_s10 }
  0x36   : > { %p5718_p0 = scmp.ne.s32.totalorder %s6025_s10, %s5717_s29  ;;  %p5726_p9 = scmp.lt.s32.totalorder %s5717_s29, %s5717_s29 }
  0x38   : > { %p5720_p2 = pnand %p5718_p0, %p6037_p8  ;;  %p5727_p4 = por %p5726_p9, %p5725_p7 }
  0x3a   : > { %p5721_p5 = pneg %p5720_p2 }
  0x3c   : > { %p5728_p10 = pnand %p5727_p4, %p5721_p5 }
  0x3e   : > { %5731 = shalt.err (!%p5728_p10)
}
  0x3f   : > { %s9310_s22 = smov 64   ;;  %s9312_s23 = smov 4  }
  0x40   : > { %5512 = dma.hbm_to_vmem [thread:$0]  (!%p6021_p6), %s9303_s3, 1024, %s6025_s10, [#allocation10], %s9310_s22, %s9310_s22, %s9312_s23  }
  0x41   : > { %s5732_s15 = scalar_lea.hbm %s9302_s2, 144 }
  0x42   : > { %p5733_p11 = scmp.ne.s32.totalorder %s9302_s2, %s5732_s15  ;;  %p5739_p0 = scmp.lt.u32.totalorder %s5732_s15, %s9302_s2 }
  0x44   : > { %p5735_p12 = pnand %p5733_p11, %p6037_p8 }
  0x46   : > { %p5736_p13 = pneg %p5735_p12 }
  0x48   : > { %p5741_p2 = pnand %p5739_p0, %p5736_p13 }
  0x4a   : > { %5744 = shalt.err (!%p5741_p2)
}
  0x4b   : > { %s5745_s21 = scalar_lea.vmem %s235_s13, 144  ;;  %s5752_s10 = scalar_lea.vmem %s235_s13, 160 }
  0x4c   : > { %p5746_p5 = scmp.ne.s32.totalorder %s235_s13, %s5745_s21  ;;  %p5753_p4 = scmp.lt.s32.totalorder %s235_s13, %s235_s13 }
  0x4d   : > { %p5754_p10 = scmp.lt.s32.totalorder %s5752_s10, %s5745_s21 }
  0x4e   : > { %p5748_p7 = pnand %p5746_p5, %p6037_p8 }
  0x4f   : > { %p5755_p1 = por %p5754_p10, %p5753_p4 }
  0x50   : > { %p5749_p9 = pneg %p5748_p7 }
  0x52   : > { %p5756_p3 = pnand %p5755_p1, %p5749_p9 }
  0x54   : > { %5759 = shalt.err (!%p5756_p3)
}
  0x55   : > { %s5933_s29 = smov 16   ;;  %s5934_s28 = smov 1  }
  0x56   : > { %5509 = dma.hbm_to_vmem [thread:$0]  (!%p6021_p6), %s9302_s2, 144, %s235_s13, [#allocation7], %s5933_s29, %s5933_s29, %s5934_s28  }
  0x57   : > { %s5935_s14 = smov [#allocation11]   ;;  %s5936_s16 = smov [#allocation12]  }
  0x58   : > { %s260_s15 = sshll.u32 %s5935_s14, 4  ;;  %s273_s17 = sshll.u32 %s5936_s16, 4  ;;  %s261_s15 = int_to_ptr.vmem [resolvable:$true] %s260_s15  ;;  %s274_s17 = int_to_ptr.vmem [resolvable:$true] %s273_s17 }
  0x59   : > { %s5760_s21 = scalar_lea.hbm %s9304_s4, 1024 }
  0x5a   : > { %p5761_p1 = scmp.ne.s32.totalorder %s9304_s4, %s5760_s21  ;;  %p5767_p12 = scmp.lt.u32.totalorder %s5760_s21, %s9304_s4 }
  0x5c   : > { %p5763_p3 = pnand %p5761_p1, %p6037_p8 }
  0x5e   : > { %p5764_p11 = pneg %p5763_p3 }
  0x60   : > { %p5769_p13 = pnand %p5767_p12, %p5764_p11 }
  0x62   : > { %5772 = shalt.err (!%p5769_p13)
}
  0x63   : > { %s5773_s13 = scalar_lea.vmem %s261_s15, 1024  ;;  %p5781_p7 = scmp.lt.s32.totalorder %s261_s15, %s261_s15 }
  0x64   : > { %p5774_p0 = scmp.ne.s32.totalorder %s261_s15, %s5773_s13  ;;  %p5782_p9 = scmp.lt.s32.totalorder %s5773_s13, %s5773_s13 }
  0x66   : > { %p5776_p2 = pnand %p5774_p0, %p6037_p8  ;;  %p5783_p4 = por %p5782_p9, %p5781_p7 }
  0x68   : > { %p5777_p5 = pneg %p5776_p2 }
  0x6a   : > { %p5784_p10 = pnand %p5783_p4, %p5777_p5 }
  0x6c   : > { %5787 = shalt.err (!%p5784_p10)
}
  0x6d   : > { %s9399_s22 = smov 4   ;;  %s9400_s29 = smov 64  }
  0x6e   : > { %5515 = dma.hbm_to_vmem [thread:$0]  (!%p6021_p6), %s9304_s4, 1024, %s261_s15, [#allocation10], %s9400_s29, %s9400_s29, %s9399_s22  }
  0x6f   : > { %s5788_s12 = scalar_lea.hbm %s9305_s5, 1024 }
  0x70   : > { %p5789_p1 = scmp.ne.s32.totalorder %s9305_s5, %s5788_s12  ;;  %p5795_p12 = scmp.lt.u32.totalorder %s5788_s12, %s9305_s5 }
  0x72   : > { %p5791_p3 = pnand %p5789_p1, %p6037_p8 }
  0x74   : > { %p5792_p11 = pneg %p5791_p3 }
  0x76   : > { %p5797_p13 = pnand %p5795_p12, %p5792_p11 }
  0x78   : > { %5800 = shalt.err (!%p5797_p13)
}
  0x79   : > { %s5801_s21 = scalar_lea.vmem %s274_s17, 1024  ;;  %p5809_p7 = scmp.lt.s32.totalorder %s274_s17, %s274_s17 }
  0x7a   : > { %p5802_p0 = scmp.ne.s32.totalorder %s274_s17, %s5801_s21  ;;  %p5810_p9 = scmp.lt.s32.totalorder %s5801_s21, %s5801_s21 }
  0x7c   : > { %p5804_p2 = pnand %p5802_p0, %p6037_p8  ;;  %p5811_p4 = por %p5810_p9, %p5809_p7 }
  0x7e   : > { %p5805_p5 = pneg %p5804_p2 }
  0x80   : > { %p5812_p10 = pnand %p5811_p4, %p5805_p5 }
  0x82   : > { %5815 = shalt.err (!%p5812_p10)
}
  0x83   : > { %5518 = dma.hbm_to_vmem [thread:$0]  (!%p6021_p6), %s9305_s5, 1024, %s274_s17, [#allocation13], %s9400_s29, %s9400_s29, %s9399_s22  }
  0x84   : > { %s5258_s11 = sadd.s32 4294967294, %s5924_s27   ;;  %s6147_s19 = sadd.s32 1, %s5924_s27  }
  0x85   : > { %s33_s13 = sadd.s32 1, %s5920_s26  ;;  %s30_s1 = ssub.s32 %s5924_s27, %s6147_s19 }
  0x86   : > { %p40_p8 = scmp.ne.s32.totalorder %s5920_s26, %s5916_s25  ;;  %p31_p1 = scmp.eq.s32.totalorder %s30_s1, 0 }
  0x87   : > { %p41_p3 = scmp.eq.s32.totalorder %s5924_s27, 0  ;;  %p46_p11 = scmp.ne.s32.totalorder %s5916_s25, %s5912_s24 }
  0x88   : > { %p196_p12 = scmp.eq.s32.totalorder %s6005_s30, 1  ;;  %p9401_p0 = scmp.eq.s32.totalorder %s6005_s30, 0 }
  0x89   : > { %s6159_s23 = scalar_select %p31_p1, %s5920_s26, %s33_s13  }
  0x8a   : > { %p42_p13 = por %p41_p3, %p40_p8  ;;  %p6163_p2 = por %p9401_p0, %p46_p11 }
  0x8b   : > { %p6167_p6 = por %p196_p12, %p40_p8  ;;  %p202_p5 = scmp.eq.s32.totalorder %s5258_s11, 1 }
  0x8c   : > { %p5532_p7 = scmp.lt.s32.totalorder %s5924_s27, 2  ;;  %s290_s9 = sand.u32 1, %s5920_s26  }
  0x8d   : > { %s9403_s17 = scalar_select %p6167_p6, 1, 0 }
  0x8e   : > { %p6173_p9 = por %p202_p5, %p46_p11  ;;  %s5266_s14 = sshll.u32 %s290_s9, 7 }
  0x8f   : > { %s5347_s16 = sshll.u32 %s5924_s27, 11  ;;  %s294_s15 = scalar_lea.vmem [#allocation3], %s5266_s14 }
  0x90   : > { %s9404_s12 = scalar_select %p6173_p9, 1, 0 }
  0x91   : > { %s6181_s21 = scalar_lea.hbm %s9300_s0, %s5347_s16  ;;  %s301_s10 = sshll.u32 %s294_s15, 4  ;;  %s6187_s10 = int_to_ptr.vmem [resolvable:$true] %s301_s10 }
  0x92   : > { %p6183_p4 = pnand %p5532_p7, %p42_p13  ;;  %s6189_s13 = scalar_lea.sflag [#allocation4], %s290_s9 }
  0x93   : > { %s5816_s1 = scalar_lea.hbm %s6181_s21, 2048  ;;  %s5821_s18 = scalar_lea.hbm %s9300_s0, 4096 }
  0x94   : > { %p5817_p10 = scmp.ne.s32.totalorder %s6181_s21, %s5816_s1  ;;  %p5818_p8 = pneg %p6183_p4 }
  0x95   : > { %p5822_p11 = scmp.lt.u32.totalorder %s6181_s21, %s9300_s0  ;;  %p5823_p12 = scmp.lt.u32.totalorder %s5821_s18, %s5816_s1 }
  0x96   : > { %p5819_p1 = pnand %p5818_p8, %p5817_p10  ;;  %p5825_p0 = scmp.lt.u32.totalorder %s5816_s1, %s6181_s21 }
  0x97   : > { %p5824_p13 = por %p5823_p12, %p5822_p11 }
  0x98   : > { %p5820_p3 = pneg %p5819_p1 }
  0x99   : > { %p5826_p5 = por %p5825_p0, %p5824_p13 }
  0x9b   : > { %p5827_p7 = pnand %p5826_p5, %p5820_p3 }
  0x9d   : > { %5830 = shalt.err (!%p5827_p7)
}
  0x9e   : > { %s5831_s9 = scalar_lea.vmem %s6187_s10, 2048  ;;  %s5937_s14 = smov [#allocation3]  }
  0x9f   : > { %p5832_p10 = scmp.ne.s32.totalorder %s6187_s10, %s5831_s9  ;;  %s5836_s16 = sshll.u32 %s5937_s14, 4  ;;  %s5837_s16 = int_to_ptr.vmem [resolvable:$false] %s5836_s16 }
  0xa0   : > { %s5838_s20 = scalar_lea.vmem %s5837_s16, 4096  ;;  %p5839_p6 = scmp.lt.s32.totalorder %s6187_s10, %s5837_s16 }
  0xa1   : > { %p5834_p1 = pnand %p5832_p10, %p5818_p8  ;;  %p5840_p11 = scmp.lt.s32.totalorder %s5838_s20, %s5831_s9 }
  0xa3   : > { %p5835_p9 = pneg %p5834_p1  ;;  %p5841_p12 = por %p5840_p11, %p5839_p6 }
  0xa5   : > { %p5842_p13 = pnand %p5841_p12, %p5835_p9 }
  0xa7   : > { %5845 = shalt.err (!%p5842_p13)
}
  0xa8   : > { %5522 = dma.hbm_to_vmem [thread:$0]  (!%p6183_p4), %s6181_s21, 2048, %s6187_s10, %s6189_s13, %s9400_s29, %s9400_s29, %s9399_s22  }
  0xa9   : > { %p9406_p8 = scmp.ne.s32.totalorder %s9395_s8, 0 }
  0xab   : > { %313 = sbr.rel (%p9406_p8) target bundleno = 1750 (0x6d6), region = 48 }
  0xb2   : > { %s6223_s1 = sand.u32 1, %s5916_s25  }
  0xb3   : > { %s5270_s18 = sshll.u32 %s6223_s1, 7  ;;  %s316_s15 = scalar_lea.sflag [#allocation4], %s6223_s1 }
  0xb4   : > { %s6227_s9 = scalar_lea.vmem [#allocation3], %s5270_s18 }
  0xb5   : > { %5891 = dma.done.wait (%p6163_p2), %s316_s15, 2048  }
  0xb6   : > { %5893 = vsyncadd (%p6163_p2), %s316_s15, 4294965248  ;;  %p9407_p6 = scmp.eq.s32.totalorder %s6005_s30, 0 }
  0xb8   : > { %5895 = dma.done.wait (%p9407_p6), [#allocation7], 2192   ;;  %p9408_p9 = pmov %p9407_p6 }
  0xb9   : > { %p9409_p4 = pmov %p9407_p6 }
  0xba   : > { %5897 = vsyncadd (%p9408_p9), [#allocation7], 4294965104 }
  0xbb   : > { %5899 = dma.done.wait (%p9409_p4), [#allocation10], 2048   ;;  %p9410_p3 = pmov %p9409_p4 }
  0xbd   : > { %5901 = vsyncadd (%p9410_p3), [#allocation10], 4294965248  ;;  %p9411_p0 = pmov %p9410_p3 }
  0xbf   : > { %5903 = dma.done.wait (%p9411_p0), [#allocation13], 1024   ;;  %p9412_p5 = pmov %p9411_p0 }
  0xc0   : > { %v5938_v0 = vmov 0   ;;  %v5587_v1 = vld [vmem:[#allocation6 + $0x4] ss:$8 sps:$4 sm:$0xff]   ;;  %v5589_v2 = vld [vmem:[#allocation6] ss:$8 sps:$4 sm:$0xff]   ;;  %v5613_v19 = vld [vmem:[%s6227_s9 + $0x10] sm:$0xff]   ;;  %v789_v33 = vlaneseq }
  0xc1   : > { %5905 = vsyncadd (%p9412_p5), [#allocation13], 4294966272  ;;  %628 = vmatprep.mubr.bf16.mxu0 %v5938_v0  ;;  %1053 = vst [vmem:[#allocation2] sm:$0xff] %v5938_v0  ;;  %596 = vmatprep.subr.bf16.mxu0 %v5587_v1  ;;  %v5590_v3 = vld [vmem:[#allocation6 + $0x14] ss:$8 sps:$4 sm:$0xff]   ;;  %v5611_v17 = vld [vmem:[%s6227_s9] sm:$0xff]   ;;  %v1423_v48 = vunpack.c.l.bf16 %v5938_v0  ;;  %v1424_v49 = vunpack.c.h.bf16 %v5938_v0 }
  0xc2   : > { %1055 = vst [vmem:[#allocation2 + $0x10] sm:$0xff] %v5938_v0  ;;  %1057 = vst [vmem:[#allocation2 + $0x198] sm:$0xff] %v5938_v0  ;;  %597 = vmatpush1.bf16.msra.mxu0 %v5589_v2  ;;  %v5592_v4 = vld [vmem:[#allocation6 + $0x10] ss:$8 sps:$4 sm:$0xff]   ;;  %v5593_v5 = vld [vmem:[#allocation6 + $0x24] ss:$8 sps:$4 sm:$0xff]  }
  0xc3   : > { %1059 = vst [vmem:[#allocation2 + $0x1a8] sm:$0xff] %v5938_v0  ;;  %1061 = vst [vmem:[#allocation2 + $0x18] sm:$0xff] %v5938_v0  ;;  %598 = vmatprep.subr.bf16.mxu0 %v5590_v3  ;;  %v5595_v6 = vld [vmem:[#allocation6 + $0x20] ss:$8 sps:$4 sm:$0xff]   ;;  %v5596_v7 = vld [vmem:[#allocation6 + $0x34] ss:$8 sps:$4 sm:$0xff]  }
  0xc4   : > { %1062 = vst [vmem:[#allocation2 + $0x30] sm:$0xff] %v5938_v0  ;;  %1063 = vst [vmem:[#allocation2 + $0x48] sm:$0xff] %v5938_v0  ;;  %v5598_v8 = vld [vmem:[#allocation6 + $0x30] ss:$8 sps:$4 sm:$0xff]   ;;  %v5599_v9 = vld [vmem:[#allocation6 + $0x44] ss:$8 sps:$4 sm:$0xff]  }
  0xc5   : > { %1064 = vst [vmem:[#allocation2 + $0x60] sm:$0xff] %v5938_v0  ;;  %1065 = vst [vmem:[#allocation2 + $0x78] sm:$0xff] %v5938_v0  ;;  %v5601_v10 = vld [vmem:[#allocation6 + $0x40] ss:$8 sps:$4 sm:$0xff]   ;;  %v5602_v11 = vld [vmem:[#allocation6 + $0x54] ss:$8 sps:$4 sm:$0xff]  }
  0xc6   : > { %1066 = vst [vmem:[#allocation2 + $0x90] sm:$0xff] %v5938_v0  ;;  %1067 = vst [vmem:[#allocation2 + $0xa8] sm:$0xff] %v5938_v0  ;;  %599 = vmatpush1.bf16.msra.mxu0 %v5592_v4  ;;  %v5604_v12 = vld [vmem:[#allocation6 + $0x50] ss:$8 sps:$4 sm:$0xff]   ;;  %v5605_v13 = vld [vmem:[#allocation6 + $0x64] ss:$8 sps:$4 sm:$0xff]  }
  0xc7   : > { %1068 = vst [vmem:[#allocation2 + $0xc0] sm:$0xff] %v5938_v0  ;;  %1069 = vst [vmem:[#allocation2 + $0xd8] sm:$0xff] %v5938_v0  ;;  %600 = vmatprep.subr.bf16.mxu0 %v5593_v5  ;;  %v5607_v14 = vld [vmem:[#allocation6 + $0x60] ss:$8 sps:$4 sm:$0xff]   ;;  %v5608_v15 = vld [vmem:[#allocation6 + $0x74] ss:$8 sps:$4 sm:$0xff]  }
  0xc8   : > { %1070 = vst [vmem:[#allocation2 + $0xf0] sm:$0xff] %v5938_v0  ;;  %1071 = vst [vmem:[#allocation2 + $0x108] sm:$0xff] %v5938_v0  ;;  %v5610_v16 = vld [vmem:[#allocation6 + $0x70] ss:$8 sps:$4 sm:$0xff]   ;;  %v5612_v18 = vld [vmem:[%s6227_s9 + $0x8] sm:$0xff]   ;;  %v6313_v34 = vshrl.u32 %v789_v33, 7 }
  0xc9   : > { %1072 = vst [vmem:[#allocation2 + $0x120] sm:$0xff] %v5938_v0  ;;  %1073 = vst [vmem:[#allocation2 + $0x138] sm:$0xff] %v5938_v0  ;;  %v5614_v20 = vld [vmem:[%s6227_s9 + $0x18] sm:$0xff]   ;;  %v5615_v21 = vld [vmem:[%s6227_s9 + $0x20] sm:$0xff]   ;;  %s5276_s29 = sshll.u32 %s6223_s1, 8  ;;  %v1192_v45 = vrot.slane %v5938_v0, 4 }
  0xca   : > { %1074 = vst [vmem:[#allocation2 + $0x150] sm:$0xff] %v5938_v0  ;;  %1075 = vst [vmem:[#allocation2 + $0x168] sm:$0xff] %v5938_v0  ;;  %601 = vmatpush1.bf16.msra.mxu0 %v5595_v6  ;;  %v5616_v22 = vld [vmem:[%s6227_s9 + $0x28] sm:$0xff]   ;;  %v5617_v23 = vld [vmem:[%s6227_s9 + $0x30] sm:$0xff]   ;;  %v9315_v35 = vsub.s32 0, %v6313_v34  ;;  %v987_v37 = vsub.s32 5, %v6313_v34 }
  0xcb   : > { %1076 = vst [vmem:[#allocation2 + $0x180] sm:$0xff] %v5938_v0  ;;  %1077 = vst [vmem:[#allocation2 + $0x28] sm:$0xff] %v5938_v0  ;;  %602 = vmatprep.subr.bf16.mxu0 %v5596_v7  ;;  %v5618_v24 = vld [vmem:[%s6227_s9 + $0x38] sm:$0xff]   ;;  %v5619_v25 = vld [vmem:[%s6227_s9 + $0x40] sm:$0xff]   ;;  %vm1190_vm0 = vcmask 1043456   ;;  %s6339_s28 = scalar_lea.vmem [#allocation14], %s5276_s29  ;;  %v1273_v2 = vunpack.c.l.bf16 %v1192_v45 }
  0xcc   : > { %1078 = vst [vmem:[#allocation2 + $0x40] sm:$0xff] %v5938_v0  ;;  %1079 = vst [vmem:[#allocation2 + $0x58] sm:$0xff] %v5938_v0  ;;  %v5620_v26 = vld [vmem:[%s6227_s9 + $0x48] sm:$0xff]   ;;  %v5621_v27 = vld [vmem:[%s6227_s9 + $0x50] sm:$0xff]   ;;  %vm1525_vm1 = vcmask 1046528   ;;  %vm1806_vm2 = vcmask 1045504  }
  0xcd   : > { %1080 = vst [vmem:[#allocation2 + $0x70] sm:$0xff] %v5938_v0  ;;  %1081 = vst [vmem:[#allocation2 + $0x88] sm:$0xff] %v5938_v0  ;;  %v5622_v28 = vld [vmem:[%s6227_s9 + $0x58] sm:$0xff]   ;;  %v5623_v29 = vld [vmem:[%s6227_s9 + $0x60] sm:$0xff]   ;;  %vm4036_vm3 = vcmask 1040384   ;;  %vm5940_vm4 = vmmov 0  }
  0xce   : > { %1082 = vst [vmem:[#allocation2 + $0xa0] sm:$0xff] %v5938_v0  ;;  %1083 = vst [vmem:[#allocation2 + $0xb8] sm:$0xff] %v5938_v0  ;;  %603 = vmatpush1.bf16.msra.mxu0 %v5598_v8  ;;  %v5624_v30 = vld [vmem:[%s6227_s9 + $0x68] sm:$0xff]   ;;  %v5625_v31 = vld [vmem:[%s6227_s9 + $0x70] sm:$0xff]   ;;  %s5348_s11 = sshll.u32 %s6005_s30, 12  ;;  %s5137_s13 = sshll.u32 %s6339_s28, 4  ;;  %s9253_s13 = int_to_ptr.vmem [resolvable:$true] %s5137_s13 }
  0xcf   : > { %1084 = vst [vmem:[#allocation2 + $0xd0] sm:$0xff] %v5938_v0  ;;  %1085 = vst [vmem:[#allocation2 + $0xe8] sm:$0xff] %v5938_v0  ;;  %604 = vmatprep.subr.bf16.mxu0 %v5599_v9  ;;  %v5626_v32 = vld [vmem:[%s6227_s9 + $0x78] sm:$0xff]   ;;  %v6319_v36 = vld [vmem:[%s9306_s6] sm:$0xff]  ;;  %s9251_s20 = scalar_lea.hbm %s9307_s7, %s5348_s11  ;;  %s5124_s30 = scalar_lea.sflag [#allocation5], %s6223_s1 }
  0xd0   : > { %1086 = vst [vmem:[#allocation2 + $0x100] sm:$0xff] %v5938_v0  ;;  %1087 = vst [vmem:[#allocation2 + $0x118] sm:$0xff] %v5938_v0  ;;  %v6325_v38 = vrot.slane %v6319_v36, %v9315_v35  ;;  %v6329_v39 = vrot.slane %v6319_v36, %v987_v37  ;;  %v1126_v40 = vld [vmem:[#allocation2] sm:$0x80]  ;;  %v6337_v52 = vld [vmem:[#allocation8 + $0x1] ss:$0 sm:$0xff] }
  0xd1   : > { %1088 = vst [vmem:[#allocation2 + $0x130] sm:$0xff] %v5938_v0  ;;  %1089 = vst [vmem:[#allocation2 + $0x148] sm:$0xff] %v5938_v0  ;;  %v1191_v44 = vrot.slane %v1126_v40, 4  ;;  %v1672_v53 = vld [vmem:[#allocation2 + $0x10] sm:$0x1]  ;;  %v1461_v59 = vmul.f32 %v6337_v52, %v1423_v48  ;;  %v1462_v60 = vmul.f32 %v6337_v52, %v1424_v49  ;;  %s5846_s18 = scalar_lea.vmem %s9253_s13, 4096 }
  0xd2   : > { %1090 = vst [vmem:[#allocation2 + $0x160] sm:$0xff] %v5938_v0  ;;  %1091 = vst [vmem:[#allocation2 + $0x178] sm:$0xff] %v5938_v0  ;;  %605 = vmatpush1.bf16.msra.mxu0 %v5601_v10  ;;  %v6346_v61 = vld [vmem:[#allocation8 + $0x2] ss:$0 sm:$0xff]  ;;  %v1688_v62 = vunpack.c.l.bf16 %v1672_v53  ;;  %v6349_v6 = vld [vmem:[#allocation8] ss:$0 sm:$0xff]  ;;  %p5847_p2 = scmp.ne.s32.totalorder %s9253_s13, %s5846_s18 }
  0xd3   : > { %1092 = vst [vmem:[#allocation2 + $0x190] sm:$0xff] %v5938_v0  ;;  %606 = vmatprep.subr.bf16.mxu0 %v5602_v11  ;;  %9413 = vst [vmem:[#allocation20_spill] sm:$0xff] %v6313_v34  ;;  %v1193_v58 = vsel %vm1190_vm0, %v1191_v44, %v1192_v45  ;;  %v1711_v8 = vmul.f32 %v6346_v61, %v1424_v49  ;;  %v1526_v10 = vrot.slane %v1461_v59, 1  ;;  %v1527_v11 = vrot.slane %v1462_v60, 1  ;;  %v6372_v49 = vld [vmem:[#allocation8 + $0x5] ss:$0 sm:$0xff] }
  0xd4   : > { %v1271_v1 = vunpack.c.l.bf16 %v1193_v58  ;;  %v1272_v7 = vunpack.c.h.bf16 %v1193_v58  ;;  %p9708_p7 = scmp.ne.s32.totalorder %s9403_s17, 0  ;;  %s5941_s15 = smov [#allocation14]  }
  0xd5   : > { %s5850_s9 = sshll.u32 %s5941_s15, 4  ;;  %s5851_s9 = int_to_ptr.vmem [resolvable:$false] %s5850_s9 }
  0xd6   : > { %607 = vmatpush1.bf16.msra.mxu0 %v5604_v12  ;;  %v1673_v12 = vld [vmem:[#allocation2 + $0x28] sm:$0x1]  ;;  %p5848_p10 = pnand %p5847_p2, %p9708_p7  ;;  %s5852_s8 = scalar_lea.vmem %s5851_s9, 8192 }
  0xd7   : > { %608 = vmatprep.subr.bf16.mxu0 %v5605_v13  ;;  %v1712_v13 = vmul.f32 %v6346_v61, %v1688_v62  ;;  %p5853_p11 = scmp.lt.s32.totalorder %s9253_s13, %s5851_s9  ;;  %p5854_p12 = scmp.lt.s32.totalorder %s5852_s8, %s5846_s18 }
  0xd8   : > { %p5849_p1 = pneg %p5848_p10 }
  0xd9   : > { %v1810_v40 = vrot.slane %v1712_v13, 2  ;;  %v6394_v13 = vld [vmem:[#allocation2 + $0x30] sm:$0x80]  ;;  %p5855_p13 = por %p5854_p12, %p5853_p11 }
  0xda   : > { %609 = vmatpush1.bf16.msra.mxu0 %v5607_v14 }
  0xdb   : > { %610 = vmatprep.subr.bf16.mxu0 %v5608_v15  ;;  %p5856_p8 = pnand %p5855_p13, %p5849_p1 }
  0xde   : > { %611 = vmatpush1.bf16.msra.mxu0 %v5610_v16 }
  0xe1   : > { %629 = vmatmul.mubr.bf16.vlgmr.msra.gmra.mrb[0].mxu0 %v5611_v17  ;;  %v1710_v17 = vmul.f32 %v6346_v61, %v1423_v48 }
  0xe2   : > { %638 = vmatprep.mubr.bf16.mxu0 %v5938_v0 }
  0xe3   : > { %v1807_v37 = vrot.slane %v1710_v17, 2 }
  0xe9   : > { %639 = vmatmul.mubr.bf16.gmra.mrb[4].mxu0 %v5612_v18 }
  0xea   : > { %648 = vmatprep.mubr.bf16.mxu0 %v5938_v0 }
  0xf1   : > { %649 = vmatmul.mubr.bf16.gmra.mrb[8].mxu0 %v5613_v19 }
  0xf2   : > { %658 = vmatprep.mubr.bf16.mxu0 %v5938_v0 }
  0xf9   : > { %659 = vmatmul.mubr.bf16.gmra.mrb[12].mxu0 %v5614_v20  ;;  %v1128_v20 = vld [vmem:[#allocation2 + $0x18] sm:$0x80] }
  0xfa   : > { %668 = vmatprep.mubr.bf16.mxu0 %v5938_v0 }
 0x101   : > { %669 = vmatmul.mubr.bf16.gmra.mrb[16].mxu0 %v5615_v21  ;;  %v1325_v21 = vmul.f32 %v6349_v6, %v1271_v1 }
 0x102   : > { %678 = vmatprep.mubr.bf16.mxu0 %v5938_v0 }
 0x109   : > { %679 = vmatmul.mubr.bf16.gmra.mrb[20].mxu0 %v5616_v22  ;;  %v1327_v22 = vmul.f32 %v6349_v6, %v1273_v2  ;;  %v3386_v2 = vld [vmem:[#allocation2 + $0x40] sm:$0x1] }
 0x10a   : > { %688 = vmatprep.mubr.bf16.mxu0 %v5938_v0  ;;  %v3402_v17 = vunpack.c.l.bf16 %v3386_v2 }
 0x111   : > { %689 = vmatmul.mubr.bf16.gmra.mrb[24].mxu0 %v5617_v23 }
 0x112   : > { %698 = vmatprep.mubr.bf16.mxu0 %v5938_v0 }
 0x119   : > { %699 = vmatmul.mubr.bf16.gmra.mrb[28].mxu0 %v5618_v24 }
 0x11a   : > { %708 = vmatprep.mubr.bf16.mxu0 %v5938_v0 }
 0x121   : > { %709 = vmatmul.mubr.bf16.gmra.mrb[32].mxu0 %v5619_v25 }
 0x122   : > { %718 = vmatprep.mubr.bf16.mxu0 %v5938_v0 }
 0x129   : > { %719 = vmatmul.mubr.bf16.gmra.mrb[36].mxu0 %v5620_v26  ;;  %v1689_v26 = vunpack.c.l.bf16 %v1673_v12 }
 0x12a   : > { %728 = vmatprep.mubr.bf16.mxu0 %v5938_v0 }
 0x12b   : > { %v6370_v48 = vmul.f32 %v6346_v61, %v1689_v26 }
 0x131   : > { %729 = vmatmul.mubr.bf16.gmra.mrb[40].mxu0 %v5621_v27  ;;  %v2529_v27 = vld [vmem:[#allocation2 + $0x28] sm:$0x1] }
 0x132   : > { %738 = vmatprep.mubr.bf16.mxu0 %v5938_v0  ;;  %v2545_v44 = vunpack.c.l.bf16 %v2529_v27 }
 0x134   : > { %v6381_v1 = vmul.f32 %v6372_v49, %v2545_v44 }
 0x139   : > { %739 = vmatmul.mubr.bf16.gmra.mrb[44].mxu0 %v5622_v28 }
 0x13a   : > { %748 = vmatprep.mubr.bf16.mxu0 %v5938_v0 }
 0x141   : > { %749 = vmatmul.mubr.bf16.gmra.mrb[48].mxu0 %v5623_v29  ;;  %v1326_v29 = vmul.f32 %v6349_v6, %v1272_v7  ;;  %v6385_v7 = vld [vmem:[#allocation2 + $0x30] sm:$0x80] }
 0x142   : > { %758 = vmatprep.mubr.bf16.mxu0 %v5938_v0 }
 0x149   : > { %759 = vmatmul.mubr.bf16.gmra.mrb[52].mxu0 %v5624_v30  ;;  %v1528_v30 = vsel %vm1525_vm1, %v1526_v10, %v1527_v11 }
 0x14a   : > { %768 = vmatprep.mubr.bf16.mxu0 %v5938_v0  ;;  %v1623_v53 = vadd.f32 %v1528_v30, %v1326_v29  ;;  %v2906_v29 = vrot.slane %v6394_v13, 4 }
 0x151   : > { %769 = vmatmul.mubr.bf16.gmra.mrb[56].mxu0 %v5625_v31  ;;  %v1808_v31 = vrot.slane %v1711_v8, 2 }
 0x152   : > { %778 = vmatprep.mubr.bf16.mxu0 %v5938_v0 }
 0x153   : > { %v1809_v59 = vsel %vm1806_vm2, %v1807_v37, %v1808_v31  ;;  %v1811_v60 = vsel %vm1806_vm2, %v1808_v31, %v1810_v40  ;;  %v6410_v40 = vld [vmem:[#allocation8 + $0x4] ss:$0 sm:$0xff] }
 0x159   : > { %779 = vmatmul.mubr.bf16.gmra.mrb[60].mxu0 %v5626_v32  ;;  %v1985_v32 = vld [vmem:[#allocation2 + $0x18] sm:$0x80] }
 0x1b4   : > { %v630_v41 = vpop.f32.mrb[0].mxu0 }
 0x1b5   : > { %v793_v42 = vadd.f32 %v6325_v38, %v630_v41  ;;  %v632_v43 = vpop.f32.mrb[1].mxu0 }
 0x1b6   : > { %v989_v46 = vadd.f32 %v6329_v39, %v632_v43  ;;  %v634_v47 = vpop.f32.mrb[2].mxu0  ;;  %v1194_v43 = vrot.slane %v1128_v20, 4 }
 0x1b7   : > { %v825_v50 = vadd.f32 3.0, %v793_v42  ;;  %v794_v51 = vadd.f32 %v6325_v38, %v634_v47  ;;  %v636_v54 = vpop.f32.mrb[3].mxu0  ;;  %v1624_v47 = vadd.f32 %v1527_v11, %v1327_v22  ;;  %v6389_v11 = vld [vmem:[#allocation2 + $0x30] sm:$0x80]  ;;  %v1197_v22 = vrot.slane %v6385_v7, 4 }
 0x1b8   : > { %1021 = vst [vmem:[%s6339_s28] sm:$0xff] %v989_v46  ;;  %v990_v55 = vadd.f32 %v6329_v39, %v636_v54  ;;  %v1622_v46 = vadd.f32 %v1526_v10, %v1325_v21  ;;  %v2049_v54 = vrot.slane %v1985_v32, 4  ;;  %v2666_v21 = vrot.slane %v6381_v1, 2 }
 0x1b9   : > { %v857_v56 = vmax.f32 %v825_v50, 0.0  ;;  %v826_v57 = vadd.f32 3.0, %v794_v51  ;;  %v6387_v10 = vadd.f32 %v1811_v60, %v1624_v47  ;;  %v2052_v27 = vrot.slane %v6389_v11, 4 }
 0x1ba   : > { %1022 = vst [vmem:[%s6339_s28 + $0x8] sm:$0xff] %v990_v55  ;;  %v1935_v8 = vadd.f32 %v1807_v37, %v1622_v46 }
 0x1bb   : > { %v889_v63 = vmin.f32 %v857_v56, 6.0  ;;  %v858_v0 = vmax.f32 %v826_v57, 0.0 }
 0x1bc   : > { %v640_v3 = vpop.f32.mrb[4].mxu0 }
 0x1bd   : > { %v921_v4 = vmul.f32 %v889_v63, %v793_v42  ;;  %v890_v5 = vmin.f32 %v858_v0, 6.0  ;;  %v642_v9 = vpop.f32.mrb[5].mxu0  ;;  %v6356_v18 = vadd.f32 %v6325_v38, %v640_v3  ;;  %v2530_v42 = vld [vmem:[#allocation2 + $0x40] sm:$0x1] }
 0x1be   : > { %v991_v14 = vadd.f32 %v6329_v39, %v642_v9  ;;  %v644_v15 = vpop.f32.mrb[6].mxu0  ;;  %v2546_v55 = vunpack.c.l.bf16 %v2530_v42  ;;  %v1936_v9 = vadd.f32 %v1809_v59, %v1623_v53 }
 0x1bf   : > { %v922_v16 = vmul.f32 %v890_v5, %v794_v51  ;;  %v646_v19 = vpop.f32.mrb[7].mxu0  ;;  %v953_v24 = vmul.f32 0.16666667, %v921_v4  ;;  %v6363_v28 = vadd.f32 %v6325_v38, %v644_v15  ;;  %v827_v41 = vadd.f32 3.0, %v6356_v18 }
 0x1c0   : > { %1023 = vst [vmem:[%s6339_s28 + $0x10] sm:$0xff] %v991_v14  ;;  %v992_v23 = vadd.f32 %v6329_v39, %v646_v19  ;;  %v1815_v4 = vrot.slane %v6370_v48, 2  ;;  %v6392_v12 = vmul.f32 %v6372_v49, %v2546_v55 }
 0x1c1   : > { %v954_v25 = vmul.f32 0.16666667, %v922_v16  ;;  %v828_v50 = vadd.f32 3.0, %v6363_v28  ;;  %v859_v62 = vmax.f32 %v827_v41, 0.0 }
 0x1c2   : > { %1024 = vst [vmem:[%s6339_s28 + $0x18] sm:$0xff] %v992_v23  ;;  %v6403_v23 = vld [vmem:[#allocation8 + $0x8] ss:$0 sm:$0xff]  ;;  %v2671_v46 = vrot.slane %v6392_v12, 2 }
 0x1c3   : > { %v1093_v33 = vpack.c.bf16 %v954_v25, %v953_v24  ;;  %v860_v5 = vmax.f32 %v828_v50, 0.0  ;;  %v891_v16 = vmin.f32 %v859_v62, 6.0  ;;  %v6420_v47 = vmul.f32 %v6403_v23, %v3402_v17 }
 0x1c4   : > { %v650_v45 = vpop.f32.mrb[8].mxu0 }
 0x1c5   : > { %v652_v51 = vpop.f32.mrb[9].mxu0  ;;  %v1195_v58 = vrot.slane %v1093_v33, 4  ;;  %v1425_v0 = vunpack.c.l.bf16 %v1093_v33  ;;  %v1426_v3 = vunpack.c.h.bf16 %v1093_v33  ;;  %v892_v26 = vmin.f32 %v860_v5, 6.0 }
 0x1c6   : > { %v993_v56 = vadd.f32 %v6329_v39, %v652_v51  ;;  %v6376_v57 = vpop.f32.mrb[10].mxu0  ;;  %v923_v44 = vmul.f32 %v891_v16, %v6356_v18  ;;  %v6426_v55 = vadd.f32 %v6325_v38, %v650_v45 }
 0x1c7   : > { %v656_v63 = vpop.f32.mrb[11].mxu0  ;;  %v1196_v14 = vsel %vm1190_vm0, %v1194_v43, %v1195_v58  ;;  %v2051_v15 = vsel %vm1190_vm0, %v2049_v54, %v1195_v58  ;;  %v1276_v19 = vunpack.c.l.bf16 %v1195_v58  ;;  %v6399_v20 = vmul.f32 %v6337_v52, %v1425_v0  ;;  %v6415_v43 = vld [vmem:[#allocation8 + $0x3] ss:$0 sm:$0xff] }
 0x1c8   : > { %1025 = vst [vmem:[%s6339_s28 + $0x20] sm:$0xff] %v993_v56  ;;  %v1464_v25 = vmul.f32 %v6337_v52, %v1426_v3  ;;  %v1274_v31 = vunpack.c.l.bf16 %v1196_v14  ;;  %v1275_v32 = vunpack.c.h.bf16 %v1196_v14  ;;  %v2129_v33 = vunpack.c.l.bf16 %v2051_v15 }
 0x1c9   : > { %v2130_v37 = vunpack.c.h.bf16 %v2051_v15  ;;  %v1714_v42 = vmul.f32 %v6346_v61, %v1426_v3  ;;  %v1330_v51 = vmul.f32 %v6349_v6, %v1276_v19  ;;  %v1529_v53 = vrot.slane %v6399_v20, 1 }
 0x1ca   : > { %v1713_v54 = vmul.f32 %v6346_v61, %v1425_v0  ;;  %v1530_v56 = vrot.slane %v1464_v25, 1  ;;  %v2319_v58 = vmul.f32 %v6410_v40, %v1425_v0  ;;  %v2320_v18 = vmul.f32 %v6410_v40, %v1426_v3 }
 0x1cb   : > { %v924_v59 = vmul.f32 %v892_v26, %v6363_v28  ;;  %v1328_v60 = vmul.f32 %v6349_v6, %v1274_v31  ;;  %v1329_v62 = vmul.f32 %v6349_v6, %v1275_v32  ;;  %v2183_v2 = vmul.f32 %v6415_v43, %v2129_v33 }
 0x1cc   : > { %v6405_v24 = vpop.f32.mrb[12].mxu0  ;;  %v2184_v5 = vmul.f32 %v6415_v43, %v2130_v37  ;;  %v1813_v14 = vrot.slane %v1714_v42, 2  ;;  %v2185_v15 = vmul.f32 %v6415_v43, %v1276_v19  ;;  %v955_v45 = vmul.f32 0.16666667, %v923_v44 }
 0x1cd   : > { %v662_v30 = vpop.f32.mrb[13].mxu0  ;;  %v956_v16 = vmul.f32 0.16666667, %v924_v59  ;;  %v2567_v17 = vmul.f32 %v6372_v49, %v1425_v0  ;;  %v829_v20 = vadd.f32 3.0, %v6426_v55  ;;  %v6440_v28 = vadd.f32 %v6325_v38, %v6376_v57 }
 0x1ce   : > { %v6412_v41 = vpop.f32.mrb[14].mxu0  ;;  %v994_v25 = vadd.f32 %v6329_v39, %v656_v63  ;;  %v2383_v31 = vrot.slane %v2319_v58, 1  ;;  %v2384_v32 = vrot.slane %v2320_v18, 1  ;;  %v2568_v33 = vmul.f32 %v6372_v49, %v1426_v3 }
 0x1cf   : > { %v666_v50 = vpop.f32.mrb[15].mxu0  ;;  %v1094_v19 = vpack.c.bf16 %v956_v16, %v955_v45  ;;  %v1812_v42 = vrot.slane %v1713_v54, 2  ;;  %v2231_v0 = vadd.f32 %v2183_v2, %v1935_v8  ;;  %v2232_v44 = vadd.f32 %v2184_v5, %v1936_v9 }
 0x1d0   : > { %1026 = vst [vmem:[%s6339_s28 + $0x28] sm:$0xff] %v994_v25  ;;  %v995_v59 = vadd.f32 %v6329_v39, %v662_v30  ;;  %v1531_v63 = vsel %vm1525_vm1, %v1529_v53, %v1530_v56  ;;  %v1627_v35 = vadd.f32 %v1530_v56, %v1330_v51  ;;  %v2233_v58 = vadd.f32 %v2185_v15, %v6387_v10 }
 0x1d1   : > { %v6454_v18 = vrot.slane %v1094_v19, 4  ;;  %v1816_v8 = vsel %vm1806_vm2, %v1813_v14, %v1815_v4  ;;  %v861_v9 = vmax.f32 %v829_v20, 0.0  ;;  %v830_v54 = vadd.f32 3.0, %v6440_v28 }
 0x1d2   : > { %1027 = vst [vmem:[%s6339_s28 + $0x30] sm:$0xff] %v995_v59  ;;  %v996_v30 = vadd.f32 %v6329_v39, %v666_v50  ;;  %v1625_v2 = vadd.f32 %v1529_v53, %v1328_v60  ;;  %v2385_v51 = vsel %vm1525_vm1, %v2383_v31, %v2384_v32  ;;  %v2663_v56 = vrot.slane %v2567_v17, 2 }
 0x1d3   : > { %v2664_v10 = vrot.slane %v2568_v33, 2  ;;  %v1626_v5 = vadd.f32 %v1531_v63, %v1329_v62  ;;  %v1814_v15 = vsel %vm1806_vm2, %v1812_v42, %v1813_v14  ;;  %v2479_v45 = vadd.f32 %v2383_v31, %v2231_v0 }
 0x1d4   : > { %v6443_v26 = vpop.f32.mrb[16].mxu0  ;;  %v2480_v16 = vadd.f32 %v2385_v51, %v2232_v44  ;;  %1028 = vst [vmem:[%s6339_s28 + $0x38] sm:$0xff] %v996_v30  ;;  %v1940_v48 = vadd.f32 %v1816_v8, %v1627_v35  ;;  %v2481_v25 = vadd.f32 %v2384_v32, %v2233_v58  ;;  %v6468_v4 = vunpack.c.l.bf16 %v6454_v18 }
 0x1d5   : > { %v6446_v37 = vpop.f32.mrb[17].mxu0  ;;  %v2054_v50 = vsel %vm1190_vm0, %v2052_v27, %v6454_v18  ;;  %v6474_v53 = vunpack.c.l.bf16 %v1094_v19  ;;  %v6476_v60 = vunpack.c.h.bf16 %v1094_v19  ;;  %v893_v62 = vmin.f32 %v861_v9, 6.0 }
 0x1d6   : > { %v6450_v57 = vpop.f32.mrb[18].mxu0  ;;  %v862_v17 = vmax.f32 %v830_v54, 0.0  ;;  %v1938_v20 = vadd.f32 %v1812_v42, %v1625_v2  ;;  %v2665_v35 = vsel %vm1806_vm2, %v2663_v56, %v2664_v10  ;;  %v2132_v31 = vunpack.c.l.bf16 %v2054_v50 }
 0x1d7   : > { %v6456_v3 = vpop.f32.mrb[19].mxu0  ;;  %v2133_v32 = vunpack.c.h.bf16 %v2054_v50  ;;  %v1939_v0 = vadd.f32 %v1814_v15, %v1626_v5  ;;  %v2667_v11 = vsel %vm1806_vm2, %v2664_v10, %v2666_v21  ;;  %v2791_v27 = vadd.f32 %v2663_v56, %v2479_v45  ;;  %v6498_v21 = vld [vmem:[#allocation8 + $0x6] ss:$0 sm:$0xff] }
 0x1d8   : > { %v2792_v44 = vadd.f32 %v2665_v35, %v2480_v16  ;;  %v2793_v59 = vadd.f32 %v2667_v11, %v2481_v25  ;;  %v2186_v63 = vmul.f32 %v6415_v43, %v2132_v31  ;;  %v2188_v58 = vmul.f32 %v6415_v43, %v6468_v4 }
 0x1d9   : > { %v2187_v42 = vmul.f32 %v6415_v43, %v2133_v32  ;;  %v2321_v9 = vmul.f32 %v6410_v40, %v6474_v53  ;;  %v2322_v1 = vmul.f32 %v6410_v40, %v6476_v60  ;;  %v925_v54 = vmul.f32 %v893_v62, %v6426_v55 }
 0x1da   : > { %v894_v30 = vmin.f32 %v862_v17, 6.0  ;;  %v2234_v2 = vadd.f32 %v2186_v63, %v1938_v20  ;;  %v2236_v56 = vadd.f32 %v2188_v58, %v1940_v48  ;;  %v2570_v10 = vmul.f32 %v6372_v49, %v6474_v53  ;;  %v6511_v48 = vld [vmem:[#allocation8 + $0x7] ss:$0 sm:$0xff] }
 0x1db   : > { %v2235_v51 = vadd.f32 %v2187_v42, %v1939_v0  ;;  %v2386_v5 = vrot.slane %v2321_v9, 1  ;;  %v2387_v15 = vrot.slane %v2322_v1, 1  ;;  %v2571_v45 = vmul.f32 %v6372_v49, %v6476_v60  ;;  %v1674_v42 = vld [vmem:[#allocation2 + $0x40] sm:$0x1] }
 0x1dc   : > { %v6478_v14 = vpop.f32.mrb[20].mxu0  ;;  %v2908_v16 = vsel %vm1190_vm0, %v2906_v29, %v6454_v18  ;;  %v2668_v25 = vrot.slane %v2570_v10, 2  ;;  %v3042_v62 = vmul.f32 %v6498_v21, %v6468_v4  ;;  %v3424_v12 = vmul.f32 %v6403_v23, %v6474_v53 }
 0x1dd   : > { %v6481_v33 = vpop.f32.mrb[21].mxu0  ;;  %v2986_v50 = vunpack.c.l.bf16 %v2908_v16  ;;  %v2987_v55 = vunpack.c.h.bf16 %v2908_v16  ;;  %v2388_v17 = vsel %vm1525_vm1, %v2386_v5, %v2387_v15  ;;  %v2482_v20 = vadd.f32 %v2386_v5, %v2234_v2 }
 0x1de   : > { %v6486_v19 = vpop.f32.mrb[22].mxu0  ;;  %v2484_v35 = vadd.f32 %v2387_v15, %v2236_v56  ;;  %v2669_v31 = vrot.slane %v2571_v45, 2  ;;  %v2483_v0 = vadd.f32 %v2388_v17, %v2235_v51  ;;  %v3090_v11 = vadd.f32 %v3042_v62, %v2793_v59 }
 0x1df   : > { %v6492_v8 = vpop.f32.mrb[23].mxu0  ;;  %v3040_v13 = vmul.f32 %v6498_v21, %v2986_v50  ;;  %v3041_v29 = vmul.f32 %v6498_v21, %v2987_v55  ;;  %v6524_v1 = vadd.f32 %v2668_v25, %v2482_v20  ;;  %v3176_v2 = vmul.f32 %v6511_v48, %v6474_v53 }
 0x1e0   : > { %v2670_v58 = vsel %vm1806_vm2, %v2668_v25, %v2669_v31  ;;  %v2672_v9 = vsel %vm1806_vm2, %v2669_v31, %v2671_v46  ;;  %v3177_v15 = vmul.f32 %v6511_v48, %v6476_v60  ;;  %v3425_v46 = vmul.f32 %v6403_v23, %v6476_v60 }
 0x1e1   : > { %v6530_v56 = vadd.f32 %v2670_v58, %v2483_v0  ;;  %v6532_v10 = vadd.f32 %v2672_v9, %v2484_v35  ;;  %v3088_v59 = vadd.f32 %v3040_v13, %v2791_v27  ;;  %v3089_v5 = vadd.f32 %v3041_v29, %v2792_v44 }
 0x1e2   : > { %v3240_v45 = vrot.slane %v3176_v2, 1  ;;  %v1690_v16 = vunpack.c.l.bf16 %v1674_v42  ;;  %v3523_v25 = vrot.slane %v6420_v47, 2  ;;  %v926_v50 = vmul.f32 %v894_v30, %v6440_v28  ;;  %v2531_v2 = vld [vmem:[#allocation2 + $0x58] sm:$0x1] }
 0x1e3   : > { %v6544_v55 = vadd.f32 %v6325_v38, %v6405_v24  ;;  %v3241_v27 = vrot.slane %v3177_v15, 1  ;;  %v3520_v62 = vrot.slane %v3424_v12, 2  ;;  %v3521_v17 = vrot.slane %v3425_v46, 2 }
 0x1e4   : > { %v6514_v32 = vpop.f32.mrb[24].mxu0  ;;  %v3336_v44 = vadd.f32 %v3240_v45, %v3088_v59  ;;  %v1199_v20 = vsel %vm1190_vm0, %v1197_v22, %v6454_v18  ;;  %v957_v35 = vmul.f32 0.16666667, %v925_v54  ;;  %v958_v31 = vmul.f32 0.16666667, %v926_v50 }
 0x1e5   : > { %v6518_v63 = vpop.f32.mrb[25].mxu0  ;;  %v6552_v47 = vadd.f32 %v6325_v38, %v6412_v41  ;;  %v1465_v28 = vmul.f32 %v6337_v52, %v6474_v53  ;;  %v1466_v24 = vmul.f32 %v6337_v52, %v6476_v60  ;;  %v3242_v30 = vsel %vm1525_vm1, %v3240_v45, %v3241_v27 }
 0x1e6   : > { %v6528_v51 = vpop.f32.mrb[26].mxu0  ;;  %v3338_v0 = vadd.f32 %v3241_v27, %v3090_v11  ;;  %v3337_v13 = vadd.f32 %v3242_v30, %v3089_v5  ;;  %v3524_v7 = vsel %vm1806_vm2, %v3521_v17, %v3523_v25  ;;  %v6560_v22 = vadd.f32 %v3520_v62, %v3336_v44  ;;  %v1989_v11 = vld [vmem:[#allocation2 + $0x48] sm:$0x80]  ;;  %v3387_v25 = vld [vmem:[#allocation2 + $0x58] sm:$0x1] }
 0x1e7   : > { %v1095_v18 = vpack.c.bf16 %v958_v31, %v957_v35  ;;  %v3522_v54 = vsel %vm1806_vm2, %v3520_v62, %v3521_v17  ;;  %v997_v29 = vadd.f32 %v6329_v39, %v6446_v37  ;;  %v6567_v42 = vpop.f32.mrb[27].mxu0  ;;  %v1277_v58 = vunpack.c.l.bf16 %v1199_v20  ;;  %v1132_v35 = vld [vmem:[#allocation2 + $0x48] sm:$0x80] }
 0x1e8   : > { %v6563_v41 = vadd.f32 %v3524_v7, %v3338_v0  ;;  %9414 = vst [vmem:[#allocation21_spill] sm:$0xff] %v6567_v42  ;;  %v6569_v9 = vadd.f32 %v3522_v54, %v3337_v13  ;;  %v831_v59 = vadd.f32 3.0, %v6544_v55  ;;  %v832_v5 = vadd.f32 3.0, %v6552_v47 }
 0x1e9   : > { %v1278_v15 = vunpack.c.h.bf16 %v1199_v20  ;;  %v1717_v45 = vmul.f32 %v6346_v61, %v6476_v60  ;;  %v1718_v12 = vmul.f32 %v6346_v61, %v1690_v16  ;;  %1029 = vst [vmem:[%s6339_s28 + $0x40] sm:$0xff] %v997_v29  ;;  %v1532_v46 = vrot.slane %v1465_v28, 1 }
 0x1ea   : > { %v1533_v37 = vrot.slane %v1466_v24, 1  ;;  %v1716_v50 = vmul.f32 %v6346_v61, %v6474_v53  ;;  %v1201_v27 = vrot.slane %v1095_v18, 4  ;;  %v2055_v44 = vrot.slane %v1989_v11, 4  ;;  %v6588_v11 = vld [vmem:[#allocation2 + $0x58] sm:$0x1] }
 0x1eb   : > { %v2547_v62 = vunpack.c.l.bf16 %v2531_v2  ;;  %v1331_v17 = vmul.f32 %v6349_v6, %v1277_v58  ;;  %v1333_v20 = vmul.f32 %v6349_v6, %v6468_v4  ;;  %v863_v31 = vmax.f32 %v831_v59, 0.0  ;;  %v2844_v2 = vld [vmem:[#allocation2 + $0x48] sm:$0x80] }
 0x1ec   : > { %v864_v60 = vmax.f32 %v832_v5, 0.0  ;;  %v6582_v30 = vpop.f32.mrb[28].mxu0  ;;  %v1332_v16 = vmul.f32 %v6349_v6, %v1278_v15  ;;  %v1818_v28 = vrot.slane %v1717_v45, 2  ;;  %v1820_v24 = vrot.slane %v1718_v12, 2 }
 0x1ed   : > { %9415 = vst [vmem:[#allocation22_spill] sm:$0xff] %v6582_v30  ;;  %v3403_v0 = vunpack.c.l.bf16 %v3387_v25  ;;  %v1534_v53 = vsel %vm1525_vm1, %v1532_v46, %v1533_v37  ;;  %v1817_v13 = vrot.slane %v1716_v50, 2  ;;  %v1200_v7 = vrot.slane %v1132_v35, 4 }
 0x1ee   : > { %v2057_v54 = vsel %vm1190_vm0, %v2055_v44, %v1201_v27  ;;  %v2575_v29 = vmul.f32 %v6372_v49, %v2547_v62  ;;  %v1628_v58 = vadd.f32 %v1532_v46, %v1331_v17  ;;  %v1630_v4 = vadd.f32 %v1533_v37, %v1333_v20 }
 0x1ef   : > { %v895_v59 = vmin.f32 %v863_v31, 6.0  ;;  %v896_v5 = vmin.f32 %v864_v60, 6.0  ;;  %v1629_v30 = vadd.f32 %v1534_v53, %v1332_v16  ;;  %v1821_v15 = vsel %vm1806_vm2, %v1818_v28, %v1820_v24  ;;  %v6604_v24 = vpop.f32.mrb[29].mxu0 }
 0x1f0   : > { %v6591_v45 = vunpack.c.l.bf16 %v1201_v27  ;;  %v6594_v12 = vmul.f32 %v6403_v23, %v3403_v0  ;;  %v6596_v25 = vunpack.c.l.bf16 %v1095_v18  ;;  %v6598_v50 = vunpack.c.h.bf16 %v1095_v18  ;;  %9416 = vst [vmem:[#allocation23_spill] sm:$0xff] %v6604_v24 }
 0x1f1   : > { %v2135_v44 = vunpack.c.l.bf16 %v2057_v54  ;;  %v2136_v46 = vunpack.c.h.bf16 %v2057_v54  ;;  %v1819_v37 = vsel %vm1806_vm2, %v1817_v13, %v1818_v28  ;;  %v1691_v62 = vunpack.c.l.bf16 %v6588_v11  ;;  %v6610_v54 = vpop.f32.mrb[30].mxu0 }
 0x1f2   : > { %v2676_v17 = vrot.slane %v2575_v29, 2  ;;  %v2909_v20 = vrot.slane %v2844_v2, 4  ;;  %v1941_v35 = vadd.f32 %v1817_v13, %v1628_v58  ;;  %v1943_v31 = vadd.f32 %v1821_v15, %v1630_v4  ;;  %9417 = vst [vmem:[#allocation24_spill] sm:$0xff] %v6610_v54 }
 0x1f3   : > { %v927_v60 = vmul.f32 %v895_v59, %v6544_v55  ;;  %v928_v16 = vmul.f32 %v896_v5, %v6552_v47  ;;  %v1942_v0 = vadd.f32 %v1819_v37, %v1629_v30  ;;  %v2189_v18 = vmul.f32 %v6415_v43, %v2135_v44 }
 0x1f4   : > { %v2190_v53 = vmul.f32 %v6415_v43, %v2136_v46  ;;  %v2191_v28 = vmul.f32 %v6415_v43, %v6591_v45  ;;  %v2323_v13 = vmul.f32 %v6410_v40, %v6596_v25  ;;  %v2324_v55 = vmul.f32 %v6410_v40, %v6598_v50 }
 0x1f5   : > { %v2573_v47 = vmul.f32 %v6372_v49, %v6596_v25  ;;  %v3528_v30 = vrot.slane %v6594_v12, 2  ;;  %v2237_v29 = vadd.f32 %v2189_v18, %v1941_v35  ;;  %v2574_v11 = vmul.f32 %v6372_v49, %v6598_v50 }
 0x1f6   : > { %v2238_v58 = vadd.f32 %v2190_v53, %v1942_v0  ;;  %v2239_v4 = vadd.f32 %v2191_v28, %v1943_v31  ;;  %v2389_v2 = vrot.slane %v2323_v13, 1  ;;  %v2390_v59 = vrot.slane %v2324_v55, 1 }
 0x1f7   : > { %v959_v5 = vmul.f32 0.16666667, %v927_v60  ;;  %v960_v15 = vmul.f32 0.16666667, %v928_v16  ;;  %v1202_v44 = vsel %vm1190_vm0, %v1200_v7, %v1201_v27  ;;  %v2673_v46 = vrot.slane %v2573_v47, 2 }
 0x1f8   : > { %v2674_v37 = vrot.slane %v2574_v11, 2  ;;  %v2911_v54 = vsel %vm1190_vm0, %v2909_v20, %v1201_v27  ;;  %v2391_v24 = vsel %vm1525_vm1, %v2389_v2, %v2390_v59  ;;  %v2485_v42 = vadd.f32 %v2389_v2, %v2237_v29 }
 0x1f9   : > { %v2487_v12 = vadd.f32 %v2390_v59, %v2239_v4  ;;  %v2989_v35 = vunpack.c.l.bf16 %v2911_v54  ;;  %v2486_v0 = vadd.f32 %v2391_v24, %v2238_v58  ;;  %v2990_v53 = vunpack.c.h.bf16 %v2911_v54 }
 0x1fa   : > { %v2675_v31 = vsel %vm1806_vm2, %v2673_v46, %v2674_v37  ;;  %v2677_v18 = vsel %vm1806_vm2, %v2674_v37, %v2676_v17  ;;  %v6626_v28 = vadd.f32 %v2673_v46, %v2485_v42  ;;  %v3045_v27 = vmul.f32 %v6498_v21, %v6591_v45 }
 0x1fb   : > { %v6628_v60 = vadd.f32 %v2677_v18, %v2487_v12  ;;  %v3043_v7 = vmul.f32 %v6498_v21, %v2989_v35  ;;  %v6633_v20 = vadd.f32 %v2675_v31, %v2486_v0  ;;  %v3044_v16 = vmul.f32 %v6498_v21, %v2990_v53  ;;  %v1991_v35 = vld [vmem:[#allocation2 + $0x60] sm:$0x80] }
 0x1fc   : > { %v3178_v24 = vmul.f32 %v6511_v48, %v6596_v25  ;;  %v3179_v17 = vmul.f32 %v6511_v48, %v6598_v50  ;;  %v3093_v54 = vadd.f32 %v3045_v27, %v6532_v10  ;;  %v3427_v13 = vmul.f32 %v6403_v23, %v6596_v25 }
 0x1fd   : > { %v3091_v42 = vadd.f32 %v3043_v7, %v6524_v1  ;;  %v3428_v55 = vmul.f32 %v6403_v23, %v6598_v50  ;;  %v3092_v47 = vadd.f32 %v3044_v16, %v6530_v56  ;;  %v1096_v4 = vpack.c.bf16 %v960_v15, %v959_v5 }
 0x1fe   : > { %v3243_v29 = vrot.slane %v3178_v24, 1  ;;  %v3244_v58 = vrot.slane %v3179_v17, 1  ;;  %v1280_v11 = vunpack.c.l.bf16 %v1202_v44  ;;  %v1467_v2 = vmul.f32 %v6337_v52, %v6596_v25 }
 0x1ff   : > { %v3525_v59 = vrot.slane %v3427_v13, 2  ;;  %v3526_v46 = vrot.slane %v3428_v55, 2  ;;  %v1468_v1 = vmul.f32 %v6337_v52, %v6598_v50  ;;  %v1721_v0 = vmul.f32 %v6346_v61, %v1691_v62 }
 0x200   : > { %v3245_v10 = vsel %vm1525_vm1, %v3243_v29, %v3244_v58  ;;  %v3339_v37 = vadd.f32 %v3243_v29, %v3091_v42  ;;  %v3341_v12 = vadd.f32 %v3244_v58, %v3093_v54  ;;  %v1720_v5 = vmul.f32 %v6346_v61, %v6598_v50  ;;  %v2532_v50 = vld [vmem:[#allocation2 + $0x70] sm:$0x1] }
 0x201   : > { %v3340_v56 = vadd.f32 %v3245_v10, %v3092_v47  ;;  %v3529_v31 = vsel %vm1806_vm2, %v3526_v46, %v3528_v30  ;;  %v3527_v15 = vsel %vm1806_vm2, %v3525_v59, %v3526_v46  ;;  %v1281_v7 = vunpack.c.h.bf16 %v1202_v44  ;;  %v2846_v46 = vld [vmem:[#allocation2 + $0x60] sm:$0x80] }
 0x202   : > { %v6657_v18 = vadd.f32 %v3525_v59, %v3339_v37  ;;  %v6659_v53 = vadd.f32 %v3529_v31, %v3341_v12  ;;  %v2058_v16 = vrot.slane %v1991_v35, 4  ;;  %v1334_v24 = vmul.f32 %v6349_v6, %v1280_v11 }
 0x203   : > { %v6661_v27 = vadd.f32 %v3527_v15, %v3340_v56  ;;  %v1535_v17 = vrot.slane %v1467_v2, 1  ;;  %v1536_v62 = vrot.slane %v1468_v1, 1  ;;  %v6664_v42 = vrot.slane %v1096_v4, 4  ;;  %v6674_v2 = vpop.f32.mrb[31].mxu0  ;;  %v3388_v1 = vld [vmem:[#allocation2 + $0x70] sm:$0x1] }
 0x204   : > { %v1336_v30 = vmul.f32 %v6349_v6, %v6591_v45  ;;  %v1719_v54 = vmul.f32 %v6346_v61, %v6596_v25  ;;  %v1823_v13 = vrot.slane %v1720_v5, 2  ;;  %v1825_v55 = vrot.slane %v1721_v0, 2  ;;  %9418 = vst [vmem:[#allocation25_spill] sm:$0xff] %v6674_v2 }
 0x205   : > { %v1335_v44 = vmul.f32 %v6349_v6, %v1281_v7  ;;  %v1537_v47 = vsel %vm1525_vm1, %v1535_v17, %v1536_v62  ;;  %v1631_v29 = vadd.f32 %v1535_v17, %v1334_v24  ;;  %v2060_v58 = vsel %vm1190_vm0, %v2058_v16, %v6664_v42  ;;  %v6690_v17 = vld [vmem:[#allocation2 + $0x70] sm:$0x1] }
 0x206   : > { %v2548_v11 = vunpack.c.l.bf16 %v2532_v50  ;;  %v1633_v59 = vadd.f32 %v1536_v62, %v1336_v30  ;;  %v6677_v45 = vunpack.c.l.bf16 %v6664_v42  ;;  %v6681_v25 = vadd.f32 %v6325_v38, %v6443_v26 }
 0x207   : > { %v1822_v10 = vrot.slane %v1719_v54, 2  ;;  %v1826_v37 = vsel %vm1806_vm2, %v1823_v13, %v1825_v55  ;;  %v6684_v12 = vunpack.c.l.bf16 %v1096_v4  ;;  %v6686_v35 = vunpack.c.h.bf16 %v1096_v4  ;;  %v6695_v4 = vpop.f32.mrb[32].mxu0 }
 0x208   : > { %v3698_v0 = vsub.s32 1, %v6313_v34  ;;  %v1632_v56 = vadd.f32 %v1537_v47, %v1335_v44  ;;  %v2138_v31 = vunpack.c.l.bf16 %v2060_v58  ;;  %v2578_v15 = vmul.f32 %v6372_v49, %v2548_v11  ;;  %9419 = vst [vmem:[#allocation26_spill] sm:$0xff] %v6695_v4 }
 0x209   : > { %v1944_v5 = vadd.f32 %v1822_v10, %v1631_v29  ;;  %v2912_v7 = vrot.slane %v2846_v46, 4  ;;  %v3404_v16 = vunpack.c.l.bf16 %v3388_v1  ;;  %v1946_v24 = vadd.f32 %v1826_v37, %v1633_v59 }
 0x20a   : > { %v2139_v26 = vunpack.c.h.bf16 %v2060_v58  ;;  %v2192_v62 = vmul.f32 %v6415_v43, %v2138_v31  ;;  %v2194_v30 = vmul.f32 %v6415_v43, %v6677_v45  ;;  %v1824_v50 = vsel %vm1806_vm2, %v1822_v10, %v1823_v13  ;;  %v6708_v10 = vpop.f32.mrb[33].mxu0 }
 0x20b   : > { %v2325_v54 = vmul.f32 %v6410_v40, %v6684_v12  ;;  %v2326_v55 = vmul.f32 %v6410_v40, %v6686_v35  ;;  %v833_v44 = vadd.f32 3.0, %v6681_v25  ;;  %v1945_v47 = vadd.f32 %v1824_v50, %v1632_v56  ;;  %9421 = vst [vmem:[#allocation28_spill] sm:$0xff] %v6708_v10 }
 0x20c   : > { %v2193_v29 = vmul.f32 %v6415_v43, %v2139_v26  ;;  %v2240_v58 = vadd.f32 %v2192_v62, %v1944_v5  ;;  %v2242_v11 = vadd.f32 %v2194_v30, %v1946_v24  ;;  %v6705_v59 = vrot.slane %v6319_v36, %v3698_v0  ;;  %v6714_v26 = vpop.f32.mrb[34].mxu0 }
 0x20d   : > { %v1692_v46 = vunpack.c.l.bf16 %v6690_v17  ;;  %v2392_v1 = vrot.slane %v2325_v54, 1  ;;  %v2393_v13 = vrot.slane %v2326_v55, 1  ;;  %v2576_v31 = vmul.f32 %v6372_v49, %v6684_v12  ;;  %9422 = vst [vmem:[#allocation29_spill] sm:$0xff] %v6714_v26 }
 0x20e   : > { %9420 = vst [vmem:[#allocation27_spill] sm:$0xff] %v6705_v59  ;;  %v2241_v37 = vadd.f32 %v2193_v29, %v1945_v47  ;;  %v2577_v56 = vmul.f32 %v6372_v49, %v6686_v35  ;;  %v2681_v50 = vrot.slane %v2578_v15, 2  ;;  %v2914_v24 = vsel %vm1190_vm0, %v2912_v7, %v6664_v42 }
 0x20f   : > { %v2394_v5 = vsel %vm1525_vm1, %v2392_v1, %v2393_v13  ;;  %v2488_v36 = vadd.f32 %v2392_v1, %v2240_v58  ;;  %v2490_v0 = vadd.f32 %v2393_v13, %v2242_v11  ;;  %v2678_v62 = vrot.slane %v2576_v31, 2 }
 0x210   : > { %v2489_v17 = vadd.f32 %v2394_v5, %v2241_v37  ;;  %v3432_v30 = vmul.f32 %v6403_v23, %v3404_v16  ;;  %v865_v54 = vmax.f32 %v833_v44, 0.0  ;;  %v2679_v55 = vrot.slane %v2577_v56, 2 }
 0x211   : > { %v2992_v47 = vunpack.c.l.bf16 %v2914_v24  ;;  %v2993_v29 = vunpack.c.h.bf16 %v2914_v24  ;;  %v802_v15 = vadd.f32 %v6325_v38, %v6450_v57  ;;  %v6722_v34 = vadd.f32 %v2678_v62, %v2488_v36 }
 0x212   : > { %v3048_v58 = vmul.f32 %v6498_v21, %v6677_v45  ;;  %v3180_v11 = vmul.f32 %v6511_v48, %v6684_v12  ;;  %v3181_v7 = vmul.f32 %v6511_v48, %v6686_v35  ;;  %v2680_v16 = vsel %vm1806_vm2, %v2678_v62, %v2679_v55 }
 0x213   : > { %v2682_v44 = vsel %vm1806_vm2, %v2679_v55, %v2681_v50  ;;  %v3046_v1 = vmul.f32 %v6498_v21, %v2992_v47  ;;  %v3047_v13 = vmul.f32 %v6498_v21, %v2993_v29  ;;  %v6734_v57 = vadd.f32 %v2680_v16, %v2489_v17  ;;  %v1134_v50 = vld [vmem:[#allocation2 + $0x60] sm:$0x80] }
 0x214   : > { %v6736_v37 = vadd.f32 %v2682_v44, %v2490_v0  ;;  %v3096_v31 = vadd.f32 %v3048_v58, %v6628_v60  ;;  %v3246_v56 = vrot.slane %v3180_v11, 1  ;;  %v3247_v24 = vrot.slane %v3181_v7, 1 }
 0x215   : > { %v3094_v5 = vadd.f32 %v3046_v1, %v6626_v28  ;;  %v3095_v36 = vadd.f32 %v3047_v13, %v6633_v20  ;;  %v3430_v62 = vmul.f32 %v6403_v23, %v6684_v12  ;;  %v3431_v55 = vmul.f32 %v6403_v23, %v6686_v35 }
 0x216   : > { %v3533_v47 = vrot.slane %v3432_v30, 2  ;;  %v897_v17 = vmin.f32 %v865_v54, 6.0  ;;  %v834_v29 = vadd.f32 3.0, %v802_v15  ;;  %v3248_v0 = vsel %vm1525_vm1, %v3246_v56, %v3247_v24 }
 0x217   : > { %v3342_v16 = vadd.f32 %v3246_v56, %v3094_v5  ;;  %v3344_v60 = vadd.f32 %v3247_v24, %v3096_v31  ;;  %v3530_v58 = vrot.slane %v3430_v62, 2  ;;  %v3343_v28 = vadd.f32 %v3248_v0, %v3095_v36 }
 0x218   : > { %v3531_v20 = vrot.slane %v3431_v55, 2  ;;  %v866_v11 = vmax.f32 %v834_v29, 0.0  ;;  %v1203_v7 = vrot.slane %v1134_v50, 4  ;;  %v998_v1 = vadd.f32 %v6329_v39, %v6456_v3  ;;  %v6770_v50 = vld [vmem:[#allocation2 + $0x78] sm:$0x80] }
 0x219   : > { %v6746_v44 = vadd.f32 %v3530_v58, %v3342_v16  ;;  %v999_v30 = vadd.f32 %v6329_v39, %v6481_v33  ;;  %v929_v31 = vmul.f32 %v897_v17, %v6681_v25  ;;  %v6757_v5 = vadd.f32 %v6705_v59, %v6560_v22 }
 0x21a   : > { %v3532_v54 = vsel %vm1806_vm2, %v3530_v58, %v3531_v20  ;;  %v3534_v13 = vsel %vm1806_vm2, %v3531_v20, %v3533_v47  ;;  %v898_v56 = vmin.f32 %v866_v11, 6.0  ;;  %v1724_v36 = vmul.f32 %v6346_v61, %v1692_v46  ;;  %1030 = vst [vmem:[%s6339_s28 + $0x48] sm:$0xff] %v998_v1  ;;  %v2533_v46 = vld [vmem:[#allocation2 + $0x88] sm:$0x1] }
 0x21b   : > { %v6760_v24 = vadd.f32 %v3532_v54, %v3343_v28  ;;  %v6762_v62 = vadd.f32 %v3534_v13, %v3344_v60  ;;  %1031 = vst [vmem:[%s6339_s28 + $0x50] sm:$0xff] %v999_v30  ;;  %v6768_v3 = vadd.f32 %v6705_v59, %v6563_v41  ;;  %v1205_v25 = vsel %vm1190_vm0, %v1203_v7, %v6664_v42  ;;  %v1993_v54 = vld [vmem:[#allocation2 + $0x78] sm:$0x80] }
 0x21c   : > { %v930_v33 = vmul.f32 %v898_v56, %v802_v15  ;;  %v1470_v22 = vmul.f32 %v6337_v52, %v6686_v35  ;;  %v6778_v55 = vadd.f32 %v6325_v38, %v6478_v14  ;;  %v1469_v47 = vmul.f32 %v6337_v52, %v6684_v12  ;;  %v6793_v52 = vld [vmem:[#allocation2 + $0x88] sm:$0x1] }
 0x21d   : > { %v6784_v41 = vmul.f32 %v6346_v61, %v6686_v35  ;;  %v961_v15 = vmul.f32 0.16666667, %v929_v31  ;;  %v6788_v42 = vadd.f32 %v6705_v59, %v6569_v9  ;;  %v3748_v29 = vadd.f32 3.0, %v6757_v5  ;;  %v3389_v61 = vld [vmem:[#allocation2 + $0x88] sm:$0x1] }
 0x21e   : > { %v962_v17 = vmul.f32 0.16666667, %v930_v33  ;;  %v1830_v0 = vrot.slane %v1724_v36, 2  ;;  %v3750_v14 = vadd.f32 3.0, %v6768_v3  ;;  %v1283_v60 = vunpack.c.l.bf16 %v1205_v25 }
 0x21f   : > { %v2549_v28 = vunpack.c.l.bf16 %v2533_v46  ;;  %v1284_v35 = vunpack.c.h.bf16 %v1205_v25  ;;  %v1339_v20 = vmul.f32 %v6349_v6, %v6677_v45  ;;  %v1539_v11 = vrot.slane %v1470_v22, 1  ;;  %v6807_v45 = vpop.f32.mrb[35].mxu0  ;;  %v6810_v46 = vld [vmem:[#allocation8 + $0x2] ss:$0 sm:$0xff] }
 0x220   : > { %v1097_v58 = vpack.c.bf16 %v962_v17, %v961_v15  ;;  %v835_v9 = vadd.f32 3.0, %v6778_v55  ;;  %v1538_v7 = vrot.slane %v1469_v47, 1  ;;  %v1828_v1 = vrot.slane %v6784_v41, 2  ;;  %9423 = vst [vmem:[#allocation30_spill] sm:$0xff] %v6807_v45 }
 0x221   : > { %v6803_v13 = vadd.f32 %v6325_v38, %v6486_v19  ;;  %v3749_v31 = vadd.f32 3.0, %v6788_v42  ;;  %v3796_v56 = vmax.f32 %v3748_v29, 0.0  ;;  %v3405_v33 = vunpack.c.l.bf16 %v3389_v61  ;;  %v2848_v19 = vld [vmem:[#allocation2 + $0x78] sm:$0x80] }
 0x222   : > { %v6799_v30 = vrot.slane %v1097_v58, 4  ;;  %v3798_v25 = vmax.f32 %v3750_v14, 0.0  ;;  %v1337_v22 = vmul.f32 %v6349_v6, %v1283_v60  ;;  %v1722_v47 = vmul.f32 %v6810_v46, %v6684_v12 }
 0x223   : > { %v6815_v41 = vmul.f32 %v6372_v49, %v2549_v28  ;;  %v1338_v15 = vmul.f32 %v6349_v6, %v1284_v35  ;;  %v1636_v17 = vadd.f32 %v1539_v11, %v1339_v20  ;;  %v2061_v29 = vrot.slane %v1993_v54, 4 }
 0x224   : > { %v867_v36 = vmax.f32 %v835_v9, 0.0  ;;  %v1540_v61 = vsel %vm1525_vm1, %v1538_v7, %v1539_v11  ;;  %v1831_v14 = vsel %vm1806_vm2, %v1828_v1, %v1830_v0  ;;  %v6821_v60 = vunpack.c.l.bf16 %v6799_v30  ;;  %v6828_v9 = vpop.f32.mrb[36].mxu0 }
 0x225   : > { %v836_v16 = vadd.f32 3.0, %v6803_v13  ;;  %v3797_v45 = vmax.f32 %v3749_v31, 0.0  ;;  %v3844_v12 = vmin.f32 %v3796_v56, 6.0  ;;  %v2915_v26 = vrot.slane %v2848_v19, 4  ;;  %9424 = vst [vmem:[#allocation31_spill] sm:$0xff] %v6828_v9 }
 0x226   : > { %v6825_v28 = vmul.f32 %v6403_v23, %v3405_v33  ;;  %v3846_v4 = vmin.f32 %v3798_v25, 6.0  ;;  %v1634_v6 = vadd.f32 %v1538_v7, %v1337_v22  ;;  %v1827_v35 = vrot.slane %v1722_v47, 2  ;;  %v7035_v9 = vld [vmem:[#allocation8 + $0x7] ss:$0 sm:$0xff] }
 0x227   : > { %v2686_v20 = vrot.slane %v6815_v41, 2  ;;  %v1635_v11 = vadd.f32 %v1540_v61, %v1338_v15  ;;  %v1949_v0 = vadd.f32 %v1831_v14, %v1636_v17  ;;  %v6830_v54 = vunpack.c.l.bf16 %v1097_v58 }
 0x228   : > { %v899_v10 = vmin.f32 %v867_v36, 6.0  ;;  %v6832_v2 = vunpack.c.h.bf16 %v1097_v58  ;;  %v2063_v31 = vsel %vm1190_vm0, %v2061_v29, %v6799_v30  ;;  %v2197_v56 = vmul.f32 %v6415_v43, %v6821_v60 }
 0x229   : > { %v868_v33 = vmax.f32 %v836_v16, 0.0  ;;  %v3845_v7 = vmin.f32 %v3797_v45, 6.0  ;;  %v3892_v25 = vmul.f32 %v3844_v12, %v6757_v5  ;;  %v2141_v22 = vunpack.c.l.bf16 %v2063_v31 }
 0x22a   : > { %v3538_v47 = vrot.slane %v6825_v28, 2  ;;  %v6841_v41 = vmul.f32 %v3846_v4, %v6768_v3  ;;  %v1829_v36 = vsel %vm1806_vm2, %v1827_v35, %v1828_v1  ;;  %v2142_v58 = vunpack.c.h.bf16 %v2063_v31  ;;  %v6855_v28 = vpop.f32.mrb[37].mxu0 }
 0x22b   : > { %v2245_v19 = vadd.f32 %v2197_v56, %v1949_v0  ;;  %v1947_v15 = vadd.f32 %v1827_v35, %v1634_v6  ;;  %v1948_v17 = vadd.f32 %v1829_v36, %v1635_v11  ;;  %v2195_v29 = vmul.f32 %v6415_v43, %v2141_v22 }
 0x22c   : > { %v2327_v16 = vmul.f32 %v6410_v40, %v6830_v54  ;;  %v2196_v45 = vmul.f32 %v6415_v43, %v2142_v58  ;;  %v2328_v5 = vmul.f32 %v6410_v40, %v6832_v2  ;;  %v931_v61 = vmul.f32 %v899_v10, %v6778_v55  ;;  %v6861_v10 = vpop.f32.mrb[38].mxu0 }
 0x22d   : > { %v900_v4 = vmin.f32 %v868_v33, 6.0  ;;  %v2243_v3 = vadd.f32 %v2195_v29, %v1947_v15  ;;  %v2579_v1 = vmul.f32 %v6372_v49, %v6830_v54  ;;  %v2580_v12 = vmul.f32 %v6372_v49, %v6832_v2  ;;  %9425 = vst [vmem:[#allocation32_spill] sm:$0xff] %v6861_v10 }
 0x22e   : > { %v2395_v14 = vrot.slane %v2327_v16, 1  ;;  %v2244_v6 = vadd.f32 %v2196_v45, %v1948_v17  ;;  %v2396_v35 = vrot.slane %v2328_v5, 1  ;;  %v2917_v43 = vsel %vm1190_vm0, %v2915_v26, %v6799_v30 }
 0x22f   : > { %v3051_v40 = vmul.f32 %v6498_v21, %v6821_v60  ;;  %v2683_v11 = vrot.slane %v2579_v1, 2  ;;  %v2684_v0 = vrot.slane %v2580_v12, 2  ;;  %v2995_v31 = vunpack.c.l.bf16 %v2917_v43 }
 0x230   : > { %v2491_v55 = vadd.f32 %v2395_v14, %v2243_v3  ;;  %v2397_v56 = vsel %vm1525_vm1, %v2395_v14, %v2396_v35  ;;  %v2493_v33 = vadd.f32 %v2396_v35, %v2245_v19  ;;  %v2996_v49 = vunpack.c.h.bf16 %v2917_v43 }
 0x231   : > { %v3099_v22 = vadd.f32 %v3051_v40, %v6736_v37  ;;  %v2492_v36 = vadd.f32 %v2397_v56, %v2244_v6  ;;  %v2685_v58 = vsel %vm1806_vm2, %v2683_v11, %v2684_v0  ;;  %v2687_v26 = vsel %vm1806_vm2, %v2684_v0, %v2686_v20 }
 0x232   : > { %v6867_v15 = vadd.f32 %v2683_v11, %v2491_v55  ;;  %v6869_v17 = vadd.f32 %v2687_v26, %v2493_v33  ;;  %v3049_v29 = vmul.f32 %v6498_v21, %v2995_v31  ;;  %v3050_v16 = vmul.f32 %v6498_v21, %v2996_v49 }
 0x233   : > { %v3182_v45 = vmul.f32 %v6511_v48, %v6830_v54  ;;  %v6875_v19 = vadd.f32 %v2685_v58, %v2492_v36  ;;  %v3183_v37 = vmul.f32 %v6511_v48, %v6832_v2  ;;  %v3433_v5 = vmul.f32 %v6403_v23, %v6830_v54 }
 0x234   : > { %v3434_v20 = vmul.f32 %v6403_v23, %v6832_v2  ;;  %v3893_v3 = vmul.f32 %v3845_v7, %v6788_v42  ;;  %v3097_v14 = vadd.f32 %v3049_v29, %v6722_v34  ;;  %v3098_v21 = vadd.f32 %v3050_v16, %v6734_v57  ;;  %v6893_v42 = vld [vmem:[#allocation8 + $0x1] ss:$0 sm:$0xff]  ;;  %v1995_v29 = vld [vmem:[#allocation2 + $0x90] sm:$0x80] }
 0x235   : > { %v3249_v1 = vrot.slane %v3182_v45, 1  ;;  %v3250_v12 = vrot.slane %v3183_v37, 1  ;;  %v3535_v6 = vrot.slane %v3433_v5, 2  ;;  %v932_v43 = vmul.f32 %v900_v4, %v6803_v13  ;;  %v2534_v37 = vld [vmem:[#allocation2 + $0xa0] sm:$0x1] }
 0x236   : > { %v3536_v35 = vrot.slane %v3434_v20, 2  ;;  %v6887_v40 = vmul.f32 0.16666667, %v3892_v25  ;;  %v9427_v55 = vrot.slane %v6770_v50, 4  ;;  %v963_v0 = vmul.f32 0.16666667, %v931_v61 }
 0x237   : > { %v3345_v23 = vadd.f32 %v3249_v1, %v3097_v14  ;;  %v1471_v34 = vmul.f32 %v6893_v42, %v6830_v54  ;;  %v1472_v57 = vmul.f32 %v6893_v42, %v6832_v2  ;;  %v3251_v7 = vsel %vm1525_vm1, %v3249_v1, %v3250_v12  ;;  %v6943_v1 = vld [vmem:[#allocation8] ss:$0 sm:$0xff] }
 0x238   : > { %9426 = vst [vmem:[#allocation33_spill] sm:$0xff] %v6887_v40  ;;  %v1208_v11 = vsel %vm1190_vm0, %v9427_v55, %v6799_v30  ;;  %v3347_v13 = vadd.f32 %v3250_v12, %v3099_v22  ;;  %v3346_v25 = vadd.f32 %v3251_v7, %v3098_v21  ;;  %v3539_v4 = vsel %vm1806_vm2, %v3536_v35, %v3538_v47 }
 0x239   : > { %v6901_v50 = vadd.f32 %v3535_v6, %v3345_v23  ;;  %v964_v30 = vmul.f32 0.16666667, %v932_v43  ;;  %v6903_v31 = vmul.f32 0.16666667, %v3893_v3  ;;  %v3537_v61 = vsel %vm1806_vm2, %v3535_v6, %v3536_v35 }
 0x23a   : > { %v6906_v56 = vadd.f32 %v3539_v4, %v3347_v13  ;;  %v1000_v33 = vadd.f32 %v6329_v39, %v6492_v8  ;;  %v6912_v49 = vadd.f32 %v6705_v59, %v6657_v18  ;;  %v6914_v22 = vadd.f32 %v3537_v61, %v3346_v25 }
 0x23b   : > { %9428 = vst [vmem:[#allocation34_spill] sm:$0xff] %v6903_v31  ;;  %v1098_v47 = vpack.c.bf16 %v964_v30, %v963_v0  ;;  %v1001_v36 = vadd.f32 %v6329_v39, %v6518_v63  ;;  %v1286_v58 = vunpack.c.l.bf16 %v1208_v11  ;;  %v1287_v26 = vunpack.c.h.bf16 %v1208_v11  ;;  %v6952_v11 = vpop.f32.mrb[39].mxu0  ;;  %v3390_v30 = vld [vmem:[#allocation2 + $0xa0] sm:$0x1] }
 0x23c   : > { %1032 = vst [vmem:[%s6339_s28 + $0x58] sm:$0xff] %v1000_v33  ;;  %v1541_v16 = vrot.slane %v1471_v34, 1  ;;  %v1542_v45 = vrot.slane %v1472_v57, 1  ;;  %v1725_v8 = vmul.f32 %v6810_v46, %v6830_v54  ;;  %v1726_v18 = vmul.f32 %v6810_v46, %v6832_v2  ;;  %9431 = vst [vmem:[#allocation36_spill] sm:$0xff] %v6952_v11 }
 0x23d   : > { %1033 = vst [vmem:[%s6339_s28 + $0x60] sm:$0xff] %v1001_v36  ;;  %v6925_v5 = vmul.f32 0.16666667, %v6841_v41  ;;  %v4037_v63 = vrot.slane %v6887_v40, 7  ;;  %v9318_v20 = vrot.slane %v6903_v31, 7  ;;  %v9430_v3 = vunpack.c.l.bf16 %v6793_v52 }
 0x23e   : > { %v6934_v21 = vadd.f32 %v6705_v59, %v6661_v27  ;;  %v6938_v2 = vadd.f32 %v6705_v59, %v6659_v53  ;;  %v6941_v54 = vadd.f32 3.0, %v6912_v49  ;;  %v2064_v41 = vrot.slane %v1995_v29, 4 }
 0x23f   : > { %9429 = vst [vmem:[#allocation35_spill] sm:$0xff] %v6925_v5  ;;  %v1727_v14 = vmul.f32 %v6810_v46, %v9430_v3  ;;  %v1340_v12 = vmul.f32 %v6943_v1, %v1286_v58  ;;  %v1341_v52 = vmul.f32 %v6943_v1, %v1287_v26  ;;  %v6947_v6 = vrot.slane %v1098_v47, 4  ;;  %v6974_v58 = vld [vmem:[#allocation2 + $0x90] sm:$0x80]  ;;  %v6976_v26 = vld [vmem:[#allocation8 + $0x5] ss:$0 sm:$0xff] }
 0x240   : > { %v2550_v35 = vunpack.c.l.bf16 %v2534_v37  ;;  %v1342_v27 = vmul.f32 %v6943_v1, %v6821_v60  ;;  %v1543_v43 = vsel %vm1525_vm1, %v1541_v16, %v1542_v45  ;;  %v1832_v53 = vrot.slane %v1725_v8, 2  ;;  %v2850_v37 = vld [vmem:[#allocation2 + $0x90] sm:$0x80] }
 0x241   : > { %v1833_v55 = vrot.slane %v1726_v18, 2  ;;  %v1835_v23 = vrot.slane %v1727_v14, 2  ;;  %v6957_v0 = vsel %vm4036_vm3, %v4037_v63, %v9318_v20  ;;  %v6961_v57 = vadd.f32 3.0, %v6938_v2 }
 0x242   : > { %v6965_v60 = vadd.f32 %v6325_v38, %v6514_v32  ;;  %v6968_v7 = vadd.f32 3.0, %v6934_v21  ;;  %v1637_v13 = vadd.f32 %v1541_v16, %v1340_v12  ;;  %v1638_v25 = vadd.f32 %v1543_v43, %v1341_v52 }
 0x243   : > { %v2066_v4 = vsel %vm1190_vm0, %v2064_v41, %v6947_v6  ;;  %v1639_v33 = vadd.f32 %v1542_v45, %v1342_v27  ;;  %v1834_v36 = vsel %vm1806_vm2, %v1832_v53, %v1833_v55  ;;  %v2584_v32 = vmul.f32 %v6976_v26, %v2550_v35  ;;  %v6988_v41 = vpop.f32.mrb[40].mxu0 }
 0x244   : > { %v1836_v29 = vsel %vm1806_vm2, %v1833_v55, %v1835_v23  ;;  %v6981_v16 = vunpack.c.l.bf16 %v6947_v6  ;;  %v6983_v8 = vunpack.c.l.bf16 %v1098_v47  ;;  %v6985_v18 = vunpack.c.h.bf16 %v1098_v47  ;;  %9432 = vst [vmem:[#allocation37_spill] sm:$0xff] %v6988_v41  ;;  %v6995_v55 = vld [vmem:[#allocation8 + $0x3] ss:$0 sm:$0xff] }
 0x245   : > { %v2144_v63 = vunpack.c.l.bf16 %v2066_v4  ;;  %v2145_v45 = vunpack.c.h.bf16 %v2066_v4  ;;  %v3406_v3 = vunpack.c.l.bf16 %v3390_v30  ;;  %v837_v14 = vadd.f32 3.0, %v6965_v60 }
 0x246   : > { %v1950_v12 = vadd.f32 %v1832_v53, %v1637_v13  ;;  %v1951_v52 = vadd.f32 %v1834_v36, %v1638_v25  ;;  %v1209_v35 = vrot.slane %v6974_v58, 4  ;;  %v6993_v27 = vadd.f32 %v6325_v38, %v6528_v51  ;;  %v7001_v53 = vld [vmem:[#allocation8 + $0x4] ss:$0 sm:$0xff]  ;;  %v7007_v25 = vpop.f32.mrb[41].mxu0  ;;  %v7011_v58 = vld [vmem:[#allocation8 + $0x8] ss:$0 sm:$0xff] }
 0x247   : > { %v1952_v43 = vadd.f32 %v1836_v29, %v1639_v33  ;;  %v2198_v47 = vmul.f32 %v6995_v55, %v2144_v63  ;;  %v2691_v23 = vrot.slane %v2584_v32, 2  ;;  %v2918_v4 = vrot.slane %v2850_v37, 4  ;;  %9433 = vst [vmem:[#allocation38_spill] sm:$0xff] %v7007_v25  ;;  %v7014_v37 = vpop.f32.mrb[42].mxu0 }
 0x248   : > { %v2199_v30 = vmul.f32 %v6995_v55, %v2145_v45  ;;  %v2200_v20 = vmul.f32 %v6995_v55, %v6981_v16  ;;  %v2329_v13 = vmul.f32 %v7001_v53, %v6983_v8  ;;  %v2330_v51 = vmul.f32 %v7001_v53, %v6985_v18  ;;  %9434 = vst [vmem:[#allocation39_spill] sm:$0xff] %v7014_v37 }
 0x249   : > { %v2246_v33 = vadd.f32 %v2198_v47, %v1950_v12  ;;  %v2582_v36 = vmul.f32 %v6976_v26, %v6983_v8  ;;  %v3438_v32 = vmul.f32 %v7011_v58, %v3406_v3  ;;  %v869_v29 = vmax.f32 %v837_v14, 0.0  ;;  %v7021_v3 = vld [vmem:[#allocation8 + $0x6] ss:$0 sm:$0xff] }
 0x24a   : > { %v2247_v63 = vadd.f32 %v2199_v30, %v1951_v52  ;;  %v2248_v45 = vadd.f32 %v2200_v20, %v1952_v43  ;;  %v2398_v34 = vrot.slane %v2329_v13, 1  ;;  %v838_v61 = vadd.f32 3.0, %v6993_v27 }
 0x24b   : > { %v2399_v40 = vrot.slane %v2330_v51, 1  ;;  %v2583_v25 = vmul.f32 %v6976_v26, %v6985_v18  ;;  %v2688_v12 = vrot.slane %v2582_v36, 2  ;;  %v2920_v47 = vsel %vm1190_vm0, %v2918_v4, %v6947_v6 }
 0x24c   : > { %v2494_v41 = vadd.f32 %v2398_v34, %v2246_v33  ;;  %v2998_v11 = vunpack.c.l.bf16 %v2920_v47  ;;  %v2999_v10 = vunpack.c.h.bf16 %v2920_v47  ;;  %v3054_v14 = vmul.f32 %v7021_v3, %v6981_v16 }
 0x24d   : > { %v2400_v20 = vsel %vm1525_vm1, %v2398_v34, %v2399_v40  ;;  %v2496_v52 = vadd.f32 %v2399_v40, %v2248_v45  ;;  %v2689_v43 = vrot.slane %v2583_v25, 2  ;;  %v3184_v30 = vmul.f32 %v6511_v48, %v6983_v8 }
 0x24e   : > { %v2495_v13 = vadd.f32 %v2400_v20, %v2247_v63  ;;  %v7028_v51 = vadd.f32 %v2688_v12, %v2494_v41  ;;  %v3052_v4 = vmul.f32 %v7021_v3, %v2998_v11  ;;  %v3053_v33 = vmul.f32 %v7021_v3, %v2999_v10  ;;  %v1678_v20 = vld [vmem:[#allocation2 + $0xa0] sm:$0x1] }
 0x24f   : > { %v2690_v36 = vsel %vm1806_vm2, %v2688_v12, %v2689_v43  ;;  %v2692_v47 = vsel %vm1806_vm2, %v2689_v43, %v2691_v23  ;;  %v3102_v37 = vadd.f32 %v3054_v14, %v6869_v17  ;;  %v3185_v40 = vmul.f32 %v7035_v9, %v6985_v18 }
 0x250   : > { %v7039_v34 = vadd.f32 %v2690_v36, %v2495_v13  ;;  %v7041_v48 = vadd.f32 %v2692_v47, %v2496_v52  ;;  %v3100_v41 = vadd.f32 %v3052_v4, %v6867_v15  ;;  %v3101_v11 = vadd.f32 %v3053_v33, %v6875_v19 }
 0x251   : > { %v3252_v10 = vrot.slane %v3184_v30, 1  ;;  %v3253_v25 = vrot.slane %v3185_v40, 1  ;;  %v3436_v23 = vmul.f32 %v7011_v58, %v6983_v8  ;;  %v3437_v17 = vmul.f32 %v7011_v58, %v6985_v18 }
 0x252   : > { %v1211_v63 = vsel %vm1190_vm0, %v1209_v35, %v6947_v6  ;;  %v3543_v45 = vrot.slane %v3438_v32, 2  ;;  %v901_v12 = vmin.f32 %v869_v29, 6.0  ;;  %v870_v14 = vmax.f32 %v838_v61, 0.0 }
 0x253   : > { %v3254_v52 = vsel %vm1525_vm1, %v3252_v10, %v3253_v25  ;;  %v3348_v15 = vadd.f32 %v3252_v10, %v3100_v41  ;;  %v3350_v43 = vadd.f32 %v3253_v25, %v3102_v37  ;;  %v3540_v19 = vrot.slane %v3436_v23, 2 }
 0x254   : > { %v3349_v30 = vadd.f32 %v3254_v52, %v3101_v11  ;;  %v3541_v13 = vrot.slane %v3437_v17, 2  ;;  %v933_v4 = vmul.f32 %v901_v12, %v6965_v60  ;;  %v902_v33 = vmin.f32 %v870_v14, 6.0  ;;  %v9441_v14 = vld [vmem:[#allocation21_spill] sm:$0xff]  ;;  %v7078_v52 = vpop.f32.mrb[43].mxu0 }
 0x255   : > { %v3800_v36 = vmax.f32 %v6968_v7, 0.0  ;;  %v3801_v47 = vmax.f32 %v6961_v57, 0.0  ;;  %v9435_v6 = vmax.f32 %v6941_v54, 0.0  ;;  %v7057_v32 = vadd.f32 %v3540_v19, %v3348_v15 }
 0x256   : > { %v1694_v61 = vunpack.c.l.bf16 %v1678_v20  ;;  %v3542_v29 = vsel %vm1806_vm2, %v3540_v19, %v3541_v13  ;;  %v3544_v37 = vsel %vm1806_vm2, %v3541_v13, %v3543_v45  ;;  %v934_v40 = vmul.f32 %v902_v33, %v6993_v27  ;;  %v9442_v33 = vld [vmem:[#allocation23_spill] sm:$0xff] }
 0x257   : > { %v3847_v35 = vmin.f32 %v9435_v6, 6.0  ;;  %9436 = vst [vmem:[#allocation40_spill] sm:$0xff] %v7057_v32  ;;  %v1289_v41 = vunpack.c.l.bf16 %v1211_v63  ;;  %v1473_v60 = vmul.f32 %v6893_v42, %v6983_v8  ;;  %v7064_v11 = vadd.f32 %v3542_v29, %v3349_v30  ;;  %v1997_v29 = vld [vmem:[#allocation2 + $0xa8] sm:$0x80] }
 0x258   : > { %v7066_v7 = vadd.f32 %v3544_v37, %v3350_v43  ;;  %v9439_v54 = vrot.slane %v6925_v5, 7  ;;  %v9440_v57 = vrot.slane %v6903_v31, 7  ;;  %v1474_v25 = vmul.f32 %v6893_v42, %v6985_v18  ;;  %v2535_v37 = vld [vmem:[#allocation2 + $0xb8] sm:$0x1] }
 0x259   : > { %9437 = vst [vmem:[#allocation41_spill] sm:$0xff] %v7064_v11  ;;  %v965_v23 = vmul.f32 0.16666667, %v933_v4  ;;  %v966_v27 = vmul.f32 0.16666667, %v934_v40  ;;  %v3848_v17 = vmin.f32 %v3800_v36, 6.0  ;;  %v3895_v12 = vmul.f32 %v3847_v35, %v6912_v49 }
 0x25a   : > { %9438 = vst [vmem:[#allocation42_spill] sm:$0xff] %v7066_v7  ;;  %v4041_v10 = vsel %vm4036_vm3, %v9440_v57, %v9439_v54  ;;  %v3849_v45 = vmin.f32 %v3801_v47, 6.0  ;;  %v1002_v20 = vadd.f32 %v6329_v39, %v9441_v14  ;;  %v1290_v15 = vunpack.c.h.bf16 %v1211_v63  ;;  %v7113_v40 = vpop.f32.mrb[44].mxu0 }
 0x25b   : > { %v1730_v43 = vmul.f32 %v6810_v46, %v1694_v61  ;;  %v1099_v19 = vpack.c.bf16 %v966_v27, %v965_v23  ;;  %v1343_v30 = vmul.f32 %v6943_v1, %v1289_v41  ;;  %v1544_v13 = vrot.slane %v1473_v60, 1 }
 0x25c   : > { %v1729_v4 = vmul.f32 %v6810_v46, %v6985_v18  ;;  %1034 = vst [vmem:[%s6339_s28 + $0x68] sm:$0xff] %v1002_v20  ;;  %v1003_v49 = vadd.f32 %v6329_v39, %v9442_v33  ;;  %v7088_v36 = vadd.f32 %v4041_v10, %v6957_v0  ;;  %v1545_v47 = vrot.slane %v1474_v25, 1  ;;  %v3391_v20 = vld [vmem:[#allocation2 + $0xb8] sm:$0x1] }
 0x25d   : > { %v1728_v63 = vmul.f32 %v6810_v46, %v6983_v8  ;;  %v3896_v6 = vmul.f32 %v3848_v17, %v6934_v21  ;;  %v3897_v35 = vmul.f32 %v3849_v45, %v6938_v2  ;;  %v7094_v61 = vmul.f32 0.16666667, %v3895_v12 }
 0x25e   : > { %v7098_v18 = vadd.f32 %v6705_v59, %v6746_v44  ;;  %1035 = vst [vmem:[%s6339_s28 + $0x70] sm:$0xff] %v1003_v49  ;;  %v7103_v0 = vadd.f32 %v6705_v59, %v6760_v24  ;;  %v7107_v8 = vadd.f32 %v6705_v59, %v6762_v62  ;;  %v1345_v21 = vmul.f32 %v6943_v1, %v6981_v16 }
 0x25f   : > { %9443 = vst [vmem:[#allocation21_spill] sm:$0xff] %v7094_v61  ;;  %v7111_v2 = vrot.slane %v1099_v19, 4  ;;  %v1344_v44 = vmul.f32 %v6943_v1, %v1290_v15  ;;  %v1640_v41 = vadd.f32 %v1544_v13, %v1343_v30  ;;  %v1838_v60 = vrot.slane %v1729_v4, 2  ;;  %v2852_v4 = vld [vmem:[#allocation2 + $0xa8] sm:$0x80] }
 0x260   : > { %v1840_v54 = vrot.slane %v1730_v43, 2  ;;  %v1546_v57 = vsel %vm1525_vm1, %v1544_v13, %v1545_v47  ;;  %v1837_v24 = vrot.slane %v1728_v63, 2  ;;  %v2067_v10 = vrot.slane %v1997_v29, 4 }
 0x261   : > { %v2551_v25 = vunpack.c.l.bf16 %v2535_v37  ;;  %v7117_v23 = vmul.f32 0.16666667, %v3896_v6  ;;  %v7119_v62 = vmul.f32 0.16666667, %v3897_v35  ;;  %v7123_v27 = vadd.f32 3.0, %v7098_v18  ;;  %v7143_v6 = vpop.f32.mrb[45].mxu0 }
 0x262   : > { %v7126_v17 = vadd.f32 3.0, %v7103_v0  ;;  %v1642_v45 = vadd.f32 %v1545_v47, %v1345_v21  ;;  %v7129_v12 = vunpack.c.l.bf16 %v7111_v2  ;;  %v7131_v14 = vunpack.c.l.bf16 %v1099_v19  ;;  %9446 = vst [vmem:[#allocation44_spill] sm:$0xff] %v7143_v6  ;;  %v9447_v21 = vld [vmem:[#allocation22_spill] sm:$0xff] }
 0x263   : > { %9444 = vst [vmem:[#allocation23_spill] sm:$0xff] %v7117_v23  ;;  %9445 = vst [vmem:[#allocation43_spill] sm:$0xff] %v7119_v62  ;;  %v7134_v15 = vadd.f32 3.0, %v7107_v8  ;;  %v1641_v43 = vadd.f32 %v1546_v57, %v1344_v44  ;;  %v1841_v30 = vsel %vm1806_vm2, %v1838_v60, %v1840_v54  ;;  %v7137_v13 = vunpack.c.h.bf16 %v1099_v19  ;;  %v7149_v19 = vpop.f32.mrb[46].mxu0 }
 0x264   : > { %v1839_v33 = vsel %vm1806_vm2, %v1837_v24, %v1838_v60  ;;  %v1953_v49 = vadd.f32 %v1837_v24, %v1640_v41  ;;  %v2069_v47 = vsel %vm1190_vm0, %v2067_v10, %v7111_v2  ;;  %v2587_v63 = vmul.f32 %v6976_v26, %v2551_v25  ;;  %9448 = vst [vmem:[#allocation22_spill] sm:$0xff] %v7149_v19 }
 0x265   : > { %v2147_v35 = vunpack.c.l.bf16 %v2069_v47  ;;  %v2148_v29 = vunpack.c.h.bf16 %v2069_v47  ;;  %v3407_v37 = vunpack.c.l.bf16 %v3391_v20  ;;  %v7147_v44 = vadd.f32 %v6325_v38, %v9447_v21 }
 0x266   : > { %v1955_v54 = vadd.f32 %v1841_v30, %v1642_v45  ;;  %v2203_v41 = vmul.f32 %v6995_v55, %v7129_v12  ;;  %v2331_v60 = vmul.f32 %v7001_v53, %v7131_v14  ;;  %v2921_v57 = vrot.slane %v2852_v4, 4 }
 0x267   : > { %v1954_v24 = vadd.f32 %v1839_v33, %v1641_v43  ;;  %v2201_v10 = vmul.f32 %v6995_v55, %v2147_v35  ;;  %v2202_v25 = vmul.f32 %v6995_v55, %v2148_v29  ;;  %v2332_v20 = vmul.f32 %v7001_v53, %v7137_v13 }
 0x268   : > { %v3802_v47 = vmax.f32 %v7123_v27, 0.0  ;;  %v2251_v21 = vadd.f32 %v2203_v41, %v1955_v54  ;;  %v2401_v16 = vrot.slane %v2331_v60, 1  ;;  %v2696_v45 = vrot.slane %v2587_v63, 2 }
 0x269   : > { %v2249_v30 = vadd.f32 %v2201_v10, %v1953_v49  ;;  %v2250_v5 = vadd.f32 %v2202_v25, %v1954_v24  ;;  %v3441_v31 = vmul.f32 %v7011_v58, %v3407_v37  ;;  %v839_v7 = vadd.f32 3.0, %v7147_v44 }
 0x26a   : > { %v2402_v4 = vrot.slane %v2332_v20, 1  ;;  %v2585_v43 = vmul.f32 %v6976_v26, %v7131_v14  ;;  %v2586_v33 = vmul.f32 %v6976_v26, %v7137_v13  ;;  %v2923_v35 = vsel %vm1190_vm0, %v2921_v57, %v7111_v2 }
 0x26b   : > { %v2497_v27 = vadd.f32 %v2401_v16, %v2249_v30  ;;  %v3001_v29 = vunpack.c.l.bf16 %v2923_v35  ;;  %v3002_v54 = vunpack.c.h.bf16 %v2923_v35  ;;  %v3057_v49 = vmul.f32 %v7021_v3, %v7129_v12 }
 0x26c   : > { %v2403_v63 = vsel %vm1525_vm1, %v2401_v16, %v2402_v4  ;;  %v2499_v37 = vadd.f32 %v2402_v4, %v2251_v21  ;;  %v2693_v41 = vrot.slane %v2585_v43, 2  ;;  %v2694_v60 = vrot.slane %v2586_v33, 2  ;;  %v7186_v43 = vpop.f32.mrb[47].mxu0 }
 0x26d   : > { %v2498_v24 = vadd.f32 %v2403_v63, %v2250_v5  ;;  %v3055_v10 = vmul.f32 %v7021_v3, %v3001_v29  ;;  %v3056_v25 = vmul.f32 %v7021_v3, %v3002_v54  ;;  %v3105_v20 = vadd.f32 %v3057_v49, %v7041_v48  ;;  %9449 = vst [vmem:[#allocation45_spill] sm:$0xff] %v7186_v43  ;;  %v1140_v48 = vld [vmem:[#allocation2 + $0xa8] sm:$0x80]  ;;  %v1679_v49 = vld [vmem:[#allocation2 + $0xb8] sm:$0x1]  ;;  %v7199_v6 = vpop.f32.mrb[48].mxu0 }
 0x26e   : > { %v2695_v57 = vsel %vm1806_vm2, %v2693_v41, %v2694_v60  ;;  %v2697_v30 = vsel %vm1806_vm2, %v2694_v60, %v2696_v45  ;;  %v7176_v35 = vadd.f32 %v2693_v41, %v2497_v27  ;;  %v3186_v11 = vmul.f32 %v7035_v9, %v7131_v14 }
 0x26f   : > { %v7180_v16 = vadd.f32 %v2695_v57, %v2498_v24  ;;  %v7182_v21 = vadd.f32 %v2697_v30, %v2499_v37  ;;  %v3103_v5 = vadd.f32 %v3055_v10, %v7028_v51  ;;  %v3104_v4 = vadd.f32 %v3056_v25, %v7039_v34  ;;  %v9450_v37 = vld [vmem:[#allocation24_spill] sm:$0xff] }
 0x270   : > { %v3187_v33 = vmul.f32 %v7035_v9, %v7137_v13  ;;  %v3255_v45 = vrot.slane %v3186_v11, 1  ;;  %v3439_v27 = vmul.f32 %v7011_v58, %v7131_v14  ;;  %v3440_v29 = vmul.f32 %v7011_v58, %v7137_v13 }
 0x271   : > { %v3803_v54 = vmax.f32 %v7126_v17, 0.0  ;;  %v3548_v63 = vrot.slane %v3441_v31, 2  ;;  %v871_v51 = vmax.f32 %v839_v7, 0.0  ;;  %v808_v34 = vadd.f32 %v6325_v38, %v9450_v37 }
 0x272   : > { %v3256_v41 = vrot.slane %v3187_v33, 1  ;;  %v3351_v60 = vadd.f32 %v3255_v45, %v3103_v5  ;;  %v3545_v24 = vrot.slane %v3439_v27, 2  ;;  %v3546_v10 = vrot.slane %v3440_v29, 2  ;;  %v7204_v33 = vpop.f32.mrb[49].mxu0 }
 0x273   : > { %v4043_v11 = vrot.slane %v7117_v23, 7  ;;  %v3850_v25 = vmin.f32 %v3802_v47, 6.0  ;;  %v903_v57 = vmin.f32 %v871_v51, 6.0  ;;  %v840_v30 = vadd.f32 3.0, %v808_v34  ;;  %v9455_v51 = vld [vmem:[#allocation25_spill] sm:$0xff] }
 0x274   : > { %v1212_v32 = vrot.slane %v1140_v48, 4  ;;  %v1695_v43 = vunpack.c.l.bf16 %v1679_v49  ;;  %v3257_v19 = vsel %vm1525_vm1, %v3255_v45, %v3256_v41  ;;  %v3353_v17 = vadd.f32 %v3256_v41, %v3105_v20  ;;  %v7210_v49 = vpop.f32.mrb[50].mxu0 }
 0x275   : > { %v3352_v31 = vadd.f32 %v3257_v19, %v3104_v4  ;;  %v3549_v7 = vsel %vm1806_vm2, %v3546_v10, %v3548_v63  ;;  %v7202_v37 = vadd.f32 %v3545_v24, %v3351_v60  ;;  %v872_v5 = vmax.f32 %v840_v30, 0.0  ;;  %9453 = vst [vmem:[#allocation47_spill] sm:$0xff] %v7210_v49 }
 0x276   : > { %v3804_v27 = vmax.f32 %v7134_v15, 0.0  ;;  %v3851_v47 = vmin.f32 %v3803_v54, 6.0  ;;  %v3547_v29 = vsel %vm1806_vm2, %v3545_v24, %v3546_v10  ;;  %v7208_v48 = vadd.f32 %v3549_v7, %v3353_v17 }
 0x277   : > { %9451 = vst [vmem:[#allocation24_spill] sm:$0xff] %v7202_v37  ;;  %v3898_v20 = vmul.f32 %v3850_v25, %v7098_v18  ;;  %v7213_v19 = vadd.f32 %v3547_v29, %v3352_v31  ;;  %v935_v4 = vmul.f32 %v903_v57, %v7147_v44  ;;  %v904_v45 = vmin.f32 %v872_v5, 6.0  ;;  %v9457_v57 = vld [vmem:[#allocation28_spill] sm:$0xff] }
 0x278   : > { %9452 = vst [vmem:[#allocation46_spill] sm:$0xff] %v7208_v48  ;;  %v1214_v63 = vsel %vm1190_vm0, %v1212_v32, %v7111_v2  ;;  %v1475_v15 = vmul.f32 %v6893_v42, %v7131_v14  ;;  %v1476_v54 = vmul.f32 %v6893_v42, %v7137_v13  ;;  %v1004_v41 = vadd.f32 %v6329_v39, %v9455_v51 }
 0x279   : > { %9454 = vst [vmem:[#allocation48_spill] sm:$0xff] %v7213_v19  ;;  %v4045_v60 = vrot.slane %v7119_v62, 7  ;;  %v1732_v18 = vmul.f32 %v6810_v46, %v7137_v13  ;;  %v1733_v44 = vmul.f32 %v6810_v46, %v1695_v43  ;;  %v936_v24 = vmul.f32 %v904_v45, %v808_v34 }
 0x27a   : > { %v9456_v32 = vrot.slane %v7094_v61, 7  ;;  %v3852_v10 = vmin.f32 %v3804_v27, 6.0  ;;  %v3899_v25 = vmul.f32 %v3851_v47, %v7103_v0  ;;  %1036 = vst [vmem:[%s6339_s28 + $0x78] sm:$0xff] %v1004_v41  ;;  %v1005_v30 = vadd.f32 %v6329_v39, %v9457_v57  ;;  %v1999_v41 = vld [vmem:[#allocation2 + $0xc0] sm:$0x80] }
 0x27b   : > { %v1292_v17 = vunpack.c.l.bf16 %v1214_v63  ;;  %v1293_v31 = vunpack.c.h.bf16 %v1214_v63  ;;  %v967_v7 = vmul.f32 0.16666667, %v935_v4  ;;  %v968_v5 = vmul.f32 0.16666667, %v936_v24  ;;  %v9459_v63 = vld [vmem:[#allocation26_spill] sm:$0xff] }
 0x27c   : > { %v4044_v2 = vsel %vm4036_vm3, %v9456_v32, %v4043_v11  ;;  %v7235_v13 = vmul.f32 0.16666667, %v3898_v20  ;;  %v1547_v29 = vrot.slane %v1475_v15, 1  ;;  %v1548_v43 = vrot.slane %v1476_v54, 1  ;;  %1037 = vst [vmem:[%s6339_s28 + $0x80] sm:$0xff] %v1005_v30 }
 0x27d   : > { %v1731_v34 = vmul.f32 %v6810_v46, %v7131_v14  ;;  %v1348_v27 = vmul.f32 %v6943_v1, %v7129_v12  ;;  %v1843_v0 = vrot.slane %v1732_v18, 2  ;;  %v1845_v47 = vrot.slane %v1733_v44, 2  ;;  %v2536_v20 = vld [vmem:[#allocation2 + $0xd0] sm:$0x1]  ;;  %v7258_v18 = vpop.f32.mrb[51].mxu0 }
 0x27e   : > { %9458 = vst [vmem:[#allocation25_spill] sm:$0xff] %v7235_v13  ;;  %v1100_v45 = vpack.c.bf16 %v968_v5, %v967_v7  ;;  %v7243_v51 = vsel %vm4036_vm3, %v4043_v11, %v4045_v60  ;;  %v7246_v4 = vadd.f32 %v7088_v36, %v4044_v2  ;;  %v7250_v15 = vadd.f32 %v6325_v38, %v9459_v63  ;;  %v7293_v63 = vld [vmem:[#allocation2 + $0xc0] sm:$0x80] }
 0x27f   : > { %v7252_v54 = vmul.f32 0.16666667, %v3899_v25  ;;  %v1346_v46 = vmul.f32 %v6943_v1, %v1292_v17  ;;  %v1347_v12 = vmul.f32 %v6943_v1, %v1293_v31  ;;  %9461 = vst [vmem:[#allocation26_spill] sm:$0xff] %v7258_v18  ;;  %v7261_v11 = vmul.f32 %v3852_v10, %v7107_v8  ;;  %v3392_v17 = vld [vmem:[#allocation2 + $0xd0] sm:$0x1]  ;;  %v9462_v10 = vld [vmem:[#allocation29_spill] sm:$0xff] }
 0x280   : > { %v7256_v14 = vrot.slane %v1100_v45, 4  ;;  %v7265_v36 = vadd.f32 %v6705_v59, %v6901_v50  ;;  %v1549_v60 = vsel %vm1525_vm1, %v1547_v29, %v1548_v43  ;;  %v1842_v44 = vrot.slane %v1731_v34, 2 }
 0x281   : > { %9460 = vst [vmem:[#allocation28_spill] sm:$0xff] %v7252_v54  ;;  %v1645_v32 = vadd.f32 %v1548_v43, %v1348_v27  ;;  %v1846_v2 = vsel %vm1806_vm2, %v1843_v0, %v1845_v47  ;;  %v2552_v25 = vunpack.c.l.bf16 %v2536_v20  ;;  %v2070_v30 = vrot.slane %v1999_v41, 4  ;;  %v7295_v41 = vpop.f32.mrb[52].mxu0 }
 0x282   : > { %v7271_v57 = vunpack.c.l.bf16 %v7256_v14  ;;  %v841_v8 = vadd.f32 3.0, %v7250_v15  ;;  %v7276_v50 = vadd.f32 %v6325_v38, %v9462_v10  ;;  %v1643_v7 = vadd.f32 %v1547_v29, %v1346_v46  ;;  %9463 = vst [vmem:[#allocation29_spill] sm:$0xff] %v7295_v41  ;;  %v7300_v10 = vld [vmem:[#allocation2 + $0xd0] sm:$0x1]  ;;  %v7307_v62 = vpop.f32.mrb[53].mxu0 }
 0x283   : > { %v1644_v5 = vadd.f32 %v1549_v60, %v1347_v12  ;;  %v7279_v34 = vunpack.c.l.bf16 %v1100_v45  ;;  %v7283_v43 = vadd.f32 %v6705_v59, %v6914_v22  ;;  %v7287_v27 = vadd.f32 %v6705_v59, %v6906_v56  ;;  %v2854_v22 = vld [vmem:[#allocation2 + $0xc0] sm:$0x80]  ;;  %9464 = vst [vmem:[#allocation49_spill] sm:$0xff] %v7307_v62 }
 0x284   : > { %v7290_v47 = vadd.f32 3.0, %v7265_v36  ;;  %v1844_v20 = vsel %vm1806_vm2, %v1842_v44, %v1843_v0  ;;  %v1958_v29 = vadd.f32 %v1846_v2, %v1645_v32  ;;  %v7297_v46 = vunpack.c.h.bf16 %v1100_v45 }
 0x285   : > { %v2590_v12 = vmul.f32 %v6976_v26, %v2552_v25  ;;  %v3408_v60 = vunpack.c.l.bf16 %v3392_v17  ;;  %v2072_v56 = vsel %vm1190_vm0, %v2070_v30, %v7256_v14  ;;  %v2206_v24 = vmul.f32 %v6995_v55, %v7271_v57  ;;  %v7312_v17 = vpop.f32.mrb[54].mxu0 }
 0x286   : > { %v873_v0 = vmax.f32 %v841_v8, 0.0  ;;  %v842_v31 = vadd.f32 3.0, %v7276_v50  ;;  %v1956_v32 = vadd.f32 %v1842_v44, %v1643_v7  ;;  %v1957_v45 = vadd.f32 %v1844_v20, %v1644_v5  ;;  %9465 = vst [vmem:[#allocation50_spill] sm:$0xff] %v7312_v17  ;;  %v7314_v19 = vpop.f32.mrb[55].mxu0 }
 0x287   : > { %v1215_v2 = vrot.slane %v7293_v63, 4  ;;  %v2333_v25 = vmul.f32 %v7001_v53, %v7279_v34  ;;  %v2150_v23 = vunpack.c.l.bf16 %v2072_v56  ;;  %v2151_v61 = vunpack.c.h.bf16 %v2072_v56  ;;  %9466 = vst [vmem:[#allocation51_spill] sm:$0xff] %v7314_v19 }
 0x288   : > { %v2254_v30 = vadd.f32 %v2206_v24, %v1958_v29  ;;  %v2924_v48 = vrot.slane %v2854_v22, 4  ;;  %v1696_v8 = vunpack.c.l.bf16 %v7300_v10  ;;  %v2334_v37 = vmul.f32 %v7001_v53, %v7297_v46 }
 0x289   : > { %v2701_v44 = vrot.slane %v2590_v12, 2  ;;  %v3444_v7 = vmul.f32 %v7011_v58, %v3408_v60  ;;  %v2204_v5 = vmul.f32 %v6995_v55, %v2150_v23  ;;  %v2205_v20 = vmul.f32 %v6995_v55, %v2151_v61 }
 0x28a   : > { %v905_v63 = vmin.f32 %v873_v0, 6.0  ;;  %v874_v17 = vmax.f32 %v842_v31, 0.0  ;;  %v2404_v41 = vrot.slane %v2333_v25, 1  ;;  %v2405_v56 = vrot.slane %v2334_v37, 1  ;;  %v7331_v37 = vpop.f32.mrb[56].mxu0 }
 0x28b   : > { %v2588_v24 = vmul.f32 %v6976_v26, %v7279_v34  ;;  %v2589_v29 = vmul.f32 %v6976_v26, %v7297_v46  ;;  %v2252_v22 = vadd.f32 %v2204_v5, %v1956_v32  ;;  %v2253_v10 = vadd.f32 %v2205_v20, %v1957_v45  ;;  %v7333_v49 = vpop.f32.mrb[57].mxu0 }
 0x28c   : > { %v2926_v12 = vsel %vm1190_vm0, %v2924_v48, %v7256_v14  ;;  %v3060_v23 = vmul.f32 %v7021_v3, %v7271_v57  ;;  %v2406_v61 = vsel %vm1525_vm1, %v2404_v41, %v2405_v56  ;;  %v2502_v60 = vadd.f32 %v2405_v56, %v2254_v30  ;;  %v7340_v30 = vpop.f32.mrb[58].mxu0 }
 0x28d   : > { %v2698_v31 = vrot.slane %v2588_v24, 2  ;;  %v2699_v0 = vrot.slane %v2589_v29, 2  ;;  %v2500_v25 = vadd.f32 %v2404_v41, %v2252_v22  ;;  %v2501_v19 = vadd.f32 %v2406_v61, %v2253_v10  ;;  %v7349_v29 = vpop.f32.mrb[59].mxu0 }
 0x28e   : > { %v3004_v62 = vunpack.c.l.bf16 %v2926_v12  ;;  %v3005_v18 = vunpack.c.h.bf16 %v2926_v12  ;;  %v3108_v45 = vadd.f32 %v3060_v23, %v7182_v21  ;;  %v3188_v5 = vmul.f32 %v7035_v9, %v7279_v34 }
 0x28f   : > { %v2700_v32 = vsel %vm1806_vm2, %v2698_v31, %v2699_v0  ;;  %v2702_v48 = vsel %vm1806_vm2, %v2699_v0, %v2701_v44  ;;  %v7342_v20 = vadd.f32 %v2698_v31, %v2500_v25  ;;  %v3189_v21 = vmul.f32 %v7035_v9, %v7297_v46 }
 0x290   : > { %v7344_v56 = vadd.f32 %v2700_v32, %v2501_v19  ;;  %v7346_v41 = vadd.f32 %v2702_v48, %v2502_v60  ;;  %v3058_v24 = vmul.f32 %v7021_v3, %v3004_v62  ;;  %v3059_v22 = vmul.f32 %v7021_v3, %v3005_v18 }
 0x291   : > { %v3258_v44 = vrot.slane %v3188_v5, 1  ;;  %v3442_v10 = vmul.f32 %v7011_v58, %v7279_v34  ;;  %v3443_v19 = vmul.f32 %v7011_v58, %v7297_v46  ;;  %v3553_v23 = vrot.slane %v3444_v7, 2  ;;  %v7369_v5 = vpop.f32.mrb[60].mxu0 }
 0x292   : > { %v3106_v12 = vadd.f32 %v3058_v24, %v7176_v35  ;;  %v906_v61 = vmin.f32 %v874_v17, 6.0  ;;  %v3107_v62 = vadd.f32 %v3059_v22, %v7180_v16  ;;  %v3259_v60 = vrot.slane %v3189_v21, 1  ;;  %v7371_v24 = vld [vmem:[#allocation8 + $0x2] ss:$0 sm:$0xff] }
 0x293   : > { %v3550_v31 = vrot.slane %v3442_v10, 2  ;;  %v937_v18 = vmul.f32 %v905_v63, %v7250_v15  ;;  %v1217_v0 = vsel %vm1190_vm0, %v1215_v2, %v7256_v14  ;;  %v3551_v32 = vrot.slane %v3443_v19, 2 }
 0x294   : > { %v3354_v25 = vadd.f32 %v3258_v44, %v3106_v12  ;;  %v938_v48 = vmul.f32 %v906_v61, %v7276_v50  ;;  %v1477_v35 = vmul.f32 %v6893_v42, %v7279_v34  ;;  %v1478_v7 = vmul.f32 %v6893_v42, %v7297_v46  ;;  %v7377_v50 = vpop.f32.mrb[61].mxu0 }
 0x295   : > { %v3260_v17 = vsel %vm1525_vm1, %v3258_v44, %v3259_v60  ;;  %v3356_v16 = vadd.f32 %v3259_v60, %v3108_v45  ;;  %v1736_v15 = vmul.f32 %v7371_v24, %v1696_v8  ;;  %v3554_v2 = vsel %vm1806_vm2, %v3551_v32, %v3553_v23  ;;  %9468 = vst [vmem:[#allocation53_spill] sm:$0xff] %v7377_v50  ;;  %v7382_v45 = vpop.f32.mrb[62].mxu0  ;;  %v9472_v8 = vld [vmem:[#allocation30_spill] sm:$0xff] }
 0x296   : > { %v3355_v14 = vadd.f32 %v3260_v17, %v3107_v62  ;;  %v7375_v63 = vadd.f32 %v3550_v31, %v3354_v25  ;;  %v3552_v22 = vsel %vm1806_vm2, %v3550_v31, %v3551_v32  ;;  %v969_v10 = vmul.f32 0.16666667, %v937_v18  ;;  %9470 = vst [vmem:[#allocation55_spill] sm:$0xff] %v7382_v45  ;;  %v7388_v62 = vpop.f32.mrb[63].mxu0  ;;  %v7625_v45 = vld [vmem:[#allocation8 + $0x6] ss:$0 sm:$0xff] }
 0x297   : > { %v7380_v21 = vadd.f32 %v3554_v2, %v3356_v16  ;;  %v970_v44 = vmul.f32 0.16666667, %v938_v48  ;;  %v1295_v12 = vunpack.c.l.bf16 %v1217_v0  ;;  %v1296_v19 = vunpack.c.h.bf16 %v1217_v0  ;;  %9473 = vst [vmem:[#allocation30_spill] sm:$0xff] %v7388_v62 }
 0x298   : > { %9467 = vst [vmem:[#allocation52_spill] sm:$0xff] %v7375_v63  ;;  %v7384_v61 = vadd.f32 %v3552_v22, %v3355_v14  ;;  %v1006_v23 = vadd.f32 %v6329_v39, %v9472_v8  ;;  %v1550_v60 = vrot.slane %v1477_v35, 1  ;;  %v1551_v25 = vrot.slane %v1478_v7, 1  ;;  %v2001_v14 = vld [vmem:[#allocation2 + $0xd8] sm:$0x80] }
 0x299   : > { %9469 = vst [vmem:[#allocation54_spill] sm:$0xff] %v7380_v21  ;;  %v1735_v31 = vmul.f32 %v7371_v24, %v7297_v46  ;;  %v1101_v32 = vpack.c.bf16 %v970_v44, %v969_v10  ;;  %v7393_v18 = vmul.f32 0.16666667, %v7261_v11  ;;  %v9475_v48 = vrot.slane %v7252_v54, 7  ;;  %v2537_v35 = vld [vmem:[#allocation2 + $0xe8] sm:$0x1] }
 0x29a   : > { %9471 = vst [vmem:[#allocation56_spill] sm:$0xff] %v7384_v61  ;;  %v9476_v0 = vrot.slane %v7235_v13, 7  ;;  %v4151_v16 = vadd.f32 %v7246_v4, %v7243_v51  ;;  %1038 = vst [vmem:[%s6339_s28 + $0x88] sm:$0xff] %v1006_v23  ;;  %v1007_v46 = vadd.f32 %v6329_v39, %v6855_v28  ;;  %v7406_v7 = vadd.f32 3.0, %v7283_v43  ;;  %v3393_v10 = vld [vmem:[#allocation2 + $0xe8] sm:$0x1] }
 0x29b   : > { %9474 = vst [vmem:[#allocation57_spill] sm:$0xff] %v7393_v18  ;;  %v3759_v11 = vadd.f32 3.0, %v7287_v27  ;;  %v3805_v2 = vmax.f32 %v7290_v47, 0.0  ;;  %v1734_v22 = vmul.f32 %v7371_v24, %v7279_v34  ;;  %v1349_v44 = vmul.f32 %v6943_v1, %v1295_v12  ;;  %v7424_v63 = vld [vmem:[#allocation2 + $0xe8] sm:$0x1] }
 0x29c   : > { %v4049_v17 = vsel %vm4036_vm3, %v9476_v0, %v9475_v48  ;;  %v1350_v51 = vmul.f32 %v6943_v1, %v1296_v19  ;;  %v1351_v4 = vmul.f32 %v6943_v1, %v7271_v57  ;;  %v1850_v8 = vrot.slane %v1736_v15, 2  ;;  %1039 = vst [vmem:[%s6339_s28 + $0x90] sm:$0xff] %v1007_v46  ;;  %v1144_v46 = vld [vmem:[#allocation2 + $0xd8] sm:$0x80] }
 0x29d   : > { %v1552_v28 = vsel %vm1525_vm1, %v1550_v60, %v1551_v25  ;;  %v1848_v23 = vrot.slane %v1735_v31, 2  ;;  %v1219_v48 = vrot.slane %v1101_v32, 4  ;;  %v2553_v0 = vunpack.c.l.bf16 %v2537_v35 }
 0x29e   : > { %v2073_v13 = vrot.slane %v2001_v14, 4  ;;  %v3409_v21 = vunpack.c.l.bf16 %v3393_v10  ;;  %v7419_v34 = vadd.f32 %v4151_v16, %v4049_v17  ;;  %v3807_v61 = vmax.f32 %v3759_v11, 0.0  ;;  %v2856_v17 = vld [vmem:[#allocation2 + $0xd8] sm:$0x80]  ;;  %v9478_v16 = vld [vmem:[#allocation31_spill] sm:$0xff] }
 0x29f   : > { %v1847_v19 = vrot.slane %v1734_v22, 2  ;;  %v7422_v54 = vmin.f32 %v3805_v2, 6.0  ;;  %v1646_v1 = vadd.f32 %v1550_v60, %v1349_v44  ;;  %v1647_v57 = vadd.f32 %v1552_v28, %v1350_v51 }
 0x2a0   : > { %9477 = vst [vmem:[#allocation58_spill] sm:$0xff] %v7419_v34  ;;  %v1648_v15 = vadd.f32 %v1551_v25, %v1351_v4  ;;  %v1851_v31 = vsel %vm1806_vm2, %v1848_v23, %v1850_v8  ;;  %v7427_v35 = vunpack.c.l.bf16 %v1219_v48  ;;  %v2593_v14 = vmul.f32 %v6976_v26, %v2553_v0 }
 0x2a1   : > { %v7432_v10 = vadd.f32 %v6325_v38, %v9478_v16  ;;  %v7434_v11 = vunpack.c.l.bf16 %v1101_v32  ;;  %v7436_v2 = vunpack.c.h.bf16 %v1101_v32  ;;  %v2075_v60 = vsel %vm1190_vm0, %v2073_v13, %v1219_v48 }
 0x2a2   : > { %v7440_v25 = vmul.f32 %v7011_v58, %v3409_v21  ;;  %v7442_v22 = vmin.f32 %v3807_v61, 6.0  ;;  %v1849_v44 = vsel %vm1806_vm2, %v1847_v19, %v1848_v23  ;;  %v1218_v51 = vrot.slane %v1144_v46, 4 }
 0x2a3   : > { %v1959_v8 = vadd.f32 %v1847_v19, %v1646_v1  ;;  %v1960_v28 = vadd.f32 %v1849_v44, %v1647_v57  ;;  %v1961_v0 = vadd.f32 %v1851_v31, %v1648_v15  ;;  %v2927_v16 = vrot.slane %v2856_v17, 4 }
 0x2a4   : > { %v2153_v47 = vunpack.c.l.bf16 %v2075_v60  ;;  %v2154_v12 = vunpack.c.h.bf16 %v2075_v60  ;;  %v2209_v32 = vmul.f32 %v6995_v55, %v7427_v35  ;;  %v2706_v13 = vrot.slane %v2593_v14, 2 }
 0x2a5   : > { %v2335_v21 = vmul.f32 %v7001_v53, %v7434_v11  ;;  %v2336_v61 = vmul.f32 %v7001_v53, %v7436_v2  ;;  %v3558_v23 = vrot.slane %v7440_v25, 2  ;;  %v843_v46 = vadd.f32 3.0, %v7432_v10 }
 0x2a6   : > { %v7455_v19 = vsel %vm1190_vm0, %v1218_v51, %v1219_v48  ;;  %v7459_v1 = vmul.f32 %v6893_v42, %v7434_v11  ;;  %v2207_v57 = vmul.f32 %v6995_v55, %v2153_v47  ;;  %v2208_v15 = vmul.f32 %v6995_v55, %v2154_v12 }
 0x2a7   : > { %v2257_v31 = vadd.f32 %v2209_v32, %v1961_v0  ;;  %v2407_v14 = vrot.slane %v2335_v21, 1  ;;  %v2408_v17 = vrot.slane %v2336_v61, 1  ;;  %v2591_v53 = vmul.f32 %v6976_v26, %v7434_v11 }
 0x2a8   : > { %v2255_v60 = vadd.f32 %v2207_v57, %v1959_v8  ;;  %v2256_v25 = vadd.f32 %v2208_v15, %v1960_v28  ;;  %v2592_v44 = vmul.f32 %v6976_v26, %v7436_v2  ;;  %v2929_v51 = vsel %vm1190_vm0, %v2927_v16, %v1219_v48 }
 0x2a9   : > { %v2409_v42 = vsel %vm1525_vm1, %v2407_v14, %v2408_v17  ;;  %v2505_v4 = vadd.f32 %v2408_v17, %v2257_v31  ;;  %v2703_v34 = vrot.slane %v2591_v53, 2  ;;  %v3007_v47 = vunpack.c.l.bf16 %v2929_v51 }
 0x2aa   : > { %v2503_v18 = vadd.f32 %v2407_v14, %v2255_v60  ;;  %v2504_v55 = vadd.f32 %v2409_v42, %v2256_v25  ;;  %v2704_v12 = vrot.slane %v2592_v44, 2  ;;  %v3008_v0 = vunpack.c.h.bf16 %v2929_v51 }
 0x2ab   : > { %v3061_v32 = vmul.f32 %v7021_v3, %v3007_v47  ;;  %v3063_v8 = vmul.f32 %v7021_v3, %v7427_v35  ;;  %v3190_v28 = vmul.f32 %v7035_v9, %v7434_v11  ;;  %v3191_v26 = vmul.f32 %v7035_v9, %v7436_v2 }
 0x2ac   : > { %v2705_v48 = vsel %vm1806_vm2, %v2703_v34, %v2704_v12  ;;  %v2707_v16 = vsel %vm1806_vm2, %v2704_v12, %v2706_v13  ;;  %v7478_v21 = vadd.f32 %v2703_v34, %v2503_v18  ;;  %v3062_v61 = vmul.f32 %v7021_v3, %v3008_v0  ;;  %v7490_v13 = vld [vmem:[#allocation8 + $0x1] ss:$0 sm:$0xff] }
 0x2ad   : > { %v7481_v57 = vadd.f32 %v2705_v48, %v2504_v55  ;;  %v7483_v15 = vadd.f32 %v2707_v16, %v2505_v4  ;;  %v3109_v31 = vadd.f32 %v3061_v32, %v7342_v20  ;;  %v3111_v14 = vadd.f32 %v3063_v8, %v7346_v41  ;;  %v9479_v4 = vld [vmem:[#allocation32_spill] sm:$0xff] }
 0x2ae   : > { %v3110_v17 = vadd.f32 %v3062_v61, %v7344_v56  ;;  %v3261_v53 = vrot.slane %v3190_v28, 1  ;;  %v3262_v9 = vrot.slane %v3191_v26, 1  ;;  %v3445_v60 = vmul.f32 %v7011_v58, %v7434_v11 }
 0x2af   : > { %v1480_v3 = vmul.f32 %v7490_v13, %v7436_v2  ;;  %v3446_v18 = vmul.f32 %v7011_v58, %v7436_v2  ;;  %v875_v34 = vmax.f32 %v843_v46, 0.0  ;;  %v812_v20 = vadd.f32 %v6325_v38, %v9479_v4  ;;  %v9485_v4 = vld [vmem:[#allocation36_spill] sm:$0xff] }
 0x2b0   : > { %v3263_v41 = vsel %vm1525_vm1, %v3261_v53, %v3262_v9  ;;  %v3357_v56 = vadd.f32 %v3261_v53, %v3109_v31  ;;  %v3359_v25 = vadd.f32 %v3262_v9, %v3111_v14  ;;  %v3555_v44 = vrot.slane %v3445_v60, 2  ;;  %v1682_v9 = vld [vmem:[#allocation2 + $0x100] sm:$0x1]  ;;  %v7522_v60 = vld [vmem:[#allocation8] ss:$0 sm:$0xff] }
 0x2b1   : > { %v3358_v51 = vadd.f32 %v3263_v41, %v3110_v17  ;;  %v3556_v42 = vrot.slane %v3446_v18, 2  ;;  %v907_v47 = vmin.f32 %v875_v34, 6.0  ;;  %v844_v55 = vadd.f32 3.0, %v812_v20  ;;  %v2538_v18 = vld [vmem:[#allocation2 + $0x100] sm:$0x1] }
 0x2b2   : > { %v1298_v12 = vunpack.c.l.bf16 %v7455_v19  ;;  %v1299_v0 = vunpack.c.h.bf16 %v7455_v19  ;;  %v9480_v32 = vunpack.c.l.bf16 %v7424_v63  ;;  %v7504_v46 = vadd.f32 %v3555_v44, %v3357_v56 }
 0x2b3   : > { %v1553_v8 = vrot.slane %v7459_v1, 1  ;;  %v3557_v28 = vsel %vm1806_vm2, %v3555_v44, %v3556_v42  ;;  %v3559_v26 = vsel %vm1806_vm2, %v3556_v42, %v3558_v23  ;;  %v876_v48 = vmax.f32 %v844_v55, 0.0 }
 0x2b4   : > { %v1739_v58 = vmul.f32 %v7371_v24, %v9480_v32  ;;  %9481 = vst [vmem:[#allocation31_spill] sm:$0xff] %v7504_v46  ;;  %v1554_v16 = vrot.slane %v1480_v3, 1  ;;  %v1738_v61 = vmul.f32 %v7371_v24, %v7436_v2  ;;  %v7511_v31 = vadd.f32 %v3557_v28, %v3358_v51  ;;  %v2003_v32 = vld [vmem:[#allocation2 + $0xf0] sm:$0x80] }
 0x2b5   : > { %v7513_v19 = vadd.f32 %v3559_v26, %v3359_v25  ;;  %v9484_v63 = vmax.f32 %v7406_v7, 0.0  ;;  %v3901_v17 = vmul.f32 %v7422_v54, %v7265_v36  ;;  %v939_v1 = vmul.f32 %v907_v47, %v7432_v10  ;;  %v3394_v10 = vld [vmem:[#allocation2 + $0x100] sm:$0x1]  ;;  %v9486_v25 = vld [vmem:[#allocation37_spill] sm:$0xff]  ;;  %v9487_v47 = vld [vmem:[#allocation38_spill] sm:$0xff] }
 0x2b6   : > { %9482 = vst [vmem:[#allocation32_spill] sm:$0xff] %v7511_v31  ;;  %v908_v53 = vmin.f32 %v876_v48, 6.0  ;;  %v3903_v23 = vmul.f32 %v7442_v22, %v7287_v27  ;;  %v1352_v2 = vmul.f32 %v7522_v60, %v1298_v12  ;;  %v1354_v3 = vmul.f32 %v7522_v60, %v7427_v35 }
 0x2b7   : > { %9483 = vst [vmem:[#allocation59_spill] sm:$0xff] %v7513_v19  ;;  %v3854_v14 = vmin.f32 %v9484_v63, 6.0  ;;  %v1855_v7 = vrot.slane %v1739_v58, 2  ;;  %v1353_v34 = vmul.f32 %v7522_v60, %v1299_v0  ;;  %v1737_v54 = vmul.f32 %v7371_v24, %v7434_v11  ;;  %v1146_v0 = vld [vmem:[#allocation2 + $0xf0] sm:$0x80] }
 0x2b8   : > { %v940_v36 = vmul.f32 %v908_v53, %v812_v20  ;;  %v1008_v27 = vadd.f32 %v6329_v39, %v9485_v4  ;;  %v1555_v22 = vsel %vm1525_vm1, %v1553_v8, %v1554_v16  ;;  %v1853_v41 = vrot.slane %v1738_v61, 2  ;;  %v9489_v61 = vld [vmem:[#allocation39_spill] sm:$0xff] }
 0x2b9   : > { %v1698_v56 = vunpack.c.l.bf16 %v1682_v9  ;;  %v7535_v35 = vadd.f32 %v6325_v38, %v9486_v25  ;;  %v971_v44 = vmul.f32 0.16666667, %v939_v1  ;;  %v2554_v42 = vunpack.c.l.bf16 %v2538_v18 }
 0x2ba   : > { %v972_v51 = vmul.f32 0.16666667, %v940_v36  ;;  %1040 = vst [vmem:[%s6339_s28 + $0x98] sm:$0xff] %v1008_v27  ;;  %v1009_v11 = vadd.f32 %v6329_v39, %v9487_v47  ;;  %v7541_v20 = vmul.f32 %v3854_v14, %v7283_v43  ;;  %v7543_v55 = vmul.f32 0.16666667, %v3901_v17 }
 0x2bb   : > { %v1649_v12 = vadd.f32 %v1553_v8, %v1352_v2  ;;  %v3410_v58 = vunpack.c.l.bf16 %v3394_v10  ;;  %v1852_v28 = vrot.slane %v1737_v54, 2  ;;  %v845_v48 = vadd.f32 3.0, %v7535_v35  ;;  %v7555_v2 = vld [vmem:[#allocation8 + $0x5] ss:$0 sm:$0xff]  ;;  %v2858_v54 = vld [vmem:[#allocation2 + $0xf0] sm:$0x80] }
 0x2bc   : > { %9488 = vst [vmem:[#allocation36_spill] sm:$0xff] %v7543_v55  ;;  %v1102_v26 = vpack.c.bf16 %v972_v51, %v971_v44  ;;  %1041 = vst [vmem:[%s6339_s28 + $0xa0] sm:$0xff] %v1009_v11  ;;  %v7549_v63 = vadd.f32 %v6325_v38, %v9489_v61  ;;  %v1650_v1 = vadd.f32 %v1555_v22, %v1353_v34  ;;  %v1221_v8 = vrot.slane %v1146_v0, 4  ;;  %v7614_v44 = vld [vmem:[#allocation8 + $0x4] ss:$0 sm:$0xff] }
 0x2bd   : > { %v1651_v53 = vadd.f32 %v1554_v16, %v1354_v3  ;;  %v1856_v43 = vsel %vm1806_vm2, %v1853_v41, %v1855_v7  ;;  %v7553_v14 = vmul.f32 %v7371_v24, %v1698_v56  ;;  %v2076_v9 = vrot.slane %v2003_v32, 4  ;;  %v7566_v16 = vld [vmem:[#allocation8 + $0x8] ss:$0 sm:$0xff] }
 0x2be   : > { %v1222_v17 = vrot.slane %v1102_v26, 4  ;;  %v7558_v18 = vmul.f32 %v7555_v2, %v2554_v42  ;;  %v7560_v36 = vmul.f32 0.16666667, %v3903_v23  ;;  %v7562_v10 = vunpack.c.l.bf16 %v1102_v26  ;;  %v7575_v56 = vld [vmem:[#allocation2 + $0x118] sm:$0x1] }
 0x2bf   : > { %v7564_v34 = vunpack.c.h.bf16 %v1102_v26  ;;  %v7569_v3 = vmul.f32 %v7566_v16, %v3410_v58  ;;  %v1854_v7 = vsel %vm1806_vm2, %v1852_v28, %v1853_v41  ;;  %v1962_v4 = vadd.f32 %v1852_v28, %v1649_v12  ;;  %v7583_v12 = vld [vmem:[#allocation2 + $0x118] sm:$0x1] }
 0x2c0   : > { %9490 = vst [vmem:[#allocation37_spill] sm:$0xff] %v7560_v36  ;;  %v877_v27 = vmax.f32 %v845_v48, 0.0  ;;  %v7573_v22 = vadd.f32 3.0, %v7549_v63  ;;  %v1963_v23 = vadd.f32 %v1854_v7, %v1650_v1  ;;  %v1964_v25 = vadd.f32 %v1856_v43, %v1651_v53 }
 0x2c1   : > { %v2930_v51 = vrot.slane %v2858_v54, 4  ;;  %v7579_v42 = vsel %vm1190_vm0, %v1221_v8, %v1222_v17  ;;  %v1303_v47 = vunpack.c.l.bf16 %v1222_v17  ;;  %v2078_v11 = vsel %vm1190_vm0, %v2076_v9, %v1222_v17  ;;  %v7607_v54 = vld [vmem:[#allocation8 + $0x3] ss:$0 sm:$0xff] }
 0x2c2   : > { %v2711_v41 = vrot.slane %v7558_v18, 2  ;;  %v7587_v0 = vmul.f32 %v7490_v13, %v7562_v10  ;;  %v7591_v32 = vmul.f32 %v7490_v13, %v7564_v34  ;;  %v2156_v26 = vunpack.c.l.bf16 %v2078_v11 }
 0x2c3   : > { %v2157_v48 = vunpack.c.h.bf16 %v2078_v11  ;;  %v909_v61 = vmin.f32 %v877_v27, 6.0  ;;  %v878_v1 = vmax.f32 %v7573_v22, 0.0  ;;  %v1301_v53 = vunpack.c.l.bf16 %v7579_v42 }
 0x2c4   : > { %v1302_v43 = vunpack.c.h.bf16 %v7579_v42  ;;  %v7600_v8 = vmul.f32 %v7371_v24, %v7562_v10  ;;  %v7605_v18 = vmul.f32 %v7371_v24, %v7564_v34  ;;  %v2210_v7 = vmul.f32 %v7607_v54, %v2156_v26 }
 0x2c5   : > { %v2211_v27 = vmul.f32 %v7607_v54, %v2157_v48  ;;  %v2212_v22 = vmul.f32 %v7607_v54, %v1303_v47  ;;  %v2337_v9 = vmul.f32 %v7614_v44, %v7562_v10  ;;  %v2338_v28 = vmul.f32 %v7614_v44, %v7564_v34 }
 0x2c6   : > { %v2258_v58 = vadd.f32 %v2210_v7, %v1962_v4  ;;  %v2594_v26 = vmul.f32 %v7555_v2, %v7562_v10  ;;  %v2595_v42 = vmul.f32 %v7555_v2, %v7564_v34  ;;  %v2932_v11 = vsel %vm1190_vm0, %v2930_v51, %v1222_v17 }
 0x2c7   : > { %v2259_v31 = vadd.f32 %v2211_v27, %v1963_v23  ;;  %v2260_v19 = vadd.f32 %v2212_v22, %v1964_v25  ;;  %v2410_v48 = vrot.slane %v2337_v9, 1  ;;  %v2411_v46 = vrot.slane %v2338_v28, 1 }
 0x2c8   : > { %v2708_v36 = vrot.slane %v2594_v26, 2  ;;  %v3010_v55 = vunpack.c.l.bf16 %v2932_v11  ;;  %v3011_v62 = vunpack.c.h.bf16 %v2932_v11  ;;  %v3066_v50 = vmul.f32 %v7625_v45, %v1303_v47  ;;  %v7636_v26 = vld [vmem:[#allocation8 + $0x7] ss:$0 sm:$0xff] }
 0x2c9   : > { %v2412_v4 = vsel %vm1525_vm1, %v2410_v48, %v2411_v46  ;;  %v2506_v23 = vadd.f32 %v2410_v48, %v2258_v58  ;;  %v2508_v25 = vadd.f32 %v2411_v46, %v2260_v19  ;;  %v2709_v7 = vrot.slane %v2595_v42, 2 }
 0x2ca   : > { %v2507_v27 = vadd.f32 %v2412_v4, %v2259_v31  ;;  %v3064_v28 = vmul.f32 %v7625_v45, %v3010_v55  ;;  %v3065_v9 = vmul.f32 %v7625_v45, %v3011_v62  ;;  %v3114_v22 = vadd.f32 %v3066_v50, %v7483_v15 }
 0x2cb   : > { %v2710_v17 = vsel %vm1806_vm2, %v2708_v36, %v2709_v7  ;;  %v2712_v51 = vsel %vm1806_vm2, %v2709_v7, %v2711_v41  ;;  %v7634_v11 = vadd.f32 %v2708_v36, %v2506_v23  ;;  %v3192_v58 = vmul.f32 %v7636_v26, %v7562_v10 }
 0x2cc   : > { %v7640_v46 = vadd.f32 %v2710_v17, %v2507_v27  ;;  %v7642_v31 = vadd.f32 %v2712_v51, %v2508_v25  ;;  %v3112_v19 = vadd.f32 %v3064_v28, %v7478_v21  ;;  %v3113_v62 = vadd.f32 %v3065_v9, %v7481_v57 }
 0x2cd   : > { %v3193_v50 = vmul.f32 %v7636_v26, %v7564_v34  ;;  %v3264_v15 = vrot.slane %v3192_v58, 1  ;;  %v3448_v55 = vmul.f32 %v7566_v16, %v7562_v10  ;;  %v3449_v36 = vmul.f32 %v7566_v16, %v7564_v34 }
 0x2ce   : > { %v1355_v41 = vmul.f32 %v7522_v60, %v1301_v53  ;;  %v1357_v42 = vmul.f32 %v7522_v60, %v1303_v47  ;;  %v941_v48 = vmul.f32 %v909_v61, %v7535_v35  ;;  %v910_v4 = vmin.f32 %v878_v1, 6.0 }
 0x2cf   : > { %v3265_v21 = vrot.slane %v3193_v50, 1  ;;  %v3360_v23 = vadd.f32 %v3264_v15, %v3112_v19  ;;  %v3560_v57 = vrot.slane %v3448_v55, 2  ;;  %v3561_v25 = vrot.slane %v3449_v36, 2 }
 0x2d0   : > { %v1356_v7 = vmul.f32 %v7522_v60, %v1302_v43  ;;  %v9491_v27 = vrot.slane %v7591_v32, 1  ;;  %v9492_v10 = vrot.slane %v7587_v0, 1  ;;  %v1858_v34 = vrot.slane %v7605_v18, 2  ;;  %v1148_v43 = vld [vmem:[#allocation2 + $0x108] sm:$0x80] }
 0x2d1   : > { %v942_v53 = vmul.f32 %v910_v4, %v7549_v63  ;;  %v3266_v47 = vsel %vm1525_vm1, %v3264_v15, %v3265_v21  ;;  %v3362_v35 = vadd.f32 %v3265_v21, %v3114_v22  ;;  %v9493_v61 = vrot.slane %v7569_v3, 2  ;;  %v9496_v22 = vld [vmem:[#allocation44_spill] sm:$0xff] }
 0x2d2   : > { %v1558_v28 = vsel %vm1525_vm1, %v9492_v10, %v9491_v27  ;;  %v973_v9 = vmul.f32 0.16666667, %v941_v48  ;;  %v3361_v17 = vadd.f32 %v3266_v47, %v3113_v62  ;;  %v7667_v51 = vadd.f32 %v3560_v57, %v3360_v23  ;;  %v2005_v23 = vld [vmem:[#allocation2 + $0x108] sm:$0x80] }
 0x2d3   : > { %v3564_v1 = vsel %vm1806_vm2, %v3561_v25, %v9493_v61  ;;  %v974_v58 = vmul.f32 0.16666667, %v942_v53  ;;  %v1010_v18 = vadd.f32 %v6329_v39, %v7078_v52  ;;  %v3562_v63 = vsel %vm1806_vm2, %v3560_v57, %v3561_v25  ;;  %v9501_v57 = vld [vmem:[#allocation22_spill] sm:$0xff]  ;;  %v9505_v61 = vld [vmem:[#allocation45_spill] sm:$0xff] }
 0x2d4   : > { %9494 = vst [vmem:[#allocation38_spill] sm:$0xff] %v7667_v51  ;;  %v7672_v19 = vadd.f32 %v3564_v1, %v3362_v35  ;;  %v7676_v3 = vadd.f32 %v6325_v38, %v7113_v40  ;;  %v1011_v50 = vadd.f32 %v6329_v39, %v9496_v22  ;;  %v7681_v62 = vmul.f32 0.16666667, %v7541_v20 }
 0x2d5   : > { %v7683_v15 = vadd.f32 %v3562_v63, %v3361_v17  ;;  %v1103_v55 = vpack.c.bf16 %v974_v58, %v973_v9  ;;  %v1224_v36 = vrot.slane %v1148_v43, 4  ;;  %1042 = vst [vmem:[%s6339_s28 + $0xa8] sm:$0xff] %v1010_v18  ;;  %v9499_v52 = vmov %v9491_v27  ;;  %v2860_v43 = vld [vmem:[#allocation2 + $0x108] sm:$0x80] }
 0x2d6   : > { %9495 = vst [vmem:[#allocation39_spill] sm:$0xff] %v7672_v19  ;;  %9497 = vst [vmem:[#allocation44_spill] sm:$0xff] %v7681_v62  ;;  %v1654_v48 = vadd.f32 %v9499_v52, %v1357_v42  ;;  %v1857_v4 = vrot.slane %v7600_v8, 2  ;;  %v9500_v21 = vunpack.c.l.bf16 %v7575_v56  ;;  %v7697_v20 = vadd.f32 %v6325_v38, %v9501_v57 }
 0x2d7   : > { %9498 = vst [vmem:[#allocation60_spill] sm:$0xff] %v7683_v15  ;;  %1043 = vst [vmem:[%s6339_s28 + $0xb0] sm:$0xff] %v1011_v50  ;;  %v9502_v25 = vmov %v9492_v10  ;;  %v1653_v10 = vadd.f32 %v1558_v28, %v1356_v7  ;;  %v9503_v32 = vrot.slane %v7553_v14, 2  ;;  %v1225_v42 = vrot.slane %v1103_v55, 4  ;;  %v9508_v14 = vld [vmem:[#allocation41_spill] sm:$0xff] }
 0x2d8   : > { %v7692_v40 = vmul.f32 %v7371_v24, %v9500_v21  ;;  %v1652_v27 = vadd.f32 %v9502_v25, %v1355_v41  ;;  %v7704_v56 = vunpack.c.l.bf16 %v1103_v55  ;;  %v9504_v53 = vunpack.c.l.bf16 %v7583_v12  ;;  %v9506_v41 = vld [vmem:[#allocation40_spill] sm:$0xff] }
 0x2d9   : > { %v1861_v8 = vsel %vm1806_vm2, %v1858_v34, %v9503_v32  ;;  %v7710_v35 = vadd.f32 3.0, %v7676_v3  ;;  %v1012_v0 = vadd.f32 %v6329_v39, %v9505_v61  ;;  %v7716_v7 = vadd.f32 %v6705_v59, %v9506_v41 }
 0x2da   : > { %v2599_v47 = vmul.f32 %v7555_v2, %v9504_v53  ;;  %v7720_v28 = vadd.f32 %v6705_v59, %v9508_v14  ;;  %v1306_v1 = vunpack.c.l.bf16 %v1225_v42  ;;  %v2079_v9 = vrot.slane %v2005_v23, 4 }
 0x2db   : > { %9507 = vst [vmem:[#allocation22_spill] sm:$0xff] %v7716_v7  ;;  %v1859_v12 = vsel %vm1806_vm2, %v1857_v4, %v1858_v34  ;;  %v1967_v17 = vadd.f32 %v1861_v8, %v1654_v48  ;;  %v1226_v58 = vsel %vm1190_vm0, %v1224_v36, %v1225_v42  ;;  %v848_v18 = vadd.f32 3.0, %v7697_v20  ;;  %1044 = vst [vmem:[%s6339_s28 + $0xb8] sm:$0xff] %v1012_v0 }
 0x2dc   : > { %9509 = vst [vmem:[#allocation45_spill] sm:$0xff] %v7720_v28  ;;  %v1965_v63 = vadd.f32 %v1857_v4, %v1652_v27  ;;  %v1966_v22 = vadd.f32 %v1859_v12, %v1653_v10  ;;  %v7726_v50 = vunpack.c.h.bf16 %v1103_v55  ;;  %v7731_v21 = vmul.f32 %v7490_v13, %v7704_v56 }
 0x2dd   : > { %v2716_v23 = vrot.slane %v2599_v47, 2  ;;  %v2933_v57 = vrot.slane %v2860_v43, 4  ;;  %v879_v34 = vmax.f32 %v7710_v35, 0.0  ;;  %v1304_v48 = vunpack.c.l.bf16 %v1226_v58 }
 0x2de   : > { %9510 = vst [vmem:[#allocation40_spill] sm:$0xff] %v7726_v50  ;;  %v2081_v36 = vsel %vm1190_vm0, %v2079_v9, %v1225_v42  ;;  %v2215_v25 = vmul.f32 %v7607_v54, %v1306_v1  ;;  %v2339_v4 = vmul.f32 %v7614_v44, %v7704_v56  ;;  %v1305_v55 = vunpack.c.h.bf16 %v1226_v58 }
 0x2df   : > { %v2159_v27 = vunpack.c.l.bf16 %v2081_v36  ;;  %v880_v10 = vmax.f32 %v848_v18, 0.0  ;;  %v7740_v32 = vadd.f32 %v6325_v38, %v7199_v6  ;;  %v7743_v8 = vmul.f32 %v7522_v60, %v1306_v1 }
 0x2e0   : > { %v7747_v53 = vmul.f32 %v7490_v13, %v7726_v50  ;;  %v7751_v47 = vmul.f32 %v7371_v24, %v7704_v56  ;;  %v2160_v35 = vunpack.c.h.bf16 %v2081_v36  ;;  %v1559_v61 = vrot.slane %v7731_v21, 1 }
 0x2e1   : > { %v7756_v0 = vmul.f32 %v7371_v24, %v7726_v50  ;;  %v2213_v6 = vmul.f32 %v7607_v54, %v2159_v27  ;;  %v2263_v41 = vadd.f32 %v2215_v25, %v1967_v17  ;;  %v1358_v14 = vmul.f32 %v7522_v60, %v1304_v48 }
 0x2e2   : > { %v2214_v9 = vmul.f32 %v7607_v54, %v2160_v35  ;;  %v2340_v43 = vmul.f32 %v7614_v44, %v7726_v50  ;;  %v2413_v12 = vrot.slane %v2339_v4, 1  ;;  %v7765_v18 = vmul.f32 %v7555_v2, %v7704_v56 }
 0x2e3   : > { %v2261_v58 = vadd.f32 %v2213_v6, %v1965_v63  ;;  %v7769_v21 = vmul.f32 %v7555_v2, %v7726_v50  ;;  %v2935_v36 = vsel %vm1190_vm0, %v2933_v57, %v1225_v42  ;;  %v3069_v63 = vmul.f32 %v7625_v45, %v1306_v1 }
 0x2e4   : > { %v2262_v17 = vadd.f32 %v2214_v9, %v1966_v22  ;;  %v2414_v25 = vrot.slane %v2340_v43, 1  ;;  %v3013_v48 = vunpack.c.l.bf16 %v2935_v36  ;;  %v3014_v27 = vunpack.c.h.bf16 %v2935_v36 }
 0x2e5   : > { %v2509_v35 = vadd.f32 %v2413_v12, %v2261_v58  ;;  %v2713_v52 = vrot.slane %v7765_v18, 2  ;;  %v2714_v4 = vrot.slane %v7769_v21, 2  ;;  %v1560_v42 = vrot.slane %v7747_v53, 1 }
 0x2e6   : > { %v2415_v6 = vsel %vm1525_vm1, %v2413_v12, %v2414_v25  ;;  %v2511_v19 = vadd.f32 %v2414_v25, %v2263_v41  ;;  %v3067_v15 = vmul.f32 %v7625_v45, %v3013_v48  ;;  %v3068_v51 = vmul.f32 %v7625_v45, %v3014_v27  ;;  %v9518_v48 = vld [vmem:[#allocation42_spill] sm:$0xff] }
 0x2e7   : > { %v7779_v22 = vadd.f32 %v2415_v6, %v2262_v17  ;;  %v2717_v57 = vsel %vm1806_vm2, %v2714_v4, %v2716_v23  ;;  %v7786_v9 = vadd.f32 %v2713_v52, %v2509_v35  ;;  %v3117_v12 = vadd.f32 %v3069_v63, %v7642_v31 }
 0x2e8   : > { %v7788_v1 = vadd.f32 %v2717_v57, %v2511_v19  ;;  %v3115_v41 = vadd.f32 %v3067_v15, %v7634_v11  ;;  %v7792_v43 = vadd.f32 %v3068_v51, %v7640_v46  ;;  %v1359_v53 = vmul.f32 %v7522_v60, %v1305_v55 }
 0x2e9   : > { %9511 = vst [vmem:[#allocation41_spill] sm:$0xff] %v7779_v22  ;;  %v7798_v58 = vmul.f32 %v7636_v26, %v7704_v56  ;;  %v7802_v23 = vmul.f32 %v7636_v26, %v7726_v50  ;;  %v7806_v19 = vmul.f32 %v7566_v16, %v7704_v56  ;;  %v911_v11 = vmin.f32 %v879_v34, 6.0  ;;  %v9517_v34 = vld [vmem:[#allocation47_spill] sm:$0xff] }
 0x2ea   : > { %9512 = vst [vmem:[#allocation61_spill] sm:$0xff] %v7788_v1  ;;  %9513 = vst [vmem:[#allocation62_spill] sm:$0xff] %v7792_v43  ;;  %v912_v46 = vmin.f32 %v880_v10, 6.0  ;;  %v849_v51 = vadd.f32 3.0, %v7740_v32  ;;  %v1013_v31 = vadd.f32 %v6329_v39, %v7204_v33  ;;  %v1561_v15 = vsel %vm1525_vm1, %v1559_v61, %v1560_v42 }
 0x2eb   : > { %9514 = vst [vmem:[#allocation63_spill] sm:$0xff] %v7798_v58  ;;  %9515 = vst [vmem:[#allocation64_spill] sm:$0xff] %v7802_v23  ;;  %v1863_v55 = vrot.slane %v7756_v0, 2  ;;  %v9333_v36 = vrot.slane %v7798_v58, 1  ;;  %v9334_v17 = vrot.slane %v7802_v23, 1  ;;  %v943_v25 = vmul.f32 %v911_v11, %v7676_v3 }
 0x2ec   : > { %9516 = vst [vmem:[#allocation65_spill] sm:$0xff] %v7806_v19  ;;  %v944_v16 = vmul.f32 %v912_v46, %v7697_v20  ;;  %v881_v56 = vmax.f32 %v849_v51, 0.0  ;;  %1045 = vst [vmem:[%s6339_s28 + $0xc0] sm:$0xff] %v1013_v31  ;;  %v7820_v10 = vadd.f32 %v6325_v38, %v9517_v34  ;;  %v7824_v33 = vadd.f32 %v6705_v59, %v9518_v48  ;;  %v1150_v20 = vld [vmem:[#allocation2 + $0x120] sm:$0x80] }
 0x2ed   : > { %v3363_v0 = vadd.f32 %v9333_v36, %v3115_v41  ;;  %v7830_v27 = vadd.f32 %v9334_v17, %v3117_v12  ;;  %v9332_v3 = vrot.slane %v7806_v19, 2  ;;  %v1655_v35 = vadd.f32 %v1559_v61, %v1358_v14  ;;  %v2007_v41 = vld [vmem:[#allocation2 + $0x120] sm:$0x80]  ;;  %v9522_v12 = vld [vmem:[#allocation26_spill] sm:$0xff]  ;;  %v7862_v36 = vld [vmem:[#allocation2 + $0x138] sm:$0x80] }
 0x2ee   : > { %9519 = vst [vmem:[#allocation47_spill] sm:$0xff] %v7824_v33  ;;  %v1862_v63 = vrot.slane %v7751_v47, 2  ;;  %v975_v6 = vmul.f32 0.16666667, %v943_v25  ;;  %v976_v57 = vmul.f32 0.16666667, %v944_v16  ;;  %v1656_v11 = vadd.f32 %v1561_v15, %v1359_v53 }
 0x2ef   : > { %9520 = vst [vmem:[#allocation42_spill] sm:$0xff] %v7830_v27  ;;  %v1657_v46 = vadd.f32 %v1560_v42, %v7743_v8  ;;  %v7837_v51 = vadd.f32 %v9332_v3, %v3363_v0  ;;  %v7839_v31 = vld [vmem:[#allocation2 + $0x120] sm:$0x80]  ;;  %v1014_v34 = vadd.f32 %v6329_v39, %v9522_v12  ;;  %v9523_v61 = vrot.slane %v7692_v40, 2  ;;  %v7860_v3 = vld [vmem:[#allocation2 + $0x138] sm:$0x80] }
 0x2f0   : > { %v1104_v14 = vpack.c.bf16 %v976_v57, %v975_v6  ;;  %v913_v25 = vmin.f32 %v881_v56, 6.0  ;;  %v850_v53 = vadd.f32 3.0, %v7820_v10  ;;  %v7848_v8 = vadd.f32 3.0, %v7716_v7  ;;  %v9526_v16 = vld [vmem:[#allocation49_spill] sm:$0xff] }
 0x2f1   : > { %9521 = vst [vmem:[#allocation66_spill] sm:$0xff] %v7837_v51  ;;  %v1866_v47 = vsel %vm1806_vm2, %v1863_v55, %v9523_v61  ;;  %v7851_v42 = vadd.f32 3.0, %v7720_v28  ;;  %v1227_v15 = vrot.slane %v1150_v20, 4  ;;  %1046 = vst [vmem:[%s6339_s28 + $0xc8] sm:$0xff] %v1014_v34  ;;  %v1015_v48 = vadd.f32 %v6329_v39, %v9526_v16  ;;  %v7864_v20 = vld [vmem:[#allocation2 + $0x138] sm:$0x80] }
 0x2f2   : > { %9524 = vst [vmem:[#allocation26_spill] sm:$0xff] %v7848_v8  ;;  %v1864_v40 = vsel %vm1806_vm2, %v1862_v63, %v1863_v55  ;;  %v1228_v0 = vrot.slane %v1104_v14, 4  ;;  %v2082_v12 = vrot.slane %v2007_v41, 4  ;;  %v2936_v56 = vrot.slane %v7839_v31, 4  ;;  %v9528_v34 = vld [vmem:[#allocation51_spill] sm:$0xff]  ;;  %v5629_v8 = vld [vmem:[#allocation9 + $0x10] sm:$0xff]  }
 0x2f3   : > { %9525 = vst [vmem:[#allocation67_spill] sm:$0xff] %v7851_v42  ;;  %v1968_v6 = vadd.f32 %v1862_v63, %v1655_v35  ;;  %v1970_v57 = vadd.f32 %v1866_v47, %v1657_v46  ;;  %v7858_v61 = vunpack.c.l.bf16 %v1104_v14  ;;  %1047 = vst [vmem:[%s6339_s28 + $0xd0] sm:$0xff] %v1015_v48  ;;  %v1016_v16 = vadd.f32 %v6329_v39, %v9528_v34  ;;  %v7879_v41 = vld [vmem:[#allocation2 + $0x150] sm:$0x80] }
 0x2f4   : > { %v7869_v55 = vadd.f32 %v1864_v40, %v1656_v11  ;;  %v7876_v35 = vsel %vm1806_vm2, %v2713_v52, %v2714_v4  ;;  %v945_v63 = vmul.f32 %v913_v25, %v7740_v32  ;;  %v882_v46 = vmax.f32 %v850_v53, 0.0  ;;  %v7881_v31 = vld [vmem:[#allocation2 + $0x150] sm:$0x80]  ;;  %v9532_v40 = vld [vmem:[#allocation29_spill] sm:$0xff]  ;;  %v9533_v53 = vld [vmem:[#allocation50_spill] sm:$0xff] }
 0x2f5   : > { %9527 = vst [vmem:[#allocation49_spill] sm:$0xff] %v7858_v61  ;;  %9529 = vst [vmem:[#allocation51_spill] sm:$0xff] %v7876_v35  ;;  %v1229_v47 = vsel %vm1190_vm0, %v1227_v15, %v1228_v0  ;;  %v7884_v48 = vunpack.c.l.bf16 %v1228_v0  ;;  %v7886_v11 = vunpack.c.h.bf16 %v1104_v14  ;;  %v7890_v21 = vadd.f32 %v6325_v38, %v9532_v40 }
 0x2f6   : > { %1048 = vst [vmem:[%s6339_s28 + $0xd8] sm:$0xff] %v1016_v16  ;;  %v2084_v52 = vsel %vm1190_vm0, %v2082_v12, %v1228_v0  ;;  %v1485_v25 = vmul.f32 %v7490_v13, %v7858_v61  ;;  %v7901_v14 = vadd.f32 %v6325_v38, %v9533_v53  ;;  %v1307_v16 = vunpack.c.l.bf16 %v1229_v47 }
 0x2f7   : > { %9530 = vst [vmem:[#allocation68_spill] sm:$0xff] %v7884_v48  ;;  %9531 = vst [vmem:[#allocation69_spill] sm:$0xff] %v7886_v11  ;;  %v2162_v40 = vunpack.c.l.bf16 %v2084_v52  ;;  %v977_v12 = vmul.f32 0.16666667, %v945_v63  ;;  %v914_v17 = vmin.f32 %v882_v46, 6.0  ;;  %v2218_v18 = vmul.f32 %v7607_v54, %v7884_v48 }
 0x2f8   : > { %v7909_v4 = vmul.f32 %v7614_v44, %v7858_v61  ;;  %v7913_v32 = vmul.f32 %v7614_v44, %v7886_v11  ;;  %v851_v53 = vadd.f32 3.0, %v7890_v21  ;;  %v1308_v15 = vunpack.c.h.bf16 %v1229_v47 }
 0x2f9   : > { %v1486_v34 = vmul.f32 %v7490_v13, %v7886_v11  ;;  %v2216_v63 = vmul.f32 %v7607_v54, %v2162_v40  ;;  %v7921_v46 = vmul.f32 %v7555_v2, %v7858_v61  ;;  %v1562_v51 = vrot.slane %v1485_v25, 1 }
 0x2fa   : > { %v7925_v28 = vmul.f32 %v7371_v24, %v7858_v61  ;;  %v2266_v7 = vadd.f32 %v2218_v18, %v1970_v57  ;;  %v9340_v27 = vrot.slane %v7913_v32, 1  ;;  %v1361_v19 = vmul.f32 %v7522_v60, %v1307_v16 }
 0x2fb   : > { %9534 = vst [vmem:[#allocation29_spill] sm:$0xff] %v7921_v46  ;;  %v2264_v47 = vadd.f32 %v2216_v63, %v1968_v6  ;;  %v9345_v59 = vrot.slane %v7909_v4, 1  ;;  %v7931_v43 = vsel %vm1190_vm0, %v2936_v56, %v1228_v0  ;;  %v7935_v40 = vmul.f32 %v7371_v24, %v7886_v11 }
 0x2fc   : > { %9535 = vst [vmem:[#allocation50_spill] sm:$0xff] %v7931_v43  ;;  %v7939_v25 = vadd.f32 %v9340_v27, %v2266_v7  ;;  %v3016_v57 = vunpack.c.l.bf16 %v7931_v43  ;;  %v852_v18 = vadd.f32 3.0, %v7901_v14  ;;  %v1363_v6 = vmul.f32 %v7522_v60, %v7884_v48  ;;  %v5627_v43 = vld [vmem:[#allocation9] sm:$0xff]  }
 0x2fd   : > { %v2512_v16 = vadd.f32 %v9345_v59, %v2264_v47  ;;  %v9348_v0 = vrot.slane %v7921_v46, 2  ;;  %v7950_v56 = vmul.f32 %v7636_v26, %v7858_v61  ;;  %v7953_v63 = vmul.f32 %v7522_v60, %v1308_v15 }
 0x2fe   : > { %9536 = vst [vmem:[#allocation70_spill] sm:$0xff] %v7939_v25  ;;  %v1563_v7 = vrot.slane %v1486_v34, 1  ;;  %v3070_v27 = vmul.f32 %v7625_v45, %v3016_v57  ;;  %v946_v50 = vmul.f32 %v914_v17, %v7820_v10  ;;  %v1658_v58 = vadd.f32 %v1562_v51, %v1361_v19 }
 0x2ff   : > { %9537 = vst [vmem:[#allocation71_spill] sm:$0xff] %v7950_v56  ;;  %v9349_v23 = vrot.slane %v7925_v28, 2  ;;  %v2163_v62 = vunpack.c.h.bf16 %v2084_v52  ;;  %v7960_v47 = vadd.f32 %v9348_v0, %v2512_v16  ;;  %v9347_v26 = vrot.slane %v7950_v56, 1 }
 0x300   : > { %v3118_v59 = vadd.f32 %v3070_v27, %v7786_v9  ;;  %v978_v15 = vmul.f32 0.16666667, %v946_v50  ;;  %v883_v61 = vmax.f32 %v851_v53, 0.0  ;;  %v7966_v45 = vmul.f32 %v7555_v2, %v7886_v11 }
 0x301   : > { %9538 = vst [vmem:[#allocation72_spill] sm:$0xff] %v7960_v47  ;;  %v884_v17 = vmax.f32 %v852_v18, 0.0  ;;  %v7970_v19 = vadd.f32 %v6325_v38, %v7331_v37  ;;  %v1017_v10 = vadd.f32 %v6329_v39, %v7333_v49  ;;  %v7980_v50 = vadd.f32 %v6325_v38, %v7340_v30 }
 0x302   : > { %9539 = vst [vmem:[#allocation73_spill] sm:$0xff] %v7966_v45  ;;  %v7976_v9 = vadd.f32 %v9347_v26, %v3118_v59  ;;  %v1105_v27 = vpack.c.bf16 %v978_v15, %v977_v12  ;;  %v1018_v52 = vadd.f32 %v6329_v39, %v7349_v29  ;;  %v7985_v34 = vsel %vm1525_vm1, %v1562_v51, %v1563_v7 }
 0x303   : > { %v7987_v37 = vadd.f32 %v1563_v7, %v1363_v6  ;;  %v915_v49 = vmin.f32 %v883_v61, 6.0  ;;  %1049 = vst [vmem:[%s6339_s28 + $0xe0] sm:$0xff] %v1017_v10  ;;  %v7992_v59 = vmul.f32 %v7607_v54, %v2163_v62  ;;  %v8001_v29 = vadd.f32 %v9349_v23, %v1658_v58 }
 0x304   : > { %9540 = vst [vmem:[#allocation74_spill] sm:$0xff] %v7976_v9  ;;  %v1231_v12 = vrot.slane %v1105_v27, 4  ;;  %v7994_v57 = vunpack.c.l.bf16 %v1105_v27  ;;  %v7996_v30 = vunpack.c.h.bf16 %v1105_v27  ;;  %1050 = vst [vmem:[%s6339_s28 + $0xe8] sm:$0xff] %v1018_v52  ;;  %v916_v6 = vmin.f32 %v884_v17, 6.0  ;;  %v9553_v9 = vld [vmem:[#allocation55_spill] sm:$0xff] }
 0x305   : > { %v9543_v61 = vrot.slane %v7860_v3, 4  ;;  %v853_v7 = vadd.f32 3.0, %v7970_v19  ;;  %v854_v15 = vadd.f32 3.0, %v7980_v50  ;;  %v947_v27 = vmul.f32 %v915_v49, %v7890_v21 }
 0x306   : > { %9541 = vst [vmem:[#allocation75_spill] sm:$0xff] %v7994_v57  ;;  %9542 = vst [vmem:[#allocation76_spill] sm:$0xff] %v7996_v30  ;;  %v8012_v16 = vmul.f32 %v7490_v13, %v7994_v57  ;;  %v8017_v10 = vunpack.c.l.bf16 %v1231_v12  ;;  %v823_v3 = vadd.f32 %v6325_v38, %v7369_v5  ;;  %v8024_v17 = vmul.f32 %v7490_v13, %v7996_v30 }
 0x307   : > { %v8008_v62 = vsel %vm1190_vm0, %v9543_v61, %v1231_v12  ;;  %v8028_v52 = vmul.f32 %v7371_v24, %v7994_v57  ;;  %v8032_v61 = vmul.f32 %v7371_v24, %v7996_v30  ;;  %v9545_v26 = vrot.slane %v7862_v36, 4 }
 0x308   : > { %v1310_v58 = vunpack.c.l.bf16 %v8008_v62  ;;  %9544 = vst [vmem:[#allocation77_spill] sm:$0xff] %v8017_v10  ;;  %v948_v0 = vmul.f32 %v916_v6, %v7901_v14  ;;  %v8045_v51 = vmul.f32 %v7614_v44, %v7994_v57  ;;  %v8049_v24 = vmul.f32 %v7614_v44, %v7996_v30 }
 0x309   : > { %v8037_v18 = vsel %vm1190_vm0, %v9545_v26, %v1231_v12  ;;  %v885_v36 = vmax.f32 %v853_v7, 0.0  ;;  %v886_v23 = vmax.f32 %v854_v15, 0.0  ;;  %v8058_v53 = vmul.f32 %v7555_v2, %v7994_v57 }
 0x30a   : > { %v1364_v21 = vmul.f32 %v7522_v60, %v1310_v58  ;;  %v2165_v49 = vunpack.c.l.bf16 %v8037_v18  ;;  %9546 = vst [vmem:[#allocation78_spill] sm:$0xff] %v8045_v51  ;;  %v8054_v58 = vmul.f32 %v7522_v60, %v8017_v10  ;;  %v855_v14 = vadd.f32 3.0, %v823_v3 }
 0x30b   : > { %9547 = vst [vmem:[#allocation79_spill] sm:$0xff] %v8058_v53  ;;  %v8065_v7 = vmul.f32 %v7555_v2, %v7996_v30  ;;  %v9549_v15 = vrot.slane %v8012_v16, 1  ;;  %v8077_v6 = vmul.f32 %v7607_v54, %v8017_v10  ;;  %v9550_v30 = vrot.slane %v7864_v20, 4  ;;  %v9552_v10 = vld [vmem:[#allocation53_spill] sm:$0xff] }
 0x30c   : > { %v8073_v47 = vmul.f32 %v7607_v54, %v2165_v49  ;;  %v980_v56 = vmul.f32 0.16666667, %v948_v0  ;;  %v917_v49 = vmin.f32 %v885_v36, 6.0  ;;  %v918_v1 = vmin.f32 %v886_v23, 6.0  ;;  %v1156_v23 = vld [vmem:[#allocation2 + $0x168] sm:$0x80] }
 0x30d   : > { %9548 = vst [vmem:[#allocation80_spill] sm:$0xff] %v8065_v7  ;;  %v8069_v26 = vadd.f32 %v9549_v15, %v1364_v21  ;;  %v8085_v21 = vsel %vm1190_vm0, %v9550_v30, %v1231_v12  ;;  %v979_v15 = vmul.f32 0.16666667, %v947_v27  ;;  %v887_v11 = vmax.f32 %v855_v14, 0.0  ;;  %v9554_v27 = vld [vmem:[#allocation30_spill] sm:$0xff] }
 0x30e   : > { %9551 = vst [vmem:[#allocation81_spill] sm:$0xff] %v8085_v21  ;;  %v1019_v5 = vadd.f32 %v6329_v39, %v9552_v10  ;;  %v824_v2 = vadd.f32 %v6325_v38, %v9553_v9  ;;  %v949_v12 = vmul.f32 %v917_v49, %v7970_v19  ;;  %v950_v30 = vmul.f32 %v918_v1, %v7980_v50  ;;  %v5628_v19 = vld [vmem:[#allocation9 + $0x8] sm:$0xff]  }
 0x30f   : > { %v1106_v20 = vpack.c.bf16 %v980_v56, %v979_v15  ;;  %v1020_v0 = vadd.f32 %v6329_v39, %v9554_v27  ;;  %v919_v36 = vmin.f32 %v887_v11, 6.0  ;;  %v9360_v56 = vmov 0.0   ;;  %v1685_v7 = vld [vmem:[#allocation2 + $0x148] sm:$0x1] }
 0x310   : > { %1051 = vst [vmem:[%s6339_s28 + $0xf0] sm:$0xff] %v1019_v5  ;;  %v856_v14 = vadd.f32 3.0, %v824_v2  ;;  %v981_v38 = vmul.f32 0.16666667, %v949_v12  ;;  %5391 = vmatprep.subr.bf16.mxu1 %v9360_v56  ;;  %5407 = vmatprep.mubr.msk.bf16.mxu1 %vm5940_vm4, %v9360_v56  ;;  %v982_v39 = vmul.f32 0.16666667, %v950_v30 }
 0x311   : > { %v8097_v57 = vrot.slane %v1106_v20, 4  ;;  %v8099_v48 = vunpack.c.l.bf16 %v1106_v20  ;;  %v8101_v10 = vunpack.c.h.bf16 %v1106_v20  ;;  %1052 = vst [vmem:[%s6339_s28 + $0xf8] sm:$0xff] %v1020_v0  ;;  %v951_v1 = vmul.f32 %v919_v36, %v823_v3  ;;  %5392 = vmatpush3.bf16.msra.mxu1 %v5627_v43  ;;  %v8119_v43 = vld [vmem:[#allocation8 + $0x2] ss:$0 sm:$0xff] }
 0x312   : > { %v888_v11 = vmax.f32 %v856_v14, 0.0  ;;  %v1236_v9 = vrot.slane %v1156_v23, 4  ;;  %v9557_v50 = vrot.slane %v7879_v41, 4  ;;  %5393 = vmatprep.subr.bf16.mxu1 %v9360_v56  ;;  %v9558_v30 = vrot.slane %v7881_v31, 4 }
 0x313   : > { %9555 = vst [vmem:[#allocation53_spill] sm:$0xff] %v8097_v57  ;;  %9556 = vst [vmem:[#allocation55_spill] sm:$0xff] %v8099_v48  ;;  %v8112_v15 = vunpack.c.l.bf16 %v8097_v57  ;;  %v1489_v49 = vmul.f32 %v7490_v13, %v8099_v48  ;;  %v1490_v20 = vmul.f32 %v7490_v13, %v8101_v10  ;;  %v8123_v12 = vmul.f32 %v8119_v43, %v8099_v48 }
 0x314   : > { %v1235_v5 = vsel %vm1190_vm0, %v9557_v50, %v8097_v57  ;;  %v8127_v41 = vmul.f32 %v8119_v43, %v8101_v10  ;;  %v8133_v27 = vsel %vm1190_vm0, %v9558_v30, %v8097_v57  ;;  %v8138_v36 = vmul.f32 %v7614_v44, %v8099_v48 }
 0x315   : > { %v1313_v3 = vunpack.c.l.bf16 %v1235_v5  ;;  %v1568_v0 = vrot.slane %v1489_v49, 1  ;;  %v1107_v14 = vpack.c.bf16 %v982_v39, %v981_v38  ;;  %v983_v56 = vmul.f32 0.16666667, %v951_v1  ;;  %5394 = vmatpush3.bf16.msra.mxu1 %v5628_v19 }
 0x316   : > { %9559 = vst [vmem:[#allocation30_spill] sm:$0xff] %v8138_v36  ;;  %v920_v42 = vmin.f32 %v888_v11, 6.0  ;;  %v1314_v33 = vunpack.c.h.bf16 %v1235_v5  ;;  %v9560_v49 = vmov 0.0   ;;  %v9561_v23 = vunpack.c.h.bf16 %v8008_v62 }
 0x317   : > { %v8141_v21 = vrot.slane %v1107_v14, 4  ;;  %v8143_v31 = vunpack.c.l.bf16 %v1107_v14  ;;  %v8145_v30 = vunpack.c.h.bf16 %v1107_v14  ;;  %5395 = vmatprep.subr.bf16.mxu1 %v9560_v49  ;;  %v1367_v39 = vmul.f32 %v7522_v60, %v1313_v3 }
 0x318   : > { %v1365_v57 = vmul.f32 %v7522_v60, %v9561_v23  ;;  %v952_v38 = vmul.f32 %v920_v42, %v824_v2  ;;  %v1368_v1 = vmul.f32 %v7522_v60, %v1314_v33  ;;  %v1369_v11 = vmul.f32 %v7522_v60, %v8112_v15  ;;  %v5630_v2 = vld [vmem:[#allocation9 + $0x18] sm:$0xff]  }
 0x319   : > { %v1238_v19 = vsel %vm1190_vm0, %v1236_v9, %v8141_v21  ;;  %v8158_v5 = vunpack.c.l.bf16 %v8141_v21  ;;  %v1491_v14 = vmul.f32 %v7490_v13, %v8143_v31  ;;  %v1492_v62 = vmul.f32 %v7490_v13, %v8145_v30  ;;  %5396 = vmatpush3.bf16.msra.mxu1 %v5629_v8 }
 0x31a   : > { %v984_v42 = vmul.f32 0.16666667, %v952_v38  ;;  %v1316_v3 = vunpack.c.l.bf16 %v1238_v19  ;;  %v1317_v33 = vunpack.c.h.bf16 %v1238_v19  ;;  %v9562_v23 = vrot.slane %v8024_v17, 1  ;;  %5397 = vmatprep.subr.bf16.mxu1 %v9560_v49 }
 0x31b   : > { %v9563_v50 = vrot.slane %v8012_v16, 1  ;;  %v1372_v25 = vmul.f32 %v7522_v60, %v8158_v5  ;;  %v1569_v35 = vrot.slane %v1490_v20, 1  ;;  %v1571_v22 = vrot.slane %v1491_v14, 1  ;;  %v1684_v16 = vld [vmem:[#allocation2 + $0x130] sm:$0x1] }
 0x31c   : > { %v1572_v53 = vrot.slane %v1492_v62, 1  ;;  %v8172_v13 = vpack.c.bf16 %v984_v42, %v983_v56  ;;  %v1370_v8 = vmul.f32 %v7522_v60, %v1316_v3  ;;  %v1371_v38 = vmul.f32 %v7522_v60, %v1317_v33  ;;  %v1686_v56 = vld [vmem:[#allocation2 + $0x160] sm:$0x1]  ;;  %v1687_v62 = vld [vmem:[#allocation2 + $0x178] sm:$0x1] }
 0x31d   : > { %v1567_v9 = vsel %vm1525_vm1, %v9563_v50, %v9562_v23  ;;  %v1659_v19 = vadd.f32 %v7985_v34, %v7953_v63  ;;  %v1570_v50 = vsel %vm1525_vm1, %v1568_v0, %v1569_v35  ;;  %v9564_v20 = vrot.slane %v8024_v17, 1  ;;  %5398 = vmatpush3.bf16.msra.mxu1 %v5630_v2  ;;  %v5631_v42 = vld [vmem:[#allocation9 + $0x20] sm:$0xff]  }
 0x31e   : > { %v1573_v23 = vsel %vm1525_vm1, %v1571_v22, %v1572_v53  ;;  %v1662_v46 = vadd.f32 %v1567_v9, %v1365_v57  ;;  %v1664_v3 = vadd.f32 %v1568_v0, %v1367_v39  ;;  %v1665_v60 = vadd.f32 %v1570_v50, %v1368_v1  ;;  %5399 = vmatprep.subr.bf16.mxu1 %v9560_v49  ;;  %v5632_v1 = vld [vmem:[#allocation9 + $0x28] sm:$0xff]  }
 0x31f   : > { %v1663_v14 = vadd.f32 %v9564_v20, %v8054_v58  ;;  %v1666_v33 = vadd.f32 %v1569_v35, %v1369_v11  ;;  %v1667_v45 = vadd.f32 %v1571_v22, %v1370_v8  ;;  %v1668_v63 = vadd.f32 %v1573_v23, %v1371_v38 }
 0x320   : > { %v1669_v34 = vadd.f32 %v1572_v53, %v1372_v25  ;;  %v1700_v48 = vunpack.c.l.bf16 %v1684_v16  ;;  %v1701_v36 = vunpack.c.l.bf16 %v1685_v7  ;;  %v1702_v51 = vunpack.c.l.bf16 %v1686_v56 }
 0x321   : > { %v1703_v57 = vunpack.c.l.bf16 %v1687_v62  ;;  %v1755_v17 = vmul.f32 %v8119_v43, %v8143_v31  ;;  %v1756_v58 = vmul.f32 %v8119_v43, %v8145_v30  ;;  %v9565_v22 = vrot.slane %v7935_v40, 2  ;;  %5400 = vmatpush3.bf16.msra.mxu1 %v5631_v42 }
 0x322   : > { %v1748_v2 = vmul.f32 %v8119_v43, %v1700_v48  ;;  %v1751_v0 = vmul.f32 %v8119_v43, %v1701_v36  ;;  %v9566_v35 = vrot.slane %v7925_v28, 2  ;;  %v9567_v53 = vrot.slane %v8032_v61, 2  ;;  %5401 = vmatprep.subr.bf16.mxu1 %v9560_v49 }
 0x323   : > { %v9568_v7 = vrot.slane %v8028_v52, 2  ;;  %v1754_v11 = vmul.f32 %v8119_v43, %v1702_v51  ;;  %v1757_v48 = vmul.f32 %v8119_v43, %v1703_v57  ;;  %v1877_v36 = vrot.slane %v8123_v12, 2 }
 0x324   : > { %v1869_v25 = vsel %vm1806_vm2, %v9566_v35, %v9565_v22  ;;  %v1882_v9 = vrot.slane %v1755_v17, 2  ;;  %v1870_v28 = vrot.slane %v1748_v2, 2  ;;  %v1875_v8 = vrot.slane %v1751_v0, 2  ;;  %v2015_v2 = vld [vmem:[#allocation2 + $0x180] sm:$0x80]  ;;  %v5633_v0 = vld [vmem:[#allocation9 + $0x30] sm:$0xff]  }
 0x325   : > { %v1874_v39 = vsel %vm1806_vm2, %v9568_v7, %v9567_v53  ;;  %v1883_v38 = vrot.slane %v1756_v58, 2  ;;  %v1972_v16 = vadd.f32 %v1869_v25, %v1659_v19  ;;  %v9569_v50 = vrot.slane %v8127_v41, 2  ;;  %v2013_v58 = vld [vmem:[#allocation2 + $0x168] sm:$0x80]  ;;  %5402 = vmatpush3.bf16.msra.mxu1 %v5632_v1 }
 0x326   : > { %v1880_v20 = vrot.slane %v1754_v11, 2  ;;  %v1885_v56 = vrot.slane %v1757_v48, 2  ;;  %v9570_v51 = vmov %v9568_v7  ;;  %v9571_v43 = vmov %v9565_v22  ;;  %5403 = vmatprep.subr.bf16.mxu1 %v9560_v49 }
 0x327   : > { %v1879_v23 = vsel %vm1806_vm2, %v1877_v36, %v9569_v50  ;;  %v1974_v62 = vadd.f32 %v9570_v51, %v8069_v26  ;;  %v1871_v12 = vsel %vm1806_vm2, %v9571_v43, %v1870_v28  ;;  %v9572_v42 = vmov %v9567_v53 }
 0x328   : > { %v1876_v57 = vsel %vm1806_vm2, %v9572_v42, %v1875_v8  ;;  %v1884_v19 = vsel %vm1806_vm2, %v1882_v9, %v1883_v38  ;;  %v1975_v17 = vadd.f32 %v1874_v39, %v1662_v46  ;;  %v9573_v22 = vmov %v9569_v50 }
 0x329   : > { %v1881_v52 = vsel %vm1806_vm2, %v9573_v22, %v1880_v20  ;;  %v1886_v26 = vsel %vm1806_vm2, %v1883_v38, %v1885_v56  ;;  %v1973_v40 = vadd.f32 %v1871_v12, %v7987_v37  ;;  %v1976_v35 = vadd.f32 %v1876_v57, %v1663_v14  ;;  %5404 = vmatpush3.bf16.msra.mxu1 %v5633_v0 }
 0x32a   : > { %v1977_v61 = vadd.f32 %v1877_v36, %v1664_v3  ;;  %v1978_v25 = vadd.f32 %v1879_v23, %v1665_v60  ;;  %v1979_v53 = vadd.f32 %v1881_v52, %v1666_v33  ;;  %v1980_v7 = vadd.f32 %v1882_v9, %v1667_v45  ;;  %v5634_v60 = vld [vmem:[#allocation9 + $0x38] sm:$0xff]   ;;  %5405 = vmatprep.subr.bf16.mxu1 %v9560_v49 }
 0x32b   : > { %v1981_v46 = vadd.f32 %v1884_v19, %v1668_v63  ;;  %v1982_v39 = vadd.f32 %v1886_v26, %v1669_v34  ;;  %v2091_v11 = vrot.slane %v2013_v58, 4  ;;  %v2094_v1 = vrot.slane %v2015_v2, 4 }
 0x32c   : > { %v8224_v48 = vrot.slane %v8172_v13, 4  ;;  %v2169_v41 = vunpack.c.h.bf16 %v8133_v27  ;;  %v9574_v28 = vunpack.c.h.bf16 %v8037_v18  ;;  %v9575_v14 = vunpack.c.l.bf16 %v8133_v27 }
 0x32d   : > { %v2093_v45 = vsel %vm1190_vm0, %v2091_v11, %v8141_v21  ;;  %v2224_v33 = vmul.f32 %v7607_v54, %v8112_v15  ;;  %v2227_v63 = vmul.f32 %v7607_v54, %v8158_v5  ;;  %v2265_v18 = vadd.f32 %v7992_v59, %v7869_v55  ;;  %5406 = vmatpush3.bf16.msra.mxu1 %v5634_v60 }
 0x32e   : > { %v2220_v37 = vmul.f32 %v7607_v54, %v9574_v28  ;;  %v2222_v3 = vmul.f32 %v7607_v54, %v9575_v14  ;;  %v2096_v27 = vsel %vm1190_vm0, %v2094_v1, %v8224_v48  ;;  %v2171_v34 = vunpack.c.l.bf16 %v2093_v45  ;;  %5411 = vmatprep.subr.bf16.mxu1 %v9560_v49  ;;  %v9613_v49 = vld [vmem:[#allocation76_spill] sm:$0xff] }
 0x32f   : > { %v2172_v36 = vunpack.c.h.bf16 %v2093_v45  ;;  %v2176_v9 = vunpack.c.l.bf16 %v8224_v48  ;;  %v2174_v8 = vunpack.c.l.bf16 %v2096_v27  ;;  %v2175_v38 = vunpack.c.h.bf16 %v2096_v27  ;;  %v2541_v27 = vld [vmem:[#allocation2 + $0x148] sm:$0x1] }
 0x330   : > { %v2223_v50 = vmul.f32 %v7607_v54, %v2169_v41  ;;  %v2267_v23 = vadd.f32 %v8073_v47, %v8001_v29  ;;  %v2225_v20 = vmul.f32 %v7607_v54, %v2171_v34  ;;  %v2268_v56 = vadd.f32 %v2220_v37, %v1972_v16 }
 0x331   : > { %v2226_v55 = vmul.f32 %v7607_v54, %v2172_v36  ;;  %v2230_v59 = vmul.f32 %v7607_v54, %v2176_v9  ;;  %v2228_v51 = vmul.f32 %v7607_v54, %v2174_v8  ;;  %v2229_v43 = vmul.f32 %v7607_v54, %v2175_v38  ;;  %v2542_v38 = vld [vmem:[#allocation2 + $0x160] sm:$0x1] }
 0x332   : > { %v2269_v12 = vadd.f32 %v8077_v6, %v1973_v40  ;;  %v2270_v42 = vadd.f32 %v2222_v3, %v1974_v62  ;;  %v2271_v57 = vadd.f32 %v2223_v50, %v1975_v17  ;;  %v2272_v19 = vadd.f32 %v2224_v33, %v1976_v35  ;;  %v2544_v50 = vld [vmem:[#allocation2 + $0x190] sm:$0x1] }
 0x333   : > { %v2273_v47 = vadd.f32 %v2225_v20, %v1977_v61  ;;  %v2274_v29 = vadd.f32 %v2226_v55, %v1978_v25  ;;  %v2275_v58 = vadd.f32 %v2227_v63, %v1979_v53  ;;  %v2276_v2 = vadd.f32 %v2228_v51, %v1980_v7  ;;  %v9579_v61 = vld [vmem:[#allocation78_spill] sm:$0xff] }
 0x334   : > { %v2277_v0 = vadd.f32 %v2229_v43, %v1981_v46  ;;  %v2278_v22 = vadd.f32 %v2230_v59, %v1982_v39  ;;  %v8258_v16 = vunpack.c.l.bf16 %v8172_v13  ;;  %v8261_v52 = vunpack.c.h.bf16 %v8172_v13  ;;  %v9581_v53 = vld [vmem:[#allocation30_spill] sm:$0xff] }
 0x335   : > { %v2346_v54 = vmul.f32 %v7614_v44, %v8101_v10  ;;  %v2347_v6 = vmul.f32 %v7614_v44, %v8143_v31  ;;  %v2348_v62 = vmul.f32 %v7614_v44, %v8145_v30  ;;  %v9576_v17 = vrot.slane %v7913_v32, 1  ;;  %v2540_v63 = vld [vmem:[#allocation2 + $0x130] sm:$0x1] }
 0x336   : > { %v9577_v26 = vrot.slane %v7909_v4, 1  ;;  %v9578_v35 = vrot.slane %v8049_v24, 1  ;;  %v9580_v13 = vrot.slane %v9579_v61, 1  ;;  %v2422_v7 = vrot.slane %v9581_v53, 1  ;;  %v9585_v61 = vld [vmem:[#allocation73_spill] sm:$0xff] }
 0x337   : > { %v2349_v46 = vmul.f32 %v7614_v44, %v8258_v16  ;;  %v2350_v39 = vmul.f32 %v7614_v44, %v8261_v52  ;;  %v2423_v11 = vrot.slane %v2346_v54, 1  ;;  %v2425_v32 = vrot.slane %v2347_v6, 1 }
 0x338   : > { %v2418_v40 = vsel %vm1525_vm1, %v9577_v26, %v9576_v17  ;;  %v2421_v25 = vsel %vm1525_vm1, %v9580_v13, %v9578_v35  ;;  %v2426_v1 = vrot.slane %v2348_v62, 1  ;;  %v9582_v41 = vmov %v9580_v13  ;;  %v5670_v17 = vld [vmem:[#allocation8 + $0x5] ss:$0 sm:$0xff] }
 0x339   : > { %v2513_v4 = vadd.f32 %v2418_v40, %v2265_v18  ;;  %v2515_v28 = vadd.f32 %v9582_v41, %v2267_v23  ;;  %v2516_v37 = vadd.f32 %v2421_v25, %v2268_v56  ;;  %v2424_v14 = vsel %vm1525_vm1, %v2422_v7, %v2423_v11  ;;  %v2543_v18 = vld [vmem:[#allocation2 + $0x178] sm:$0x1]  ;;  %v9587_v25 = vld [vmem:[#allocation29_spill] sm:$0xff] }
 0x33a   : > { %v2428_v3 = vrot.slane %v2349_v46, 1  ;;  %v2429_v60 = vrot.slane %v2350_v39, 1  ;;  %v9583_v45 = vmov %v9578_v35  ;;  %v2427_v34 = vsel %vm1525_vm1, %v2425_v32, %v2426_v1  ;;  %v9589_v39 = vld [vmem:[#allocation80_spill] sm:$0xff] }
 0x33b   : > { %v2517_v33 = vadd.f32 %v9583_v45, %v2269_v12  ;;  %v2518_v44 = vadd.f32 %v2422_v7, %v2270_v42  ;;  %v2519_v36 = vadd.f32 %v2424_v14, %v2271_v57  ;;  %v2520_v8 = vadd.f32 %v2423_v11, %v2272_v19  ;;  %v9584_v57 = vld [vmem:[#allocation55_spill] sm:$0xff] }
 0x33c   : > { %v2430_v23 = vsel %vm1525_vm1, %v2428_v3, %v2429_v60  ;;  %v2521_v20 = vadd.f32 %v2425_v32, %v2273_v47  ;;  %v2522_v55 = vadd.f32 %v2427_v34, %v2274_v29  ;;  %v2523_v59 = vadd.f32 %v2426_v1, %v2275_v58  ;;  %v9591_v32 = vld [vmem:[#allocation79_spill] sm:$0xff] }
 0x33d   : > { %v2524_v56 = vadd.f32 %v2428_v3, %v2276_v2  ;;  %v2525_v51 = vadd.f32 %v2430_v23, %v2277_v0  ;;  %v2526_v43 = vadd.f32 %v2429_v60, %v2278_v22  ;;  %v2556_v24 = vunpack.c.l.bf16 %v2540_v63 }
 0x33e   : > { %v2557_v12 = vunpack.c.l.bf16 %v2541_v27  ;;  %v2558_v54 = vunpack.c.l.bf16 %v2542_v38  ;;  %v2559_v6 = vunpack.c.l.bf16 %v2543_v18  ;;  %v2560_v62 = vunpack.c.l.bf16 %v2544_v50 }
 0x33f   : > { %v2602_v42 = vmul.f32 %v5670_v17, %v2556_v24  ;;  %v2606_v19 = vmul.f32 %v5670_v17, %v9584_v57  ;;  %v2607_v26 = vmul.f32 %v5670_v17, %v8101_v10  ;;  %v2609_v40 = vmul.f32 %v5670_v17, %v8143_v31 }
 0x340   : > { %v2605_v35 = vmul.f32 %v5670_v17, %v2557_v12  ;;  %v2608_v47 = vmul.f32 %v5670_v17, %v2558_v54  ;;  %v2610_v29 = vmul.f32 %v5670_v17, %v8145_v30  ;;  %v2611_v58 = vmul.f32 %v5670_v17, %v2559_v6 }
 0x341   : > { %v2612_v2 = vmul.f32 %v5670_v17, %v8258_v16  ;;  %v2613_v0 = vmul.f32 %v5670_v17, %v8261_v52  ;;  %v2614_v22 = vmul.f32 %v5670_v17, %v2560_v62  ;;  %v9586_v13 = vrot.slane %v9585_v61, 2 }
 0x342   : > { %v9588_v53 = vrot.slane %v9587_v25, 2  ;;  %v2721_v46 = vrot.slane %v2602_v42, 2  ;;  %v9590_v11 = vrot.slane %v9589_v39, 2  ;;  %v9592_v1 = vrot.slane %v9591_v32, 2  ;;  %v2866_v25 = vld [vmem:[#allocation2 + $0x150] sm:$0x80] }
 0x343   : > { %v2726_v14 = vrot.slane %v2605_v35, 2  ;;  %v2728_v3 = vrot.slane %v2606_v19, 2  ;;  %v2729_v60 = vrot.slane %v2607_v26, 2  ;;  %v2731_v45 = vrot.slane %v2608_v47, 2  ;;  %v9595_v19 = vld [vmem:[#allocation41_spill] sm:$0xff]  ;;  %v9596_v26 = vld [vmem:[#allocation51_spill] sm:$0xff] }
 0x344   : > { %v2720_v7 = vsel %vm1806_vm2, %v9588_v53, %v9586_v13  ;;  %v2725_v41 = vsel %vm1806_vm2, %v9592_v1, %v9590_v11  ;;  %v2733_v63 = vrot.slane %v2609_v40, 2  ;;  %v2734_v27 = vrot.slane %v2610_v29, 2  ;;  %v9597_v29 = vld [vmem:[#allocation70_spill] sm:$0xff] }
 0x345   : > { %v9593_v34 = vmov %v9586_v13  ;;  %v9594_v18 = vmov %v9590_v11  ;;  %v2736_v23 = vrot.slane %v2611_v58, 2  ;;  %v2738_v24 = vrot.slane %v2612_v2, 2  ;;  %v2868_v11 = vld [vmem:[#allocation2 + $0x168] sm:$0x80] }
 0x346   : > { %v2722_v38 = vsel %vm1806_vm2, %v9593_v34, %v2721_v46  ;;  %v2727_v50 = vsel %vm1806_vm2, %v9594_v18, %v2726_v14  ;;  %v2730_v12 = vsel %vm1806_vm2, %v2728_v3, %v2729_v60  ;;  %v2732_v54 = vsel %vm1806_vm2, %v2729_v60, %v2731_v45 }
 0x347   : > { %v2735_v6 = vsel %vm1806_vm2, %v2733_v63, %v2734_v27  ;;  %v2739_v62 = vrot.slane %v2613_v0, 2  ;;  %v2737_v17 = vsel %vm1806_vm2, %v2734_v27, %v2736_v23  ;;  %v2741_v42 = vrot.slane %v2614_v22, 2  ;;  %v2870_v22 = vld [vmem:[#allocation2 + $0x180] sm:$0x80] }
 0x348   : > { %v2822_v40 = vadd.f32 %v9596_v26, %v9595_v19  ;;  %v2825_v35 = vadd.f32 %v2720_v7, %v2513_v4  ;;  %v2826_v61 = vadd.f32 %v2722_v38, %v9597_v29  ;;  %v9598_v58 = vmov %v9592_v1 }
 0x349   : > { %v2740_v47 = vsel %vm1806_vm2, %v2738_v24, %v2739_v62  ;;  %v2827_v2 = vadd.f32 %v9598_v58, %v2515_v28  ;;  %v2828_v13 = vadd.f32 %v2725_v41, %v2516_v37  ;;  %v2742_v53 = vsel %vm1806_vm2, %v2739_v62, %v2741_v42  ;;  %v9599_v37 = vld [vmem:[#allocation81_spill] sm:$0xff] }
 0x34a   : > { %v2829_v46 = vadd.f32 %v2727_v50, %v2517_v33  ;;  %v2830_v0 = vadd.f32 %v2728_v3, %v2518_v44  ;;  %v2831_v39 = vadd.f32 %v2730_v12, %v2519_v36  ;;  %v2832_v1 = vadd.f32 %v2732_v54, %v2520_v8  ;;  %v9600_v36 = vld [vmem:[#allocation47_spill] sm:$0xff]  ;;  %v9601_v8 = vld [vmem:[#allocation26_spill] sm:$0xff] }
 0x34b   : > { %v2833_v14 = vadd.f32 %v2733_v63, %v2521_v20  ;;  %v2834_v60 = vadd.f32 %v2735_v6, %v2522_v55  ;;  %v2835_v4 = vadd.f32 %v2737_v17, %v2523_v59  ;;  %v8324_v7 = vadd.f32 %v2738_v24, %v2524_v56  ;;  %v9602_v55 = vld [vmem:[#allocation67_spill] sm:$0xff]  ;;  %v9603_v56 = vld [vmem:[#allocation53_spill] sm:$0xff]  ;;  %v9605_v6 = vld [vmem:[#allocation50_spill] sm:$0xff] }
 0x34c   : > { %v8326_v45 = vadd.f32 %v2740_v47, %v2525_v51  ;;  %v8328_v27 = vadd.f32 %v2742_v53, %v2526_v43  ;;  %v2942_v28 = vrot.slane %v2866_v25, 4  ;;  %v3019_v32 = vunpack.c.l.bf16 %v9599_v37  ;;  %v8339_v63 = vld [vmem:[#allocation8 + $0x6] ss:$0 sm:$0xff]  ;;  %v9604_v43 = vld [vmem:[#allocation68_spill] sm:$0xff]  ;;  %v9607_v47 = vld [vmem:[#allocation77_spill] sm:$0xff] }
 0x34d   : > { %v3020_v41 = vunpack.c.h.bf16 %v9599_v37  ;;  %v2945_v33 = vrot.slane %v2868_v11, 4  ;;  %v2948_v44 = vrot.slane %v2870_v22, 4  ;;  %v8333_v3 = vadd.f32 3.0, %v9600_v36  ;;  %v8363_v37 = vld [vmem:[#allocation8 + $0x7] ss:$0 sm:$0xff] }
 0x34e   : > { %v3808_v20 = vmax.f32 %v9601_v8, 0.0  ;;  %v3809_v59 = vmax.f32 %v9602_v55, 0.0  ;;  %v2944_v51 = vsel %vm1190_vm0, %v2942_v28, %v9603_v56  ;;  %v3072_v34 = vmul.f32 %v8339_v63, %v9604_v43  ;;  %v9610_v56 = vld [vmem:[#allocation61_spill] sm:$0xff] }
 0x34f   : > { %v2947_v38 = vsel %vm1190_vm0, %v2945_v33, %v8141_v21  ;;  %v2950_v18 = vsel %vm1190_vm0, %v2948_v44, %v8224_v48  ;;  %v3022_v50 = vunpack.c.l.bf16 %v2944_v51  ;;  %v3023_v23 = vunpack.c.h.bf16 %v2944_v51  ;;  %v9609_v33 = vld [vmem:[#allocation75_spill] sm:$0xff] }
 0x350   : > { %v3025_v24 = vunpack.c.l.bf16 %v2947_v38  ;;  %v3026_v12 = vunpack.c.h.bf16 %v2947_v38  ;;  %v3028_v54 = vunpack.c.l.bf16 %v2950_v18  ;;  %v9606_v62 = vunpack.c.h.bf16 %v9605_v6 }
 0x351   : > { %v3029_v42 = vunpack.c.h.bf16 %v2950_v18  ;;  %v3073_v19 = vmul.f32 %v8339_v63, %v3019_v32  ;;  %v3074_v26 = vmul.f32 %v8339_v63, %v3020_v41  ;;  %v3075_v21 = vmul.f32 %v8339_v63, %v9607_v47  ;;  %v9608_v32 = vld [vmem:[#allocation69_spill] sm:$0xff]  ;;  %v9612_v47 = vld [vmem:[#allocation36_spill] sm:$0xff] }
 0x352   : > { %v3071_v17 = vmul.f32 %v8339_v63, %v9606_v62  ;;  %v3076_v29 = vmul.f32 %v8339_v63, %v3022_v50  ;;  %v3077_v58 = vmul.f32 %v8339_v63, %v3023_v23  ;;  %v3078_v25 = vmul.f32 %v8339_v63, %v8112_v15 }
 0x353   : > { %v3079_v53 = vmul.f32 %v8339_v63, %v3025_v24  ;;  %v3080_v11 = vmul.f32 %v8339_v63, %v3026_v12  ;;  %v3081_v22 = vmul.f32 %v8339_v63, %v8158_v5  ;;  %v3082_v28 = vmul.f32 %v8339_v63, %v3028_v54  ;;  %v9611_v5 = vld [vmem:[#allocation72_spill] sm:$0xff] }
 0x354   : > { %v3197_v41 = vmul.f32 %v8363_v37, %v9608_v32  ;;  %v3198_v44 = vmul.f32 %v8363_v37, %v9609_v33  ;;  %v3083_v8 = vmul.f32 %v8339_v63, %v3029_v42  ;;  %v3084_v15 = vmul.f32 %v8339_v63, %v2176_v9 }
 0x355   : > { %v3119_v55 = vadd.f32 %v3071_v17, %v2822_v40  ;;  %v3120_v51 = vadd.f32 %v3072_v34, %v9610_v56  ;;  %v3121_v43 = vadd.f32 %v3073_v19, %v9611_v5  ;;  %v3122_v38 = vadd.f32 %v3074_v26, %v2825_v35  ;;  %v9614_v17 = vld [vmem:[#allocation44_spill] sm:$0xff] }
 0x356   : > { %v3123_v18 = vadd.f32 %v3075_v21, %v2826_v61  ;;  %v3124_v50 = vadd.f32 %v3076_v29, %v2827_v2  ;;  %v3125_v23 = vadd.f32 %v3077_v58, %v2828_v13  ;;  %v3126_v24 = vadd.f32 %v3078_v25, %v2829_v46  ;;  %v9615_v29 = vld [vmem:[#allocation64_spill] sm:$0xff]  ;;  %v9617_v25 = vld [vmem:[#allocation63_spill] sm:$0xff] }
 0x357   : > { %v3127_v12 = vadd.f32 %v3079_v53, %v2830_v0  ;;  %v3128_v54 = vadd.f32 %v3080_v11, %v2831_v39  ;;  %v3129_v6 = vadd.f32 %v3081_v22, %v2832_v1  ;;  %v3130_v62 = vadd.f32 %v3082_v28, %v2833_v14 }
 0x358   : > { %v4052_v42 = vrot.slane %v9612_v47, 7  ;;  %v3199_v48 = vmul.f32 %v8363_v37, %v9613_v49  ;;  %v3131_v9 = vadd.f32 %v3083_v8, %v2834_v60  ;;  %v3132_v40 = vadd.f32 %v3084_v15, %v2835_v4 }
 0x359   : > { %v4053_v34 = vrot.slane %v9614_v17, 7  ;;  %v3271_v56 = vrot.slane %v3197_v41, 1  ;;  %v3273_v19 = vrot.slane %v3198_v44, 1  ;;  %v3200_v35 = vmul.f32 %v8363_v37, %v9584_v57  ;;  %v9620_v44 = vld [vmem:[#allocation71_spill] sm:$0xff] }
 0x35a   : > { %v3201_v61 = vmul.f32 %v8363_v37, %v8101_v10  ;;  %v3202_v2 = vmul.f32 %v8363_v37, %v8143_v31  ;;  %v3203_v13 = vmul.f32 %v8363_v37, %v8145_v30  ;;  %v3204_v46 = vmul.f32 %v8363_v37, %v8258_v16 }
 0x35b   : > { %v3810_v0 = vmax.f32 %v8333_v3, 0.0  ;;  %v8390_v39 = vmin.f32 %v3808_v20, 6.0  ;;  %v8392_v1 = vmin.f32 %v3809_v59, 6.0  ;;  %v3205_v14 = vmul.f32 %v8363_v37, %v8261_v52  ;;  %v8401_v20 = vld [vmem:[#allocation8 + $0x8] ss:$0 sm:$0xff]  ;;  %v9619_v59 = vld [vmem:[#allocation40_spill] sm:$0xff] }
 0x35c   : > { %v3274_v60 = vrot.slane %v3199_v48, 1  ;;  %v3276_v4 = vrot.slane %v3200_v35, 1  ;;  %v3277_v26 = vrot.slane %v3201_v61, 1  ;;  %v3279_v21 = vrot.slane %v3202_v2, 1  ;;  %v9622_v48 = vld [vmem:[#allocation62_spill] sm:$0xff] }
 0x35d   : > { %v9616_v58 = vrot.slane %v9615_v29, 1  ;;  %v9618_v53 = vrot.slane %v9617_v25, 1  ;;  %v3280_v22 = vrot.slane %v3203_v13, 1  ;;  %v3282_v28 = vrot.slane %v3204_v46, 1 }
 0x35e   : > { %v3283_v3 = vrot.slane %v3205_v14, 1  ;;  %v8405_v41 = vmul.f32 %v8401_v20, %v9619_v59  ;;  %v9621_v8 = vrot.slane %v9620_v44, 1  ;;  %v3275_v5 = vsel %vm1525_vm1, %v3273_v19, %v3274_v60 }
 0x35f   : > { %v3269_v11 = vsel %vm1525_vm1, %v9618_v53, %v9616_v58  ;;  %v3278_v61 = vsel %vm1525_vm1, %v3276_v4, %v3277_v26  ;;  %v3281_v2 = vsel %vm1525_vm1, %v3279_v21, %v3280_v22  ;;  %v8418_v46 = vadd.f32 %v3271_v56, %v3120_v51  ;;  %v3395_v53 = vld [vmem:[#allocation2 + $0x118] sm:$0x1]  ;;  %v3397_v51 = vld [vmem:[#allocation2 + $0x148] sm:$0x1] }
 0x360   : > { %v3272_v15 = vsel %vm1525_vm1, %v9621_v8, %v3271_v56  ;;  %v8412_v35 = vadd.f32 %v3269_v11, %v9622_v48  ;;  %v3284_v14 = vsel %vm1525_vm1, %v3282_v28, %v3283_v3  ;;  %v8421_v29 = vadd.f32 %v3273_v19, %v3121_v43  ;;  %v3398_v56 = vld [vmem:[#allocation2 + $0x160] sm:$0x1]  ;;  %v3399_v19 = vld [vmem:[#allocation2 + $0x178] sm:$0x1] }
 0x361   : > { %v8416_v13 = vadd.f32 %v3272_v15, %v3119_v55  ;;  %v8423_v58 = vadd.f32 %v3275_v5, %v3122_v38  ;;  %v8425_v25 = vadd.f32 %v3274_v60, %v3123_v18  ;;  %v8427_v59 = vadd.f32 %v3276_v4, %v3124_v50  ;;  %v3396_v55 = vld [vmem:[#allocation2 + $0x130] sm:$0x1]  ;;  %v9623_v50 = vld [vmem:[#allocation49_spill] sm:$0xff] }
 0x362   : > { %v8429_v11 = vadd.f32 %v3278_v61, %v3125_v23  ;;  %v8431_v44 = vadd.f32 %v3277_v26, %v3126_v24  ;;  %v8433_v8 = vadd.f32 %v3279_v21, %v3127_v12  ;;  %v8435_v15 = vadd.f32 %v3281_v2, %v3128_v54  ;;  %v3400_v54 = vld [vmem:[#allocation2 + $0x190] sm:$0x1] }
 0x363   : > { %v8437_v43 = vadd.f32 %v3280_v22, %v3129_v6  ;;  %v8439_v38 = vadd.f32 %v3282_v28, %v3130_v62  ;;  %v8441_v18 = vadd.f32 %v3284_v14, %v3131_v9  ;;  %v3454_v23 = vmul.f32 %v8401_v20, %v9623_v50  ;;  %v9624_v9 = vld [vmem:[#allocation24_spill] sm:$0xff]  ;;  %v9625_v22 = vld [vmem:[#allocation27_spill] sm:$0xff] }
 0x364   : > { %v3455_v24 = vmul.f32 %v8401_v20, %v9608_v32  ;;  %v3458_v12 = vmul.f32 %v8401_v20, %v9613_v49  ;;  %v8449_v60 = vadd.f32 %v3283_v3, %v3132_v40  ;;  %v3411_v4 = vunpack.c.l.bf16 %v3395_v53 }
 0x365   : > { %v3412_v6 = vunpack.c.l.bf16 %v3396_v55  ;;  %v3413_v26 = vunpack.c.l.bf16 %v3397_v51  ;;  %v3414_v62 = vunpack.c.l.bf16 %v3398_v56  ;;  %v8451_v21 = vmin.f32 %v3810_v0, 6.0 }
 0x366   : > { %v8455_v28 = vadd.f32 %v9625_v22, %v9624_v9  ;;  %v3566_v5 = vrot.slane %v8405_v41, 2  ;;  %v3415_v48 = vunpack.c.l.bf16 %v3399_v19  ;;  %v3457_v32 = vmul.f32 %v8401_v20, %v9609_v33 }
 0x367   : > { %v3416_v49 = vunpack.c.l.bf16 %v3400_v54  ;;  %v3453_v40 = vmul.f32 %v8401_v20, %v3411_v4  ;;  %v3456_v3 = vmul.f32 %v8401_v20, %v3412_v6  ;;  %v3459_v61 = vmul.f32 %v8401_v20, %v3413_v26  ;;  %v9626_v6 = vld [vmem:[#allocation48_spill] sm:$0xff]  ;;  %v9627_v26 = vld [vmem:[#allocation46_spill] sm:$0xff] }
 0x368   : > { %v3460_v0 = vmul.f32 %v8401_v20, %v9584_v57  ;;  %v3461_v2 = vmul.f32 %v8401_v20, %v8101_v10  ;;  %v3462_v14 = vmul.f32 %v8401_v20, %v3414_v62  ;;  %v3570_v41 = vrot.slane %v3454_v23, 2 }
 0x369   : > { %v3571_v53 = vrot.slane %v3455_v24, 2  ;;  %v3576_v55 = vrot.slane %v3458_v12, 2  ;;  %v3463_v33 = vmul.f32 %v8401_v20, %v8143_v31  ;;  %v3464_v51 = vmul.f32 %v8401_v20, %v8145_v30 }
 0x36a   : > { %v3465_v56 = vmul.f32 %v8401_v20, %v3415_v48  ;;  %v3466_v19 = vmul.f32 %v8401_v20, %v8258_v16  ;;  %v3568_v57 = vrot.slane %v3453_v40, 2  ;;  %v3467_v10 = vmul.f32 %v8401_v20, %v8261_v52  ;;  %v9628_v16 = vld [vmem:[#allocation65_spill] sm:$0xff] }
 0x36b   : > { %v3468_v50 = vmul.f32 %v8401_v20, %v3416_v49  ;;  %v3573_v23 = vrot.slane %v3456_v3, 2  ;;  %v3575_v24 = vrot.slane %v3457_v32, 2  ;;  %v3578_v12 = vrot.slane %v3459_v61, 2 }
 0x36c   : > { %v3580_v54 = vrot.slane %v3460_v0, 2  ;;  %v3581_v4 = vrot.slane %v3461_v2, 2  ;;  %v3583_v31 = vrot.slane %v3462_v14, 2  ;;  %v8480_v30 = vadd.f32 %v9625_v22, %v9626_v6 }
 0x36d   : > { %v8484_v62 = vadd.f32 %v9625_v22, %v9627_v26  ;;  %v9629_v9 = vrot.slane %v9628_v16, 2  ;;  %v3585_v48 = vrot.slane %v3463_v33, 2  ;;  %v3569_v49 = vsel %vm1806_vm2, %v3566_v5, %v3568_v57 }
 0x36e   : > { %v3572_v32 = vsel %vm1806_vm2, %v3570_v41, %v3571_v53  ;;  %v3586_v40 = vrot.slane %v3464_v51, 2  ;;  %v3588_v3 = vrot.slane %v3465_v56, 2  ;;  %v3574_v61 = vsel %vm1806_vm2, %v3571_v53, %v3573_v23  ;;  %v9630_v56 = vld [vmem:[#allocation42_spill] sm:$0xff] }
 0x36f   : > { %v3567_v52 = vsel %vm1806_vm2, %v9629_v9, %v3566_v5  ;;  %v3590_v0 = vrot.slane %v3466_v19, 2  ;;  %v3591_v2 = vrot.slane %v3467_v10, 2  ;;  %v3593_v14 = vrot.slane %v3468_v50, 2  ;;  %v9631_v10 = vld [vmem:[#allocation74_spill] sm:$0xff] }
 0x370   : > { %v3577_v6 = vsel %vm1806_vm2, %v3575_v24, %v3576_v55  ;;  %v3579_v26 = vsel %vm1806_vm2, %v3576_v55, %v3578_v12  ;;  %v3582_v16 = vsel %vm1806_vm2, %v3580_v54, %v3581_v4  ;;  %v3584_v9 = vsel %vm1806_vm2, %v3581_v4, %v3583_v31 }
 0x371   : > { %v3587_v33 = vsel %vm1806_vm2, %v3585_v48, %v3586_v40  ;;  %v3589_v5 = vsel %vm1806_vm2, %v3586_v40, %v3588_v3  ;;  %v8499_v51 = vadd.f32 %v3567_v52, %v8412_v35  ;;  %v8502_v53 = vadd.f32 %v3569_v49, %v9630_v56  ;;  %v9637_v49 = vld [vmem:[#allocation22_spill] sm:$0xff] }
 0x372   : > { %v3592_v19 = vsel %vm1806_vm2, %v3590_v0, %v3591_v2  ;;  %v3594_v57 = vsel %vm1806_vm2, %v3591_v2, %v3593_v14  ;;  %v8507_v55 = vadd.f32 %v3570_v41, %v9631_v10  ;;  %v8510_v50 = vadd.f32 %v3572_v32, %v8416_v13  ;;  %v9638_v32 = vld [vmem:[#allocation45_spill] sm:$0xff]  ;;  %v9640_v2 = vld [vmem:[#allocation58_spill] sm:$0xff] }
 0x373   : > { %v8513_v23 = vadd.f32 %v3574_v61, %v8418_v46  ;;  %v8516_v12 = vadd.f32 %v3575_v24, %v8421_v29  ;;  %v8519_v35 = vadd.f32 %v3577_v6, %v8423_v58  ;;  %v8522_v4 = vadd.f32 %v3579_v26, %v8425_v25  ;;  %v9632_v24 = vld [vmem:[#allocation52_spill] sm:$0xff]  ;;  %v9639_v61 = vld [vmem:[#allocation37_spill] sm:$0xff]  ;;  %v9642_v56 = vld [vmem:[#allocation54_spill] sm:$0xff] }
 0x374   : > { %v8525_v31 = vadd.f32 %v3580_v54, %v8427_v59  ;;  %v8528_v41 = vadd.f32 %v3582_v16, %v8429_v11  ;;  %v8531_v13 = vadd.f32 %v3584_v9, %v8431_v44  ;;  %v8534_v46 = vadd.f32 %v3585_v48, %v8433_v8  ;;  %v2872_v8 = vld [vmem:[#allocation2 + $0x198] sm:$0x80]  ;;  %v5674_v16 = vld [vmem:[#allocation2] sm:$0xff] }
 0x375   : > { %v8537_v29 = vadd.f32 %v3587_v33, %v8435_v15  ;;  %v8540_v58 = vadd.f32 %v3589_v5, %v8437_v43  ;;  %v8543_v25 = vadd.f32 %v3590_v0, %v8439_v38  ;;  %v8546_v59 = vadd.f32 %v3592_v19, %v8441_v18  ;;  %v9633_v15 = vld [vmem:[#allocation57_spill] sm:$0xff]  ;;  %v9635_v43 = vld [vmem:[#allocation28_spill] sm:$0xff] }
 0x376   : > { %v3763_v11 = vadd.f32 3.0, %v8455_v28  ;;  %v8551_v44 = vadd.f32 %v9625_v22, %v9632_v24  ;;  %v8554_v54 = vadd.f32 %v3594_v57, %v8449_v60  ;;  %v9634_v52 = vrot.slane %v9633_v15, 7  ;;  %v9641_v33 = vld [vmem:[#allocation56_spill] sm:$0xff] }
 0x377   : > { %v9636_v48 = vrot.slane %v9635_v43, 7  ;;  %v3904_v18 = vmul.f32 %v8390_v39, %v9637_v49  ;;  %v3905_v40 = vmul.f32 %v8392_v1, %v9638_v32  ;;  %v3765_v3 = vadd.f32 3.0, %v8484_v62 }
 0x378   : > { %v4054_v60 = vsel %vm4036_vm3, %v4052_v42, %v4053_v34  ;;  %v4055_v0 = vrot.slane %v9639_v61, 7  ;;  %v3906_v6 = vmul.f32 %v8451_v21, %v9600_v36  ;;  %v3764_v39 = vadd.f32 3.0, %v8480_v30  ;;  %v9644_v21 = vld [vmem:[#allocation31_spill] sm:$0xff] }
 0x379   : > { %v4051_v38 = vsel %vm4036_vm3, %v9636_v48, %v9634_v52  ;;  %v2951_v26 = vrot.slane %v2872_v8, 4  ;;  %v2952_v1 = vrot.slane %v5674_v16, 4  ;;  %v3811_v9 = vmax.f32 %v3763_v11, 0.0 }
 0x37a   : > { %v4153_v14 = vadd.f32 %v9640_v2, %v4051_v38  ;;  %v8578_v5 = vadd.f32 %v9625_v22, %v9641_v33  ;;  %v8582_v42 = vadd.f32 %v9625_v22, %v9642_v56  ;;  %v3766_v19 = vadd.f32 3.0, %v8551_v44  ;;  %v3401_v33 = vld [vmem:[#allocation2 + $0x1a8] sm:$0x1] }
 0x37b   : > { %v8585_v57 = vmul.f32 0.16666667, %v3904_v18  ;;  %v8587_v10 = vmul.f32 0.16666667, %v3905_v40  ;;  %v3813_v36 = vmax.f32 %v3765_v3, 0.0  ;;  %v8591_v24 = vadd.f32 %v9625_v22, %v9644_v21 }
 0x37c   : > { %v8596_v11 = vsel %vm4036_vm3, %v4053_v34, %v4055_v0  ;;  %v8598_v8 = vadd.f32 %v4153_v14, %v4054_v60  ;;  %v3168_v52 = vunpack.c.l.bf16 %v5674_v16  ;;  %v8600_v48 = vmul.f32 0.16666667, %v3906_v6  ;;  %v9645_v34 = vld [vmem:[#allocation59_spill] sm:$0xff] }
 0x37d   : > { %9643 = vst [vmem:[#allocation78_spill] sm:$0xff] %v8585_v57  ;;  %v3812_v38 = vmax.f32 %v3764_v39, 0.0  ;;  %v2953_v49 = vsel %vm1190_vm0, %v2951_v26, %v2952_v1  ;;  %v3169_v18 = vunpack.c.h.bf16 %v5674_v16  ;;  %v3859_v32 = vmin.f32 %v3811_v9, 6.0 }
 0x37e   : > { %v3767_v40 = vadd.f32 3.0, %v8578_v5  ;;  %v3768_v3 = vadd.f32 3.0, %v8582_v42  ;;  %v3814_v2 = vmax.f32 %v3766_v19, 0.0  ;;  %v4057_v56 = vrot.slane %v8585_v57, 7 }
 0x37f   : > { %v3861_v60 = vmin.f32 %v3813_v36, 6.0  ;;  %v3769_v0 = vadd.f32 3.0, %v8591_v24  ;;  %v3031_v14 = vunpack.c.l.bf16 %v2953_v49  ;;  %v3032_v6 = vunpack.c.h.bf16 %v2953_v49  ;;  %v9646_v49 = vld [vmem:[#allocation38_spill] sm:$0xff] }
 0x380   : > { %v3033_v39 = vunpack.c.l.bf16 %v2952_v1  ;;  %v3206_v26 = vmul.f32 %v8363_v37, %v3168_v52  ;;  %v3860_v9 = vmin.f32 %v3812_v38, 6.0  ;;  %v3207_v21 = vmul.f32 %v8363_v37, %v3169_v18 }
 0x381   : > { %v3417_v61 = vunpack.c.l.bf16 %v3401_v33  ;;  %v3907_v19 = vmul.f32 %v3859_v32, %v8455_v28  ;;  %v3815_v17 = vmax.f32 %v3767_v40, 0.0  ;;  %v3816_v57 = vmax.f32 %v3768_v3, 0.0 }
 0x382   : > { %v3862_v47 = vmin.f32 %v3814_v2, 6.0  ;;  %v3909_v36 = vmul.f32 %v3861_v60, %v8484_v62  ;;  %v8615_v15 = vadd.f32 %v9625_v22, %v9645_v34  ;;  %v3817_v1 = vmax.f32 %v3769_v0, 0.0 }
 0x383   : > { %v8619_v43 = vadd.f32 %v9625_v22, %v9646_v49  ;;  %v3085_v38 = vmul.f32 %v8339_v63, %v3031_v14  ;;  %v3086_v37 = vmul.f32 %v8339_v63, %v3032_v6  ;;  %v3087_v28 = vmul.f32 %v8339_v63, %v3033_v39 }
 0x384   : > { %v3285_v32 = vrot.slane %v3206_v26, 1  ;;  %v3286_v40 = vrot.slane %v3207_v21, 1  ;;  %v3469_v3 = vmul.f32 %v8401_v20, %v3168_v52  ;;  %v3470_v62 = vmul.f32 %v8401_v20, %v3169_v18  ;;  %v9647_v21 = vld [vmem:[#allocation32_spill] sm:$0xff] }
 0x385   : > { %v3471_v2 = vmul.f32 %v8401_v20, %v3417_v61  ;;  %v3908_v33 = vmul.f32 %v3860_v9, %v8480_v30  ;;  %v3863_v34 = vmin.f32 %v3815_v17, 6.0  ;;  %v3864_v60 = vmin.f32 %v3816_v57, 6.0 }
 0x386   : > { %v3910_v0 = vmul.f32 %v3862_v47, %v8551_v44  ;;  %v8629_v49 = vmul.f32 0.16666667, %v3907_v19  ;;  %v3771_v14 = vadd.f32 3.0, %v8615_v15  ;;  %v3865_v6 = vmin.f32 %v3817_v1, 6.0 }
 0x387   : > { %v3772_v63 = vadd.f32 3.0, %v8619_v43  ;;  %v8633_v39 = vmul.f32 0.16666667, %v3909_v36  ;;  %v3133_v52 = vadd.f32 %v3085_v38, %v8324_v7  ;;  %v3134_v18 = vadd.f32 %v3086_v37, %v8326_v45 }
 0x388   : > { %v3135_v20 = vadd.f32 %v3087_v28, %v8328_v27  ;;  %v3287_v17 = vsel %vm1525_vm1, %v3285_v32, %v3286_v40  ;;  %v3595_v30 = vrot.slane %v3469_v3, 2  ;;  %v3596_v61 = vrot.slane %v3470_v62, 2 }
 0x389   : > { %v3598_v47 = vrot.slane %v3471_v2, 2  ;;  %v8639_v44 = vmul.f32 0.16666667, %v3908_v33  ;;  %v3911_v57 = vmul.f32 %v3863_v34, %v8578_v5  ;;  %v3912_v26 = vmul.f32 %v3864_v60, %v8582_v42 }
 0x38a   : > { %v8643_v9 = vmul.f32 0.16666667, %v3910_v0  ;;  %v8647_v7 = vadd.f32 %v9625_v22, %v9647_v21  ;;  %v3819_v45 = vmax.f32 %v3771_v14, 0.0  ;;  %v3913_v27 = vmul.f32 %v3865_v6, %v8591_v24 }
 0x38b   : > { %v3820_v19 = vmax.f32 %v3772_v63, 0.0  ;;  %v9648_v36 = vrot.slane %v8587_v10, 7  ;;  %v3381_v38 = vadd.f32 %v3285_v32, %v3133_v52  ;;  %v3382_v37 = vadd.f32 %v3287_v17, %v3134_v18  ;;  %v9649_v63 = vld [vmem:[#allocation60_spill] sm:$0xff]  ;;  %v9650_v18 = vld [vmem:[#allocation39_spill] sm:$0xff]  ;;  %v9651_v17 = vld [vmem:[#allocation66_spill] sm:$0xff] }
 0x38c   : > { %v3383_v5 = vadd.f32 %v3286_v40, %v3135_v20  ;;  %v3597_v3 = vsel %vm1806_vm2, %v3595_v30, %v3596_v61  ;;  %v3599_v62 = vsel %vm1806_vm2, %v3596_v61, %v3598_v47  ;;  %v8660_v24 = vmul.f32 0.16666667, %v3911_v57 }
 0x38d   : > { %v8653_v1 = vsel %vm4036_vm3, %v4057_v56, %v9648_v36  ;;  %v8662_v33 = vmul.f32 0.16666667, %v3912_v26  ;;  %v3770_v32 = vadd.f32 3.0, %v8647_v7  ;;  %v8666_v34 = vmin.f32 %v3819_v45, 6.0 }
 0x38e   : > { %v8668_v40 = vmul.f32 0.16666667, %v3913_v27  ;;  %v8670_v60 = vmin.f32 %v3820_v19, 6.0  ;;  %v3693_v0 = vadd.f32 %v3595_v30, %v3381_v38  ;;  %v3694_v14 = vadd.f32 %v3597_v3, %v3382_v37 }
 0x38f   : > { %v3695_v6 = vadd.f32 %v3599_v62, %v3383_v5  ;;  %v8674_v52 = vadd.f32 %v9625_v22, %v9649_v63  ;;  %v8678_v20 = vadd.f32 %v9625_v22, %v9650_v18  ;;  %v8682_v61 = vadd.f32 %v9625_v22, %v9651_v17 }
 0x390   : > { %v8686_v47 = vadd.f32 %v9625_v22, %v8499_v51  ;;  %v8690_v30 = vadd.f32 %v9625_v22, %v8502_v53  ;;  %v8694_v57 = vadd.f32 %v9625_v22, %v8507_v55  ;;  %v8698_v26 = vadd.f32 %v9625_v22, %v8510_v50 }
 0x391   : > { %v8702_v21 = vadd.f32 %v9625_v22, %v8513_v23  ;;  %v8706_v51 = vadd.f32 %v9625_v22, %v8516_v12  ;;  %v8710_v53 = vadd.f32 %v9625_v22, %v8519_v35  ;;  %v8714_v55 = vadd.f32 %v9625_v22, %v8522_v4 }
 0x392   : > { %v8718_v50 = vadd.f32 %v9625_v22, %v8525_v31  ;;  %v8722_v23 = vadd.f32 %v9625_v22, %v8528_v41  ;;  %v8726_v12 = vadd.f32 %v9625_v22, %v8531_v13  ;;  %v8730_v35 = vadd.f32 %v9625_v22, %v8534_v46 }
 0x393   : > { %9652 = vst [vmem:[#allocation30_spill] sm:$0xff] %v8710_v53  ;;  %9653 = vst [vmem:[#allocation55_spill] sm:$0xff] %v8714_v55  ;;  %v8734_v4 = vadd.f32 %v9625_v22, %v8537_v29  ;;  %v8738_v31 = vadd.f32 %v9625_v22, %v8540_v58  ;;  %v8742_v41 = vadd.f32 %v9625_v22, %v8543_v25  ;;  %v3773_v25 = vadd.f32 3.0, %v8674_v52 }
 0x394   : > { %9654 = vst [vmem:[#allocation73_spill] sm:$0xff] %v8718_v50  ;;  %9655 = vst [vmem:[#allocation29_spill] sm:$0xff] %v8722_v23  ;;  %v8746_v13 = vadd.f32 %v9625_v22, %v8546_v59  ;;  %v8750_v46 = vadd.f32 %v9625_v22, %v8554_v54  ;;  %v8753_v45 = vadd.f32 %v9625_v22, %v3693_v0  ;;  %v3774_v27 = vadd.f32 3.0, %v8678_v20 }
 0x395   : > { %9656 = vst [vmem:[#allocation80_spill] sm:$0xff] %v8726_v12  ;;  %9657 = vst [vmem:[#allocation79_spill] sm:$0xff] %v8730_v35  ;;  %v8756_v29 = vadd.f32 %v9625_v22, %v3694_v14  ;;  %v8759_v58 = vadd.f32 %v9625_v22, %v3695_v6  ;;  %v3775_v59 = vadd.f32 3.0, %v8682_v61  ;;  %v3776_v19 = vadd.f32 3.0, %v8686_v47 }
 0x396   : > { %9658 = vst [vmem:[#allocation41_spill] sm:$0xff] %v8734_v4  ;;  %9659 = vst [vmem:[#allocation51_spill] sm:$0xff] %v8738_v31  ;;  %v3777_v54 = vadd.f32 3.0, %v8690_v30  ;;  %v3778_v36 = vadd.f32 3.0, %v8694_v57  ;;  %v3779_v38 = vadd.f32 3.0, %v8698_v26  ;;  %v8769_v37 = vadd.f32 3.0, %v8702_v21 }
 0x397   : > { %9660 = vst [vmem:[#allocation70_spill] sm:$0xff] %v8742_v41  ;;  %9661 = vst [vmem:[#allocation81_spill] sm:$0xff] %v8746_v13  ;;  %v8772_v22 = vadd.f32 3.0, %v8706_v51  ;;  %v8775_v5 = vadd.f32 3.0, %v8710_v53  ;;  %v8778_v3 = vadd.f32 3.0, %v8714_v55  ;;  %v8781_v62 = vadd.f32 3.0, %v8718_v50 }
 0x398   : > { %9662 = vst [vmem:[#allocation47_spill] sm:$0xff] %v8750_v46  ;;  %9663 = vst [vmem:[#allocation26_spill] sm:$0xff] %v8753_v45  ;;  %v8784_v0 = vadd.f32 3.0, %v8722_v23  ;;  %v3818_v14 = vmax.f32 %v3770_v32, 0.0  ;;  %v8787_v6 = vadd.f32 3.0, %v8726_v12  ;;  %v8790_v63 = vadd.f32 3.0, %v8730_v35 }
 0x399   : > { %9664 = vst [vmem:[#allocation67_spill] sm:$0xff] %v8756_v29  ;;  %9665 = vst [vmem:[#allocation53_spill] sm:$0xff] %v8759_v58  ;;  %v8793_v18 = vadd.f32 3.0, %v8734_v4  ;;  %v8796_v17 = vadd.f32 3.0, %v8738_v31  ;;  %v8799_v56 = vadd.f32 3.0, %v8742_v41  ;;  %v8802_v28 = vadd.f32 3.0, %v8746_v13 }
 0x39a   : > { %v8805_v32 = vadd.f32 3.0, %v8750_v46  ;;  %v8808_v42 = vadd.f32 3.0, %v8753_v45  ;;  %v8811_v2 = vadd.f32 3.0, %v8756_v29  ;;  %v8814_v16 = vadd.f32 3.0, %v8759_v58 }
 0x39b   : > { %v3821_v31 = vmax.f32 %v3773_v25, 0.0  ;;  %v3822_v4 = vmax.f32 %v3774_v27, 0.0  ;;  %v3823_v35 = vmax.f32 %v3775_v59, 0.0  ;;  %v3824_v41 = vmax.f32 %v3776_v19, 0.0 }
 0x39c   : > { %v3825_v12 = vmax.f32 %v3777_v54, 0.0  ;;  %v3866_v23 = vmin.f32 %v3818_v14, 6.0  ;;  %v3826_v13 = vmax.f32 %v3778_v36, 0.0  ;;  %v3827_v50 = vmax.f32 %v3779_v38, 0.0 }
 0x39d   : > { %v3828_v46 = vmax.f32 %v8769_v37, 0.0  ;;  %v3829_v55 = vmax.f32 %v8772_v22, 0.0  ;;  %v3830_v45 = vmax.f32 %v8775_v5, 0.0  ;;  %v3831_v29 = vmax.f32 %v8778_v3, 0.0 }
 0x39e   : > { %v3832_v53 = vmax.f32 %v8781_v62, 0.0  ;;  %v3833_v58 = vmax.f32 %v8784_v0, 0.0  ;;  %v3834_v25 = vmax.f32 %v8787_v6, 0.0  ;;  %v3835_v27 = vmax.f32 %v8790_v63, 0.0 }
 0x39f   : > { %v3869_v59 = vmin.f32 %v3821_v31, 6.0  ;;  %v4155_v19 = vadd.f32 %v8598_v8, %v8596_v11  ;;  %v3836_v54 = vmax.f32 %v8793_v18, 0.0  ;;  %v3837_v36 = vmax.f32 %v8796_v17, 0.0 }
 0x3a0   : > { %v3914_v37 = vmul.f32 %v3866_v23, %v8647_v7  ;;  %v3839_v22 = vmax.f32 %v8802_v28, 0.0  ;;  %v3870_v31 = vmin.f32 %v3822_v4, 6.0  ;;  %v3871_v0 = vmin.f32 %v3823_v35, 6.0 }
 0x3a1   : > { %v4156_v62 = vadd.f32 %v4155_v19, %v8653_v1  ;;  %v3872_v14 = vmin.f32 %v3824_v41, 6.0  ;;  %v3915_v11 = vmul.f32 %v8666_v34, %v8615_v15  ;;  %v3916_v7 = vmul.f32 %v8670_v60, %v8619_v43 }
 0x3a2   : > { %v3917_v23 = vmul.f32 %v3869_v59, %v8674_v52  ;;  %v8841_v5 = vmul.f32 0.16666667, %v3914_v37  ;;  %v9666_v3 = vrot.slane %v8600_v48, 7  ;;  %v9667_v1 = vrot.slane %v8587_v10, 7 }
 0x3a3   : > { %v9668_v4 = vrot.slane %v8639_v44, 7  ;;  %v9669_v15 = vrot.slane %v8629_v49, 7  ;;  %v4068_v41 = vrot.slane %v8660_v24, 7  ;;  %v3873_v19 = vmin.f32 %v3825_v12, 6.0 }
 0x3a4   : > { %v4061_v35 = vsel %vm4036_vm3, %v9667_v1, %v9666_v3  ;;  %v3874_v43 = vmin.f32 %v3826_v13, 6.0  ;;  %v3875_v60 = vmin.f32 %v3827_v50, 6.0  ;;  %v3918_v59 = vmul.f32 %v3870_v31, %v8678_v20 }
 0x3a5   : > { %v4064_v34 = vsel %vm4036_vm3, %v9669_v15, %v9668_v4  ;;  %v4157_v52 = vadd.f32 %v4156_v62, %v4061_v35  ;;  %v3919_v37 = vmul.f32 %v3871_v0, %v8682_v61  ;;  %v3920_v38 = vmul.f32 %v3872_v14, %v8686_v47 }
 0x3a6   : > { %v8857_v8 = vmul.f32 0.16666667, %v3915_v11  ;;  %v8859_v3 = vmul.f32 0.16666667, %v3916_v7  ;;  %v8861_v1 = vmul.f32 0.16666667, %v3917_v23  ;;  %v3921_v7 = vmul.f32 %v3873_v19, %v8690_v30 }
 0x3a7   : > { %v9670_v4 = vrot.slane %v8633_v39, 7  ;;  %v9671_v15 = vrot.slane %v8639_v44, 7  ;;  %v4158_v50 = vadd.f32 %v4157_v52, %v4064_v34  ;;  %v9672_v13 = vrot.slane %v8643_v9, 7 }
 0x3a8   : > { %v4070_v61 = vrot.slane %v8662_v33, 7  ;;  %v4072_v47 = vrot.slane %v8668_v40, 7  ;;  %v4073_v62 = vrot.slane %v8841_v5, 7  ;;  %v3876_v31 = vmin.f32 %v3828_v46, 6.0 }
 0x3a9   : > { %v4066_v12 = vsel %vm4036_vm3, %v9671_v15, %v9670_v4  ;;  %v4069_v20 = vsel %vm4036_vm3, %v9672_v13, %v4068_v41  ;;  %v3877_v0 = vmin.f32 %v3829_v55, 6.0  ;;  %v3878_v14 = vmin.f32 %v3830_v45, 6.0 }
 0x3aa   : > { %v4159_v11 = vadd.f32 %v4158_v50, %v4066_v12  ;;  %v3922_v23 = vmul.f32 %v3874_v43, %v8694_v57  ;;  %v3923_v35 = vmul.f32 %v3875_v60, %v8698_v26  ;;  %v8877_v34 = vmul.f32 0.16666667, %v3918_v59  ;;  %v9673_v59 = vld [vmem:[#allocation30_spill] sm:$0xff] }
 0x3ab   : > { %v8879_v52 = vmul.f32 0.16666667, %v3919_v37  ;;  %v8881_v4 = vmul.f32 0.16666667, %v3920_v38  ;;  %v4075_v15 = vrot.slane %v8857_v8, 7  ;;  %v4071_v46 = vsel %vm4036_vm3, %v4068_v41, %v4070_v61 }
 0x3ac   : > { %v4160_v13 = vadd.f32 %v4159_v11, %v4069_v20  ;;  %v4074_v55 = vsel %vm4036_vm3, %v4072_v47, %v4073_v62  ;;  %v4077_v45 = vrot.slane %v8859_v3, 7  ;;  %v4078_v30 = vrot.slane %v8861_v1, 7 }
 0x3ad   : > { %v3879_v57 = vmin.f32 %v3831_v29, 6.0  ;;  %v3880_v19 = vmin.f32 %v3832_v53, 6.0  ;;  %v3881_v26 = vmin.f32 %v3833_v58, 6.0  ;;  %v3924_v60 = vmul.f32 %v3876_v31, %v8702_v21 }
 0x3ae   : > { %v4161_v43 = vadd.f32 %v4160_v13, %v4071_v46  ;;  %v3925_v38 = vmul.f32 %v3877_v0, %v8706_v51  ;;  %v3926_v37 = vmul.f32 %v3878_v14, %v9673_v59  ;;  %v8891_v12 = vmul.f32 0.16666667, %v3921_v7  ;;  %v9674_v14 = vld [vmem:[#allocation55_spill] sm:$0xff]  ;;  %v9675_v7 = vld [vmem:[#allocation73_spill] sm:$0xff] }
 0x3af   : > { %v8893_v50 = vmul.f32 0.16666667, %v3922_v23  ;;  %v8895_v41 = vmul.f32 0.16666667, %v3923_v35  ;;  %v4080_v20 = vrot.slane %v8877_v34, 7  ;;  %v4076_v29 = vsel %vm4036_vm3, %v4073_v62, %v4075_v15  ;;  %v9676_v23 = vld [vmem:[#allocation29_spill] sm:$0xff] }
 0x3b0   : > { %v4162_v61 = vadd.f32 %v4161_v43, %v4074_v55  ;;  %v4079_v53 = vsel %vm4036_vm3, %v4077_v45, %v4078_v30  ;;  %v4082_v58 = vrot.slane %v8879_v52, 7  ;;  %v4083_v21 = vrot.slane %v8881_v4, 7  ;;  %v9680_v59 = vld [vmem:[#allocation41_spill] sm:$0xff] }
 0x3b1   : > { %v3882_v51 = vmin.f32 %v3834_v25, 6.0  ;;  %v3883_v47 = vmin.f32 %v3835_v27, 6.0  ;;  %v3884_v31 = vmin.f32 %v3836_v54, 6.0  ;;  %v3927_v11 = vmul.f32 %v3879_v57, %v9674_v14 }
 0x3b2   : > { %v4163_v0 = vadd.f32 %v4162_v61, %v4076_v29  ;;  %v3928_v62 = vmul.f32 %v3880_v19, %v9675_v7  ;;  %v3929_v35 = vmul.f32 %v3881_v26, %v9676_v23  ;;  %v8911_v15 = vmul.f32 0.16666667, %v3924_v60  ;;  %v9679_v60 = vld [vmem:[#allocation79_spill] sm:$0xff]  ;;  %v9685_v23 = vld [vmem:[#allocation70_spill] sm:$0xff] }
 0x3b3   : > { %v8913_v13 = vmul.f32 0.16666667, %v3925_v38  ;;  %v8915_v46 = vmul.f32 0.16666667, %v3926_v37  ;;  %v4081_v6 = vsel %vm4036_vm3, %v4078_v30, %v4080_v20  ;;  %v4084_v25 = vsel %vm4036_vm3, %v4082_v58, %v4083_v21  ;;  %v9678_v30 = vld [vmem:[#allocation80_spill] sm:$0xff]  ;;  %v9684_v7 = vld [vmem:[#allocation51_spill] sm:$0xff] }
 0x3b4   : > { %v4164_v63 = vadd.f32 %v4163_v0, %v4079_v53  ;;  %v4085_v18 = vrot.slane %v8891_v12, 7  ;;  %v4087_v27 = vrot.slane %v8893_v50, 7  ;;  %v4088_v54 = vrot.slane %v8895_v41, 7 }
 0x3b5   : > { %v3885_v55 = vmin.f32 %v3837_v36, 6.0  ;;  %v9677_v45 = vmax.f32 %v8799_v56, 0.0  ;;  %v3887_v19 = vmin.f32 %v3839_v22, 6.0  ;;  %v3930_v43 = vmul.f32 %v3882_v51, %v9678_v30  ;;  %v9688_v30 = vld [vmem:[#allocation47_spill] sm:$0xff] }
 0x3b6   : > { %v4165_v26 = vadd.f32 %v4164_v63, %v4081_v6  ;;  %v3931_v38 = vmul.f32 %v3883_v47, %v9679_v60  ;;  %v3932_v37 = vmul.f32 %v3884_v31, %v9680_v59  ;;  %v8931_v20 = vmul.f32 0.16666667, %v3927_v11  ;;  %v9689_v60 = vld [vmem:[#allocation26_spill] sm:$0xff]  ;;  %v9690_v59 = vld [vmem:[#allocation67_spill] sm:$0xff] }
 0x3b7   : > { %v3886_v57 = vmin.f32 %v9677_v45, 6.0  ;;  %v8933_v61 = vmul.f32 0.16666667, %v3928_v62  ;;  %v8935_v29 = vmul.f32 0.16666667, %v3929_v35  ;;  %v4090_v17 = vrot.slane %v8911_v15, 7 }
 0x3b8   : > { %v4166_v56 = vadd.f32 %v4165_v26, %v4084_v25  ;;  %v4086_v36 = vsel %vm4036_vm3, %v4083_v21, %v4085_v18  ;;  %v4089_v28 = vsel %vm4036_vm3, %v4087_v27, %v4088_v54  ;;  %v4092_v22 = vrot.slane %v8913_v13, 7  ;;  %v9686_v35 = vld [vmem:[#allocation81_spill] sm:$0xff] }
 0x3b9   : > { %v4093_v53 = vrot.slane %v8915_v46, 7  ;;  %v9681_v58 = vmax.f32 %v8805_v32, 0.0  ;;  %v9682_v47 = vmax.f32 %v8808_v42, 0.0  ;;  %v9683_v0 = vmax.f32 %v8811_v2, 0.0 }
 0x3ba   : > { %v4167_v11 = vadd.f32 %v4166_v56, %v4086_v36  ;;  %v3933_v62 = vmul.f32 %v3885_v55, %v9684_v7  ;;  %v3934_v21 = vmul.f32 %v3886_v57, %v9685_v23  ;;  %v3935_v6 = vmul.f32 %v3887_v19, %v9686_v35 }
 0x3bb   : > { %v3888_v51 = vmin.f32 %v9681_v58, 6.0  ;;  %v3889_v31 = vmin.f32 %v9682_v47, 6.0  ;;  %v3890_v14 = vmin.f32 %v9683_v0, 6.0  ;;  %v8951_v63 = vmul.f32 0.16666667, %v3930_v43 }
 0x3bc   : > { %v8953_v25 = vmul.f32 0.16666667, %v3931_v38  ;;  %v8955_v18 = vmul.f32 0.16666667, %v3932_v37  ;;  %v4095_v32 = vrot.slane %v8931_v20, 7  ;;  %v4168_v42 = vadd.f32 %v4167_v11, %v4089_v28 }
 0x3bd   : > { %v4091_v27 = vsel %vm4036_vm3, %v4088_v54, %v4090_v17  ;;  %v4094_v2 = vsel %vm4036_vm3, %v4092_v22, %v4093_v53  ;;  %v4097_v45 = vrot.slane %v8933_v61, 7  ;;  %v4098_v55 = vrot.slane %v8935_v29, 7 }
 0x3be   : > { %v9687_v57 = vmax.f32 %v8814_v16, 0.0  ;;  %v4169_v26 = vadd.f32 %v4168_v42, %v4091_v27  ;;  %v3936_v43 = vmul.f32 %v3888_v51, %v9688_v30  ;;  %v3937_v38 = vmul.f32 %v3889_v31, %v9689_v60  ;;  %v9691_v31 = vld [vmem:[#allocation53_spill] sm:$0xff] }
 0x3bf   : > { %v3938_v37 = vmul.f32 %v3890_v14, %v9690_v59  ;;  %v8967_v56 = vmul.f32 0.16666667, %v3933_v62  ;;  %v8969_v36 = vmul.f32 0.16666667, %v3934_v21  ;;  %v8971_v54 = vmul.f32 0.16666667, %v3935_v6 }
 0x3c0   : > { %v3891_v19 = vmin.f32 %v9687_v57, 6.0  ;;  %v4100_v17 = vrot.slane %v8951_v63, 7  ;;  %v4170_v28 = vadd.f32 %v4169_v26, %v4094_v2  ;;  %v4096_v22 = vsel %vm4036_vm3, %v4093_v53, %v4095_v32 }
 0x3c1   : > { %v4099_v16 = vsel %vm4036_vm3, %v4097_v45, %v4098_v55  ;;  %v4102_v58 = vrot.slane %v8953_v25, 7  ;;  %v4103_v51 = vrot.slane %v8955_v18, 7  ;;  %v8979_v14 = vmul.f32 0.16666667, %v3936_v43 }
 0x3c2   : > { %v4171_v47 = vadd.f32 %v4170_v28, %v4096_v22  ;;  %v3939_v0 = vmul.f32 %v3891_v19, %v9691_v31  ;;  %v8981_v11 = vmul.f32 0.16666667, %v3937_v38  ;;  %v8983_v7 = vmul.f32 0.16666667, %v3938_v37 }
 0x3c3   : > { %v4101_v62 = vsel %vm4036_vm3, %v4098_v55, %v4100_v17  ;;  %v4104_v53 = vsel %vm4036_vm3, %v4102_v58, %v4103_v51  ;;  %v4105_v21 = vrot.slane %v8967_v56, 7  ;;  %v4107_v35 = vrot.slane %v8969_v36, 7 }
 0x3c4   : > { %v4172_v23 = vadd.f32 %v4171_v47, %v4099_v16  ;;  %v4108_v6 = vrot.slane %v8971_v54, 7  ;;  %v8990_v42 = vmul.f32 0.16666667, %v3939_v0  ;;  %v4110_v27 = vrot.slane %v8979_v14, 7 }
 0x3c5   : > { %v4106_v45 = vsel %vm4036_vm3, %v4103_v51, %v4105_v21  ;;  %v4112_v55 = vrot.slane %v8981_v11, 7  ;;  %v4113_v19 = vrot.slane %v8983_v7, 7  ;;  %v9692_v21 = vmov 0.0  }
 0x3c6   : > { %v4173_v32 = vadd.f32 %v4172_v23, %v4101_v62  ;;  %v4109_v57 = vsel %vm4036_vm3, %v4107_v35, %v4108_v6  ;;  %v4111_v43 = vsel %vm4036_vm3, %v4108_v6, %v4110_v27  ;;  %v4115_v38 = vrot.slane %v8990_v42, 7  ;;  %v5635_v62 = vld [vmem:[#allocation11] sm:$0xff]   ;;  %v5637_v35 = vld [vmem:[#allocation11 + $0x10] sm:$0xff]   ;;  %v5638_v6 = vld [vmem:[#allocation11 + $0x18] sm:$0xff]  }
 0x3c7   : > { %v4114_v60 = vsel %vm4036_vm3, %v4112_v55, %v4113_v19  ;;  %v5640_v27 = vld [vmem:[#allocation11 + $0x28] sm:$0xff]  }
 0x3c8   : > { %v4174_v2 = vadd.f32 %v4173_v32, %v4104_v53  ;;  %v4116_v17 = vsel %vm4036_vm3, %v4113_v19, %v4115_v38  ;;  %v5636_v53 = vld [vmem:[#allocation11 + $0x8] sm:$0xff]   ;;  %v5639_v32 = vld [vmem:[#allocation11 + $0x20] sm:$0xff]  }
 0x3c9   : > { %v9013_v55 = vld [vmem:[%s9306_s6] sm:$0xff] }
 0x3ca   : > { %v4175_v26 = vadd.f32 %v4174_v2, %v4106_v45  ;;  %v5641_v2 = vld [vmem:[#allocation11 + $0x30] sm:$0xff]   ;;  %v5642_v45 = vld [vmem:[#allocation11 + $0x38] sm:$0xff]   ;;  %v4254_v19 = vrot.slane %v9013_v55, 2 }
 0x3cc   : > { %v4176_v30 = vadd.f32 %v4175_v26, %v4109_v57  ;;  %v5643_v57 = vld [vmem:[#allocation12] sm:$0xff]  }
 0x3ce   : > { %v4177_v59 = vadd.f32 %v4176_v30, %v4111_v43 }
 0x3d0   : > { %v4178_v37 = vadd.f32 %v4177_v59, %v4114_v60 }
 0x3d2   : > { %v4179_v28 = vadd.f32 %v4178_v37, %v4116_v17 }
 0x3d4   : > { %v4180_v22 = vrot.slane %v4179_v28, 4 }
 0x3d6   : > { %v4181_v16 = vadd.f32 %v4180_v22, %v4179_v28  ;;  %v5644_v28 = vld [vmem:[#allocation12 + $0x8] sm:$0xff]   ;;  %v5645_v22 = vld [vmem:[#allocation12 + $0x10] sm:$0xff]  }
 0x3d8   : > { %v4182_v58 = vrot.slane %v4181_v16, 2 }
 0x3da   : > { %v4183_v51 = vadd.f32 %v4182_v58, %v4181_v16  ;;  %v5646_v16 = vld [vmem:[#allocation12 + $0x18] sm:$0xff]   ;;  %v5647_v58 = vld [vmem:[#allocation12 + $0x20] sm:$0xff]  }
 0x3dc   : > { %v4184_v47 = vrot.slane %v4183_v51, 1 }
 0x3de   : > { %v4185_v31 = vadd.f32 %v4184_v47, %v4183_v51  ;;  %v5648_v51 = vld [vmem:[#allocation12 + $0x28] sm:$0xff]   ;;  %v5649_v47 = vld [vmem:[#allocation12 + $0x30] sm:$0xff]  }
 0x3e0   : > { %v4187_v0 = vmul.f32 0.00390625, %v4185_v31  ;;  %v5650_v31 = vld [vmem:[#allocation12 + $0x38] sm:$0xff]  }
 0x3e2   : > { %v4188_v23 = vpack.c.bf16 %v4187_v0, %v4187_v0  ;;  %v4363_v0 = vrot.slane %v9013_v55, 3 }
 0x3e4   : > { %5408 = vmatmul.mubr.bf16.vlgmr.msra.gmra.mrb[0].mxu1 %v4188_v23 }
 0x3e5   : > { %5412 = vmatpush3.bf16.msra.mxu1 %v5635_v62  ;;  %5427 = vmatprep.mubr.msk.bf16.mxu1 %vm5940_vm4, %v9692_v21 }
 0x3e6   : > { %5413 = vmatprep.subr.bf16.mxu1 %v9692_v21 }
 0x3e9   : > { %5414 = vmatpush3.bf16.msra.mxu1 %v5636_v53 }
 0x3ea   : > { %5415 = vmatprep.subr.bf16.mxu1 %v9692_v21 }
 0x3ed   : > { %5416 = vmatpush3.bf16.msra.mxu1 %v5637_v35 }
 0x3ee   : > { %5417 = vmatprep.subr.bf16.mxu1 %v9692_v21 }
 0x3f1   : > { %5418 = vmatpush3.bf16.msra.mxu1 %v5638_v6 }
 0x3f2   : > { %5419 = vmatprep.subr.bf16.mxu1 %v9692_v21 }
 0x3f5   : > { %5420 = vmatpush3.bf16.msra.mxu1 %v5639_v32 }
 0x3f6   : > { %5421 = vmatprep.subr.bf16.mxu1 %v9692_v21 }
 0x3f9   : > { %5422 = vmatpush3.bf16.msra.mxu1 %v5640_v27 }
 0x3fa   : > { %5423 = vmatprep.subr.bf16.mxu1 %v9692_v21 }
 0x3fd   : > { %5424 = vmatpush3.bf16.msra.mxu1 %v5641_v2 }
 0x3fe   : > { %5425 = vmatprep.subr.bf16.mxu1 %v9692_v21 }
 0x401   : > { %5426 = vmatpush3.bf16.msra.mxu1 %v5642_v45 }
 0x402   : > { %5431 = vmatprep.subr.bf16.mxu1 %v5643_v57 }
 0x4b7   : > { %v4290_v26 = vpop.f32.mrb[0].mxu1 }
 0x4b8   : > { %v4291_v30 = vadd.f32 %v4290_v26, %v4254_v19  ;;  %v5409_v43 = vpop.f32.mrb[1].mxu1 }
 0x4b9   : > { %v4293_v60 = vpop.f32.mrb[2].mxu1 }
 0x4ba   : > { %v4296_v38 = vmax.f32 %v4291_v30, 0.0  ;;  %v5410_v59 = vpop.f32.mrb[3].mxu1  ;;  %v9695_v30 = vld [vmem:[#allocation33_spill] sm:$0xff]  ;;  %v9696_v60 = vld [vmem:[#allocation34_spill] sm:$0xff] }
 0x4bb   : > { %v9697_v59 = vld [vmem:[#allocation35_spill] sm:$0xff] }
 0x4bc   : > { %v4297_v37 = vmin.f32 %v4296_v38, 6.0 }
 0x4be   : > { %v4298_v17 = vpack.c.bf16 %v4297_v37, %v4297_v37 }
 0x4c0   : > { %5428 = vmatmul.mubr.bf16.vlgmr.msra.gmra.mrb[4].mxu1 %v4298_v17  ;;  %v9698_v17 = vld [vmem:[#allocation21_spill] sm:$0xff] }
 0x4c1   : > { %5432 = vmatpush3.bf16.msra.mxu1 %v5643_v57  ;;  %v9693_v57 = vld [vmem:[#allocation20_spill] sm:$0xff] }
 0x4c2   : > { %5433 = vmatprep.subr.bf16.mxu1 %v5644_v28  ;;  %v9694_v19 = vsub.s32 0, %v9693_v57 }
 0x4c5   : > { %5434 = vmatpush3.bf16.msra.mxu1 %v5644_v28 }
 0x4c6   : > { %5435 = vmatprep.subr.bf16.mxu1 %v5645_v22 }
 0x4c9   : > { %5436 = vmatpush3.bf16.msra.mxu1 %v5645_v22  ;;  %v9699_v22 = vld [vmem:[#allocation23_spill] sm:$0xff] }
 0x4ca   : > { %5437 = vmatprep.subr.bf16.mxu1 %v5646_v16 }
 0x4cd   : > { %5438 = vmatpush3.bf16.msra.mxu1 %v5646_v16 }
 0x4ce   : > { %5439 = vmatprep.subr.bf16.mxu1 %v5647_v58 }
 0x4d1   : > { %5440 = vmatpush3.bf16.msra.mxu1 %v5647_v58  ;;  %v9700_v58 = vld [vmem:[#allocation43_spill] sm:$0xff] }
 0x4d2   : > { %5441 = vmatprep.subr.bf16.mxu1 %v5648_v51 }
 0x4d5   : > { %5442 = vmatpush3.bf16.msra.mxu1 %v5648_v51 }
 0x4d6   : > { %5443 = vmatprep.subr.bf16.mxu1 %v5649_v47 }
 0x4d9   : > { %5444 = vmatpush3.bf16.msra.mxu1 %v5649_v47  ;;  %v9701_v47 = vld [vmem:[#allocation25_spill] sm:$0xff] }
 0x4da   : > { %5445 = vmatprep.subr.bf16.mxu1 %v5650_v31 }
 0x4dd   : > { %5446 = vmatpush3.bf16.msra.mxu1 %v5650_v31 }
 0x593   : > { %v4399_v62 = vpop.f32.mrb[4].mxu1 }
 0x594   : > { %v4400_v23 = vadd.f32 %v4399_v62, %v4363_v0  ;;  %v5429_v53 = vpop.f32.mrb[5].mxu1  ;;  %v9702_v0 = vld [vmem:[#allocation28_spill] sm:$0xff] }
 0x595   : > { %v4402_v21 = vpop.f32.mrb[6].mxu1 }
 0x596   : > { %v4405_v35 = vadd.f32 3.0, %v4400_v23  ;;  %v5430_v6 = vpop.f32.mrb[7].mxu1 }
 0x598   : > { %v4406_v32 = vmax.f32 %v4405_v35, 0.0 }
 0x59a   : > { %v4407_v27 = vmin.f32 %v4406_v32, 6.0 }
 0x59c   : > { %v4408_v2 = vmul.f32 %v4407_v27, %v4400_v23  ;;  %v9703_v27 = vld [vmem:[#allocation57_spill] sm:$0xff] }
 0x59e   : > { %v4409_v45 = vmul.f32 0.16666667, %v4408_v2 }
 0x5a0   : > { %v9019_v26 = vrot.slane %v4409_v45, %v9694_v19 }
 0x5a2   : > { %v4414_v43 = vmul.f32 %v9019_v26, %v9695_v30  ;;  %v4415_v38 = vmul.f32 %v9019_v26, %v9696_v60  ;;  %v4416_v37 = vmul.f32 %v9019_v26, %v9697_v59  ;;  %v4417_v28 = vmul.f32 %v9019_v26, %v9698_v17  ;;  %v9704_v59 = vld [vmem:[#allocation36_spill] sm:$0xff] }
 0x5a3   : > { %v4418_v16 = vmul.f32 %v9019_v26, %v9699_v22  ;;  %v4419_v51 = vmul.f32 %v9019_v26, %v9700_v58  ;;  %v4420_v31 = vmul.f32 %v9019_v26, %v9701_v47  ;;  %v4421_v62 = vmul.f32 %v9019_v26, %v9702_v0  ;;  %v9705_v58 = vld [vmem:[#allocation44_spill] sm:$0xff]  ;;  %v9706_v47 = vld [vmem:[#allocation37_spill] sm:$0xff] }
 0x5a4   : > { %v4510_v23 = vrot.slane %v4414_v43, 7  ;;  %v4511_v53 = vrot.slane %v4415_v38, 7  ;;  %v4513_v21 = vrot.slane %v4416_v37, 7  ;;  %v4515_v35 = vrot.slane %v4417_v28, 7 }
 0x5a5   : > { %v4516_v6 = vrot.slane %v4418_v16, 7  ;;  %v4518_v32 = vrot.slane %v4419_v51, 7  ;;  %v4422_v2 = vmul.f32 %v9019_v26, %v9703_v27  ;;  %v4520_v45 = vrot.slane %v4420_v31, 7 }
 0x5a6   : > { %v4512_v19 = vsel %vm4036_vm3, %v4510_v23, %v4511_v53  ;;  %v4514_v30 = vsel %vm4036_vm3, %v4511_v53, %v4513_v21  ;;  %v4521_v60 = vrot.slane %v4421_v62, 7  ;;  %v4423_v17 = vmul.f32 %v9019_v26, %v9704_v59  ;;  %v9707_v23 = vld [vmem:[#allocation78_spill] sm:$0xff] }
 0x5a7   : > { %v4622_v22 = vpack.c.bf16 %v4514_v30, %v4512_v19  ;;  %v4517_v43 = vsel %vm4036_vm3, %v4515_v35, %v4516_v6  ;;  %v4519_v38 = vsel %vm4036_vm3, %v4516_v6, %v4518_v32  ;;  %v4523_v37 = vrot.slane %v4422_v2, 7 }
 0x5a8   : > { %v4623_v28 = vpack.c.bf16 %v4519_v38, %v4517_v43  ;;  %v4522_v16 = vsel %vm4036_vm3, %v4520_v45, %v4521_v60  ;;  %v4424_v51 = vmul.f32 %v9019_v26, %v9705_v58  ;;  %v4425_v31 = vmul.f32 %v9019_v26, %v9706_v47 }
 0x5a9   : > { %5447 = vmatprep.mubr.bf16.mxu1 %v4622_v22  ;;  %v4524_v0 = vsel %vm4036_vm3, %v4521_v60, %v4523_v37  ;;  %v4525_v62 = vrot.slane %v4423_v17, 7  ;;  %v4426_v53 = vmul.f32 %v9019_v26, %v9707_v23  ;;  %v4427_v21 = vmul.f32 %v9019_v26, %v8587_v10 }
 0x5aa   : > { %5448 = vmatmul.mubr.bf16.vlgmr.msra.gmra.mrb[8].mxu1 %v4623_v28  ;;  %v4624_v35 = vpack.c.bf16 %v4524_v0, %v4522_v16  ;;  %v4526_v6 = vrot.slane %v4424_v51, 7  ;;  %v4528_v32 = vrot.slane %v4425_v31, 7  ;;  %v4428_v27 = vmul.f32 %v9019_v26, %v8600_v48 }
 0x5ab   : > { %v4530_v2 = vrot.slane %v4426_v53, 7  ;;  %v4531_v45 = vrot.slane %v4427_v21, 7  ;;  %v4429_v30 = vmul.f32 %v9019_v26, %v8629_v49  ;;  %v4430_v60 = vmul.f32 %v9019_v26, %v8639_v44 }
 0x5ac   : > { %5451 = vmatprep.mubr.bf16.mxu1 %v4624_v35  ;;  %v4533_v19 = vrot.slane %v4428_v27, 7  ;;  %v4527_v59 = vsel %vm4036_vm3, %v4525_v62, %v4526_v6  ;;  %v4529_v10 = vsel %vm4036_vm3, %v4526_v6, %v4528_v32  ;;  %v4431_v17 = vmul.f32 %v9019_v26, %v8633_v39 }
 0x5ad   : > { %v4532_v22 = vsel %vm4036_vm3, %v4530_v2, %v4531_v45  ;;  %v4432_v43 = vmul.f32 %v9019_v26, %v8643_v9  ;;  %v4433_v49 = vmul.f32 %v9019_v26, %v8660_v24  ;;  %v4434_v44 = vmul.f32 %v9019_v26, %v8662_v33 }
 0x5ae   : > { %v4534_v48 = vsel %vm4036_vm3, %v4531_v45, %v4533_v19  ;;  %v4625_v38 = vpack.c.bf16 %v4529_v10, %v4527_v59  ;;  %v4535_v37 = vrot.slane %v4429_v30, 7  ;;  %v4536_v28 = vrot.slane %v4430_v60, 7 }
 0x5af   : > { %v4626_v16 = vpack.c.bf16 %v4534_v48, %v4532_v22  ;;  %v4538_v58 = vrot.slane %v4431_v17, 7  ;;  %v4540_v39 = vrot.slane %v4432_v43, 7  ;;  %v4541_v51 = vrot.slane %v4433_v49, 7 }
 0x5b0   : > { %v4543_v47 = vrot.slane %v4434_v44, 7  ;;  %v4537_v31 = vsel %vm4036_vm3, %v4535_v37, %v4536_v28  ;;  %v4435_v9 = vmul.f32 %v9019_v26, %v8668_v40  ;;  %v4436_v24 = vmul.f32 %v9019_v26, %v8841_v5 }
 0x5b1   : > { %v4539_v33 = vsel %vm4036_vm3, %v4536_v28, %v4538_v58  ;;  %v4437_v0 = vmul.f32 %v9019_v26, %v8857_v8  ;;  %v4438_v62 = vmul.f32 %v9019_v26, %v8859_v3  ;;  %v4439_v23 = vmul.f32 %v9019_v26, %v8861_v1 }
 0x5b2   : > { %5452 = vmatmul.mubr.bf16.gmra.mrb[12].mxu1 %v4625_v38  ;;  %v4542_v53 = vsel %vm4036_vm3, %v4540_v39, %v4541_v51  ;;  %v4544_v21 = vsel %vm4036_vm3, %v4541_v51, %v4543_v47  ;;  %v4440_v40 = vmul.f32 %v9019_v26, %v8877_v34  ;;  %v4627_v35 = vpack.c.bf16 %v4539_v33, %v4537_v31 }
 0x5b3   : > { %5455 = vmatprep.mubr.bf16.mxu1 %v4626_v16  ;;  %v4545_v5 = vrot.slane %v4435_v9, 7  ;;  %v4546_v6 = vrot.slane %v4436_v24, 7  ;;  %v4628_v32 = vpack.c.bf16 %v4544_v21, %v4542_v53  ;;  %v4548_v27 = vrot.slane %v4437_v0, 7 }
 0x5b4   : > { %v4550_v2 = vrot.slane %v4438_v62, 7  ;;  %v4551_v8 = vrot.slane %v4439_v23, 7  ;;  %v4553_v45 = vrot.slane %v4440_v40, 7  ;;  %v4441_v3 = vmul.f32 %v9019_v26, %v8879_v52 }
 0x5b5   : > { %v4442_v1 = vmul.f32 %v9019_v26, %v8881_v4  ;;  %v4547_v19 = vsel %vm4036_vm3, %v4545_v5, %v4546_v6  ;;  %v4549_v34 = vsel %vm4036_vm3, %v4546_v6, %v4548_v27  ;;  %v4443_v60 = vmul.f32 %v9019_v26, %v8891_v12 }
 0x5b6   : > { %v4552_v30 = vsel %vm4036_vm3, %v4550_v2, %v4551_v8  ;;  %v4554_v59 = vsel %vm4036_vm3, %v4551_v8, %v4553_v45  ;;  %v4444_v10 = vmul.f32 %v9019_v26, %v8893_v50  ;;  %v4445_v52 = vmul.f32 %v9019_v26, %v8895_v41 }
 0x5b7   : > { %v4446_v4 = vmul.f32 %v9019_v26, %v8911_v15  ;;  %v4629_v17 = vpack.c.bf16 %v4549_v34, %v4547_v19  ;;  %v4555_v22 = vrot.slane %v4441_v3, 7  ;;  %v4556_v48 = vrot.slane %v4442_v1, 7 }
 0x5b8   : > { %v4630_v43 = vpack.c.bf16 %v4554_v59, %v4552_v30  ;;  %v4558_v49 = vrot.slane %v4443_v60, 7  ;;  %v4560_v44 = vrot.slane %v4444_v10, 7  ;;  %v4561_v38 = vrot.slane %v4445_v52, 7 }
 0x5b9   : > { %v4563_v12 = vrot.slane %v4446_v4, 7  ;;  %v4557_v37 = vsel %vm4036_vm3, %v4555_v22, %v4556_v48  ;;  %v4447_v50 = vmul.f32 %v9019_v26, %v8913_v13  ;;  %v4448_v41 = vmul.f32 %v9019_v26, %v8915_v46 }
 0x5ba   : > { %5456 = vmatmul.mubr.bf16.gmra.mrb[16].mxu1 %v4627_v35  ;;  %v4559_v15 = vsel %vm4036_vm3, %v4556_v48, %v4558_v49  ;;  %v4449_v28 = vmul.f32 %v9019_v26, %v8931_v20  ;;  %v4450_v16 = vmul.f32 %v9019_v26, %v8933_v61  ;;  %v4451_v58 = vmul.f32 %v9019_v26, %v8935_v29 }
 0x5bb   : > { %5459 = vmatprep.mubr.bf16.mxu1 %v4628_v32  ;;  %v4562_v39 = vsel %vm4036_vm3, %v4560_v44, %v4561_v38  ;;  %v4564_v51 = vsel %vm4036_vm3, %v4561_v38, %v4563_v12  ;;  %v4452_v13 = vmul.f32 %v9019_v26, %v8951_v63  ;;  %v4631_v47 = vpack.c.bf16 %v4559_v15, %v4557_v37 }
 0x5bc   : > { %v4565_v46 = vrot.slane %v4447_v50, 7  ;;  %v4566_v31 = vrot.slane %v4448_v41, 7  ;;  %v4632_v9 = vpack.c.bf16 %v4564_v51, %v4562_v39  ;;  %v4568_v24 = vrot.slane %v4449_v28, 7 }
 0x5bd   : > { %v4570_v33 = vrot.slane %v4450_v16, 7  ;;  %v4571_v20 = vrot.slane %v4451_v58, 7  ;;  %v4573_v0 = vrot.slane %v4452_v13, 7  ;;  %v4453_v29 = vmul.f32 %v9019_v26, %v8953_v25 }
 0x5be   : > { %v4567_v61 = vsel %vm4036_vm3, %v4565_v46, %v4566_v31  ;;  %v4569_v62 = vsel %vm4036_vm3, %v4566_v31, %v4568_v24  ;;  %v4454_v63 = vmul.f32 %v9019_v26, %v8955_v18  ;;  %v4455_v53 = vmul.f32 %v9019_v26, %v8967_v56 }
 0x5bf   : > { %v4572_v23 = vsel %vm4036_vm3, %v4570_v33, %v4571_v20  ;;  %v4574_v21 = vsel %vm4036_vm3, %v4571_v20, %v4573_v0  ;;  %v4456_v40 = vmul.f32 %v9019_v26, %v8969_v36  ;;  %v4457_v35 = vmul.f32 %v9019_v26, %v8971_v54 }
 0x5c0   : > { %v4458_v25 = vmul.f32 %v9019_v26, %v8979_v14  ;;  %v4633_v5 = vpack.c.bf16 %v4569_v62, %v4567_v61  ;;  %v4634_v6 = vpack.c.bf16 %v4574_v21, %v4572_v23  ;;  %v4575_v32 = vrot.slane %v4453_v29, 7  ;;  %v5029_v23 = vld [vmem:[%s6339_s28 + $0x10] sm:$0xff] }
 0x5c1   : > { %v4576_v27 = vrot.slane %v4454_v63, 7  ;;  %v4578_v2 = vrot.slane %v4455_v53, 7  ;;  %v4580_v18 = vrot.slane %v4456_v40, 7  ;;  %v4581_v8 = vrot.slane %v4457_v35, 7 }
 0x5c2   : > { %5460 = vmatmul.mubr.bf16.gmra.mrb[20].mxu1 %v4629_v17  ;;  %v4583_v56 = vrot.slane %v4458_v25, 7  ;;  %v4459_v45 = vmul.f32 %v9019_v26, %v8981_v11  ;;  %v4460_v14 = vmul.f32 %v9019_v26, %v8983_v7  ;;  %v4461_v3 = vmul.f32 %v9019_v26, %v8990_v42  ;;  %v5027_v25 = vld [vmem:[%s6339_s28] sm:$0xff] }
 0x5c3   : > { %5463 = vmatprep.mubr.bf16.mxu1 %v4630_v43  ;;  %v4577_v36 = vsel %vm4036_vm3, %v4575_v32, %v4576_v27  ;;  %v4579_v54 = vsel %vm4036_vm3, %v4576_v27, %v4578_v2  ;;  %v4582_v1 = vsel %vm4036_vm3, %v4580_v18, %v4581_v8  ;;  %v4656_v7 = vsub.s32 4, %v9693_v57  ;;  %v5030_v2 = vld [vmem:[%s6339_s28 + $0x18] sm:$0xff] }
 0x5c4   : > { %v4584_v19 = vsel %vm4036_vm3, %v4581_v8, %v4583_v56  ;;  %v4635_v34 = vpack.c.bf16 %v4579_v54, %v4577_v36  ;;  %v4585_v60 = vrot.slane %v4459_v45, 7  ;;  %v4586_v59 = vrot.slane %v4460_v14, 7  ;;  %v5028_v36 = vld [vmem:[%s6339_s28 + $0x8] sm:$0xff] }
 0x5c5   : > { %v4636_v30 = vpack.c.bf16 %v4584_v19, %v4582_v1  ;;  %v4588_v10 = vrot.slane %v4461_v3, 7  ;;  %v9151_v42 = vrot.slane %v9013_v55, %v4656_v7 }
 0x5c6   : > { %v4587_v11 = vsel %vm4036_vm3, %v4585_v60, %v4586_v59 }
 0x5c7   : > { %v4589_v52 = vsel %vm4036_vm3, %v4586_v59, %v4588_v10 }
 0x5c8   : > { %v4637_v4 = vpack.c.bf16 %v4589_v52, %v4587_v11 }
 0x5ca   : > { %5464 = vmatmul.mubr.bf16.gmra.mrb[24].mxu1 %v4631_v47 }
 0x5cb   : > { %5467 = vmatprep.mubr.bf16.mxu1 %v4632_v9 }
 0x5d2   : > { %5468 = vmatmul.mubr.bf16.gmra.mrb[28].mxu1 %v4633_v5 }
 0x5d3   : > { %5471 = vmatprep.mubr.bf16.mxu1 %v4634_v6 }
 0x5da   : > { %5472 = vmatmul.mubr.bf16.gmra.mrb[32].mxu1 %v4635_v34 }
 0x5db   : > { %5475 = vmatprep.mubr.bf16.mxu1 %v4636_v30 }
 0x5e2   : > { %5476 = vmatmul.mubr.bf16.gmra.mrb[36].mxu1 %v4637_v4 }
 0x67d   : > { %v5449_v26 = vpop.f32.mrb[8].mxu1 }
 0x67e   : > { %v4749_v17 = vadd.f32 %v5449_v26, %v9151_v42  ;;  %v4740_v22 = vpop.f32.mrb[9].mxu1 }
 0x67f   : > { %v4741_v48 = vadd.f32 %v4740_v22, %v9151_v42  ;;  %v5450_v43 = vpop.f32.mrb[10].mxu1 }
 0x680   : > { %v4869_v49 = vadd.f32 3.0, %v4749_v17  ;;  %v4752_v44 = vadd.f32 %v5450_v43, %v9151_v42  ;;  %v4743_v38 = vpop.f32.mrb[11].mxu1 }
 0x681   : > { %v4867_v12 = vadd.f32 3.0, %v4741_v48  ;;  %v4744_v37 = vadd.f32 %v4743_v38, %v9151_v42 }
 0x682   : > { %v4901_v50 = vmax.f32 %v4869_v49, 0.0  ;;  %v4870_v41 = vadd.f32 3.0, %v4752_v44  ;;  %v5033_v49 = vld [vmem:[%s6339_s28 + $0x30] sm:$0xff] }
 0x683   : > { %v4899_v57 = vmax.f32 %v4867_v12, 0.0  ;;  %v4868_v15 = vadd.f32 3.0, %v4744_v37 }
 0x684   : > { %v4933_v55 = vmin.f32 %v4901_v50, 6.0  ;;  %v4902_v28 = vmax.f32 %v4870_v41, 0.0  ;;  %v5031_v41 = vld [vmem:[%s6339_s28 + $0x20] sm:$0xff] }
 0x685   : > { %v4931_v16 = vmin.f32 %v4899_v57, 6.0  ;;  %v4900_v58 = vmax.f32 %v4868_v15, 0.0  ;;  %v5453_v39 = vpop.f32.mrb[12].mxu1 }
 0x686   : > { %v4965_v51 = vmul.f32 %v4933_v55, %v4749_v17  ;;  %v4934_v13 = vmin.f32 %v4902_v28, 6.0  ;;  %v4765_v47 = vadd.f32 %v5453_v39, %v9151_v42  ;;  %v4756_v46 = vpop.f32.mrb[13].mxu1 }
 0x687   : > { %v4963_v31 = vmul.f32 %v4931_v16, %v4741_v48  ;;  %v4932_v9 = vmin.f32 %v4900_v58, 6.0  ;;  %v4757_v24 = vadd.f32 %v4756_v46, %v9151_v42  ;;  %v5454_v33 = vpop.f32.mrb[14].mxu1  ;;  %v5034_v16 = vld [vmem:[%s6339_s28 + $0x38] sm:$0xff] }
 0x688   : > { %v4997_v20 = vmul.f32 0.16666667, %v4965_v51  ;;  %v4966_v0 = vmul.f32 %v4934_v13, %v4752_v44  ;;  %v4873_v61 = vadd.f32 3.0, %v4765_v47  ;;  %v4768_v29 = vadd.f32 %v5454_v33, %v9151_v42  ;;  %v4759_v62 = vpop.f32.mrb[15].mxu1 }
 0x689   : > { %v4995_v63 = vmul.f32 0.16666667, %v4963_v31  ;;  %v4964_v53 = vmul.f32 %v4932_v9, %v4744_v37  ;;  %v4871_v21 = vadd.f32 3.0, %v4757_v24  ;;  %v4760_v40 = vadd.f32 %v4759_v62, %v9151_v42 }
 0x68a   : > { %v5061_v35 = vadd.f32 %v5029_v23, %v4997_v20  ;;  %v4998_v5 = vmul.f32 0.16666667, %v4966_v0  ;;  %v4905_v6 = vmax.f32 %v4873_v61, 0.0  ;;  %v4874_v32 = vadd.f32 3.0, %v4768_v29 }
 0x68b   : > { %v5059_v27 = vadd.f32 %v5027_v25, %v4995_v63  ;;  %v4996_v18 = vmul.f32 0.16666667, %v4964_v53  ;;  %v4903_v8 = vmax.f32 %v4871_v21, 0.0  ;;  %v4872_v56 = vadd.f32 3.0, %v4760_v40 }
 0x68c   : > { %5093 = vst [vmem:[%s6339_s28 + $0x10] sm:$0xff] %v5061_v35  ;;  %v5062_v45 = vadd.f32 %v5030_v2, %v4998_v5  ;;  %v4937_v54 = vmin.f32 %v4905_v6, 6.0  ;;  %v4906_v14 = vmax.f32 %v4874_v32, 0.0  ;;  %v5037_v32 = vld [vmem:[%s6339_s28 + $0x50] sm:$0xff] }
 0x68d   : > { %5091 = vst [vmem:[%s6339_s28] sm:$0xff] %v5059_v27  ;;  %v5060_v3 = vadd.f32 %v5028_v36, %v4996_v18  ;;  %v4935_v1 = vmin.f32 %v4903_v8, 6.0  ;;  %v4904_v19 = vmax.f32 %v4872_v56, 0.0  ;;  %v5457_v34 = vpop.f32.mrb[16].mxu1 }
 0x68e   : > { %5094 = vst [vmem:[%s6339_s28 + $0x18] sm:$0xff] %v5062_v45  ;;  %v4969_v30 = vmul.f32 %v4937_v54, %v4765_v47  ;;  %v4938_v60 = vmin.f32 %v4906_v14, 6.0  ;;  %v4781_v59 = vadd.f32 %v5457_v34, %v9151_v42  ;;  %v4772_v10 = vpop.f32.mrb[17].mxu1  ;;  %v5032_v47 = vld [vmem:[%s6339_s28 + $0x28] sm:$0xff]  ;;  %v5035_v45 = vld [vmem:[%s6339_s28 + $0x40] sm:$0xff] }
 0x68f   : > { %5092 = vst [vmem:[%s6339_s28 + $0x8] sm:$0xff] %v5060_v3  ;;  %v4967_v11 = vmul.f32 %v4935_v1, %v4757_v24  ;;  %v4936_v52 = vmin.f32 %v4904_v19, 6.0  ;;  %v4773_v4 = vadd.f32 %v4772_v10, %v9151_v42  ;;  %v5458_v7 = vpop.f32.mrb[18].mxu1  ;;  %v5038_v1 = vld [vmem:[%s6339_s28 + $0x58] sm:$0xff] }
 0x690   : > { %v5001_v26 = vmul.f32 0.16666667, %v4969_v30  ;;  %v4970_v17 = vmul.f32 %v4938_v60, %v4768_v29  ;;  %v4877_v22 = vadd.f32 3.0, %v4781_v59  ;;  %v4784_v48 = vadd.f32 %v5458_v7, %v9151_v42  ;;  %v4775_v43 = vpop.f32.mrb[19].mxu1 }
 0x691   : > { %v4999_v44 = vmul.f32 0.16666667, %v4967_v11  ;;  %v4968_v38 = vmul.f32 %v4936_v52, %v4760_v40  ;;  %v4875_v12 = vadd.f32 3.0, %v4773_v4  ;;  %v4776_v37 = vadd.f32 %v4775_v43, %v9151_v42 }
 0x692   : > { %v5065_v50 = vadd.f32 %v5033_v49, %v5001_v26  ;;  %v5002_v57 = vmul.f32 0.16666667, %v4970_v17  ;;  %v4909_v15 = vmax.f32 %v4877_v22, 0.0  ;;  %v4878_v55 = vadd.f32 3.0, %v4784_v48 }
 0x693   : > { %v5063_v28 = vadd.f32 %v5031_v41, %v4999_v44  ;;  %v5000_v58 = vmul.f32 0.16666667, %v4968_v38  ;;  %v4907_v39 = vmax.f32 %v4875_v12, 0.0  ;;  %v4876_v51 = vadd.f32 3.0, %v4776_v37 }
 0x694   : > { %5097 = vst [vmem:[%s6339_s28 + $0x30] sm:$0xff] %v5065_v50  ;;  %v5066_v13 = vadd.f32 %v5034_v16, %v5002_v57  ;;  %v4941_v46 = vmin.f32 %v4909_v15, 6.0  ;;  %v4910_v31 = vmax.f32 %v4878_v55, 0.0  ;;  %v5041_v55 = vld [vmem:[%s6339_s28 + $0x70] sm:$0xff] }
 0x695   : > { %5095 = vst [vmem:[%s6339_s28 + $0x20] sm:$0xff] %v5063_v28  ;;  %v5064_v9 = vadd.f32 %v5032_v47, %v5000_v58  ;;  %v4939_v24 = vmin.f32 %v4907_v39, 6.0  ;;  %v4908_v33 = vmax.f32 %v4876_v51, 0.0  ;;  %v5461_v20 = vpop.f32.mrb[20].mxu1 }
 0x696   : > { %5098 = vst [vmem:[%s6339_s28 + $0x38] sm:$0xff] %v5066_v13  ;;  %v4973_v0 = vmul.f32 %v4941_v46, %v4781_v59  ;;  %v4942_v61 = vmin.f32 %v4910_v31, 6.0  ;;  %v4797_v29 = vadd.f32 %v5461_v20, %v9151_v42  ;;  %v4788_v62 = vpop.f32.mrb[21].mxu1  ;;  %v5036_v59 = vld [vmem:[%s6339_s28 + $0x48] sm:$0xff]  ;;  %v5039_v13 = vld [vmem:[%s6339_s28 + $0x60] sm:$0xff] }
 0x697   : > { %5096 = vst [vmem:[%s6339_s28 + $0x28] sm:$0xff] %v5064_v9  ;;  %v4971_v23 = vmul.f32 %v4939_v24, %v4773_v4  ;;  %v4940_v63 = vmin.f32 %v4908_v33, 6.0  ;;  %v4789_v53 = vadd.f32 %v4788_v62, %v9151_v42  ;;  %v5462_v21 = vpop.f32.mrb[22].mxu1  ;;  %v5042_v24 = vld [vmem:[%s6339_s28 + $0x78] sm:$0xff] }
 0x698   : > { %v5005_v40 = vmul.f32 0.16666667, %v4973_v0  ;;  %v4974_v35 = vmul.f32 %v4942_v61, %v4784_v48  ;;  %v4881_v25 = vadd.f32 3.0, %v4797_v29  ;;  %v4800_v5 = vadd.f32 %v5462_v21, %v9151_v42  ;;  %v4791_v6 = vpop.f32.mrb[23].mxu1 }
 0x699   : > { %v5003_v27 = vmul.f32 0.16666667, %v4971_v23  ;;  %v4972_v2 = vmul.f32 %v4940_v63, %v4776_v37  ;;  %v4879_v18 = vadd.f32 3.0, %v4789_v53  ;;  %v4792_v8 = vadd.f32 %v4791_v6, %v9151_v42 }
 0x69a   : > { %v5069_v56 = vadd.f32 %v5037_v32, %v5005_v40  ;;  %v5006_v36 = vmul.f32 0.16666667, %v4974_v35  ;;  %v4913_v54 = vmax.f32 %v4881_v25, 0.0  ;;  %v4882_v14 = vadd.f32 3.0, %v4800_v5 }
 0x69b   : > { %v5067_v3 = vadd.f32 %v5035_v45, %v5003_v27  ;;  %v5004_v19 = vmul.f32 0.16666667, %v4972_v2  ;;  %v4911_v34 = vmax.f32 %v4879_v18, 0.0  ;;  %v4880_v30 = vadd.f32 3.0, %v4792_v8 }
 0x69c   : > { %5101 = vst [vmem:[%s6339_s28 + $0x50] sm:$0xff] %v5069_v56  ;;  %v5070_v60 = vadd.f32 %v5038_v1, %v5006_v36  ;;  %v4945_v10 = vmin.f32 %v4913_v54, 6.0  ;;  %v4914_v11 = vmax.f32 %v4882_v14, 0.0  ;;  %v5045_v14 = vld [vmem:[%s6339_s28 + $0x90] sm:$0xff] }
 0x69d   : > { %5099 = vst [vmem:[%s6339_s28 + $0x40] sm:$0xff] %v5067_v3  ;;  %v5068_v52 = vadd.f32 %v5036_v59, %v5004_v19  ;;  %v4943_v4 = vmin.f32 %v4911_v34, 6.0  ;;  %v4912_v7 = vmax.f32 %v4880_v30, 0.0  ;;  %v5465_v26 = vpop.f32.mrb[24].mxu1 }
 0x69e   : > { %5102 = vst [vmem:[%s6339_s28 + $0x58] sm:$0xff] %v5070_v60  ;;  %v4977_v17 = vmul.f32 %v4945_v10, %v4797_v29  ;;  %v4946_v22 = vmin.f32 %v4914_v11, 6.0  ;;  %v4813_v48 = vadd.f32 %v5465_v26, %v9151_v42  ;;  %v4804_v43 = vpop.f32.mrb[25].mxu1  ;;  %v5040_v29 = vld [vmem:[%s6339_s28 + $0x68] sm:$0xff]  ;;  %v5043_v60 = vld [vmem:[%s6339_s28 + $0x80] sm:$0xff] }
 0x69f   : > { %5100 = vst [vmem:[%s6339_s28 + $0x48] sm:$0xff] %v5068_v52  ;;  %v4975_v49 = vmul.f32 %v4943_v4, %v4789_v53  ;;  %v4944_v44 = vmin.f32 %v4912_v7, 6.0  ;;  %v4805_v38 = vadd.f32 %v4804_v43, %v9151_v42  ;;  %v5466_v12 = vpop.f32.mrb[26].mxu1  ;;  %v5046_v4 = vld [vmem:[%s6339_s28 + $0x98] sm:$0xff] }
 0x6a0   : > { %v5009_v37 = vmul.f32 0.16666667, %v4977_v17  ;;  %v4978_v50 = vmul.f32 %v4946_v22, %v4800_v5  ;;  %v4885_v41 = vadd.f32 3.0, %v4813_v48  ;;  %v4816_v57 = vadd.f32 %v5466_v12, %v9151_v42  ;;  %v4807_v15 = vpop.f32.mrb[27].mxu1 }
 0x6a1   : > { %v5007_v28 = vmul.f32 0.16666667, %v4975_v49  ;;  %v4976_v16 = vmul.f32 %v4944_v44, %v4792_v8  ;;  %v4883_v58 = vadd.f32 3.0, %v4805_v38  ;;  %v4808_v39 = vadd.f32 %v4807_v15, %v9151_v42 }
 0x6a2   : > { %v5073_v51 = vadd.f32 %v5041_v55, %v5009_v37  ;;  %v5010_v47 = vmul.f32 0.16666667, %v4978_v50  ;;  %v4917_v46 = vmax.f32 %v4885_v41, 0.0  ;;  %v4886_v31 = vadd.f32 3.0, %v4816_v57 }
 0x6a3   : > { %v5071_v9 = vadd.f32 %v5039_v13, %v5007_v28  ;;  %v5008_v33 = vmul.f32 0.16666667, %v4976_v16  ;;  %v4915_v20 = vmax.f32 %v4883_v58, 0.0  ;;  %v4884_v0 = vadd.f32 3.0, %v4808_v39 }
 0x6a4   : > { %5105 = vst [vmem:[%s6339_s28 + $0x70] sm:$0xff] %v5073_v51  ;;  %v5074_v61 = vadd.f32 %v5042_v24, %v5010_v47  ;;  %v4949_v62 = vmin.f32 %v4917_v46, 6.0  ;;  %v4918_v23 = vmax.f32 %v4886_v31, 0.0  ;;  %v5049_v31 = vld [vmem:[%s6339_s28 + $0xb0] sm:$0xff] }
 0x6a5   : > { %5103 = vst [vmem:[%s6339_s28 + $0x60] sm:$0xff] %v5071_v9  ;;  %v5072_v63 = vadd.f32 %v5040_v29, %v5008_v33  ;;  %v4947_v53 = vmin.f32 %v4915_v20, 6.0  ;;  %v4916_v21 = vmax.f32 %v4884_v0, 0.0  ;;  %v5469_v40 = vpop.f32.mrb[28].mxu1 }
 0x6a6   : > { %5106 = vst [vmem:[%s6339_s28 + $0x78] sm:$0xff] %v5074_v61  ;;  %v4981_v35 = vmul.f32 %v4949_v62, %v4813_v48  ;;  %v4950_v25 = vmin.f32 %v4918_v23, 6.0  ;;  %v4829_v5 = vadd.f32 %v5469_v40, %v9151_v42  ;;  %v4820_v6 = vpop.f32.mrb[29].mxu1  ;;  %v5044_v48 = vld [vmem:[%s6339_s28 + $0x88] sm:$0xff]  ;;  %v5047_v61 = vld [vmem:[%s6339_s28 + $0xa0] sm:$0xff] }
 0x6a7   : > { %5104 = vst [vmem:[%s6339_s28 + $0x68] sm:$0xff] %v5072_v63  ;;  %v4979_v32 = vmul.f32 %v4947_v53, %v4805_v38  ;;  %v4948_v27 = vmin.f32 %v4916_v21, 6.0  ;;  %v4821_v2 = vadd.f32 %v4820_v6, %v9151_v42  ;;  %v5470_v18 = vpop.f32.mrb[30].mxu1  ;;  %v5050_v53 = vld [vmem:[%s6339_s28 + $0xb8] sm:$0xff] }
 0x6a8   : > { %v5013_v8 = vmul.f32 0.16666667, %v4981_v35  ;;  %v4982_v56 = vmul.f32 %v4950_v25, %v4816_v57  ;;  %v4889_v45 = vadd.f32 3.0, %v4829_v5  ;;  %v4832_v36 = vadd.f32 %v5470_v18, %v9151_v42  ;;  %v4823_v54 = vpop.f32.mrb[31].mxu1 }
 0x6a9   : > { %v5011_v3 = vmul.f32 0.16666667, %v4979_v32  ;;  %v4980_v1 = vmul.f32 %v4948_v27, %v4808_v39  ;;  %v4887_v19 = vadd.f32 3.0, %v4821_v2  ;;  %v4824_v34 = vadd.f32 %v4823_v54, %v9151_v42 }
 0x6aa   : > { %v5077_v30 = vadd.f32 %v5045_v14, %v5013_v8  ;;  %v5014_v59 = vmul.f32 0.16666667, %v4982_v56  ;;  %v4921_v10 = vmax.f32 %v4889_v45, 0.0  ;;  %v4890_v11 = vadd.f32 3.0, %v4832_v36 }
 0x6ab   : > { %v5075_v52 = vadd.f32 %v5043_v60, %v5011_v3  ;;  %v5012_v7 = vmul.f32 0.16666667, %v4980_v1  ;;  %v4919_v26 = vmax.f32 %v4887_v19, 0.0  ;;  %v4888_v17 = vadd.f32 3.0, %v4824_v34 }
 0x6ac   : > { %5109 = vst [vmem:[%s6339_s28 + $0x90] sm:$0xff] %v5077_v30  ;;  %v5078_v22 = vadd.f32 %v5046_v4, %v5014_v59  ;;  %v4953_v43 = vmin.f32 %v4921_v10, 6.0  ;;  %v4922_v49 = vmax.f32 %v4890_v11, 0.0  ;;  %v5053_v11 = vld [vmem:[%s6339_s28 + $0xd0] sm:$0xff] }
 0x6ad   : > { %5107 = vst [vmem:[%s6339_s28 + $0x80] sm:$0xff] %v5075_v52  ;;  %v5076_v44 = vadd.f32 %v5044_v48, %v5012_v7  ;;  %v4951_v38 = vmin.f32 %v4919_v26, 6.0  ;;  %v4920_v12 = vmax.f32 %v4888_v17, 0.0  ;;  %v5473_v37 = vpop.f32.mrb[32].mxu1 }
 0x6ae   : > { %5110 = vst [vmem:[%s6339_s28 + $0x98] sm:$0xff] %v5078_v22  ;;  %v4985_v50 = vmul.f32 %v4953_v43, %v4829_v5  ;;  %v4954_v41 = vmin.f32 %v4922_v49, 6.0  ;;  %v4845_v57 = vadd.f32 %v5473_v37, %v9151_v42  ;;  %v4836_v15 = vpop.f32.mrb[33].mxu1  ;;  %v5048_v5 = vld [vmem:[%s6339_s28 + $0xa8] sm:$0xff]  ;;  %v5051_v22 = vld [vmem:[%s6339_s28 + $0xc0] sm:$0xff] }
 0x6af   : > { %5108 = vst [vmem:[%s6339_s28 + $0x88] sm:$0xff] %v5076_v44  ;;  %v4983_v55 = vmul.f32 %v4951_v38, %v4821_v2  ;;  %v4952_v28 = vmin.f32 %v4920_v12, 6.0  ;;  %v4837_v16 = vadd.f32 %v4836_v15, %v9151_v42  ;;  %v5474_v58 = vpop.f32.mrb[34].mxu1  ;;  %v5054_v38 = vld [vmem:[%s6339_s28 + $0xd8] sm:$0xff] }
 0x6b0   : > { %v5017_v39 = vmul.f32 0.16666667, %v4985_v50  ;;  %v4986_v51 = vmul.f32 %v4954_v41, %v4832_v36  ;;  %v4893_v13 = vadd.f32 3.0, %v4845_v57  ;;  %v4848_v47 = vadd.f32 %v5474_v58, %v9151_v42  ;;  %v4839_v46 = vpop.f32.mrb[35].mxu1 }
 0x6b1   : > { %v5015_v9 = vmul.f32 0.16666667, %v4983_v55  ;;  %v4984_v24 = vmul.f32 %v4952_v28, %v4824_v34  ;;  %v4891_v33 = vadd.f32 3.0, %v4837_v16  ;;  %v4840_v20 = vadd.f32 %v4839_v46, %v9151_v42 }
 0x6b2   : > { %v5081_v0 = vadd.f32 %v5049_v31, %v5017_v39  ;;  %v5018_v29 = vmul.f32 0.16666667, %v4986_v51  ;;  %v4925_v62 = vmax.f32 %v4893_v13, 0.0  ;;  %v4894_v23 = vadd.f32 3.0, %v4848_v47  ;;  %v5057_v31 = vld [vmem:[%s6339_s28 + $0xf0] sm:$0xff] }
 0x6b3   : > { %v5079_v63 = vadd.f32 %v5047_v61, %v5015_v9  ;;  %v5016_v21 = vmul.f32 0.16666667, %v4984_v24  ;;  %v4923_v40 = vmax.f32 %v4891_v33, 0.0  ;;  %v4892_v35 = vadd.f32 3.0, %v4840_v20 }
 0x6b4   : > { %5113 = vst [vmem:[%s6339_s28 + $0xb0] sm:$0xff] %v5081_v0  ;;  %v5082_v25 = vadd.f32 %v5050_v53, %v5018_v29  ;;  %v4957_v6 = vmin.f32 %v4925_v62, 6.0  ;;  %v4926_v32 = vmax.f32 %v4894_v23, 0.0  ;;  %v5058_v29 = vld [vmem:[%s6339_s28 + $0xf8] sm:$0xff] }
 0x6b5   : > { %5111 = vst [vmem:[%s6339_s28 + $0xa0] sm:$0xff] %v5079_v63  ;;  %v5080_v27 = vadd.f32 %v5048_v5, %v5016_v21  ;;  %v4955_v2 = vmin.f32 %v4923_v40, 6.0  ;;  %v4924_v18 = vmax.f32 %v4892_v35, 0.0  ;;  %v5477_v8 = vpop.f32.mrb[36].mxu1  ;;  %v5056_v63 = vld [vmem:[%s6339_s28 + $0xe8] sm:$0xff] }
 0x6b6   : > { %5114 = vst [vmem:[%s6339_s28 + $0xb8] sm:$0xff] %v5082_v25  ;;  %v4989_v56 = vmul.f32 %v4957_v6, %v4845_v57  ;;  %v4958_v45 = vmin.f32 %v4926_v32, 6.0  ;;  %v4861_v36 = vadd.f32 %v5477_v8, %v9151_v42  ;;  %v4852_v54 = vpop.f32.mrb[37].mxu1  ;;  %v5052_v57 = vld [vmem:[%s6339_s28 + $0xc8] sm:$0xff] }
 0x6b7   : > { %5112 = vst [vmem:[%s6339_s28 + $0xa8] sm:$0xff] %v5080_v27  ;;  %v4987_v14 = vmul.f32 %v4955_v2, %v4837_v16  ;;  %v4956_v3 = vmin.f32 %v4924_v18, 6.0  ;;  %v4853_v1 = vadd.f32 %v4852_v54, %v9151_v42  ;;  %v5478_v19 = vpop.f32.mrb[38].mxu1 }
 0x6b8   : > { %v5021_v34 = vmul.f32 0.16666667, %v4989_v56  ;;  %v4990_v30 = vmul.f32 %v4958_v45, %v4848_v47  ;;  %v4897_v60 = vadd.f32 3.0, %v4861_v36  ;;  %v4864_v59 = vadd.f32 %v5478_v19, %v9151_v42  ;;  %v4855_v10 = vpop.f32.mrb[39].mxu1 }
 0x6b9   : > { %v5019_v52 = vmul.f32 0.16666667, %v4987_v14  ;;  %v4988_v4 = vmul.f32 %v4956_v3, %v4840_v20  ;;  %v4895_v7 = vadd.f32 3.0, %v4853_v1  ;;  %v4856_v26 = vadd.f32 %v4855_v10, %v9151_v42  ;;  %v5055_v20 = vld [vmem:[%s6339_s28 + $0xe0] sm:$0xff] }
 0x6ba   : > { %v5085_v17 = vadd.f32 %v5053_v11, %v5021_v34  ;;  %v5022_v48 = vmul.f32 0.16666667, %v4990_v30  ;;  %v4929_v43 = vmax.f32 %v4897_v60, 0.0  ;;  %v4898_v49 = vadd.f32 3.0, %v4864_v59 }
 0x6bb   : > { %v5083_v44 = vadd.f32 %v5051_v22, %v5019_v52  ;;  %v5020_v12 = vmul.f32 0.16666667, %v4988_v4  ;;  %v4927_v37 = vmax.f32 %v4895_v7, 0.0  ;;  %v4896_v50 = vadd.f32 3.0, %v4856_v26 }
 0x6bc   : > { %5117 = vst [vmem:[%s6339_s28 + $0xd0] sm:$0xff] %v5085_v17  ;;  %v5086_v41 = vadd.f32 %v5054_v38, %v5022_v48  ;;  %v4961_v15 = vmin.f32 %v4929_v43, 6.0  ;;  %v4930_v55 = vmax.f32 %v4898_v49, 0.0 }
 0x6bd   : > { %5115 = vst [vmem:[%s6339_s28 + $0xc0] sm:$0xff] %v5083_v44  ;;  %v5084_v42 = vadd.f32 %v5052_v57, %v5020_v12  ;;  %v4959_v28 = vmin.f32 %v4927_v37, 6.0  ;;  %v4928_v16 = vmax.f32 %v4896_v50, 0.0 }
 0x6be   : > { %5118 = vst [vmem:[%s6339_s28 + $0xd8] sm:$0xff] %v5086_v41  ;;  %v4993_v58 = vmul.f32 %v4961_v15, %v4861_v36  ;;  %v4962_v39 = vmin.f32 %v4930_v55, 6.0 }
 0x6bf   : > { %5116 = vst [vmem:[%s6339_s28 + $0xc8] sm:$0xff] %v5084_v42  ;;  %v4991_v51 = vmul.f32 %v4959_v28, %v4853_v1  ;;  %v4960_v13 = vmin.f32 %v4928_v16, 6.0 }
 0x6c0   : > { %v5025_v47 = vmul.f32 0.16666667, %v4993_v58  ;;  %v4994_v46 = vmul.f32 %v4962_v39, %v4864_v59 }
 0x6c1   : > { %v5023_v9 = vmul.f32 0.16666667, %v4991_v51  ;;  %v4992_v24 = vmul.f32 %v4960_v13, %v4856_v26 }
 0x6c2   : > { %v5089_v33 = vadd.f32 %v5057_v31, %v5025_v47  ;;  %v5026_v0 = vmul.f32 0.16666667, %v4994_v46 }
 0x6c3   : > { %v5087_v61 = vadd.f32 %v5055_v20, %v5023_v9  ;;  %v5024_v62 = vmul.f32 0.16666667, %v4992_v24 }
 0x6c4   : > { %5121 = vst [vmem:[%s6339_s28 + $0xf0] sm:$0xff] %v5089_v33  ;;  %v5090_v23 = vadd.f32 %v5058_v29, %v5026_v0 }
 0x6c5   : > { %5119 = vst [vmem:[%s6339_s28 + $0xe0] sm:$0xff] %v5087_v61  ;;  %v5088_v53 = vadd.f32 %v5056_v63, %v5024_v62 }
 0x6c6   : > { %5122 = vst [vmem:[%s6339_s28 + $0xf8] sm:$0xff] %v5090_v23 }
 0x6c7   : > { %5120 = vst [vmem:[%s6339_s28 + $0xe8] sm:$0xff] %v5088_v53 }
 0x6c8   : > { %5859 = shalt.err (!%p5856_p8)
}
 0x6c9   : > { %s5860_s22 = scalar_lea.hbm %s9251_s20, 4096  ;;  %s5864_s21 = scalar_lea.hbm %s9307_s7, 8192 }
 0x6ca   : > { %p5861_p6 = scmp.ne.s32.totalorder %s9251_s20, %s5860_s22  ;;  %p5865_p3 = scmp.lt.u32.totalorder %s9251_s20, %s9307_s7 }
 0x6cb   : > { %p5866_p0 = scmp.lt.u32.totalorder %s5864_s21, %s5860_s22  ;;  %p5868_p2 = scmp.lt.u32.totalorder %s5860_s22, %s9251_s20 }
 0x6cc   : > { %p5862_p9 = pnand %p5861_p6, %p9708_p7 }
 0x6cd   : > { %p5867_p5 = por %p5866_p0, %p5865_p3 }
 0x6ce   : > { %p5863_p4 = pneg %p5862_p9 }
 0x6cf   : > { %p5869_p10 = por %p5868_p2, %p5867_p5 }
 0x6d1   : > { %p5870_p1 = pnand %p5869_p10, %p5863_p4 }
 0x6d3   : > { %5873 = shalt.err (!%p5870_p1)
}
 0x6d4   : > { %s5942_s14 = smov 128   ;;  %s5943_s16 = smov 8  }
 0x6d5   : > { %5501 = dma.vmem_to_hbm [thread:$0]  (%p9708_p7), %s9253_s13, 4096, %s9251_s20, %s5124_s30, %s5942_s14, %s5942_s14, %s5943_s16  }
 0x6d6 PF: > { %s5152_s18 = sand.u32 1, %s5912_s24   ;;  %p9709_p11 = scmp.ne.s32.totalorder %s9404_s12, 0 }
 0x6d7   : > { %p9710_p12 = scmp.ge.s32.totalorder %s5924_s27, 2  ;;  %s5153_s15 = scalar_lea.sflag [#allocation5], %s5152_s18 }
 0x6d9   : > { %p5524_p13 = pnand %p9710_p12, %p9709_p11 }
 0x6db   : > { %5907 = dma.done.wait (!%p5524_p13), %s5153_s15, 4096  }
 0x6dc   : > { %5909 = vsyncadd (!%p5524_p13), %s5153_s15, 4294963200  ;;  %p23_p8 = scmp.ge.s32.totalorder %s6147_s19, 4   ;;  %s9711_s24 = smov %s5916_s25 }
 0x6dd   : > { %s9712_s25 = smov %s5920_s26  ;;  %s9713_s26 = smov %s6159_s23 }
 0x6de   : > { %s9714_s27 = smov %s6147_s19  ;;  %25 = sbr.rel (!%p23_p8) target bundleno = 10 (0xa), region = 124 }
 0x6e5   :  { %5158 = vsyncpa [#allocation4], 1 }
 0x6e6   :  { %5160 = vsyncpa [#allocation4 + $0x1], 1 }
 0x6e7   :  { %5161 = vsyncpa [#allocation7], 1 }
 0x6e8   :  { %5162 = vsyncpa [#allocation10], 1 }
 0x6e9   :  { %5163 = vsyncpa [#allocation13], 1 }
 0x6ea   :  { %5164 = vsyncpa [#allocation5], 1 }
 0x6eb   :  { %5166 = vsyncpa [#allocation5 + $0x1], 1 }

// kernel: tpu_custom_call.1
= control target key start
LH: loop header
LB: loop body
LE: loop exit
PB: predicated region body
PF: predicated region fallthrough
CT: control target
= control target key end

     0   :  { %s9300_s0 = inlined_call_operand.hbm [shape: bf16[2,16,16,128], index: 0, kind: input, shape index: {}]   ;;  %s9301_s1 = inlined_call_operand.hbm [shape: bf16[128,256], index: 1, kind: input, shape index: {}]   ;;  %s9302_s2 = inlined_call_operand.hbm [shape: f32[9,1,128], index: 2, kind: input, shape index: {}]   ;;  %s9303_s3 = inlined_call_operand.hbm [shape: bf16[128,128], index: 3, kind: input, shape index: {}]   ;;  %s9304_s4 = inlined_call_operand.hbm [shape: bf16[128,128], index: 4, kind: input, shape index: {}]   ;;  %s9305_s5 = inlined_call_operand.hbm [shape: bf16[128,128], index: 5, kind: input, shape index: {}]   ;;  %s9306_s6 = inlined_call_operand.vmem [shape: f32[8,128], index: 6, kind: input, shape index: {}]   ;;  %s9307_s7 = inlined_call_operand.hbm [shape: f32[2,16,16,128], index: 7, kind: output, shape index: {}]  }
   0x1   :  { %9394 = sst [smem:[#allocation82_spill]] %s9301_s1 }
   0x2   :  { %12 = vsyncpa [#allocation4], 0 }
   0x3   :  { %14 = vsyncpa [#allocation4 + $0x1], 0 }
   0x4   :  { %15 = vsyncpa [#allocation7], 0 }
   0x5   :  { %16 = vsyncpa [#allocation10], 0 }
   0x6   :  { %17 = vsyncpa [#allocation13], 0 }
   0x7   :  { %18 = vsyncpa [#allocation5], 0 }
   0x8   :  { %20 = vsyncpa [#allocation5 + $0x1], 0  ;;  %s5984_s24 = smov 0   ;;  %s5986_s25 = smov 0  }
   0x9   :  { %s5988_s26 = smov 0   ;;  %s5990_s27 = smov 0  }
   0xa LB: > { %s5926_s28 = smov [#allocation6]   ;;  %s6005_s30 = sadd.s32 4294967295, %s5924_s27   ;;  %s5924_s27 = sphi %s5990_s27, %s9714_s27   ;;  %s5920_s26 = sphi %s5988_s26, %s9713_s26   ;;  %s5916_s25 = sphi %s5986_s25, %s9712_s25   ;;  %s5912_s24 = sphi %s5984_s24, %s9711_s24  }
   0xb   : > { %s221_s29 = sshll.u32 %s5926_s28, 4  ;;  %p5259_p0 = scmp.ge.s32.totalorder %s5924_s27, 1  ;;  %s6010_s29 = int_to_ptr.vmem [resolvable:$true] %s221_s29 }
   0xc   : > { %p9308_p1 = scmp.eq.s32.totalorder %s6005_s30, 0  ;;  %p209_p2 = scmp.lt.s32.totalorder %s5924_s27, 3 }
   0xd   : > { %s5927_s9 = smov [#allocation9]   ;;  %s5928_s12 = smov [#allocation8]  }
   0xe   : > { %p6012_p3 = pnand %p5259_p0, %p209_p2  ;;  %s247_s10 = sshll.u32 %s5927_s9, 4  ;;  %s6025_s10 = int_to_ptr.vmem [resolvable:$true] %s247_s10 }
   0xf   : > { %s6027_s13 = sshll.u32 %s5928_s12, 4  ;;  %s9397_s1 = sld [smem:[#allocation82_spill]]  ;;  %s235_s13 = int_to_ptr.vmem [resolvable:$true] %s6027_s13 }
  0x10   : > { %s9395_s8 = scalar_select %p6012_p3, 1, 0 }
  0x11   : > { %p5503_p5 = pneg %p6012_p3 }
  0x13   : > { %p6021_p6 = pnand %p5503_p5, %p9308_p1 }
  0x15   : > { %s5676_s16 = scalar_lea.hbm %s9397_s1, 2048  ;;  %p6037_p8 = pneg %p6021_p6 }
  0x16   : > { %p5677_p7 = scmp.ne.s32.totalorder %s9397_s1, %s5676_s16  ;;  %p5683_p11 = scmp.lt.u32.totalorder %s5676_s16, %s9397_s1 }
  0x18   : > { %p5679_p9 = pnand %p6037_p8, %p5677_p7 }
  0x1a   : > { %p5680_p10 = pneg %p5679_p9 }
  0x1c   : > { %p5685_p12 = pnand %p5683_p11, %p5680_p10 }
  0x1e   : > { %5688 = shalt.err (!%p5685_p12)
}
  0x1f   : > { %s5689_s22 = scalar_lea.vmem %s6010_s29, 2048  ;;  %p5697_p5 = scmp.lt.s32.totalorder %s6010_s29, %s6010_s29 }
  0x20   : > { %p5690_p13 = scmp.ne.s32.totalorder %s6010_s29, %s5689_s22  ;;  %p5698_p4 = scmp.lt.s32.totalorder %s5689_s22, %s5689_s22 }
  0x22   : > { %p5692_p0 = pnand %p5690_p13, %p6037_p8  ;;  %p5699_p7 = por %p5698_p4, %p5697_p5 }
  0x24   : > { %p5693_p2 = pneg %p5692_p0 }
  0x26   : > { %p5700_p9 = pnand %p5699_p7, %p5693_p2 }
  0x28   : > { %5703 = shalt.err (!%p5700_p9)
}
  0x29   : > { %s5929_s23 = smov 128   ;;  %s5930_s28 = smov 8  }
  0x2a   : > { %5506 = dma.hbm_to_vmem [thread:$0]  (!%p6021_p6), %s9397_s1, 2048, %s6010_s29, [#allocation7], %s5929_s23, %s5929_s23, %s5930_s28  }
  0x2b   : > { %s5704_s16 = scalar_lea.hbm %s9303_s3, 1024 }
  0x2c   : > { %p5705_p4 = scmp.ne.s32.totalorder %s9303_s3, %s5704_s16  ;;  %p5711_p12 = scmp.lt.u32.totalorder %s5704_s16, %s9303_s3 }
  0x2e   : > { %p5707_p10 = pnand %p5705_p4, %p6037_p8 }
  0x30   : > { %p5708_p11 = pneg %p5707_p10 }
  0x32   : > { %p5713_p13 = pnand %p5711_p12, %p5708_p11 }
  0x34   : > { %5716 = shalt.err (!%p5713_p13)
}
  0x35   : > { %s5717_s29 = scalar_lea.vmem %s6025_s10, 1024  ;;  %p5725_p7 = scmp.lt.s32.totalorder %s6025_s10, %s6025_s10 }
  0x36   : > { %p5718_p0 = scmp.ne.s32.totalorder %s6025_s10, %s5717_s29  ;;  %p5726_p9 = scmp.lt.s32.totalorder %s5717_s29, %s5717_s29 }
  0x38   : > { %p5720_p2 = pnand %p5718_p0, %p6037_p8  ;;  %p5727_p4 = por %p5726_p9, %p5725_p7 }
  0x3a   : > { %p5721_p5 = pneg %p5720_p2 }
  0x3c   : > { %p5728_p10 = pnand %p5727_p4, %p5721_p5 }
  0x3e   : > { %5731 = shalt.err (!%p5728_p10)
}
  0x3f   : > { %s9310_s22 = smov 64   ;;  %s9312_s23 = smov 4  }
  0x40   : > { %5512 = dma.hbm_to_vmem [thread:$0]  (!%p6021_p6), %s9303_s3, 1024, %s6025_s10, [#allocation10], %s9310_s22, %s9310_s22, %s9312_s23  }
  0x41   : > { %s5732_s15 = scalar_lea.hbm %s9302_s2, 144 }
  0x42   : > { %p5733_p11 = scmp.ne.s32.totalorder %s9302_s2, %s5732_s15  ;;  %p5739_p0 = scmp.lt.u32.totalorder %s5732_s15, %s9302_s2 }
  0x44   : > { %p5735_p12 = pnand %p5733_p11, %p6037_p8 }
  0x46   : > { %p5736_p13 = pneg %p5735_p12 }
  0x48   : > { %p5741_p2 = pnand %p5739_p0, %p5736_p13 }
  0x4a   : > { %5744 = shalt.err (!%p5741_p2)
}
  0x4b   : > { %s5745_s21 = scalar_lea.vmem %s235_s13, 144  ;;  %s5752_s10 = scalar_lea.vmem %s235_s13, 160 }
  0x4c   : > { %p5746_p5 = scmp.ne.s32.totalorder %s235_s13, %s5745_s21  ;;  %p5753_p4 = scmp.lt.s32.totalorder %s235_s13, %s235_s13 }
  0x4d   : > { %p5754_p10 = scmp.lt.s32.totalorder %s5752_s10, %s5745_s21 }
  0x4e   : > { %p5748_p7 = pnand %p5746_p5, %p6037_p8 }
  0x4f   : > { %p5755_p1 = por %p5754_p10, %p5753_p4 }
  0x50   : > { %p5749_p9 = pneg %p5748_p7 }
  0x52   : > { %p5756_p3 = pnand %p5755_p1, %p5749_p9 }
  0x54   : > { %5759 = shalt.err (!%p5756_p3)
}
  0x55   : > { %s5933_s29 = smov 16   ;;  %s5934_s28 = smov 1  }
  0x56   : > { %5509 = dma.hbm_to_vmem [thread:$0]  (!%p6021_p6), %s9302_s2, 144, %s235_s13, [#allocation7], %s5933_s29, %s5933_s29, %s5934_s28  }
  0x57   : > { %s5935_s14 = smov [#allocation11]   ;;  %s5936_s16 = smov [#allocation12]  }
  0x58   : > { %s260_s15 = sshll.u32 %s5935_s14, 4  ;;  %s273_s17 = sshll.u32 %s5936_s16, 4  ;;  %s261_s15 = int_to_ptr.vmem [resolvable:$true] %s260_s15  ;;  %s274_s17 = int_to_ptr.vmem [resolvable:$true] %s273_s17 }
  0x59   : > { %s5760_s21 = scalar_lea.hbm %s9304_s4, 1024 }
  0x5a   : > { %p5761_p1 = scmp.ne.s32.totalorder %s9304_s4, %s5760_s21  ;;  %p5767_p12 = scmp.lt.u32.totalorder %s5760_s21, %s9304_s4 }
  0x5c   : > { %p5763_p3 = pnand %p5761_p1, %p6037_p8 }
  0x5e   : > { %p5764_p11 = pneg %p5763_p3 }
  0x60   : > { %p5769_p13 = pnand %p5767_p12, %p5764_p11 }
  0x62   : > { %5772 = shalt.err (!%p5769_p13)
}
  0x63   : > { %s5773_s13 = scalar_lea.vmem %s261_s15, 1024  ;;  %p5781_p7 = scmp.lt.s32.totalorder %s261_s15, %s261_s15 }
  0x64   : > { %p5774_p0 = scmp.ne.s32.totalorder %s261_s15, %s5773_s13  ;;  %p5782_p9 = scmp.lt.s32.totalorder %s5773_s13, %s5773_s13 }
  0x66   : > { %p5776_p2 = pnand %p5774_p0, %p6037_p8  ;;  %p5783_p4 = por %p5782_p9, %p5781_p7 }
  0x68   : > { %p5777_p5 = pneg %p5776_p2 }
  0x6a   : > { %p5784_p10 = pnand %p5783_p4, %p5777_p5 }
  0x6c   : > { %5787 = shalt.err (!%p5784_p10)
}
  0x6d   : > { %s9399_s22 = smov 4   ;;  %s9400_s29 = smov 64  }
  0x6e   : > { %5515 = dma.hbm_to_vmem [thread:$0]  (!%p6021_p6), %s9304_s4, 1024, %s261_s15, [#allocation10], %s9400_s29, %s9400_s29, %s9399_s22  }
  0x6f   : > { %s5788_s12 = scalar_lea.hbm %s9305_s5, 1024 }
  0x70   : > { %p5789_p1 = scmp.ne.s32.totalorder %s9305_s5, %s5788_s12  ;;  %p5795_p12 = scmp.lt.u32.totalorder %s5788_s12, %s9305_s5 }
  0x72   : > { %p5791_p3 = pnand %p5789_p1, %p6037_p8 }
  0x74   : > { %p5792_p11 = pneg %p5791_p3 }
  0x76   : > { %p5797_p13 = pnand %p5795_p12, %p5792_p11 }
  0x78   : > { %5800 = shalt.err (!%p5797_p13)
}
  0x79   : > { %s5801_s21 = scalar_lea.vmem %s274_s17, 1024  ;;  %p5809_p7 = scmp.lt.s32.totalorder %s274_s17, %s274_s17 }
  0x7a   : > { %p5802_p0 = scmp.ne.s32.totalorder %s274_s17, %s5801_s21  ;;  %p5810_p9 = scmp.lt.s32.totalorder %s5801_s21, %s5801_s21 }
  0x7c   : > { %p5804_p2 = pnand %p5802_p0, %p6037_p8  ;;  %p5811_p4 = por %p5810_p9, %p5809_p7 }
  0x7e   : > { %p5805_p5 = pneg %p5804_p2 }
  0x80   : > { %p5812_p10 = pnand %p5811_p4, %p5805_p5 }
  0x82   : > { %5815 = shalt.err (!%p5812_p10)
}
  0x83   : > { %5518 = dma.hbm_to_vmem [thread:$0]  (!%p6021_p6), %s9305_s5, 1024, %s274_s17, [#allocation13], %s9400_s29, %s9400_s29, %s9399_s22  }
  0x84   : > { %s5258_s11 = sadd.s32 4294967294, %s5924_s27   ;;  %s6147_s19 = sadd.s32 1, %s5924_s27  }
  0x85   : > { %s33_s13 = sadd.s32 1, %s5920_s26  ;;  %s30_s1 = ssub.s32 %s5924_s27, %s6147_s19 }
  0x86   : > { %p40_p8 = scmp.ne.s32.totalorder %s5920_s26, %s5916_s25  ;;  %p31_p1 = scmp.eq.s32.totalorder %s30_s1, 0 }
  0x87   : > { %p41_p3 = scmp.eq.s32.totalorder %s5924_s27, 0  ;;  %p46_p11 = scmp.ne.s32.totalorder %s5916_s25, %s5912_s24 }
  0x88   : > { %p196_p12 = scmp.eq.s32.totalorder %s6005_s30, 1  ;;  %p9401_p0 = scmp.eq.s32.totalorder %s6005_s30, 0 }
  0x89   : > { %s6159_s23 = scalar_select %p31_p1, %s5920_s26, %s33_s13  }
  0x8a   : > { %p42_p13 = por %p41_p3, %p40_p8  ;;  %p6163_p2 = por %p9401_p0, %p46_p11 }
  0x8b   : > { %p6167_p6 = por %p196_p12, %p40_p8  ;;  %p202_p5 = scmp.eq.s32.totalorder %s5258_s11, 1 }
  0x8c   : > { %p5532_p7 = scmp.lt.s32.totalorder %s5924_s27, 2  ;;  %s290_s9 = sand.u32 1, %s5920_s26  }
  0x8d   : > { %s9403_s17 = scalar_select %p6167_p6, 1, 0 }
  0x8e   : > { %p6173_p9 = por %p202_p5, %p46_p11  ;;  %s5266_s14 = sshll.u32 %s290_s9, 7 }
  0x8f   : > { %s5347_s16 = sshll.u32 %s5924_s27, 11  ;;  %s294_s15 = scalar_lea.vmem [#allocation3], %s5266_s14 }
  0x90   : > { %s9404_s12 = scalar_select %p6173_p9, 1, 0 }
  0x91   : > { %s6181_s21 = scalar_lea.hbm %s9300_s0, %s5347_s16  ;;  %s301_s10 = sshll.u32 %s294_s15, 4  ;;  %s6187_s10 = int_to_ptr.vmem [resolvable:$true] %s301_s10 }
  0x92   : > { %p6183_p4 = pnand %p5532_p7, %p42_p13  ;;  %s6189_s13 = scalar_lea.sflag [#allocation4], %s290_s9 }
  0x93   : > { %s5816_s1 = scalar_lea.hbm %s6181_s21, 2048  ;;  %s5821_s18 = scalar_lea.hbm %s9300_s0, 4096 }
  0x94   : > { %p5817_p10 = scmp.ne.s32.totalorder %s6181_s21, %s5816_s1  ;;  %p5818_p8 = pneg %p6183_p4 }
  0x95   : > { %p5822_p11 = scmp.lt.u32.totalorder %s6181_s21, %s9300_s0  ;;  %p5823_p12 = scmp.lt.u32.totalorder %s5821_s18, %s5816_s1 }
  0x96   : > { %p5819_p1 = pnand %p5818_p8, %p5817_p10  ;;  %p5825_p0 = scmp.lt.u32.totalorder %s5816_s1, %s6181_s21 }
  0x97   : > { %p5824_p13 = por %p5823_p12, %p5822_p11 }
  0x98   : > { %p5820_p3 = pneg %p5819_p1 }
  0x99   : > { %p5826_p5 = por %p5825_p0, %p5824_p13 }
  0x9b   : > { %p5827_p7 = pnand %p5826_p5, %p5820_p3 }
  0x9d   : > { %5830 = shalt.err (!%p5827_p7)
}
  0x9e   : > { %s5831_s9 = scalar_lea.vmem %s6187_s10, 2048  ;;  %s5937_s14 = smov [#allocation3]  }
  0x9f   : > { %p5832_p10 = scmp.ne.s32.totalorder %s6187_s10, %s5831_s9  ;;  %s5836_s16 = sshll.u32 %s5937_s14, 4  ;;  %s5837_s16 = int_to_ptr.vmem [resolvable:$false] %s5836_s16 }
  0xa0   : > { %s5838_s20 = scalar_lea.vmem %s5837_s16, 4096  ;;  %p5839_p6 = scmp.lt.s32.totalorder %s6187_s10, %s5837_s16 }
  0xa1   : > { %p5834_p1 = pnand %p5832_p10, %p5818_p8  ;;  %p5840_p11 = scmp.lt.s32.totalorder %s5838_s20, %s5831_s9 }
  0xa3   : > { %p5835_p9 = pneg %p5834_p1  ;;  %p5841_p12 = por %p5840_p11, %p5839_p6 }
  0xa5   : > { %p5842_p13 = pnand %p5841_p12, %p5835_p9 }
  0xa7   : > { %5845 = shalt.err (!%p5842_p13)
}
  0xa8   : > { %5522 = dma.hbm_to_vmem [thread:$0]  (!%p6183_p4), %s6181_s21, 2048, %s6187_s10, %s6189_s13, %s9400_s29, %s9400_s29, %s9399_s22  }
  0xa9   : > { %p9406_p8 = scmp.ne.s32.totalorder %s9395_s8, 0 }
  0xab   : > { %313 = sbr.rel (%p9406_p8) target bundleno = 1750 (0x6d6), region = 48 }
  0xb2   : > { %s6223_s1 = sand.u32 1, %s5916_s25  }
  0xb3   : > { %s5270_s18 = sshll.u32 %s6223_s1, 7  ;;  %s316_s15 = scalar_lea.sflag [#allocation4], %s6223_s1 }
  0xb4   : > { %s6227_s9 = scalar_lea.vmem [#allocation3], %s5270_s18 }
  0xb5   : > { %5891 = dma.done.wait (%p6163_p2), %s316_s15, 2048  }
  0xb6   : > { %5893 = vsyncadd (%p6163_p2), %s316_s15, 4294965248  ;;  %p9407_p6 = scmp.eq.s32.totalorder %s6005_s30, 0 }
  0xb8   : > { %5895 = dma.done.wait (%p9407_p6), [#allocation7], 2192   ;;  %p9408_p9 = pmov %p9407_p6 }
  0xb9   : > { %p9409_p4 = pmov %p9407_p6 }
  0xba   : > { %5897 = vsyncadd (%p9408_p9), [#allocation7], 4294965104 }
  0xbb   : > { %5899 = dma.done.wait (%p9409_p4), [#allocation10], 2048   ;;  %p9410_p3 = pmov %p9409_p4 }
  0xbd   : > { %5901 = vsyncadd (%p9410_p3), [#allocation10], 4294965248  ;;  %p9411_p0 = pmov %p9410_p3 }
  0xbf   : > { %5903 = dma.done.wait (%p9411_p0), [#allocation13], 1024   ;;  %p9412_p5 = pmov %p9411_p0 }
  0xc0   : > { %v5938_v0 = vmov 0   ;;  %v5587_v1 = vld [vmem:[#allocation6 + $0x4] ss:$8 sps:$4 sm:$0xff]   ;;  %v5589_v2 = vld [vmem:[#allocation6] ss:$8 sps:$4 sm:$0xff]   ;;  %v5613_v19 = vld [vmem:[%s6227_s9 + $0x10] sm:$0xff]   ;;  %v789_v33 = vlaneseq }
  0xc1   : > { %5905 = vsyncadd (%p9412_p5), [#allocation13], 4294966272  ;;  %628 = vmatprep.mubr.bf16.mxu0 %v5938_v0  ;;  %1053 = vst [vmem:[#allocation2] sm:$0xff] %v5938_v0  ;;  %596 = vmatprep.subr.bf16.mxu0 %v5587_v1  ;;  %v5590_v3 = vld [vmem:[#allocation6 + $0x14] ss:$8 sps:$4 sm:$0xff]   ;;  %v5611_v17 = vld [vmem:[%s6227_s9] sm:$0xff]   ;;  %v1423_v48 = vunpack.c.l.bf16 %v5938_v0  ;;  %v1424_v49 = vunpack.c.h.bf16 %v5938_v0 }
  0xc2   : > { %1055 = vst [vmem:[#allocation2 + $0x10] sm:$0xff] %v5938_v0  ;;  %1057 = vst [vmem:[#allocation2 + $0x198] sm:$0xff] %v5938_v0  ;;  %597 = vmatpush1.bf16.msra.mxu0 %v5589_v2  ;;  %v5592_v4 = vld [vmem:[#allocation6 + $0x10] ss:$8 sps:$4 sm:$0xff]   ;;  %v5593_v5 = vld [vmem:[#allocation6 + $0x24] ss:$8 sps:$4 sm:$0xff]  }
  0xc3   : > { %1059 = vst [vmem:[#allocation2 + $0x1a8] sm:$0xff] %v5938_v0  ;;  %1061 = vst [vmem:[#allocation2 + $0x18] sm:$0xff] %v5938_v0  ;;  %598 = vmatprep.subr.bf16.mxu0 %v5590_v3  ;;  %v5595_v6 = vld [vmem:[#allocation6 + $0x20] ss:$8 sps:$4 sm:$0xff]   ;;  %v5596_v7 = vld [vmem:[#allocation6 + $0x34] ss:$8 sps:$4 sm:$0xff]  }
  0xc4   : > { %1062 = vst [vmem:[#allocation2 + $0x30] sm:$0xff] %v5938_v0  ;;  %1063 = vst [vmem:[#allocation2 + $0x48] sm:$0xff] %v5938_v0  ;;  %v5598_v8 = vld [vmem:[#allocation6 + $0x30] ss:$8 sps:$4 sm:$0xff]   ;;  %v5599_v9 = vld [vmem:[#allocation6 + $0x44] ss:$8 sps:$4 sm:$0xff]  }
  0xc5   : > { %1064 = vst [vmem:[#allocation2 + $0x60] sm:$0xff] %v5938_v0  ;;  %1065 = vst [vmem:[#allocation2 + $0x78] sm:$0xff] %v5938_v0  ;;  %v5601_v10 = vld [vmem:[#allocation6 + $0x40] ss:$8 sps:$4 sm:$0xff]   ;;  %v5602_v11 = vld [vmem:[#allocation6 + $0x54] ss:$8 sps:$4 sm:$0xff]  }
  0xc6   : > { %1066 = vst [vmem:[#allocation2 + $0x90] sm:$0xff] %v5938_v0  ;;  %1067 = vst [vmem:[#allocation2 + $0xa8] sm:$0xff] %v5938_v0  ;;  %599 = vmatpush1.bf16.msra.mxu0 %v5592_v4  ;;  %v5604_v12 = vld [vmem:[#allocation6 + $0x50] ss:$8 sps:$4 sm:$0xff]   ;;  %v5605_v13 = vld [vmem:[#allocation6 + $0x64] ss:$8 sps:$4 sm:$0xff]  }
  0xc7   : > { %1068 = vst [vmem:[#allocation2 + $0xc0] sm:$0xff] %v5938_v0  ;;  %1069 = vst [vmem:[#allocation2 + $0xd8] sm:$0xff] %v5938_v0  ;;  %600 = vmatprep.subr.bf16.mxu0 %v5593_v5  ;;  %v5607_v14 = vld [vmem:[#allocation6 + $0x60] ss:$8 sps:$4 sm:$0xff]   ;;  %v5608_v15 = vld [vmem:[#allocation6 + $0x74] ss:$8 sps:$4 sm:$0xff]  }
  0xc8   : > { %1070 = vst [vmem:[#allocation2 + $0xf0] sm:$0xff] %v5938_v0  ;;  %1071 = vst [vmem:[#allocation2 + $0x108] sm:$0xff] %v5938_v0  ;;  %v5610_v16 = vld [vmem:[#allocation6 + $0x70] ss:$8 sps:$4 sm:$0xff]   ;;  %v5612_v18 = vld [vmem:[%s6227_s9 + $0x8] sm:$0xff]   ;;  %v6313_v34 = vshrl.u32 %v789_v33, 7 }
  0xc9   : > { %1072 = vst [vmem:[#allocation2 + $0x120] sm:$0xff] %v5938_v0  ;;  %1073 = vst [vmem:[#allocation2 + $0x138] sm:$0xff] %v5938_v0  ;;  %v5614_v20 = vld [vmem:[%s6227_s9 + $0x18] sm:$0xff]   ;;  %v5615_v21 = vld [vmem:[%s6227_s9 + $0x20] sm:$0xff]   ;;  %s5276_s29 = sshll.u32 %s6223_s1, 8  ;;  %v1192_v45 = vrot.slane %v5938_v0, 4 }
  0xca   : > { %1074 = vst [vmem:[#allocation2 + $0x150] sm:$0xff] %v5938_v0  ;;  %1075 = vst [vmem:[#allocation2 + $0x168] sm:$0xff] %v5938_v0  ;;  %601 = vmatpush1.bf16.msra.mxu0 %v5595_v6  ;;  %v5616_v22 = vld [vmem:[%s6227_s9 + $0x28] sm:$0xff]   ;;  %v5617_v23 = vld [vmem:[%s6227_s9 + $0x30] sm:$0xff]   ;;  %v9315_v35 = vsub.s32 0, %v6313_v34  ;;  %v987_v37 = vsub.s32 5, %v6313_v34 }
  0xcb   : > { %1076 = vst [vmem:[#allocation2 + $0x180] sm:$0xff] %v5938_v0  ;;  %1077 = vst [vmem:[#allocation2 + $0x28] sm:$0xff] %v5938_v0  ;;  %602 = vmatprep.subr.bf16.mxu0 %v5596_v7  ;;  %v5618_v24 = vld [vmem:[%s6227_s9 + $0x38] sm:$0xff]   ;;  %v5619_v25 = vld [vmem:[%s6227_s9 + $0x40] sm:$0xff]   ;;  %vm1190_vm0 = vcmask 1043456   ;;  %s6339_s28 = scalar_lea.vmem [#allocation14], %s5276_s29  ;;  %v1273_v2 = vunpack.c.l.bf16 %v1192_v45 }
  0xcc   : > { %1078 = vst [vmem:[#allocation2 + $0x40] sm:$0xff] %v5938_v0  ;;  %1079 = vst [vmem:[#allocation2 + $0x58] sm:$0xff] %v5938_v0  ;;  %v5620_v26 = vld [vmem:[%s6227_s9 + $0x48] sm:$0xff]   ;;  %v5621_v27 = vld [vmem:[%s6227_s9 + $0x50] sm:$0xff]   ;;  %vm1525_vm1 = vcmask 1046528   ;;  %vm1806_vm2 = vcmask 1045504  }
  0xcd   : > { %1080 = vst [vmem:[#allocation2 + $0x70] sm:$0xff] %v5938_v0  ;;  %1081 = vst [vmem:[#allocation2 + $0x88] sm:$0xff] %v5938_v0  ;;  %v5622_v28 = vld [vmem:[%s6227_s9 + $0x58] sm:$0xff]   ;;  %v5623_v29 = vld [vmem:[%s6227_s9 + $0x60] sm:$0xff]   ;;  %vm4036_vm3 = vcmask 1040384   ;;  %vm5940_vm4 = vmmov 0  }
  0xce   : > { %1082 = vst [vmem:[#allocation2 + $0xa0] sm:$0xff] %v5938_v0  ;;  %1083 = vst [vmem:[#allocation2 + $0xb8] sm:$0xff] %v5938_v0  ;;  %603 = vmatpush1.bf16.msra.mxu0 %v5598_v8  ;;  %v5624_v30 = vld [vmem:[%s6227_s9 + $0x68] sm:$0xff]   ;;  %v5625_v31 = vld [vmem:[%s6227_s9 + $0x70] sm:$0xff]   ;;  %s5348_s11 = sshll.u32 %s6005_s30, 12  ;;  %s5137_s13 = sshll.u32 %s6339_s28, 4  ;;  %s9253_s13 = int_to_ptr.vmem [resolvable:$true] %s5137_s13 }
  0xcf   : > { %1084 = vst [vmem:[#allocation2 + $0xd0] sm:$0xff] %v5938_v0  ;;  %1085 = vst [vmem:[#allocation2 + $0xe8] sm:$0xff] %v5938_v0  ;;  %604 = vmatprep.subr.bf16.mxu0 %v5599_v9  ;;  %v5626_v32 = vld [vmem:[%s6227_s9 + $0x78] sm:$0xff]   ;;  %v6319_v36 = vld [vmem:[%s9306_s6] sm:$0xff]  ;;  %s9251_s20 = scalar_lea.hbm %s9307_s7, %s5348_s11  ;;  %s5124_s30 = scalar_lea.sflag [#allocation5], %s6223_s1 }
  0xd0   : > { %1086 = vst [vmem:[#allocation2 + $0x100] sm:$0xff] %v5938_v0  ;;  %1087 = vst [vmem:[#allocation2 + $0x118] sm:$0xff] %v5938_v0  ;;  %v6325_v38 = vrot.slane %v6319_v36, %v9315_v35  ;;  %v6329_v39 = vrot.slane %v6319_v36, %v987_v37  ;;  %v1126_v40 = vld [vmem:[#allocation2] sm:$0x80]  ;;  %v6337_v52 = vld [vmem:[#allocation8 + $0x1] ss:$0 sm:$0xff] }
  0xd1   : > { %1088 = vst [vmem:[#allocation2 + $0x130] sm:$0xff] %v5938_v0  ;;  %1089 = vst [vmem:[#allocation2 + $0x148] sm:$0xff] %v5938_v0  ;;  %v1191_v44 = vrot.slane %v1126_v40, 4  ;;  %v1672_v53 = vld [vmem:[#allocation2 + $0x10] sm:$0x1]  ;;  %v1461_v59 = vmul.f32 %v6337_v52, %v1423_v48  ;;  %v1462_v60 = vmul.f32 %v6337_v52, %v1424_v49  ;;  %s5846_s18 = scalar_lea.vmem %s9253_s13, 4096 }
  0xd2   : > { %1090 = vst [vmem:[#allocation2 + $0x160] sm:$0xff] %v5938_v0  ;;  %1091 = vst [vmem:[#allocation2 + $0x178] sm:$0xff] %v5938_v0  ;;  %605 = vmatpush1.bf16.msra.mxu0 %v5601_v10  ;;  %v6346_v61 = vld [vmem:[#allocation8 + $0x2] ss:$0 sm:$0xff]  ;;  %v1688_v62 = vunpack.c.l.bf16 %v1672_v53  ;;  %v6349_v6 = vld [vmem:[#allocation8] ss:$0 sm:$0xff]  ;;  %p5847_p2 = scmp.ne.s32.totalorder %s9253_s13, %s5846_s18 }
  0xd3   : > { %1092 = vst [vmem:[#allocation2 + $0x190] sm:$0xff] %v5938_v0  ;;  %606 = vmatprep.subr.bf16.mxu0 %v5602_v11  ;;  %9413 = vst [vmem:[#allocation20_spill] sm:$0xff] %v6313_v34  ;;  %v1193_v58 = vsel %vm1190_vm0, %v1191_v44, %v1192_v45  ;;  %v1711_v8 = vmul.f32 %v6346_v61, %v1424_v49  ;;  %v1526_v10 = vrot.slane %v1461_v59, 1  ;;  %v1527_v11 = vrot.slane %v1462_v60, 1  ;;  %v6372_v49 = vld [vmem:[#allocation8 + $0x5] ss:$0 sm:$0xff] }
  0xd4   : > { %v1271_v1 = vunpack.c.l.bf16 %v1193_v58  ;;  %v1272_v7 = vunpack.c.h.bf16 %v1193_v58  ;;  %p9708_p7 = scmp.ne.s32.totalorder %s9403_s17, 0  ;;  %s5941_s15 = smov [#allocation14]  }
  0xd5   : > { %s5850_s9 = sshll.u32 %s5941_s15, 4  ;;  %s5851_s9 = int_to_ptr.vmem [resolvable:$false] %s5850_s9 }
  0xd6   : > { %607 = vmatpush1.bf16.msra.mxu0 %v5604_v12  ;;  %v1673_v12 = vld [vmem:[#allocation2 + $0x28] sm:$0x1]  ;;  %p5848_p10 = pnand %p5847_p2, %p9708_p7  ;;  %s5852_s8 = scalar_lea.vmem %s5851_s9, 8192 }
  0xd7   : > { %608 = vmatprep.subr.bf16.mxu0 %v5605_v13  ;;  %v1712_v13 = vmul.f32 %v6346_v61, %v1688_v62  ;;  %p5853_p11 = scmp.lt.s32.totalorder %s9253_s13, %s5851_s9  ;;  %p5854_p12 = scmp.lt.s32.totalorder %s5852_s8, %s5846_s18 }
  0xd8   : > { %p5849_p1 = pneg %p5848_p10 }
  0xd9   : > { %v1810_v40 = vrot.slane %v1712_v13, 2  ;;  %v6394_v13 = vld [vmem:[#allocation2 + $0x30] sm:$0x80]  ;;  %p5855_p13 = por %p5854_p12, %p5853_p11 }
  0xda   : > { %609 = vmatpush1.bf16.msra.mxu0 %v5607_v14 }
  0xdb   : > { %610 = vmatprep.subr.bf16.mxu0 %v5608_v15  ;;  %p5856_p8 = pnand %p5855_p13, %p5849_p1 }
  0xde   : > { %611 = vmatpush1.bf16.msra.mxu0 %v5610_v16 }
  0xe1   : > { %629 = vmatmul.mubr.bf16.vlgmr.msra.gmra.mrb[0].mxu0 %v5611_v17  ;;  %v1710_v17 = vmul.f32 %v6346_v61, %v1423_v48 }
  0xe2   : > { %638 = vmatprep.mubr.bf16.mxu0 %v5938_v0 }
  0xe3   : > { %v1807_v37 = vrot.slane %v1710_v17, 2 }
  0xe9   : > { %639 = vmatmul.mubr.bf16.gmra.mrb[4].mxu0 %v5612_v18 }
  0xea   : > { %648 = vmatprep.mubr.bf16.mxu0 %v5938_v0 }
  0xf1   : > { %649 = vmatmul.mubr.bf16.gmra.mrb[8].mxu0 %v5613_v19 }
  0xf2   : > { %658 = vmatprep.mubr.bf16.mxu0 %v5938_v0 }
  0xf9   : > { %659 = vmatmul.mubr.bf16.gmra.mrb[12].mxu0 %v5614_v20  ;;  %v1128_v20 = vld [vmem:[#allocation2 + $0x18] sm:$0x80] }
  0xfa   : > { %668 = vmatprep.mubr.bf16.mxu0 %v5938_v0 }
 0x101   : > { %669 = vmatmul.mubr.bf16.gmra.mrb[16].mxu0 %v5615_v21  ;;  %v1325_v21 = vmul.f32 %v6349_v6, %v1271_v1 }
 0x102   : > { %678 = vmatprep.mubr.bf16.mxu0 %v5938_v0 }
 0x109   : > { %679 = vmatmul.mubr.bf16.gmra.mrb[20].mxu0 %v5616_v22  ;;  %v1327_v22 = vmul.f32 %v6349_v6, %v1273_v2  ;;  %v3386_v2 = vld [vmem:[#allocation2 + $0x40] sm:$0x1] }
 0x10a   : > { %688 = vmatprep.mubr.bf16.mxu0 %v5938_v0  ;;  %v3402_v17 = vunpack.c.l.bf16 %v3386_v2 }
 0x111   : > { %689 = vmatmul.mubr.bf16.gmra.mrb[24].mxu0 %v5617_v23 }
 0x112   : > { %698 = vmatprep.mubr.bf16.mxu0 %v5938_v0 }
 0x119   : > { %699 = vmatmul.mubr.bf16.gmra.mrb[28].mxu0 %v5618_v24 }
 0x11a   : > { %708 = vmatprep.mubr.bf16.mxu0 %v5938_v0 }
 0x121   : > { %709 = vmatmul.mubr.bf16.gmra.mrb[32].mxu0 %v5619_v25 }
 0x122   : > { %718 = vmatprep.mubr.bf16.mxu0 %v5938_v0 }
 0x129   : > { %719 = vmatmul.mubr.bf16.gmra.mrb[36].mxu0 %v5620_v26  ;;  %v1689_v26 = vunpack.c.l.bf16 %v1673_v12 }
 0x12a   : > { %728 = vmatprep.mubr.bf16.mxu0 %v5938_v0 }
 0x12b   : > { %v6370_v48 = vmul.f32 %v6346_v61, %v1689_v26 }
 0x131   : > { %729 = vmatmul.mubr.bf16.gmra.mrb[40].mxu0 %v5621_v27  ;;  %v2529_v27 = vld [vmem:[#allocation2 + $0x28] sm:$0x1] }
 0x132   : > { %738 = vmatprep.mubr.bf16.mxu0 %v5938_v0  ;;  %v2545_v44 = vunpack.c.l.bf16 %v2529_v27 }
 0x134   : > { %v6381_v1 = vmul.f32 %v6372_v49, %v2545_v44 }
 0x139   : > { %739 = vmatmul.mubr.bf16.gmra.mrb[44].mxu0 %v5622_v28 }
 0x13a   : > { %748 = vmatprep.mubr.bf16.mxu0 %v5938_v0 }
 0x141   : > { %749 = vmatmul.mubr.bf16.gmra.mrb[48].mxu0 %v5623_v29  ;;  %v1326_v29 = vmul.f32 %v6349_v6, %v1272_v7  ;;  %v6385_v7 = vld [vmem:[#allocation2 + $0x30] sm:$0x80] }
 0x142   : > { %758 = vmatprep.mubr.bf16.mxu0 %v5938_v0 }
 0x149   : > { %759 = vmatmul.mubr.bf16.gmra.mrb[52].mxu0 %v5624_v30  ;;  %v1528_v30 = vsel %vm1525_vm1, %v1526_v10, %v1527_v11 }
 0x14a   : > { %768 = vmatprep.mubr.bf16.mxu0 %v5938_v0  ;;  %v1623_v53 = vadd.f32 %v1528_v30, %v1326_v29  ;;  %v2906_v29 = vrot.slane %v6394_v13, 4 }
 0x151   : > { %769 = vmatmul.mubr.bf16.gmra.mrb[56].mxu0 %v5625_v31  ;;  %v1808_v31 = vrot.slane %v1711_v8, 2 }
 0x152   : > { %778 = vmatprep.mubr.bf16.mxu0 %v5938_v0 }
 0x153   : > { %v1809_v59 = vsel %vm1806_vm2, %v1807_v37, %v1808_v31  ;;  %v1811_v60 = vsel %vm1806_vm2, %v1808_v31, %v1810_v40  ;;  %v6410_v40 = vld [vmem:[#allocation8 + $0x4] ss:$0 sm:$0xff] }
 0x159   : > { %779 = vmatmul.mubr.bf16.gmra.mrb[60].mxu0 %v5626_v32  ;;  %v1985_v32 = vld [vmem:[#allocation2 + $0x18] sm:$0x80] }
 0x1b4   : > { %v630_v41 = vpop.f32.mrb[0].mxu0 }
 0x1b5   : > { %v793_v42 = vadd.f32 %v6325_v38, %v630_v41  ;;  %v632_v43 = vpop.f32.mrb[1].mxu0 }
 0x1b6   : > { %v989_v46 = vadd.f32 %v6329_v39, %v632_v43  ;;  %v634_v47 = vpop.f32.mrb[2].mxu0  ;;  %v1194_v43 = vrot.slane %v1128_v20, 4 }
 0x1b7   : > { %v825_v50 = vadd.f32 3.0, %v793_v42  ;;  %v794_v51 = vadd.f32 %v6325_v38, %v634_v47  ;;  %v636_v54 = vpop.f32.mrb[3].mxu0  ;;  %v1624_v47 = vadd.f32 %v1527_v11, %v1327_v22  ;;  %v6389_v11 = vld [vmem:[#allocation2 + $0x30] sm:$0x80]  ;;  %v1197_v22 = vrot.slane %v6385_v7, 4 }
 0x1b8   : > { %1021 = vst [vmem:[%s6339_s28] sm:$0xff] %v989_v46  ;;  %v990_v55 = vadd.f32 %v6329_v39, %v636_v54  ;;  %v1622_v46 = vadd.f32 %v1526_v10, %v1325_v21  ;;  %v2049_v54 = vrot.slane %v1985_v32, 4  ;;  %v2666_v21 = vrot.slane %v6381_v1, 2 }
 0x1b9   : > { %v857_v56 = vmax.f32 %v825_v50, 0.0  ;;  %v826_v57 = vadd.f32 3.0, %v794_v51  ;;  %v6387_v10 = vadd.f32 %v1811_v60, %v1624_v47  ;;  %v2052_v27 = vrot.slane %v6389_v11, 4 }
 0x1ba   : > { %1022 = vst [vmem:[%s6339_s28 + $0x8] sm:$0xff] %v990_v55  ;;  %v1935_v8 = vadd.f32 %v1807_v37, %v1622_v46 }
 0x1bb   : > { %v889_v63 = vmin.f32 %v857_v56, 6.0  ;;  %v858_v0 = vmax.f32 %v826_v57, 0.0 }
 0x1bc   : > { %v640_v3 = vpop.f32.mrb[4].mxu0 }
 0x1bd   : > { %v921_v4 = vmul.f32 %v889_v63, %v793_v42  ;;  %v890_v5 = vmin.f32 %v858_v0, 6.0  ;;  %v642_v9 = vpop.f32.mrb[5].mxu0  ;;  %v6356_v18 = vadd.f32 %v6325_v38, %v640_v3  ;;  %v2530_v42 = vld [vmem:[#allocation2 + $0x40] sm:$0x1] }
 0x1be   : > { %v991_v14 = vadd.f32 %v6329_v39, %v642_v9  ;;  %v644_v15 = vpop.f32.mrb[6].mxu0  ;;  %v2546_v55 = vunpack.c.l.bf16 %v2530_v42  ;;  %v1936_v9 = vadd.f32 %v1809_v59, %v1623_v53 }
 0x1bf   : > { %v922_v16 = vmul.f32 %v890_v5, %v794_v51  ;;  %v646_v19 = vpop.f32.mrb[7].mxu0  ;;  %v953_v24 = vmul.f32 0.16666667, %v921_v4  ;;  %v6363_v28 = vadd.f32 %v6325_v38, %v644_v15  ;;  %v827_v41 = vadd.f32 3.0, %v6356_v18 }
 0x1c0   : > { %1023 = vst [vmem:[%s6339_s28 + $0x10] sm:$0xff] %v991_v14  ;;  %v992_v23 = vadd.f32 %v6329_v39, %v646_v19  ;;  %v1815_v4 = vrot.slane %v6370_v48, 2  ;;  %v6392_v12 = vmul.f32 %v6372_v49, %v2546_v55 }
 0x1c1   : > { %v954_v25 = vmul.f32 0.16666667, %v922_v16  ;;  %v828_v50 = vadd.f32 3.0, %v6363_v28  ;;  %v859_v62 = vmax.f32 %v827_v41, 0.0 }
 0x1c2   : > { %1024 = vst [vmem:[%s6339_s28 + $0x18] sm:$0xff] %v992_v23  ;;  %v6403_v23 = vld [vmem:[#allocation8 + $0x8] ss:$0 sm:$0xff]  ;;  %v2671_v46 = vrot.slane %v6392_v12, 2 }
 0x1c3   : > { %v1093_v33 = vpack.c.bf16 %v954_v25, %v953_v24  ;;  %v860_v5 = vmax.f32 %v828_v50, 0.0  ;;  %v891_v16 = vmin.f32 %v859_v62, 6.0  ;;  %v6420_v47 = vmul.f32 %v6403_v23, %v3402_v17 }
 0x1c4   : > { %v650_v45 = vpop.f32.mrb[8].mxu0 }
 0x1c5   : > { %v652_v51 = vpop.f32.mrb[9].mxu0  ;;  %v1195_v58 = vrot.slane %v1093_v33, 4  ;;  %v1425_v0 = vunpack.c.l.bf16 %v1093_v33  ;;  %v1426_v3 = vunpack.c.h.bf16 %v1093_v33  ;;  %v892_v26 = vmin.f32 %v860_v5, 6.0 }
 0x1c6   : > { %v993_v56 = vadd.f32 %v6329_v39, %v652_v51  ;;  %v6376_v57 = vpop.f32.mrb[10].mxu0  ;;  %v923_v44 = vmul.f32 %v891_v16, %v6356_v18  ;;  %v6426_v55 = vadd.f32 %v6325_v38, %v650_v45 }
 0x1c7   : > { %v656_v63 = vpop.f32.mrb[11].mxu0  ;;  %v1196_v14 = vsel %vm1190_vm0, %v1194_v43, %v1195_v58  ;;  %v2051_v15 = vsel %vm1190_vm0, %v2049_v54, %v1195_v58  ;;  %v1276_v19 = vunpack.c.l.bf16 %v1195_v58  ;;  %v6399_v20 = vmul.f32 %v6337_v52, %v1425_v0  ;;  %v6415_v43 = vld [vmem:[#allocation8 + $0x3] ss:$0 sm:$0xff] }
 0x1c8   : > { %1025 = vst [vmem:[%s6339_s28 + $0x20] sm:$0xff] %v993_v56  ;;  %v1464_v25 = vmul.f32 %v6337_v52, %v1426_v3  ;;  %v1274_v31 = vunpack.c.l.bf16 %v1196_v14  ;;  %v1275_v32 = vunpack.c.h.bf16 %v1196_v14  ;;  %v2129_v33 = vunpack.c.l.bf16 %v2051_v15 }
 0x1c9   : > { %v2130_v37 = vunpack.c.h.bf16 %v2051_v15  ;;  %v1714_v42 = vmul.f32 %v6346_v61, %v1426_v3  ;;  %v1330_v51 = vmul.f32 %v6349_v6, %v1276_v19  ;;  %v1529_v53 = vrot.slane %v6399_v20, 1 }
 0x1ca   : > { %v1713_v54 = vmul.f32 %v6346_v61, %v1425_v0  ;;  %v1530_v56 = vrot.slane %v1464_v25, 1  ;;  %v2319_v58 = vmul.f32 %v6410_v40, %v1425_v0  ;;  %v2320_v18 = vmul.f32 %v6410_v40, %v1426_v3 }
 0x1cb   : > { %v924_v59 = vmul.f32 %v892_v26, %v6363_v28  ;;  %v1328_v60 = vmul.f32 %v6349_v6, %v1274_v31  ;;  %v1329_v62 = vmul.f32 %v6349_v6, %v1275_v32  ;;  %v2183_v2 = vmul.f32 %v6415_v43, %v2129_v33 }
 0x1cc   : > { %v6405_v24 = vpop.f32.mrb[12].mxu0  ;;  %v2184_v5 = vmul.f32 %v6415_v43, %v2130_v37  ;;  %v1813_v14 = vrot.slane %v1714_v42, 2  ;;  %v2185_v15 = vmul.f32 %v6415_v43, %v1276_v19  ;;  %v955_v45 = vmul.f32 0.16666667, %v923_v44 }
 0x1cd   : > { %v662_v30 = vpop.f32.mrb[13].mxu0  ;;  %v956_v16 = vmul.f32 0.16666667, %v924_v59  ;;  %v2567_v17 = vmul.f32 %v6372_v49, %v1425_v0  ;;  %v829_v20 = vadd.f32 3.0, %v6426_v55  ;;  %v6440_v28 = vadd.f32 %v6325_v38, %v6376_v57 }
 0x1ce   : > { %v6412_v41 = vpop.f32.mrb[14].mxu0  ;;  %v994_v25 = vadd.f32 %v6329_v39, %v656_v63  ;;  %v2383_v31 = vrot.slane %v2319_v58, 1  ;;  %v2384_v32 = vrot.slane %v2320_v18, 1  ;;  %v2568_v33 = vmul.f32 %v6372_v49, %v1426_v3 }
 0x1cf   : > { %v666_v50 = vpop.f32.mrb[15].mxu0  ;;  %v1094_v19 = vpack.c.bf16 %v956_v16, %v955_v45  ;;  %v1812_v42 = vrot.slane %v1713_v54, 2  ;;  %v2231_v0 = vadd.f32 %v2183_v2, %v1935_v8  ;;  %v2232_v44 = vadd.f32 %v2184_v5, %v1936_v9 }
 0x1d0   : > { %1026 = vst [vmem:[%s6339_s28 + $0x28] sm:$0xff] %v994_v25  ;;  %v995_v59 = vadd.f32 %v6329_v39, %v662_v30  ;;  %v1531_v63 = vsel %vm1525_vm1, %v1529_v53, %v1530_v56  ;;  %v1627_v35 = vadd.f32 %v1530_v56, %v1330_v51  ;;  %v2233_v58 = vadd.f32 %v2185_v15, %v6387_v10 }
 0x1d1   : > { %v6454_v18 = vrot.slane %v1094_v19, 4  ;;  %v1816_v8 = vsel %vm1806_vm2, %v1813_v14, %v1815_v4  ;;  %v861_v9 = vmax.f32 %v829_v20, 0.0  ;;  %v830_v54 = vadd.f32 3.0, %v6440_v28 }
 0x1d2   : > { %1027 = vst [vmem:[%s6339_s28 + $0x30] sm:$0xff] %v995_v59  ;;  %v996_v30 = vadd.f32 %v6329_v39, %v666_v50  ;;  %v1625_v2 = vadd.f32 %v1529_v53, %v1328_v60  ;;  %v2385_v51 = vsel %vm1525_vm1, %v2383_v31, %v2384_v32  ;;  %v2663_v56 = vrot.slane %v2567_v17, 2 }
 0x1d3   : > { %v2664_v10 = vrot.slane %v2568_v33, 2  ;;  %v1626_v5 = vadd.f32 %v1531_v63, %v1329_v62  ;;  %v1814_v15 = vsel %vm1806_vm2, %v1812_v42, %v1813_v14  ;;  %v2479_v45 = vadd.f32 %v2383_v31, %v2231_v0 }
 0x1d4   : > { %v6443_v26 = vpop.f32.mrb[16].mxu0  ;;  %v2480_v16 = vadd.f32 %v2385_v51, %v2232_v44  ;;  %1028 = vst [vmem:[%s6339_s28 + $0x38] sm:$0xff] %v996_v30  ;;  %v1940_v48 = vadd.f32 %v1816_v8, %v1627_v35  ;;  %v2481_v25 = vadd.f32 %v2384_v32, %v2233_v58  ;;  %v6468_v4 = vunpack.c.l.bf16 %v6454_v18 }
 0x1d5   : > { %v6446_v37 = vpop.f32.mrb[17].mxu0  ;;  %v2054_v50 = vsel %vm1190_vm0, %v2052_v27, %v6454_v18  ;;  %v6474_v53 = vunpack.c.l.bf16 %v1094_v19  ;;  %v6476_v60 = vunpack.c.h.bf16 %v1094_v19  ;;  %v893_v62 = vmin.f32 %v861_v9, 6.0 }
 0x1d6   : > { %v6450_v57 = vpop.f32.mrb[18].mxu0  ;;  %v862_v17 = vmax.f32 %v830_v54, 0.0  ;;  %v1938_v20 = vadd.f32 %v1812_v42, %v1625_v2  ;;  %v2665_v35 = vsel %vm1806_vm2, %v2663_v56, %v2664_v10  ;;  %v2132_v31 = vunpack.c.l.bf16 %v2054_v50 }
 0x1d7   : > { %v6456_v3 = vpop.f32.mrb[19].mxu0  ;;  %v2133_v32 = vunpack.c.h.bf16 %v2054_v50  ;;  %v1939_v0 = vadd.f32 %v1814_v15, %v1626_v5  ;;  %v2667_v11 = vsel %vm1806_vm2, %v2664_v10, %v2666_v21  ;;  %v2791_v27 = vadd.f32 %v2663_v56, %v2479_v45  ;;  %v6498_v21 = vld [vmem:[#allocation8 + $0x6] ss:$0 sm:$0xff] }
 0x1d8   : > { %v2792_v44 = vadd.f32 %v2665_v35, %v2480_v16  ;;  %v2793_v59 = vadd.f32 %v2667_v11, %v2481_v25  ;;  %v2186_v63 = vmul.f32 %v6415_v43, %v2132_v31  ;;  %v2188_v58 = vmul.f32 %v6415_v43, %v6468_v4 }
 0x1d9   : > { %v2187_v42 = vmul.f32 %v6415_v43, %v2133_v32  ;;  %v2321_v9 = vmul.f32 %v6410_v40, %v6474_v53  ;;  %v2322_v1 = vmul.f32 %v6410_v40, %v6476_v60  ;;  %v925_v54 = vmul.f32 %v893_v62, %v6426_v55 }
 0x1da   : > { %v894_v30 = vmin.f32 %v862_v17, 6.0  ;;  %v2234_v2 = vadd.f32 %v2186_v63, %v1938_v20  ;;  %v2236_v56 = vadd.f32 %v2188_v58, %v1940_v48  ;;  %v2570_v10 = vmul.f32 %v6372_v49, %v6474_v53  ;;  %v6511_v48 = vld [vmem:[#allocation8 + $0x7] ss:$0 sm:$0xff] }
 0x1db   : > { %v2235_v51 = vadd.f32 %v2187_v42, %v1939_v0  ;;  %v2386_v5 = vrot.slane %v2321_v9, 1  ;;  %v2387_v15 = vrot.slane %v2322_v1, 1  ;;  %v2571_v45 = vmul.f32 %v6372_v49, %v6476_v60  ;;  %v1674_v42 = vld [vmem:[#allocation2 + $0x40] sm:$0x1] }
 0x1dc   : > { %v6478_v14 = vpop.f32.mrb[20].mxu0  ;;  %v2908_v16 = vsel %vm1190_vm0, %v2906_v29, %v6454_v18  ;;  %v2668_v25 = vrot.slane %v2570_v10, 2  ;;  %v3042_v62 = vmul.f32 %v6498_v21, %v6468_v4  ;;  %v3424_v12 = vmul.f32 %v6403_v23, %v6474_v53 }
 0x1dd   : > { %v6481_v33 = vpop.f32.mrb[21].mxu0  ;;  %v2986_v50 = vunpack.c.l.bf16 %v2908_v16  ;;  %v2987_v55 = vunpack.c.h.bf16 %v2908_v16  ;;  %v2388_v17 = vsel %vm1525_vm1, %v2386_v5, %v2387_v15  ;;  %v2482_v20 = vadd.f32 %v2386_v5, %v2234_v2 }
 0x1de   : > { %v6486_v19 = vpop.f32.mrb[22].mxu0  ;;  %v2484_v35 = vadd.f32 %v2387_v15, %v2236_v56  ;;  %v2669_v31 = vrot.slane %v2571_v45, 2  ;;  %v2483_v0 = vadd.f32 %v2388_v17, %v2235_v51  ;;  %v3090_v11 = vadd.f32 %v3042_v62, %v2793_v59 }
 0x1df   : > { %v6492_v8 = vpop.f32.mrb[23].mxu0  ;;  %v3040_v13 = vmul.f32 %v6498_v21, %v2986_v50  ;;  %v3041_v29 = vmul.f32 %v6498_v21, %v2987_v55  ;;  %v6524_v1 = vadd.f32 %v2668_v25, %v2482_v20  ;;  %v3176_v2 = vmul.f32 %v6511_v48, %v6474_v53 }
 0x1e0   : > { %v2670_v58 = vsel %vm1806_vm2, %v2668_v25, %v2669_v31  ;;  %v2672_v9 = vsel %vm1806_vm2, %v2669_v31, %v2671_v46  ;;  %v3177_v15 = vmul.f32 %v6511_v48, %v6476_v60  ;;  %v3425_v46 = vmul.f32 %v6403_v23, %v6476_v60 }
 0x1e1   : > { %v6530_v56 = vadd.f32 %v2670_v58, %v2483_v0  ;;  %v6532_v10 = vadd.f32 %v2672_v9, %v2484_v35  ;;  %v3088_v59 = vadd.f32 %v3040_v13, %v2791_v27  ;;  %v3089_v5 = vadd.f32 %v3041_v29, %v2792_v44 }
 0x1e2   : > { %v3240_v45 = vrot.slane %v3176_v2, 1  ;;  %v1690_v16 = vunpack.c.l.bf16 %v1674_v42  ;;  %v3523_v25 = vrot.slane %v6420_v47, 2  ;;  %v926_v50 = vmul.f32 %v894_v30, %v6440_v28  ;;  %v2531_v2 = vld [vmem:[#allocation2 + $0x58] sm:$0x1] }
 0x1e3   : > { %v6544_v55 = vadd.f32 %v6325_v38, %v6405_v24  ;;  %v3241_v27 = vrot.slane %v3177_v15, 1  ;;  %v3520_v62 = vrot.slane %v3424_v12, 2  ;;  %v3521_v17 = vrot.slane %v3425_v46, 2 }
 0x1e4   : > { %v6514_v32 = vpop.f32.mrb[24].mxu0  ;;  %v3336_v44 = vadd.f32 %v3240_v45, %v3088_v59  ;;  %v1199_v20 = vsel %vm1190_vm0, %v1197_v22, %v6454_v18  ;;  %v957_v35 = vmul.f32 0.16666667, %v925_v54  ;;  %v958_v31 = vmul.f32 0.16666667, %v926_v50 }
 0x1e5   : > { %v6518_v63 = vpop.f32.mrb[25].mxu0  ;;  %v6552_v47 = vadd.f32 %v6325_v38, %v6412_v41  ;;  %v1465_v28 = vmul.f32 %v6337_v52, %v6474_v53  ;;  %v1466_v24 = vmul.f32 %v6337_v52, %v6476_v60  ;;  %v3242_v30 = vsel %vm1525_vm1, %v3240_v45, %v3241_v27 }
 0x1e6   : > { %v6528_v51 = vpop.f32.mrb[26].mxu0  ;;  %v3338_v0 = vadd.f32 %v3241_v27, %v3090_v11  ;;  %v3337_v13 = vadd.f32 %v3242_v30, %v3089_v5  ;;  %v3524_v7 = vsel %vm1806_vm2, %v3521_v17, %v3523_v25  ;;  %v6560_v22 = vadd.f32 %v3520_v62, %v3336_v44  ;;  %v1989_v11 = vld [vmem:[#allocation2 + $0x48] sm:$0x80]  ;;  %v3387_v25 = vld [vmem:[#allocation2 + $0x58] sm:$0x1] }
 0x1e7   : > { %v1095_v18 = vpack.c.bf16 %v958_v31, %v957_v35  ;;  %v3522_v54 = vsel %vm1806_vm2, %v3520_v62, %v3521_v17  ;;  %v997_v29 = vadd.f32 %v6329_v39, %v6446_v37  ;;  %v6567_v42 = vpop.f32.mrb[27].mxu0  ;;  %v1277_v58 = vunpack.c.l.bf16 %v1199_v20  ;;  %v1132_v35 = vld [vmem:[#allocation2 + $0x48] sm:$0x80] }
 0x1e8   : > { %v6563_v41 = vadd.f32 %v3524_v7, %v3338_v0  ;;  %9414 = vst [vmem:[#allocation21_spill] sm:$0xff] %v6567_v42  ;;  %v6569_v9 = vadd.f32 %v3522_v54, %v3337_v13  ;;  %v831_v59 = vadd.f32 3.0, %v6544_v55  ;;  %v832_v5 = vadd.f32 3.0, %v6552_v47 }
 0x1e9   : > { %v1278_v15 = vunpack.c.h.bf16 %v1199_v20  ;;  %v1717_v45 = vmul.f32 %v6346_v61, %v6476_v60  ;;  %v1718_v12 = vmul.f32 %v6346_v61, %v1690_v16  ;;  %1029 = vst [vmem:[%s6339_s28 + $0x40] sm:$0xff] %v997_v29  ;;  %v1532_v46 = vrot.slane %v1465_v28, 1 }
 0x1ea   : > { %v1533_v37 = vrot.slane %v1466_v24, 1  ;;  %v1716_v50 = vmul.f32 %v6346_v61, %v6474_v53  ;;  %v1201_v27 = vrot.slane %v1095_v18, 4  ;;  %v2055_v44 = vrot.slane %v1989_v11, 4  ;;  %v6588_v11 = vld [vmem:[#allocation2 + $0x58] sm:$0x1] }
 0x1eb   : > { %v2547_v62 = vunpack.c.l.bf16 %v2531_v2  ;;  %v1331_v17 = vmul.f32 %v6349_v6, %v1277_v58  ;;  %v1333_v20 = vmul.f32 %v6349_v6, %v6468_v4  ;;  %v863_v31 = vmax.f32 %v831_v59, 0.0  ;;  %v2844_v2 = vld [vmem:[#allocation2 + $0x48] sm:$0x80] }
 0x1ec   : > { %v864_v60 = vmax.f32 %v832_v5, 0.0  ;;  %v6582_v30 = vpop.f32.mrb[28].mxu0  ;;  %v1332_v16 = vmul.f32 %v6349_v6, %v1278_v15  ;;  %v1818_v28 = vrot.slane %v1717_v45, 2  ;;  %v1820_v24 = vrot.slane %v1718_v12, 2 }
 0x1ed   : > { %9415 = vst [vmem:[#allocation22_spill] sm:$0xff] %v6582_v30  ;;  %v3403_v0 = vunpack.c.l.bf16 %v3387_v25  ;;  %v1534_v53 = vsel %vm1525_vm1, %v1532_v46, %v1533_v37  ;;  %v1817_v13 = vrot.slane %v1716_v50, 2  ;;  %v1200_v7 = vrot.slane %v1132_v35, 4 }
 0x1ee   : > { %v2057_v54 = vsel %vm1190_vm0, %v2055_v44, %v1201_v27  ;;  %v2575_v29 = vmul.f32 %v6372_v49, %v2547_v62  ;;  %v1628_v58 = vadd.f32 %v1532_v46, %v1331_v17  ;;  %v1630_v4 = vadd.f32 %v1533_v37, %v1333_v20 }
 0x1ef   : > { %v895_v59 = vmin.f32 %v863_v31, 6.0  ;;  %v896_v5 = vmin.f32 %v864_v60, 6.0  ;;  %v1629_v30 = vadd.f32 %v1534_v53, %v1332_v16  ;;  %v1821_v15 = vsel %vm1806_vm2, %v1818_v28, %v1820_v24  ;;  %v6604_v24 = vpop.f32.mrb[29].mxu0 }
 0x1f0   : > { %v6591_v45 = vunpack.c.l.bf16 %v1201_v27  ;;  %v6594_v12 = vmul.f32 %v6403_v23, %v3403_v0  ;;  %v6596_v25 = vunpack.c.l.bf16 %v1095_v18  ;;  %v6598_v50 = vunpack.c.h.bf16 %v1095_v18  ;;  %9416 = vst [vmem:[#allocation23_spill] sm:$0xff] %v6604_v24 }
 0x1f1   : > { %v2135_v44 = vunpack.c.l.bf16 %v2057_v54  ;;  %v2136_v46 = vunpack.c.h.bf16 %v2057_v54  ;;  %v1819_v37 = vsel %vm1806_vm2, %v1817_v13, %v1818_v28  ;;  %v1691_v62 = vunpack.c.l.bf16 %v6588_v11  ;;  %v6610_v54 = vpop.f32.mrb[30].mxu0 }
 0x1f2   : > { %v2676_v17 = vrot.slane %v2575_v29, 2  ;;  %v2909_v20 = vrot.slane %v2844_v2, 4  ;;  %v1941_v35 = vadd.f32 %v1817_v13, %v1628_v58  ;;  %v1943_v31 = vadd.f32 %v1821_v15, %v1630_v4  ;;  %9417 = vst [vmem:[#allocation24_spill] sm:$0xff] %v6610_v54 }
 0x1f3   : > { %v927_v60 = vmul.f32 %v895_v59, %v6544_v55  ;;  %v928_v16 = vmul.f32 %v896_v5, %v6552_v47  ;;  %v1942_v0 = vadd.f32 %v1819_v37, %v1629_v30  ;;  %v2189_v18 = vmul.f32 %v6415_v43, %v2135_v44 }
 0x1f4   : > { %v2190_v53 = vmul.f32 %v6415_v43, %v2136_v46  ;;  %v2191_v28 = vmul.f32 %v6415_v43, %v6591_v45  ;;  %v2323_v13 = vmul.f32 %v6410_v40, %v6596_v25  ;;  %v2324_v55 = vmul.f32 %v6410_v40, %v6598_v50 }
 0x1f5   : > { %v2573_v47 = vmul.f32 %v6372_v49, %v6596_v25  ;;  %v3528_v30 = vrot.slane %v6594_v12, 2  ;;  %v2237_v29 = vadd.f32 %v2189_v18, %v1941_v35  ;;  %v2574_v11 = vmul.f32 %v6372_v49, %v6598_v50 }
 0x1f6   : > { %v2238_v58 = vadd.f32 %v2190_v53, %v1942_v0  ;;  %v2239_v4 = vadd.f32 %v2191_v28, %v1943_v31  ;;  %v2389_v2 = vrot.slane %v2323_v13, 1  ;;  %v2390_v59 = vrot.slane %v2324_v55, 1 }
 0x1f7   : > { %v959_v5 = vmul.f32 0.16666667, %v927_v60  ;;  %v960_v15 = vmul.f32 0.16666667, %v928_v16  ;;  %v1202_v44 = vsel %vm1190_vm0, %v1200_v7, %v1201_v27  ;;  %v2673_v46 = vrot.slane %v2573_v47, 2 }
 0x1f8   : > { %v2674_v37 = vrot.slane %v2574_v11, 2  ;;  %v2911_v54 = vsel %vm1190_vm0, %v2909_v20, %v1201_v27  ;;  %v2391_v24 = vsel %vm1525_vm1, %v2389_v2, %v2390_v59  ;;  %v2485_v42 = vadd.f32 %v2389_v2, %v2237_v29 }
 0x1f9   : > { %v2487_v12 = vadd.f32 %v2390_v59, %v2239_v4  ;;  %v2989_v35 = vunpack.c.l.bf16 %v2911_v54  ;;  %v2486_v0 = vadd.f32 %v2391_v24, %v2238_v58  ;;  %v2990_v53 = vunpack.c.h.bf16 %v2911_v54 }
 0x1fa   : > { %v2675_v31 = vsel %vm1806_vm2, %v2673_v46, %v2674_v37  ;;  %v2677_v18 = vsel %vm1806_vm2, %v2674_v37, %v2676_v17  ;;  %v6626_v28 = vadd.f32 %v2673_v46, %v2485_v42  ;;  %v3045_v27 = vmul.f32 %v6498_v21, %v6591_v45 }
 0x1fb   : > { %v6628_v60 = vadd.f32 %v2677_v18, %v2487_v12  ;;  %v3043_v7 = vmul.f32 %v6498_v21, %v2989_v35  ;;  %v6633_v20 = vadd.f32 %v2675_v31, %v2486_v0  ;;  %v3044_v16 = vmul.f32 %v6498_v21, %v2990_v53  ;;  %v1991_v35 = vld [vmem:[#allocation2 + $0x60] sm:$0x80] }
 0x1fc   : > { %v3178_v24 = vmul.f32 %v6511_v48, %v6596_v25  ;;  %v3179_v17 = vmul.f32 %v6511_v48, %v6598_v50  ;;  %v3093_v54 = vadd.f32 %v3045_v27, %v6532_v10  ;;  %v3427_v13 = vmul.f32 %v6403_v23, %v6596_v25 }
 0x1fd   : > { %v3091_v42 = vadd.f32 %v3043_v7, %v6524_v1  ;;  %v3428_v55 = vmul.f32 %v6403_v23, %v6598_v50  ;;  %v3092_v47 = vadd.f32 %v3044_v16, %v6530_v56  ;;  %v1096_v4 = vpack.c.bf16 %v960_v15, %v959_v5 }
 0x1fe   : > { %v3243_v29 = vrot.slane %v3178_v24, 1  ;;  %v3244_v58 = vrot.slane %v3179_v17, 1  ;;  %v1280_v11 = vunpack.c.l.bf16 %v1202_v44  ;;  %v1467_v2 = vmul.f32 %v6337_v52, %v6596_v25 }
 0x1ff   : > { %v3525_v59 = vrot.slane %v3427_v13, 2  ;;  %v3526_v46 = vrot.slane %v3428_v55, 2  ;;  %v1468_v1 = vmul.f32 %v6337_v52, %v6598_v50  ;;  %v1721_v0 = vmul.f32 %v6346_v61, %v1691_v62 }
 0x200   : > { %v3245_v10 = vsel %vm1525_vm1, %v3243_v29, %v3244_v58  ;;  %v3339_v37 = vadd.f32 %v3243_v29, %v3091_v42  ;;  %v3341_v12 = vadd.f32 %v3244_v58, %v3093_v54  ;;  %v1720_v5 = vmul.f32 %v6346_v61, %v6598_v50  ;;  %v2532_v50 = vld [vmem:[#allocation2 + $0x70] sm:$0x1] }
 0x201   : > { %v3340_v56 = vadd.f32 %v3245_v10, %v3092_v47  ;;  %v3529_v31 = vsel %vm1806_vm2, %v3526_v46, %v3528_v30  ;;  %v3527_v15 = vsel %vm1806_vm2, %v3525_v59, %v3526_v46  ;;  %v1281_v7 = vunpack.c.h.bf16 %v1202_v44  ;;  %v2846_v46 = vld [vmem:[#allocation2 + $0x60] sm:$0x80] }
 0x202   : > { %v6657_v18 = vadd.f32 %v3525_v59, %v3339_v37  ;;  %v6659_v53 = vadd.f32 %v3529_v31, %v3341_v12  ;;  %v2058_v16 = vrot.slane %v1991_v35, 4  ;;  %v1334_v24 = vmul.f32 %v6349_v6, %v1280_v11 }
 0x203   : > { %v6661_v27 = vadd.f32 %v3527_v15, %v3340_v56  ;;  %v1535_v17 = vrot.slane %v1467_v2, 1  ;;  %v1536_v62 = vrot.slane %v1468_v1, 1  ;;  %v6664_v42 = vrot.slane %v1096_v4, 4  ;;  %v6674_v2 = vpop.f32.mrb[31].mxu0  ;;  %v3388_v1 = vld [vmem:[#allocation2 + $0x70] sm:$0x1] }
 0x204   : > { %v1336_v30 = vmul.f32 %v6349_v6, %v6591_v45  ;;  %v1719_v54 = vmul.f32 %v6346_v61, %v6596_v25  ;;  %v1823_v13 = vrot.slane %v1720_v5, 2  ;;  %v1825_v55 = vrot.slane %v1721_v0, 2  ;;  %9418 = vst [vmem:[#allocation25_spill] sm:$0xff] %v6674_v2 }
 0x205   : > { %v1335_v44 = vmul.f32 %v6349_v6, %v1281_v7  ;;  %v1537_v47 = vsel %vm1525_vm1, %v1535_v17, %v1536_v62  ;;  %v1631_v29 = vadd.f32 %v1535_v17, %v1334_v24  ;;  %v2060_v58 = vsel %vm1190_vm0, %v2058_v16, %v6664_v42  ;;  %v6690_v17 = vld [vmem:[#allocation2 + $0x70] sm:$0x1] }
 0x206   : > { %v2548_v11 = vunpack.c.l.bf16 %v2532_v50  ;;  %v1633_v59 = vadd.f32 %v1536_v62, %v1336_v30  ;;  %v6677_v45 = vunpack.c.l.bf16 %v6664_v42  ;;  %v6681_v25 = vadd.f32 %v6325_v38, %v6443_v26 }
 0x207   : > { %v1822_v10 = vrot.slane %v1719_v54, 2  ;;  %v1826_v37 = vsel %vm1806_vm2, %v1823_v13, %v1825_v55  ;;  %v6684_v12 = vunpack.c.l.bf16 %v1096_v4  ;;  %v6686_v35 = vunpack.c.h.bf16 %v1096_v4  ;;  %v6695_v4 = vpop.f32.mrb[32].mxu0 }
 0x208   : > { %v3698_v0 = vsub.s32 1, %v6313_v34  ;;  %v1632_v56 = vadd.f32 %v1537_v47, %v1335_v44  ;;  %v2138_v31 = vunpack.c.l.bf16 %v2060_v58  ;;  %v2578_v15 = vmul.f32 %v6372_v49, %v2548_v11  ;;  %9419 = vst [vmem:[#allocation26_spill] sm:$0xff] %v6695_v4 }
 0x209   : > { %v1944_v5 = vadd.f32 %v1822_v10, %v1631_v29  ;;  %v2912_v7 = vrot.slane %v2846_v46, 4  ;;  %v3404_v16 = vunpack.c.l.bf16 %v3388_v1  ;;  %v1946_v24 = vadd.f32 %v1826_v37, %v1633_v59 }
 0x20a   : > { %v2139_v26 = vunpack.c.h.bf16 %v2060_v58  ;;  %v2192_v62 = vmul.f32 %v6415_v43, %v2138_v31  ;;  %v2194_v30 = vmul.f32 %v6415_v43, %v6677_v45  ;;  %v1824_v50 = vsel %vm1806_vm2, %v1822_v10, %v1823_v13  ;;  %v6708_v10 = vpop.f32.mrb[33].mxu0 }
 0x20b   : > { %v2325_v54 = vmul.f32 %v6410_v40, %v6684_v12  ;;  %v2326_v55 = vmul.f32 %v6410_v40, %v6686_v35  ;;  %v833_v44 = vadd.f32 3.0, %v6681_v25  ;;  %v1945_v47 = vadd.f32 %v1824_v50, %v1632_v56  ;;  %9421 = vst [vmem:[#allocation28_spill] sm:$0xff] %v6708_v10 }
 0x20c   : > { %v2193_v29 = vmul.f32 %v6415_v43, %v2139_v26  ;;  %v2240_v58 = vadd.f32 %v2192_v62, %v1944_v5  ;;  %v2242_v11 = vadd.f32 %v2194_v30, %v1946_v24  ;;  %v6705_v59 = vrot.slane %v6319_v36, %v3698_v0  ;;  %v6714_v26 = vpop.f32.mrb[34].mxu0 }
 0x20d   : > { %v1692_v46 = vunpack.c.l.bf16 %v6690_v17  ;;  %v2392_v1 = vrot.slane %v2325_v54, 1  ;;  %v2393_v13 = vrot.slane %v2326_v55, 1  ;;  %v2576_v31 = vmul.f32 %v6372_v49, %v6684_v12  ;;  %9422 = vst [vmem:[#allocation29_spill] sm:$0xff] %v6714_v26 }
 0x20e   : > { %9420 = vst [vmem:[#allocation27_spill] sm:$0xff] %v6705_v59  ;;  %v2241_v37 = vadd.f32 %v2193_v29, %v1945_v47  ;;  %v2577_v56 = vmul.f32 %v6372_v49, %v6686_v35  ;;  %v2681_v50 = vrot.slane %v2578_v15, 2  ;;  %v2914_v24 = vsel %vm1190_vm0, %v2912_v7, %v6664_v42 }
 0x20f   : > { %v2394_v5 = vsel %vm1525_vm1, %v2392_v1, %v2393_v13  ;;  %v2488_v36 = vadd.f32 %v2392_v1, %v2240_v58  ;;  %v2490_v0 = vadd.f32 %v2393_v13, %v2242_v11  ;;  %v2678_v62 = vrot.slane %v2576_v31, 2 }
 0x210   : > { %v2489_v17 = vadd.f32 %v2394_v5, %v2241_v37  ;;  %v3432_v30 = vmul.f32 %v6403_v23, %v3404_v16  ;;  %v865_v54 = vmax.f32 %v833_v44, 0.0  ;;  %v2679_v55 = vrot.slane %v2577_v56, 2 }
 0x211   : > { %v2992_v47 = vunpack.c.l.bf16 %v2914_v24  ;;  %v2993_v29 = vunpack.c.h.bf16 %v2914_v24  ;;  %v802_v15 = vadd.f32 %v6325_v38, %v6450_v57  ;;  %v6722_v34 = vadd.f32 %v2678_v62, %v2488_v36 }
 0x212   : > { %v3048_v58 = vmul.f32 %v6498_v21, %v6677_v45  ;;  %v3180_v11 = vmul.f32 %v6511_v48, %v6684_v12  ;;  %v3181_v7 = vmul.f32 %v6511_v48, %v6686_v35  ;;  %v2680_v16 = vsel %vm1806_vm2, %v2678_v62, %v2679_v55 }
 0x213   : > { %v2682_v44 = vsel %vm1806_vm2, %v2679_v55, %v2681_v50  ;;  %v3046_v1 = vmul.f32 %v6498_v21, %v2992_v47  ;;  %v3047_v13 = vmul.f32 %v6498_v21, %v2993_v29  ;;  %v6734_v57 = vadd.f32 %v2680_v16, %v2489_v17  ;;  %v1134_v50 = vld [vmem:[#allocation2 + $0x60] sm:$0x80] }
 0x214   : > { %v6736_v37 = vadd.f32 %v2682_v44, %v2490_v0  ;;  %v3096_v31 = vadd.f32 %v3048_v58, %v6628_v60  ;;  %v3246_v56 = vrot.slane %v3180_v11, 1  ;;  %v3247_v24 = vrot.slane %v3181_v7, 1 }
 0x215   : > { %v3094_v5 = vadd.f32 %v3046_v1, %v6626_v28  ;;  %v3095_v36 = vadd.f32 %v3047_v13, %v6633_v20  ;;  %v3430_v62 = vmul.f32 %v6403_v23, %v6684_v12  ;;  %v3431_v55 = vmul.f32 %v6403_v23, %v6686_v35 }
 0x216   : > { %v3533_v47 = vrot.slane %v3432_v30, 2  ;;  %v897_v17 = vmin.f32 %v865_v54, 6.0  ;;  %v834_v29 = vadd.f32 3.0, %v802_v15  ;;  %v3248_v0 = vsel %vm1525_vm1, %v3246_v56, %v3247_v24 }
 0x217   : > { %v3342_v16 = vadd.f32 %v3246_v56, %v3094_v5  ;;  %v3344_v60 = vadd.f32 %v3247_v24, %v3096_v31  ;;  %v3530_v58 = vrot.slane %v3430_v62, 2  ;;  %v3343_v28 = vadd.f32 %v3248_v0, %v3095_v36 }
 0x218   : > { %v3531_v20 = vrot.slane %v3431_v55, 2  ;;  %v866_v11 = vmax.f32 %v834_v29, 0.0  ;;  %v1203_v7 = vrot.slane %v1134_v50, 4  ;;  %v998_v1 = vadd.f32 %v6329_v39, %v6456_v3  ;;  %v6770_v50 = vld [vmem:[#allocation2 + $0x78] sm:$0x80] }
 0x219   : > { %v6746_v44 = vadd.f32 %v3530_v58, %v3342_v16  ;;  %v999_v30 = vadd.f32 %v6329_v39, %v6481_v33  ;;  %v929_v31 = vmul.f32 %v897_v17, %v6681_v25  ;;  %v6757_v5 = vadd.f32 %v6705_v59, %v6560_v22 }
 0x21a   : > { %v3532_v54 = vsel %vm1806_vm2, %v3530_v58, %v3531_v20  ;;  %v3534_v13 = vsel %vm1806_vm2, %v3531_v20, %v3533_v47  ;;  %v898_v56 = vmin.f32 %v866_v11, 6.0  ;;  %v1724_v36 = vmul.f32 %v6346_v61, %v1692_v46  ;;  %1030 = vst [vmem:[%s6339_s28 + $0x48] sm:$0xff] %v998_v1  ;;  %v2533_v46 = vld [vmem:[#allocation2 + $0x88] sm:$0x1] }
 0x21b   : > { %v6760_v24 = vadd.f32 %v3532_v54, %v3343_v28  ;;  %v6762_v62 = vadd.f32 %v3534_v13, %v3344_v60  ;;  %1031 = vst [vmem:[%s6339_s28 + $0x50] sm:$0xff] %v999_v30  ;;  %v6768_v3 = vadd.f32 %v6705_v59, %v6563_v41  ;;  %v1205_v25 = vsel %vm1190_vm0, %v1203_v7, %v6664_v42  ;;  %v1993_v54 = vld [vmem:[#allocation2 + $0x78] sm:$0x80] }
 0x21c   : > { %v930_v33 = vmul.f32 %v898_v56, %v802_v15  ;;  %v1470_v22 = vmul.f32 %v6337_v52, %v6686_v35  ;;  %v6778_v55 = vadd.f32 %v6325_v38, %v6478_v14  ;;  %v1469_v47 = vmul.f32 %v6337_v52, %v6684_v12  ;;  %v6793_v52 = vld [vmem:[#allocation2 + $0x88] sm:$0x1] }
 0x21d   : > { %v6784_v41 = vmul.f32 %v6346_v61, %v6686_v35  ;;  %v961_v15 = vmul.f32 0.16666667, %v929_v31  ;;  %v6788_v42 = vadd.f32 %v6705_v59, %v6569_v9  ;;  %v3748_v29 = vadd.f32 3.0, %v6757_v5  ;;  %v3389_v61 = vld [vmem:[#allocation2 + $0x88] sm:$0x1] }
 0x21e   : > { %v962_v17 = vmul.f32 0.16666667, %v930_v33  ;;  %v1830_v0 = vrot.slane %v1724_v36, 2  ;;  %v3750_v14 = vadd.f32 3.0, %v6768_v3  ;;  %v1283_v60 = vunpack.c.l.bf16 %v1205_v25 }
 0x21f   : > { %v2549_v28 = vunpack.c.l.bf16 %v2533_v46  ;;  %v1284_v35 = vunpack.c.h.bf16 %v1205_v25  ;;  %v1339_v20 = vmul.f32 %v6349_v6, %v6677_v45  ;;  %v1539_v11 = vrot.slane %v1470_v22, 1  ;;  %v6807_v45 = vpop.f32.mrb[35].mxu0  ;;  %v6810_v46 = vld [vmem:[#allocation8 + $0x2] ss:$0 sm:$0xff] }
 0x220   : > { %v1097_v58 = vpack.c.bf16 %v962_v17, %v961_v15  ;;  %v835_v9 = vadd.f32 3.0, %v6778_v55  ;;  %v1538_v7 = vrot.slane %v1469_v47, 1  ;;  %v1828_v1 = vrot.slane %v6784_v41, 2  ;;  %9423 = vst [vmem:[#allocation30_spill] sm:$0xff] %v6807_v45 }
 0x221   : > { %v6803_v13 = vadd.f32 %v6325_v38, %v6486_v19  ;;  %v3749_v31 = vadd.f32 3.0, %v6788_v42  ;;  %v3796_v56 = vmax.f32 %v3748_v29, 0.0  ;;  %v3405_v33 = vunpack.c.l.bf16 %v3389_v61  ;;  %v2848_v19 = vld [vmem:[#allocation2 + $0x78] sm:$0x80] }
 0x222   : > { %v6799_v30 = vrot.slane %v1097_v58, 4  ;;  %v3798_v25 = vmax.f32 %v3750_v14, 0.0  ;;  %v1337_v22 = vmul.f32 %v6349_v6, %v1283_v60  ;;  %v1722_v47 = vmul.f32 %v6810_v46, %v6684_v12 }
 0x223   : > { %v6815_v41 = vmul.f32 %v6372_v49, %v2549_v28  ;;  %v1338_v15 = vmul.f32 %v6349_v6, %v1284_v35  ;;  %v1636_v17 = vadd.f32 %v1539_v11, %v1339_v20  ;;  %v2061_v29 = vrot.slane %v1993_v54, 4 }
 0x224   : > { %v867_v36 = vmax.f32 %v835_v9, 0.0  ;;  %v1540_v61 = vsel %vm1525_vm1, %v1538_v7, %v1539_v11  ;;  %v1831_v14 = vsel %vm1806_vm2, %v1828_v1, %v1830_v0  ;;  %v6821_v60 = vunpack.c.l.bf16 %v6799_v30  ;;  %v6828_v9 = vpop.f32.mrb[36].mxu0 }
 0x225   : > { %v836_v16 = vadd.f32 3.0, %v6803_v13  ;;  %v3797_v45 = vmax.f32 %v3749_v31, 0.0  ;;  %v3844_v12 = vmin.f32 %v3796_v56, 6.0  ;;  %v2915_v26 = vrot.slane %v2848_v19, 4  ;;  %9424 = vst [vmem:[#allocation31_spill] sm:$0xff] %v6828_v9 }
 0x226   : > { %v6825_v28 = vmul.f32 %v6403_v23, %v3405_v33  ;;  %v3846_v4 = vmin.f32 %v3798_v25, 6.0  ;;  %v1634_v6 = vadd.f32 %v1538_v7, %v1337_v22  ;;  %v1827_v35 = vrot.slane %v1722_v47, 2  ;;  %v7035_v9 = vld [vmem:[#allocation8 + $0x7] ss:$0 sm:$0xff] }
 0x227   : > { %v2686_v20 = vrot.slane %v6815_v41, 2  ;;  %v1635_v11 = vadd.f32 %v1540_v61, %v1338_v15  ;;  %v1949_v0 = vadd.f32 %v1831_v14, %v1636_v17  ;;  %v6830_v54 = vunpack.c.l.bf16 %v1097_v58 }
 0x228   : > { %v899_v10 = vmin.f32 %v867_v36, 6.0  ;;  %v6832_v2 = vunpack.c.h.bf16 %v1097_v58  ;;  %v2063_v31 = vsel %vm1190_vm0, %v2061_v29, %v6799_v30  ;;  %v2197_v56 = vmul.f32 %v6415_v43, %v6821_v60 }
 0x229   : > { %v868_v33 = vmax.f32 %v836_v16, 0.0  ;;  %v3845_v7 = vmin.f32 %v3797_v45, 6.0  ;;  %v3892_v25 = vmul.f32 %v3844_v12, %v6757_v5  ;;  %v2141_v22 = vunpack.c.l.bf16 %v2063_v31 }
 0x22a   : > { %v3538_v47 = vrot.slane %v6825_v28, 2  ;;  %v6841_v41 = vmul.f32 %v3846_v4, %v6768_v3  ;;  %v1829_v36 = vsel %vm1806_vm2, %v1827_v35, %v1828_v1  ;;  %v2142_v58 = vunpack.c.h.bf16 %v2063_v31  ;;  %v6855_v28 = vpop.f32.mrb[37].mxu0 }
 0x22b   : > { %v2245_v19 = vadd.f32 %v2197_v56, %v1949_v0  ;;  %v1947_v15 = vadd.f32 %v1827_v35, %v1634_v6  ;;  %v1948_v17 = vadd.f32 %v1829_v36, %v1635_v11  ;;  %v2195_v29 = vmul.f32 %v6415_v43, %v2141_v22 }
 0x22c   : > { %v2327_v16 = vmul.f32 %v6410_v40, %v6830_v54  ;;  %v2196_v45 = vmul.f32 %v6415_v43, %v2142_v58  ;;  %v2328_v5 = vmul.f32 %v6410_v40, %v6832_v2  ;;  %v931_v61 = vmul.f32 %v899_v10, %v6778_v55  ;;  %v6861_v10 = vpop.f32.mrb[38].mxu0 }
 0x22d   : > { %v900_v4 = vmin.f32 %v868_v33, 6.0  ;;  %v2243_v3 = vadd.f32 %v2195_v29, %v1947_v15  ;;  %v2579_v1 = vmul.f32 %v6372_v49, %v6830_v54  ;;  %v2580_v12 = vmul.f32 %v6372_v49, %v6832_v2  ;;  %9425 = vst [vmem:[#allocation32_spill] sm:$0xff] %v6861_v10 }
 0x22e   : > { %v2395_v14 = vrot.slane %v2327_v16, 1  ;;  %v2244_v6 = vadd.f32 %v2196_v45, %v1948_v17  ;;  %v2396_v35 = vrot.slane %v2328_v5, 1  ;;  %v2917_v43 = vsel %vm1190_vm0, %v2915_v26, %v6799_v30 }
 0x22f   : > { %v3051_v40 = vmul.f32 %v6498_v21, %v6821_v60  ;;  %v2683_v11 = vrot.slane %v2579_v1, 2  ;;  %v2684_v0 = vrot.slane %v2580_v12, 2  ;;  %v2995_v31 = vunpack.c.l.bf16 %v2917_v43 }
 0x230   : > { %v2491_v55 = vadd.f32 %v2395_v14, %v2243_v3  ;;  %v2397_v56 = vsel %vm1525_vm1, %v2395_v14, %v2396_v35  ;;  %v2493_v33 = vadd.f32 %v2396_v35, %v2245_v19  ;;  %v2996_v49 = vunpack.c.h.bf16 %v2917_v43 }
 0x231   : > { %v3099_v22 = vadd.f32 %v3051_v40, %v6736_v37  ;;  %v2492_v36 = vadd.f32 %v2397_v56, %v2244_v6  ;;  %v2685_v58 = vsel %vm1806_vm2, %v2683_v11, %v2684_v0  ;;  %v2687_v26 = vsel %vm1806_vm2, %v2684_v0, %v2686_v20 }
 0x232   : > { %v6867_v15 = vadd.f32 %v2683_v11, %v2491_v55  ;;  %v6869_v17 = vadd.f32 %v2687_v26, %v2493_v33  ;;  %v3049_v29 = vmul.f32 %v6498_v21, %v2995_v31  ;;  %v3050_v16 = vmul.f32 %v6498_v21, %v2996_v49 }
 0x233   : > { %v3182_v45 = vmul.f32 %v6511_v48, %v6830_v54  ;;  %v6875_v19 = vadd.f32 %v2685_v58, %v2492_v36  ;;  %v3183_v37 = vmul.f32 %v6511_v48, %v6832_v2  ;;  %v3433_v5 = vmul.f32 %v6403_v23, %v6830_v54 }
 0x234   : > { %v3434_v20 = vmul.f32 %v6403_v23, %v6832_v2  ;;  %v3893_v3 = vmul.f32 %v3845_v7, %v6788_v42  ;;  %v3097_v14 = vadd.f32 %v3049_v29, %v6722_v34  ;;  %v3098_v21 = vadd.f32 %v3050_v16, %v6734_v57  ;;  %v6893_v42 = vld [vmem:[#allocation8 + $0x1] ss:$0 sm:$0xff]  ;;  %v1995_v29 = vld [vmem:[#allocation2 + $0x90] sm:$0x80] }
 0x235   : > { %v3249_v1 = vrot.slane %v3182_v45, 1  ;;  %v3250_v12 = vrot.slane %v3183_v37, 1  ;;  %v3535_v6 = vrot.slane %v3433_v5, 2  ;;  %v932_v43 = vmul.f32 %v900_v4, %v6803_v13  ;;  %v2534_v37 = vld [vmem:[#allocation2 + $0xa0] sm:$0x1] }
 0x236   : > { %v3536_v35 = vrot.slane %v3434_v20, 2  ;;  %v6887_v40 = vmul.f32 0.16666667, %v3892_v25  ;;  %v9427_v55 = vrot.slane %v6770_v50, 4  ;;  %v963_v0 = vmul.f32 0.16666667, %v931_v61 }
 0x237   : > { %v3345_v23 = vadd.f32 %v3249_v1, %v3097_v14  ;;  %v1471_v34 = vmul.f32 %v6893_v42, %v6830_v54  ;;  %v1472_v57 = vmul.f32 %v6893_v42, %v6832_v2  ;;  %v3251_v7 = vsel %vm1525_vm1, %v3249_v1, %v3250_v12  ;;  %v6943_v1 = vld [vmem:[#allocation8] ss:$0 sm:$0xff] }
 0x238   : > { %9426 = vst [vmem:[#allocation33_spill] sm:$0xff] %v6887_v40  ;;  %v1208_v11 = vsel %vm1190_vm0, %v9427_v55, %v6799_v30  ;;  %v3347_v13 = vadd.f32 %v3250_v12, %v3099_v22  ;;  %v3346_v25 = vadd.f32 %v3251_v7, %v3098_v21  ;;  %v3539_v4 = vsel %vm1806_vm2, %v3536_v35, %v3538_v47 }
 0x239   : > { %v6901_v50 = vadd.f32 %v3535_v6, %v3345_v23  ;;  %v964_v30 = vmul.f32 0.16666667, %v932_v43  ;;  %v6903_v31 = vmul.f32 0.16666667, %v3893_v3  ;;  %v3537_v61 = vsel %vm1806_vm2, %v3535_v6, %v3536_v35 }
 0x23a   : > { %v6906_v56 = vadd.f32 %v3539_v4, %v3347_v13  ;;  %v1000_v33 = vadd.f32 %v6329_v39, %v6492_v8  ;;  %v6912_v49 = vadd.f32 %v6705_v59, %v6657_v18  ;;  %v6914_v22 = vadd.f32 %v3537_v61, %v3346_v25 }
 0x23b   : > { %9428 = vst [vmem:[#allocation34_spill] sm:$0xff] %v6903_v31  ;;  %v1098_v47 = vpack.c.bf16 %v964_v30, %v963_v0  ;;  %v1001_v36 = vadd.f32 %v6329_v39, %v6518_v63  ;;  %v1286_v58 = vunpack.c.l.bf16 %v1208_v11  ;;  %v1287_v26 = vunpack.c.h.bf16 %v1208_v11  ;;  %v6952_v11 = vpop.f32.mrb[39].mxu0  ;;  %v3390_v30 = vld [vmem:[#allocation2 + $0xa0] sm:$0x1] }
 0x23c   : > { %1032 = vst [vmem:[%s6339_s28 + $0x58] sm:$0xff] %v1000_v33  ;;  %v1541_v16 = vrot.slane %v1471_v34, 1  ;;  %v1542_v45 = vrot.slane %v1472_v57, 1  ;;  %v1725_v8 = vmul.f32 %v6810_v46, %v6830_v54  ;;  %v1726_v18 = vmul.f32 %v6810_v46, %v6832_v2  ;;  %9431 = vst [vmem:[#allocation36_spill] sm:$0xff] %v6952_v11 }
 0x23d   : > { %1033 = vst [vmem:[%s6339_s28 + $0x60] sm:$0xff] %v1001_v36  ;;  %v6925_v5 = vmul.f32 0.16666667, %v6841_v41  ;;  %v4037_v63 = vrot.slane %v6887_v40, 7  ;;  %v9318_v20 = vrot.slane %v6903_v31, 7  ;;  %v9430_v3 = vunpack.c.l.bf16 %v6793_v52 }
 0x23e   : > { %v6934_v21 = vadd.f32 %v6705_v59, %v6661_v27  ;;  %v6938_v2 = vadd.f32 %v6705_v59, %v6659_v53  ;;  %v6941_v54 = vadd.f32 3.0, %v6912_v49  ;;  %v2064_v41 = vrot.slane %v1995_v29, 4 }
 0x23f   : > { %9429 = vst [vmem:[#allocation35_spill] sm:$0xff] %v6925_v5  ;;  %v1727_v14 = vmul.f32 %v6810_v46, %v9430_v3  ;;  %v1340_v12 = vmul.f32 %v6943_v1, %v1286_v58  ;;  %v1341_v52 = vmul.f32 %v6943_v1, %v1287_v26  ;;  %v6947_v6 = vrot.slane %v1098_v47, 4  ;;  %v6974_v58 = vld [vmem:[#allocation2 + $0x90] sm:$0x80]  ;;  %v6976_v26 = vld [vmem:[#allocation8 + $0x5] ss:$0 sm:$0xff] }
 0x240   : > { %v2550_v35 = vunpack.c.l.bf16 %v2534_v37  ;;  %v1342_v27 = vmul.f32 %v6943_v1, %v6821_v60  ;;  %v1543_v43 = vsel %vm1525_vm1, %v1541_v16, %v1542_v45  ;;  %v1832_v53 = vrot.slane %v1725_v8, 2  ;;  %v2850_v37 = vld [vmem:[#allocation2 + $0x90] sm:$0x80] }
 0x241   : > { %v1833_v55 = vrot.slane %v1726_v18, 2  ;;  %v1835_v23 = vrot.slane %v1727_v14, 2  ;;  %v6957_v0 = vsel %vm4036_vm3, %v4037_v63, %v9318_v20  ;;  %v6961_v57 = vadd.f32 3.0, %v6938_v2 }
 0x242   : > { %v6965_v60 = vadd.f32 %v6325_v38, %v6514_v32  ;;  %v6968_v7 = vadd.f32 3.0, %v6934_v21  ;;  %v1637_v13 = vadd.f32 %v1541_v16, %v1340_v12  ;;  %v1638_v25 = vadd.f32 %v1543_v43, %v1341_v52 }
 0x243   : > { %v2066_v4 = vsel %vm1190_vm0, %v2064_v41, %v6947_v6  ;;  %v1639_v33 = vadd.f32 %v1542_v45, %v1342_v27  ;;  %v1834_v36 = vsel %vm1806_vm2, %v1832_v53, %v1833_v55  ;;  %v2584_v32 = vmul.f32 %v6976_v26, %v2550_v35  ;;  %v6988_v41 = vpop.f32.mrb[40].mxu0 }
 0x244   : > { %v1836_v29 = vsel %vm1806_vm2, %v1833_v55, %v1835_v23  ;;  %v6981_v16 = vunpack.c.l.bf16 %v6947_v6  ;;  %v6983_v8 = vunpack.c.l.bf16 %v1098_v47  ;;  %v6985_v18 = vunpack.c.h.bf16 %v1098_v47  ;;  %9432 = vst [vmem:[#allocation37_spill] sm:$0xff] %v6988_v41  ;;  %v6995_v55 = vld [vmem:[#allocation8 + $0x3] ss:$0 sm:$0xff] }
 0x245   : > { %v2144_v63 = vunpack.c.l.bf16 %v2066_v4  ;;  %v2145_v45 = vunpack.c.h.bf16 %v2066_v4  ;;  %v3406_v3 = vunpack.c.l.bf16 %v3390_v30  ;;  %v837_v14 = vadd.f32 3.0, %v6965_v60 }
 0x246   : > { %v1950_v12 = vadd.f32 %v1832_v53, %v1637_v13  ;;  %v1951_v52 = vadd.f32 %v1834_v36, %v1638_v25  ;;  %v1209_v35 = vrot.slane %v6974_v58, 4  ;;  %v6993_v27 = vadd.f32 %v6325_v38, %v6528_v51  ;;  %v7001_v53 = vld [vmem:[#allocation8 + $0x4] ss:$0 sm:$0xff]  ;;  %v7007_v25 = vpop.f32.mrb[41].mxu0  ;;  %v7011_v58 = vld [vmem:[#allocation8 + $0x8] ss:$0 sm:$0xff] }
 0x247   : > { %v1952_v43 = vadd.f32 %v1836_v29, %v1639_v33  ;;  %v2198_v47 = vmul.f32 %v6995_v55, %v2144_v63  ;;  %v2691_v23 = vrot.slane %v2584_v32, 2  ;;  %v2918_v4 = vrot.slane %v2850_v37, 4  ;;  %9433 = vst [vmem:[#allocation38_spill] sm:$0xff] %v7007_v25  ;;  %v7014_v37 = vpop.f32.mrb[42].mxu0 }
 0x248   : > { %v2199_v30 = vmul.f32 %v6995_v55, %v2145_v45  ;;  %v2200_v20 = vmul.f32 %v6995_v55, %v6981_v16  ;;  %v2329_v13 = vmul.f32 %v7001_v53, %v6983_v8  ;;  %v2330_v51 = vmul.f32 %v7001_v53, %v6985_v18  ;;  %9434 = vst [vmem:[#allocation39_spill] sm:$0xff] %v7014_v37 }
 0x249   : > { %v2246_v33 = vadd.f32 %v2198_v47, %v1950_v12  ;;  %v2582_v36 = vmul.f32 %v6976_v26, %v6983_v8  ;;  %v3438_v32 = vmul.f32 %v7011_v58, %v3406_v3  ;;  %v869_v29 = vmax.f32 %v837_v14, 0.0  ;;  %v7021_v3 = vld [vmem:[#allocation8 + $0x6] ss:$0 sm:$0xff] }
 0x24a   : > { %v2247_v63 = vadd.f32 %v2199_v30, %v1951_v52  ;;  %v2248_v45 = vadd.f32 %v2200_v20, %v1952_v43  ;;  %v2398_v34 = vrot.slane %v2329_v13, 1  ;;  %v838_v61 = vadd.f32 3.0, %v6993_v27 }
 0x24b   : > { %v2399_v40 = vrot.slane %v2330_v51, 1  ;;  %v2583_v25 = vmul.f32 %v6976_v26, %v6985_v18  ;;  %v2688_v12 = vrot.slane %v2582_v36, 2  ;;  %v2920_v47 = vsel %vm1190_vm0, %v2918_v4, %v6947_v6 }
 0x24c   : > { %v2494_v41 = vadd.f32 %v2398_v34, %v2246_v33  ;;  %v2998_v11 = vunpack.c.l.bf16 %v2920_v47  ;;  %v2999_v10 = vunpack.c.h.bf16 %v2920_v47  ;;  %v3054_v14 = vmul.f32 %v7021_v3, %v6981_v16 }
 0x24d   : > { %v2400_v20 = vsel %vm1525_vm1, %v2398_v34, %v2399_v40  ;;  %v2496_v52 = vadd.f32 %v2399_v40, %v2248_v45  ;;  %v2689_v43 = vrot.slane %v2583_v25, 2  ;;  %v3184_v30 = vmul.f32 %v6511_v48, %v6983_v8 }
 0x24e   : > { %v2495_v13 = vadd.f32 %v2400_v20, %v2247_v63  ;;  %v7028_v51 = vadd.f32 %v2688_v12, %v2494_v41  ;;  %v3052_v4 = vmul.f32 %v7021_v3, %v2998_v11  ;;  %v3053_v33 = vmul.f32 %v7021_v3, %v2999_v10  ;;  %v1678_v20 = vld [vmem:[#allocation2 + $0xa0] sm:$0x1] }
 0x24f   : > { %v2690_v36 = vsel %vm1806_vm2, %v2688_v12, %v2689_v43  ;;  %v2692_v47 = vsel %vm1806_vm2, %v2689_v43, %v2691_v23  ;;  %v3102_v37 = vadd.f32 %v3054_v14, %v6869_v17  ;;  %v3185_v40 = vmul.f32 %v7035_v9, %v6985_v18 }
 0x250   : > { %v7039_v34 = vadd.f32 %v2690_v36, %v2495_v13  ;;  %v7041_v48 = vadd.f32 %v2692_v47, %v2496_v52  ;;  %v3100_v41 = vadd.f32 %v3052_v4, %v6867_v15  ;;  %v3101_v11 = vadd.f32 %v3053_v33, %v6875_v19 }
 0x251   : > { %v3252_v10 = vrot.slane %v3184_v30, 1  ;;  %v3253_v25 = vrot.slane %v3185_v40, 1  ;;  %v3436_v23 = vmul.f32 %v7011_v58, %v6983_v8  ;;  %v3437_v17 = vmul.f32 %v7011_v58, %v6985_v18 }
 0x252   : > { %v1211_v63 = vsel %vm1190_vm0, %v1209_v35, %v6947_v6  ;;  %v3543_v45 = vrot.slane %v3438_v32, 2  ;;  %v901_v12 = vmin.f32 %v869_v29, 6.0  ;;  %v870_v14 = vmax.f32 %v838_v61, 0.0 }
 0x253   : > { %v3254_v52 = vsel %vm1525_vm1, %v3252_v10, %v3253_v25  ;;  %v3348_v15 = vadd.f32 %v3252_v10, %v3100_v41  ;;  %v3350_v43 = vadd.f32 %v3253_v25, %v3102_v37  ;;  %v3540_v19 = vrot.slane %v3436_v23, 2 }
 0x254   : > { %v3349_v30 = vadd.f32 %v3254_v52, %v3101_v11  ;;  %v3541_v13 = vrot.slane %v3437_v17, 2  ;;  %v933_v4 = vmul.f32 %v901_v12, %v6965_v60  ;;  %v902_v33 = vmin.f32 %v870_v14, 6.0  ;;  %v9441_v14 = vld [vmem:[#allocation21_spill] sm:$0xff]  ;;  %v7078_v52 = vpop.f32.mrb[43].mxu0 }
 0x255   : > { %v3800_v36 = vmax.f32 %v6968_v7, 0.0  ;;  %v3801_v47 = vmax.f32 %v6961_v57, 0.0  ;;  %v9435_v6 = vmax.f32 %v6941_v54, 0.0  ;;  %v7057_v32 = vadd.f32 %v3540_v19, %v3348_v15 }
 0x256   : > { %v1694_v61 = vunpack.c.l.bf16 %v1678_v20  ;;  %v3542_v29 = vsel %vm1806_vm2, %v3540_v19, %v3541_v13  ;;  %v3544_v37 = vsel %vm1806_vm2, %v3541_v13, %v3543_v45  ;;  %v934_v40 = vmul.f32 %v902_v33, %v6993_v27  ;;  %v9442_v33 = vld [vmem:[#allocation23_spill] sm:$0xff] }
 0x257   : > { %v3847_v35 = vmin.f32 %v9435_v6, 6.0  ;;  %9436 = vst [vmem:[#allocation40_spill] sm:$0xff] %v7057_v32  ;;  %v1289_v41 = vunpack.c.l.bf16 %v1211_v63  ;;  %v1473_v60 = vmul.f32 %v6893_v42, %v6983_v8  ;;  %v7064_v11 = vadd.f32 %v3542_v29, %v3349_v30  ;;  %v1997_v29 = vld [vmem:[#allocation2 + $0xa8] sm:$0x80] }
 0x258   : > { %v7066_v7 = vadd.f32 %v3544_v37, %v3350_v43  ;;  %v9439_v54 = vrot.slane %v6925_v5, 7  ;;  %v9440_v57 = vrot.slane %v6903_v31, 7  ;;  %v1474_v25 = vmul.f32 %v6893_v42, %v6985_v18  ;;  %v2535_v37 = vld [vmem:[#allocation2 + $0xb8] sm:$0x1] }
 0x259   : > { %9437 = vst [vmem:[#allocation41_spill] sm:$0xff] %v7064_v11  ;;  %v965_v23 = vmul.f32 0.16666667, %v933_v4  ;;  %v966_v27 = vmul.f32 0.16666667, %v934_v40  ;;  %v3848_v17 = vmin.f32 %v3800_v36, 6.0  ;;  %v3895_v12 = vmul.f32 %v3847_v35, %v6912_v49 }
 0x25a   : > { %9438 = vst [vmem:[#allocation42_spill] sm:$0xff] %v7066_v7  ;;  %v4041_v10 = vsel %vm4036_vm3, %v9440_v57, %v9439_v54  ;;  %v3849_v45 = vmin.f32 %v3801_v47, 6.0  ;;  %v1002_v20 = vadd.f32 %v6329_v39, %v9441_v14  ;;  %v1290_v15 = vunpack.c.h.bf16 %v1211_v63  ;;  %v7113_v40 = vpop.f32.mrb[44].mxu0 }
 0x25b   : > { %v1730_v43 = vmul.f32 %v6810_v46, %v1694_v61  ;;  %v1099_v19 = vpack.c.bf16 %v966_v27, %v965_v23  ;;  %v1343_v30 = vmul.f32 %v6943_v1, %v1289_v41  ;;  %v1544_v13 = vrot.slane %v1473_v60, 1 }
 0x25c   : > { %v1729_v4 = vmul.f32 %v6810_v46, %v6985_v18  ;;  %1034 = vst [vmem:[%s6339_s28 + $0x68] sm:$0xff] %v1002_v20  ;;  %v1003_v49 = vadd.f32 %v6329_v39, %v9442_v33  ;;  %v7088_v36 = vadd.f32 %v4041_v10, %v6957_v0  ;;  %v1545_v47 = vrot.slane %v1474_v25, 1  ;;  %v3391_v20 = vld [vmem:[#allocation2 + $0xb8] sm:$0x1] }
 0x25d   : > { %v1728_v63 = vmul.f32 %v6810_v46, %v6983_v8  ;;  %v3896_v6 = vmul.f32 %v3848_v17, %v6934_v21  ;;  %v3897_v35 = vmul.f32 %v3849_v45, %v6938_v2  ;;  %v7094_v61 = vmul.f32 0.16666667, %v3895_v12 }
 0x25e   : > { %v7098_v18 = vadd.f32 %v6705_v59, %v6746_v44  ;;  %1035 = vst [vmem:[%s6339_s28 + $0x70] sm:$0xff] %v1003_v49  ;;  %v7103_v0 = vadd.f32 %v6705_v59, %v6760_v24  ;;  %v7107_v8 = vadd.f32 %v6705_v59, %v6762_v62  ;;  %v1345_v21 = vmul.f32 %v6943_v1, %v6981_v16 }
 0x25f   : > { %9443 = vst [vmem:[#allocation21_spill] sm:$0xff] %v7094_v61  ;;  %v7111_v2 = vrot.slane %v1099_v19, 4  ;;  %v1344_v44 = vmul.f32 %v6943_v1, %v1290_v15  ;;  %v1640_v41 = vadd.f32 %v1544_v13, %v1343_v30  ;;  %v1838_v60 = vrot.slane %v1729_v4, 2  ;;  %v2852_v4 = vld [vmem:[#allocation2 + $0xa8] sm:$0x80] }
 0x260   : > { %v1840_v54 = vrot.slane %v1730_v43, 2  ;;  %v1546_v57 = vsel %vm1525_vm1, %v1544_v13, %v1545_v47  ;;  %v1837_v24 = vrot.slane %v1728_v63, 2  ;;  %v2067_v10 = vrot.slane %v1997_v29, 4 }
 0x261   : > { %v2551_v25 = vunpack.c.l.bf16 %v2535_v37  ;;  %v7117_v23 = vmul.f32 0.16666667, %v3896_v6  ;;  %v7119_v62 = vmul.f32 0.16666667, %v3897_v35  ;;  %v7123_v27 = vadd.f32 3.0, %v7098_v18  ;;  %v7143_v6 = vpop.f32.mrb[45].mxu0 }
 0x262   : > { %v7126_v17 = vadd.f32 3.0, %v7103_v0  ;;  %v1642_v45 = vadd.f32 %v1545_v47, %v1345_v21  ;;  %v7129_v12 = vunpack.c.l.bf16 %v7111_v2  ;;  %v7131_v14 = vunpack.c.l.bf16 %v1099_v19  ;;  %9446 = vst [vmem:[#allocation44_spill] sm:$0xff] %v7143_v6  ;;  %v9447_v21 = vld [vmem:[#allocation22_spill] sm:$0xff] }
 0x263   : > { %9444 = vst [vmem:[#allocation23_spill] sm:$0xff] %v7117_v23  ;;  %9445 = vst [vmem:[#allocation43_spill] sm:$0xff] %v7119_v62  ;;  %v7134_v15 = vadd.f32 3.0, %v7107_v8  ;;  %v1641_v43 = vadd.f32 %v1546_v57, %v1344_v44  ;;  %v1841_v30 = vsel %vm1806_vm2, %v1838_v60, %v1840_v54  ;;  %v7137_v13 = vunpack.c.h.bf16 %v1099_v19  ;;  %v7149_v19 = vpop.f32.mrb[46].mxu0 }
 0x264   : > { %v1839_v33 = vsel %vm1806_vm2, %v1837_v24, %v1838_v60  ;;  %v1953_v49 = vadd.f32 %v1837_v24, %v1640_v41  ;;  %v2069_v47 = vsel %vm1190_vm0, %v2067_v10, %v7111_v2  ;;  %v2587_v63 = vmul.f32 %v6976_v26, %v2551_v25  ;;  %9448 = vst [vmem:[#allocation22_spill] sm:$0xff] %v7149_v19 }
 0x265   : > { %v2147_v35 = vunpack.c.l.bf16 %v2069_v47  ;;  %v2148_v29 = vunpack.c.h.bf16 %v2069_v47  ;;  %v3407_v37 = vunpack.c.l.bf16 %v3391_v20  ;;  %v7147_v44 = vadd.f32 %v6325_v38, %v9447_v21 }
 0x266   : > { %v1955_v54 = vadd.f32 %v1841_v30, %v1642_v45  ;;  %v2203_v41 = vmul.f32 %v6995_v55, %v7129_v12  ;;  %v2331_v60 = vmul.f32 %v7001_v53, %v7131_v14  ;;  %v2921_v57 = vrot.slane %v2852_v4, 4 }
 0x267   : > { %v1954_v24 = vadd.f32 %v1839_v33, %v1641_v43  ;;  %v2201_v10 = vmul.f32 %v6995_v55, %v2147_v35  ;;  %v2202_v25 = vmul.f32 %v6995_v55, %v2148_v29  ;;  %v2332_v20 = vmul.f32 %v7001_v53, %v7137_v13 }
 0x268   : > { %v3802_v47 = vmax.f32 %v7123_v27, 0.0  ;;  %v2251_v21 = vadd.f32 %v2203_v41, %v1955_v54  ;;  %v2401_v16 = vrot.slane %v2331_v60, 1  ;;  %v2696_v45 = vrot.slane %v2587_v63, 2 }
 0x269   : > { %v2249_v30 = vadd.f32 %v2201_v10, %v1953_v49  ;;  %v2250_v5 = vadd.f32 %v2202_v25, %v1954_v24  ;;  %v3441_v31 = vmul.f32 %v7011_v58, %v3407_v37  ;;  %v839_v7 = vadd.f32 3.0, %v7147_v44 }
 0x26a   : > { %v2402_v4 = vrot.slane %v2332_v20, 1  ;;  %v2585_v43 = vmul.f32 %v6976_v26, %v7131_v14  ;;  %v2586_v33 = vmul.f32 %v6976_v26, %v7137_v13  ;;  %v2923_v35 = vsel %vm1190_vm0, %v2921_v57, %v7111_v2 }
 0x26b   : > { %v2497_v27 = vadd.f32 %v2401_v16, %v2249_v30  ;;  %v3001_v29 = vunpack.c.l.bf16 %v2923_v35  ;;  %v3002_v54 = vunpack.c.h.bf16 %v2923_v35  ;;  %v3057_v49 = vmul.f32 %v7021_v3, %v7129_v12 }
 0x26c   : > { %v2403_v63 = vsel %vm1525_vm1, %v2401_v16, %v2402_v4  ;;  %v2499_v37 = vadd.f32 %v2402_v4, %v2251_v21  ;;  %v2693_v41 = vrot.slane %v2585_v43, 2  ;;  %v2694_v60 = vrot.slane %v2586_v33, 2  ;;  %v7186_v43 = vpop.f32.mrb[47].mxu0 }
 0x26d   : > { %v2498_v24 = vadd.f32 %v2403_v63, %v2250_v5  ;;  %v3055_v10 = vmul.f32 %v7021_v3, %v3001_v29  ;;  %v3056_v25 = vmul.f32 %v7021_v3, %v3002_v54  ;;  %v3105_v20 = vadd.f32 %v3057_v49, %v7041_v48  ;;  %9449 = vst [vmem:[#allocation45_spill] sm:$0xff] %v7186_v43  ;;  %v1140_v48 = vld [vmem:[#allocation2 + $0xa8] sm:$0x80]  ;;  %v1679_v49 = vld [vmem:[#allocation2 + $0xb8] sm:$0x1]  ;;  %v7199_v6 = vpop.f32.mrb[48].mxu0 }
 0x26e   : > { %v2695_v57 = vsel %vm1806_vm2, %v2693_v41, %v2694_v60  ;;  %v2697_v30 = vsel %vm1806_vm2, %v2694_v60, %v2696_v45  ;;  %v7176_v35 = vadd.f32 %v2693_v41, %v2497_v27  ;;  %v3186_v11 = vmul.f32 %v7035_v9, %v7131_v14 }
 0x26f   : > { %v7180_v16 = vadd.f32 %v2695_v57, %v2498_v24  ;;  %v7182_v21 = vadd.f32 %v2697_v30, %v2499_v37  ;;  %v3103_v5 = vadd.f32 %v3055_v10, %v7028_v51  ;;  %v3104_v4 = vadd.f32 %v3056_v25, %v7039_v34  ;;  %v9450_v37 = vld [vmem:[#allocation24_spill] sm:$0xff] }
 0x270   : > { %v3187_v33 = vmul.f32 %v7035_v9, %v7137_v13  ;;  %v3255_v45 = vrot.slane %v3186_v11, 1  ;;  %v3439_v27 = vmul.f32 %v7011_v58, %v7131_v14  ;;  %v3440_v29 = vmul.f32 %v7011_v58, %v7137_v13 }
 0x271   : > { %v3803_v54 = vmax.f32 %v7126_v17, 0.0  ;;  %v3548_v63 = vrot.slane %v3441_v31, 2  ;;  %v871_v51 = vmax.f32 %v839_v7, 0.0  ;;  %v808_v34 = vadd.f32 %v6325_v38, %v9450_v37 }
 0x272   : > { %v3256_v41 = vrot.slane %v3187_v33, 1  ;;  %v3351_v60 = vadd.f32 %v3255_v45, %v3103_v5  ;;  %v3545_v24 = vrot.slane %v3439_v27, 2  ;;  %v3546_v10 = vrot.slane %v3440_v29, 2  ;;  %v7204_v33 = vpop.f32.mrb[49].mxu0 }
 0x273   : > { %v4043_v11 = vrot.slane %v7117_v23, 7  ;;  %v3850_v25 = vmin.f32 %v3802_v47, 6.0  ;;  %v903_v57 = vmin.f32 %v871_v51, 6.0  ;;  %v840_v30 = vadd.f32 3.0, %v808_v34  ;;  %v9455_v51 = vld [vmem:[#allocation25_spill] sm:$0xff] }
 0x274   : > { %v1212_v32 = vrot.slane %v1140_v48, 4  ;;  %v1695_v43 = vunpack.c.l.bf16 %v1679_v49  ;;  %v3257_v19 = vsel %vm1525_vm1, %v3255_v45, %v3256_v41  ;;  %v3353_v17 = vadd.f32 %v3256_v41, %v3105_v20  ;;  %v7210_v49 = vpop.f32.mrb[50].mxu0 }
 0x275   : > { %v3352_v31 = vadd.f32 %v3257_v19, %v3104_v4  ;;  %v3549_v7 = vsel %vm1806_vm2, %v3546_v10, %v3548_v63  ;;  %v7202_v37 = vadd.f32 %v3545_v24, %v3351_v60  ;;  %v872_v5 = vmax.f32 %v840_v30, 0.0  ;;  %9453 = vst [vmem:[#allocation47_spill] sm:$0xff] %v7210_v49 }
 0x276   : > { %v3804_v27 = vmax.f32 %v7134_v15, 0.0  ;;  %v3851_v47 = vmin.f32 %v3803_v54, 6.0  ;;  %v3547_v29 = vsel %vm1806_vm2, %v3545_v24, %v3546_v10  ;;  %v7208_v48 = vadd.f32 %v3549_v7, %v3353_v17 }
 0x277   : > { %9451 = vst [vmem:[#allocation24_spill] sm:$0xff] %v7202_v37  ;;  %v3898_v20 = vmul.f32 %v3850_v25, %v7098_v18  ;;  %v7213_v19 = vadd.f32 %v3547_v29, %v3352_v31  ;;  %v935_v4 = vmul.f32 %v903_v57, %v7147_v44  ;;  %v904_v45 = vmin.f32 %v872_v5, 6.0  ;;  %v9457_v57 = vld [vmem:[#allocation28_spill] sm:$0xff] }
 0x278   : > { %9452 = vst [vmem:[#allocation46_spill] sm:$0xff] %v7208_v48  ;;  %v1214_v63 = vsel %vm1190_vm0, %v1212_v32, %v7111_v2  ;;  %v1475_v15 = vmul.f32 %v6893_v42, %v7131_v14  ;;  %v1476_v54 = vmul.f32 %v6893_v42, %v7137_v13  ;;  %v1004_v41 = vadd.f32 %v6329_v39, %v9455_v51 }
 0x279   : > { %9454 = vst [vmem:[#allocation48_spill] sm:$0xff] %v7213_v19  ;;  %v4045_v60 = vrot.slane %v7119_v62, 7  ;;  %v1732_v18 = vmul.f32 %v6810_v46, %v7137_v13  ;;  %v1733_v44 = vmul.f32 %v6810_v46, %v1695_v43  ;;  %v936_v24 = vmul.f32 %v904_v45, %v808_v34 }
 0x27a   : > { %v9456_v32 = vrot.slane %v7094_v61, 7  ;;  %v3852_v10 = vmin.f32 %v3804_v27, 6.0  ;;  %v3899_v25 = vmul.f32 %v3851_v47, %v7103_v0  ;;  %1036 = vst [vmem:[%s6339_s28 + $0x78] sm:$0xff] %v1004_v41  ;;  %v1005_v30 = vadd.f32 %v6329_v39, %v9457_v57  ;;  %v1999_v41 = vld [vmem:[#allocation2 + $0xc0] sm:$0x80] }
 0x27b   : > { %v1292_v17 = vunpack.c.l.bf16 %v1214_v63  ;;  %v1293_v31 = vunpack.c.h.bf16 %v1214_v63  ;;  %v967_v7 = vmul.f32 0.16666667, %v935_v4  ;;  %v968_v5 = vmul.f32 0.16666667, %v936_v24  ;;  %v9459_v63 = vld [vmem:[#allocation26_spill] sm:$0xff] }
 0x27c   : > { %v4044_v2 = vsel %vm4036_vm3, %v9456_v32, %v4043_v11  ;;  %v7235_v13 = vmul.f32 0.16666667, %v3898_v20  ;;  %v1547_v29 = vrot.slane %v1475_v15, 1  ;;  %v1548_v43 = vrot.slane %v1476_v54, 1  ;;  %1037 = vst [vmem:[%s6339_s28 + $0x80] sm:$0xff] %v1005_v30 }
 0x27d   : > { %v1731_v34 = vmul.f32 %v6810_v46, %v7131_v14  ;;  %v1348_v27 = vmul.f32 %v6943_v1, %v7129_v12  ;;  %v1843_v0 = vrot.slane %v1732_v18, 2  ;;  %v1845_v47 = vrot.slane %v1733_v44, 2  ;;  %v2536_v20 = vld [vmem:[#allocation2 + $0xd0] sm:$0x1]  ;;  %v7258_v18 = vpop.f32.mrb[51].mxu0 }
 0x27e   : > { %9458 = vst [vmem:[#allocation25_spill] sm:$0xff] %v7235_v13  ;;  %v1100_v45 = vpack.c.bf16 %v968_v5, %v967_v7  ;;  %v7243_v51 = vsel %vm4036_vm3, %v4043_v11, %v4045_v60  ;;  %v7246_v4 = vadd.f32 %v7088_v36, %v4044_v2  ;;  %v7250_v15 = vadd.f32 %v6325_v38, %v9459_v63  ;;  %v7293_v63 = vld [vmem:[#allocation2 + $0xc0] sm:$0x80] }
 0x27f   : > { %v7252_v54 = vmul.f32 0.16666667, %v3899_v25  ;;  %v1346_v46 = vmul.f32 %v6943_v1, %v1292_v17  ;;  %v1347_v12 = vmul.f32 %v6943_v1, %v1293_v31  ;;  %9461 = vst [vmem:[#allocation26_spill] sm:$0xff] %v7258_v18  ;;  %v7261_v11 = vmul.f32 %v3852_v10, %v7107_v8  ;;  %v3392_v17 = vld [vmem:[#allocation2 + $0xd0] sm:$0x1]  ;;  %v9462_v10 = vld [vmem:[#allocation29_spill] sm:$0xff] }
 0x280   : > { %v7256_v14 = vrot.slane %v1100_v45, 4  ;;  %v7265_v36 = vadd.f32 %v6705_v59, %v6901_v50  ;;  %v1549_v60 = vsel %vm1525_vm1, %v1547_v29, %v1548_v43  ;;  %v1842_v44 = vrot.slane %v1731_v34, 2 }
 0x281   : > { %9460 = vst [vmem:[#allocation28_spill] sm:$0xff] %v7252_v54  ;;  %v1645_v32 = vadd.f32 %v1548_v43, %v1348_v27  ;;  %v1846_v2 = vsel %vm1806_vm2, %v1843_v0, %v1845_v47  ;;  %v2552_v25 = vunpack.c.l.bf16 %v2536_v20  ;;  %v2070_v30 = vrot.slane %v1999_v41, 4  ;;  %v7295_v41 = vpop.f32.mrb[52].mxu0 }
 0x282   : > { %v7271_v57 = vunpack.c.l.bf16 %v7256_v14  ;;  %v841_v8 = vadd.f32 3.0, %v7250_v15  ;;  %v7276_v50 = vadd.f32 %v6325_v38, %v9462_v10  ;;  %v1643_v7 = vadd.f32 %v1547_v29, %v1346_v46  ;;  %9463 = vst [vmem:[#allocation29_spill] sm:$0xff] %v7295_v41  ;;  %v7300_v10 = vld [vmem:[#allocation2 + $0xd0] sm:$0x1]  ;;  %v7307_v62 = vpop.f32.mrb[53].mxu0 }
 0x283   : > { %v1644_v5 = vadd.f32 %v1549_v60, %v1347_v12  ;;  %v7279_v34 = vunpack.c.l.bf16 %v1100_v45  ;;  %v7283_v43 = vadd.f32 %v6705_v59, %v6914_v22  ;;  %v7287_v27 = vadd.f32 %v6705_v59, %v6906_v56  ;;  %v2854_v22 = vld [vmem:[#allocation2 + $0xc0] sm:$0x80]  ;;  %9464 = vst [vmem:[#allocation49_spill] sm:$0xff] %v7307_v62 }
 0x284   : > { %v7290_v47 = vadd.f32 3.0, %v7265_v36  ;;  %v1844_v20 = vsel %vm1806_vm2, %v1842_v44, %v1843_v0  ;;  %v1958_v29 = vadd.f32 %v1846_v2, %v1645_v32  ;;  %v7297_v46 = vunpack.c.h.bf16 %v1100_v45 }
 0x285   : > { %v2590_v12 = vmul.f32 %v6976_v26, %v2552_v25  ;;  %v3408_v60 = vunpack.c.l.bf16 %v3392_v17  ;;  %v2072_v56 = vsel %vm1190_vm0, %v2070_v30, %v7256_v14  ;;  %v2206_v24 = vmul.f32 %v6995_v55, %v7271_v57  ;;  %v7312_v17 = vpop.f32.mrb[54].mxu0 }
 0x286   : > { %v873_v0 = vmax.f32 %v841_v8, 0.0  ;;  %v842_v31 = vadd.f32 3.0, %v7276_v50  ;;  %v1956_v32 = vadd.f32 %v1842_v44, %v1643_v7  ;;  %v1957_v45 = vadd.f32 %v1844_v20, %v1644_v5  ;;  %9465 = vst [vmem:[#allocation50_spill] sm:$0xff] %v7312_v17  ;;  %v7314_v19 = vpop.f32.mrb[55].mxu0 }
 0x287   : > { %v1215_v2 = vrot.slane %v7293_v63, 4  ;;  %v2333_v25 = vmul.f32 %v7001_v53, %v7279_v34  ;;  %v2150_v23 = vunpack.c.l.bf16 %v2072_v56  ;;  %v2151_v61 = vunpack.c.h.bf16 %v2072_v56  ;;  %9466 = vst [vmem:[#allocation51_spill] sm:$0xff] %v7314_v19 }
 0x288   : > { %v2254_v30 = vadd.f32 %v2206_v24, %v1958_v29  ;;  %v2924_v48 = vrot.slane %v2854_v22, 4  ;;  %v1696_v8 = vunpack.c.l.bf16 %v7300_v10  ;;  %v2334_v37 = vmul.f32 %v7001_v53, %v7297_v46 }
 0x289   : > { %v2701_v44 = vrot.slane %v2590_v12, 2  ;;  %v3444_v7 = vmul.f32 %v7011_v58, %v3408_v60  ;;  %v2204_v5 = vmul.f32 %v6995_v55, %v2150_v23  ;;  %v2205_v20 = vmul.f32 %v6995_v55, %v2151_v61 }
 0x28a   : > { %v905_v63 = vmin.f32 %v873_v0, 6.0  ;;  %v874_v17 = vmax.f32 %v842_v31, 0.0  ;;  %v2404_v41 = vrot.slane %v2333_v25, 1  ;;  %v2405_v56 = vrot.slane %v2334_v37, 1  ;;  %v7331_v37 = vpop.f32.mrb[56].mxu0 }
 0x28b   : > { %v2588_v24 = vmul.f32 %v6976_v26, %v7279_v34  ;;  %v2589_v29 = vmul.f32 %v6976_v26, %v7297_v46  ;;  %v2252_v22 = vadd.f32 %v2204_v5, %v1956_v32  ;;  %v2253_v10 = vadd.f32 %v2205_v20, %v1957_v45  ;;  %v7333_v49 = vpop.f32.mrb[57].mxu0 }
 0x28c   : > { %v2926_v12 = vsel %vm1190_vm0, %v2924_v48, %v7256_v14  ;;  %v3060_v23 = vmul.f32 %v7021_v3, %v7271_v57  ;;  %v2406_v61 = vsel %vm1525_vm1, %v2404_v41, %v2405_v56  ;;  %v2502_v60 = vadd.f32 %v2405_v56, %v2254_v30  ;;  %v7340_v30 = vpop.f32.mrb[58].mxu0 }
 0x28d   : > { %v2698_v31 = vrot.slane %v2588_v24, 2  ;;  %v2699_v0 = vrot.slane %v2589_v29, 2  ;;  %v2500_v25 = vadd.f32 %v2404_v41, %v2252_v22  ;;  %v2501_v19 = vadd.f32 %v2406_v61, %v2253_v10  ;;  %v7349_v29 = vpop.f32.mrb[59].mxu0 }
 0x28e   : > { %v3004_v62 = vunpack.c.l.bf16 %v2926_v12  ;;  %v3005_v18 = vunpack.c.h.bf16 %v2926_v12  ;;  %v3108_v45 = vadd.f32 %v3060_v23, %v7182_v21  ;;  %v3188_v5 = vmul.f32 %v7035_v9, %v7279_v34 }
 0x28f   : > { %v2700_v32 = vsel %vm1806_vm2, %v2698_v31, %v2699_v0  ;;  %v2702_v48 = vsel %vm1806_vm2, %v2699_v0, %v2701_v44  ;;  %v7342_v20 = vadd.f32 %v2698_v31, %v2500_v25  ;;  %v3189_v21 = vmul.f32 %v7035_v9, %v7297_v46 }
 0x290   : > { %v7344_v56 = vadd.f32 %v2700_v32, %v2501_v19  ;;  %v7346_v41 = vadd.f32 %v2702_v48, %v2502_v60  ;;  %v3058_v24 = vmul.f32 %v7021_v3, %v3004_v62  ;;  %v3059_v22 = vmul.f32 %v7021_v3, %v3005_v18 }
 0x291   : > { %v3258_v44 = vrot.slane %v3188_v5, 1  ;;  %v3442_v10 = vmul.f32 %v7011_v58, %v7279_v34  ;;  %v3443_v19 = vmul.f32 %v7011_v58, %v7297_v46  ;;  %v3553_v23 = vrot.slane %v3444_v7, 2  ;;  %v7369_v5 = vpop.f32.mrb[60].mxu0 }
 0x292   : > { %v3106_v12 = vadd.f32 %v3058_v24, %v7176_v35  ;;  %v906_v61 = vmin.f32 %v874_v17, 6.0  ;;  %v3107_v62 = vadd.f32 %v3059_v22, %v7180_v16  ;;  %v3259_v60 = vrot.slane %v3189_v21, 1  ;;  %v7371_v24 = vld [vmem:[#allocation8 + $0x2] ss:$0 sm:$0xff] }
 0x293   : > { %v3550_v31 = vrot.slane %v3442_v10, 2  ;;  %v937_v18 = vmul.f32 %v905_v63, %v7250_v15  ;;  %v1217_v0 = vsel %vm1190_vm0, %v1215_v2, %v7256_v14  ;;  %v3551_v32 = vrot.slane %v3443_v19, 2 }
 0x294   : > { %v3354_v25 = vadd.f32 %v3258_v44, %v3106_v12  ;;  %v938_v48 = vmul.f32 %v906_v61, %v7276_v50  ;;  %v1477_v35 = vmul.f32 %v6893_v42, %v7279_v34  ;;  %v1478_v7 = vmul.f32 %v6893_v42, %v7297_v46  ;;  %v7377_v50 = vpop.f32.mrb[61].mxu0 }
 0x295   : > { %v3260_v17 = vsel %vm1525_vm1, %v3258_v44, %v3259_v60  ;;  %v3356_v16 = vadd.f32 %v3259_v60, %v3108_v45  ;;  %v1736_v15 = vmul.f32 %v7371_v24, %v1696_v8  ;;  %v3554_v2 = vsel %vm1806_vm2, %v3551_v32, %v3553_v23  ;;  %9468 = vst [vmem:[#allocation53_spill] sm:$0xff] %v7377_v50  ;;  %v7382_v45 = vpop.f32.mrb[62].mxu0  ;;  %v9472_v8 = vld [vmem:[#allocation30_spill] sm:$0xff] }
 0x296   : > { %v3355_v14 = vadd.f32 %v3260_v17, %v3107_v62  ;;  %v7375_v63 = vadd.f32 %v3550_v31, %v3354_v25  ;;  %v3552_v22 = vsel %vm1806_vm2, %v3550_v31, %v3551_v32  ;;  %v969_v10 = vmul.f32 0.16666667, %v937_v18  ;;  %9470 = vst [vmem:[#allocation55_spill] sm:$0xff] %v7382_v45  ;;  %v7388_v62 = vpop.f32.mrb[63].mxu0  ;;  %v7625_v45 = vld [vmem:[#allocation8 + $0x6] ss:$0 sm:$0xff] }
 0x297   : > { %v7380_v21 = vadd.f32 %v3554_v2, %v3356_v16  ;;  %v970_v44 = vmul.f32 0.16666667, %v938_v48  ;;  %v1295_v12 = vunpack.c.l.bf16 %v1217_v0  ;;  %v1296_v19 = vunpack.c.h.bf16 %v1217_v0  ;;  %9473 = vst [vmem:[#allocation30_spill] sm:$0xff] %v7388_v62 }
 0x298   : > { %9467 = vst [vmem:[#allocation52_spill] sm:$0xff] %v7375_v63  ;;  %v7384_v61 = vadd.f32 %v3552_v22, %v3355_v14  ;;  %v1006_v23 = vadd.f32 %v6329_v39, %v9472_v8  ;;  %v1550_v60 = vrot.slane %v1477_v35, 1  ;;  %v1551_v25 = vrot.slane %v1478_v7, 1  ;;  %v2001_v14 = vld [vmem:[#allocation2 + $0xd8] sm:$0x80] }
 0x299   : > { %9469 = vst [vmem:[#allocation54_spill] sm:$0xff] %v7380_v21  ;;  %v1735_v31 = vmul.f32 %v7371_v24, %v7297_v46  ;;  %v1101_v32 = vpack.c.bf16 %v970_v44, %v969_v10  ;;  %v7393_v18 = vmul.f32 0.16666667, %v7261_v11  ;;  %v9475_v48 = vrot.slane %v7252_v54, 7  ;;  %v2537_v35 = vld [vmem:[#allocation2 + $0xe8] sm:$0x1] }
 0x29a   : > { %9471 = vst [vmem:[#allocation56_spill] sm:$0xff] %v7384_v61  ;;  %v9476_v0 = vrot.slane %v7235_v13, 7  ;;  %v4151_v16 = vadd.f32 %v7246_v4, %v7243_v51  ;;  %1038 = vst [vmem:[%s6339_s28 + $0x88] sm:$0xff] %v1006_v23  ;;  %v1007_v46 = vadd.f32 %v6329_v39, %v6855_v28  ;;  %v7406_v7 = vadd.f32 3.0, %v7283_v43  ;;  %v3393_v10 = vld [vmem:[#allocation2 + $0xe8] sm:$0x1] }
 0x29b   : > { %9474 = vst [vmem:[#allocation57_spill] sm:$0xff] %v7393_v18  ;;  %v3759_v11 = vadd.f32 3.0, %v7287_v27  ;;  %v3805_v2 = vmax.f32 %v7290_v47, 0.0  ;;  %v1734_v22 = vmul.f32 %v7371_v24, %v7279_v34  ;;  %v1349_v44 = vmul.f32 %v6943_v1, %v1295_v12  ;;  %v7424_v63 = vld [vmem:[#allocation2 + $0xe8] sm:$0x1] }
 0x29c   : > { %v4049_v17 = vsel %vm4036_vm3, %v9476_v0, %v9475_v48  ;;  %v1350_v51 = vmul.f32 %v6943_v1, %v1296_v19  ;;  %v1351_v4 = vmul.f32 %v6943_v1, %v7271_v57  ;;  %v1850_v8 = vrot.slane %v1736_v15, 2  ;;  %1039 = vst [vmem:[%s6339_s28 + $0x90] sm:$0xff] %v1007_v46  ;;  %v1144_v46 = vld [vmem:[#allocation2 + $0xd8] sm:$0x80] }
 0x29d   : > { %v1552_v28 = vsel %vm1525_vm1, %v1550_v60, %v1551_v25  ;;  %v1848_v23 = vrot.slane %v1735_v31, 2  ;;  %v1219_v48 = vrot.slane %v1101_v32, 4  ;;  %v2553_v0 = vunpack.c.l.bf16 %v2537_v35 }
 0x29e   : > { %v2073_v13 = vrot.slane %v2001_v14, 4  ;;  %v3409_v21 = vunpack.c.l.bf16 %v3393_v10  ;;  %v7419_v34 = vadd.f32 %v4151_v16, %v4049_v17  ;;  %v3807_v61 = vmax.f32 %v3759_v11, 0.0  ;;  %v2856_v17 = vld [vmem:[#allocation2 + $0xd8] sm:$0x80]  ;;  %v9478_v16 = vld [vmem:[#allocation31_spill] sm:$0xff] }
 0x29f   : > { %v1847_v19 = vrot.slane %v1734_v22, 2  ;;  %v7422_v54 = vmin.f32 %v3805_v2, 6.0  ;;  %v1646_v1 = vadd.f32 %v1550_v60, %v1349_v44  ;;  %v1647_v57 = vadd.f32 %v1552_v28, %v1350_v51 }
 0x2a0   : > { %9477 = vst [vmem:[#allocation58_spill] sm:$0xff] %v7419_v34  ;;  %v1648_v15 = vadd.f32 %v1551_v25, %v1351_v4  ;;  %v1851_v31 = vsel %vm1806_vm2, %v1848_v23, %v1850_v8  ;;  %v7427_v35 = vunpack.c.l.bf16 %v1219_v48  ;;  %v2593_v14 = vmul.f32 %v6976_v26, %v2553_v0 }
 0x2a1   : > { %v7432_v10 = vadd.f32 %v6325_v38, %v9478_v16  ;;  %v7434_v11 = vunpack.c.l.bf16 %v1101_v32  ;;  %v7436_v2 = vunpack.c.h.bf16 %v1101_v32  ;;  %v2075_v60 = vsel %vm1190_vm0, %v2073_v13, %v1219_v48 }
 0x2a2   : > { %v7440_v25 = vmul.f32 %v7011_v58, %v3409_v21  ;;  %v7442_v22 = vmin.f32 %v3807_v61, 6.0  ;;  %v1849_v44 = vsel %vm1806_vm2, %v1847_v19, %v1848_v23  ;;  %v1218_v51 = vrot.slane %v1144_v46, 4 }
 0x2a3   : > { %v1959_v8 = vadd.f32 %v1847_v19, %v1646_v1  ;;  %v1960_v28 = vadd.f32 %v1849_v44, %v1647_v57  ;;  %v1961_v0 = vadd.f32 %v1851_v31, %v1648_v15  ;;  %v2927_v16 = vrot.slane %v2856_v17, 4 }
 0x2a4   : > { %v2153_v47 = vunpack.c.l.bf16 %v2075_v60  ;;  %v2154_v12 = vunpack.c.h.bf16 %v2075_v60  ;;  %v2209_v32 = vmul.f32 %v6995_v55, %v7427_v35  ;;  %v2706_v13 = vrot.slane %v2593_v14, 2 }
 0x2a5   : > { %v2335_v21 = vmul.f32 %v7001_v53, %v7434_v11  ;;  %v2336_v61 = vmul.f32 %v7001_v53, %v7436_v2  ;;  %v3558_v23 = vrot.slane %v7440_v25, 2  ;;  %v843_v46 = vadd.f32 3.0, %v7432_v10 }
 0x2a6   : > { %v7455_v19 = vsel %vm1190_vm0, %v1218_v51, %v1219_v48  ;;  %v7459_v1 = vmul.f32 %v6893_v42, %v7434_v11  ;;  %v2207_v57 = vmul.f32 %v6995_v55, %v2153_v47  ;;  %v2208_v15 = vmul.f32 %v6995_v55, %v2154_v12 }
 0x2a7   : > { %v2257_v31 = vadd.f32 %v2209_v32, %v1961_v0  ;;  %v2407_v14 = vrot.slane %v2335_v21, 1  ;;  %v2408_v17 = vrot.slane %v2336_v61, 1  ;;  %v2591_v53 = vmul.f32 %v6976_v26, %v7434_v11 }
 0x2a8   : > { %v2255_v60 = vadd.f32 %v2207_v57, %v1959_v8  ;;  %v2256_v25 = vadd.f32 %v2208_v15, %v1960_v28  ;;  %v2592_v44 = vmul.f32 %v6976_v26, %v7436_v2  ;;  %v2929_v51 = vsel %vm1190_vm0, %v2927_v16, %v1219_v48 }
 0x2a9   : > { %v2409_v42 = vsel %vm1525_vm1, %v2407_v14, %v2408_v17  ;;  %v2505_v4 = vadd.f32 %v2408_v17, %v2257_v31  ;;  %v2703_v34 = vrot.slane %v2591_v53, 2  ;;  %v3007_v47 = vunpack.c.l.bf16 %v2929_v51 }
 0x2aa   : > { %v2503_v18 = vadd.f32 %v2407_v14, %v2255_v60  ;;  %v2504_v55 = vadd.f32 %v2409_v42, %v2256_v25  ;;  %v2704_v12 = vrot.slane %v2592_v44, 2  ;;  %v3008_v0 = vunpack.c.h.bf16 %v2929_v51 }
 0x2ab   : > { %v3061_v32 = vmul.f32 %v7021_v3, %v3007_v47  ;;  %v3063_v8 = vmul.f32 %v7021_v3, %v7427_v35  ;;  %v3190_v28 = vmul.f32 %v7035_v9, %v7434_v11  ;;  %v3191_v26 = vmul.f32 %v7035_v9, %v7436_v2 }
 0x2ac   : > { %v2705_v48 = vsel %vm1806_vm2, %v2703_v34, %v2704_v12  ;;  %v2707_v16 = vsel %vm1806_vm2, %v2704_v12, %v2706_v13  ;;  %v7478_v21 = vadd.f32 %v2703_v34, %v2503_v18  ;;  %v3062_v61 = vmul.f32 %v7021_v3, %v3008_v0  ;;  %v7490_v13 = vld [vmem:[#allocation8 + $0x1] ss:$0 sm:$0xff] }
 0x2ad   : > { %v7481_v57 = vadd.f32 %v2705_v48, %v2504_v55  ;;  %v7483_v15 = vadd.f32 %v2707_v16, %v2505_v4  ;;  %v3109_v31 = vadd.f32 %v3061_v32, %v7342_v20  ;;  %v3111_v14 = vadd.f32 %v3063_v8, %v7346_v41  ;;  %v9479_v4 = vld [vmem:[#allocation32_spill] sm:$0xff] }
 0x2ae   : > { %v3110_v17 = vadd.f32 %v3062_v61, %v7344_v56  ;;  %v3261_v53 = vrot.slane %v3190_v28, 1  ;;  %v3262_v9 = vrot.slane %v3191_v26, 1  ;;  %v3445_v60 = vmul.f32 %v7011_v58, %v7434_v11 }
 0x2af   : > { %v1480_v3 = vmul.f32 %v7490_v13, %v7436_v2  ;;  %v3446_v18 = vmul.f32 %v7011_v58, %v7436_v2  ;;  %v875_v34 = vmax.f32 %v843_v46, 0.0  ;;  %v812_v20 = vadd.f32 %v6325_v38, %v9479_v4  ;;  %v9485_v4 = vld [vmem:[#allocation36_spill] sm:$0xff] }
 0x2b0   : > { %v3263_v41 = vsel %vm1525_vm1, %v3261_v53, %v3262_v9  ;;  %v3357_v56 = vadd.f32 %v3261_v53, %v3109_v31  ;;  %v3359_v25 = vadd.f32 %v3262_v9, %v3111_v14  ;;  %v3555_v44 = vrot.slane %v3445_v60, 2  ;;  %v1682_v9 = vld [vmem:[#allocation2 + $0x100] sm:$0x1]  ;;  %v7522_v60 = vld [vmem:[#allocation8] ss:$0 sm:$0xff] }
 0x2b1   : > { %v3358_v51 = vadd.f32 %v3263_v41, %v3110_v17  ;;  %v3556_v42 = vrot.slane %v3446_v18, 2  ;;  %v907_v47 = vmin.f32 %v875_v34, 6.0  ;;  %v844_v55 = vadd.f32 3.0, %v812_v20  ;;  %v2538_v18 = vld [vmem:[#allocation2 + $0x100] sm:$0x1] }
 0x2b2   : > { %v1298_v12 = vunpack.c.l.bf16 %v7455_v19  ;;  %v1299_v0 = vunpack.c.h.bf16 %v7455_v19  ;;  %v9480_v32 = vunpack.c.l.bf16 %v7424_v63  ;;  %v7504_v46 = vadd.f32 %v3555_v44, %v3357_v56 }
 0x2b3   : > { %v1553_v8 = vrot.slane %v7459_v1, 1  ;;  %v3557_v28 = vsel %vm1806_vm2, %v3555_v44, %v3556_v42  ;;  %v3559_v26 = vsel %vm1806_vm2, %v3556_v42, %v3558_v23  ;;  %v876_v48 = vmax.f32 %v844_v55, 0.0 }
 0x2b4   : > { %v1739_v58 = vmul.f32 %v7371_v24, %v9480_v32  ;;  %9481 = vst [vmem:[#allocation31_spill] sm:$0xff] %v7504_v46  ;;  %v1554_v16 = vrot.slane %v1480_v3, 1  ;;  %v1738_v61 = vmul.f32 %v7371_v24, %v7436_v2  ;;  %v7511_v31 = vadd.f32 %v3557_v28, %v3358_v51  ;;  %v2003_v32 = vld [vmem:[#allocation2 + $0xf0] sm:$0x80] }
 0x2b5   : > { %v7513_v19 = vadd.f32 %v3559_v26, %v3359_v25  ;;  %v9484_v63 = vmax.f32 %v7406_v7, 0.0  ;;  %v3901_v17 = vmul.f32 %v7422_v54, %v7265_v36  ;;  %v939_v1 = vmul.f32 %v907_v47, %v7432_v10  ;;  %v3394_v10 = vld [vmem:[#allocation2 + $0x100] sm:$0x1]  ;;  %v9486_v25 = vld [vmem:[#allocation37_spill] sm:$0xff]  ;;  %v9487_v47 = vld [vmem:[#allocation38_spill] sm:$0xff] }
 0x2b6   : > { %9482 = vst [vmem:[#allocation32_spill] sm:$0xff] %v7511_v31  ;;  %v908_v53 = vmin.f32 %v876_v48, 6.0  ;;  %v3903_v23 = vmul.f32 %v7442_v22, %v7287_v27  ;;  %v1352_v2 = vmul.f32 %v7522_v60, %v1298_v12  ;;  %v1354_v3 = vmul.f32 %v7522_v60, %v7427_v35 }
 0x2b7   : > { %9483 = vst [vmem:[#allocation59_spill] sm:$0xff] %v7513_v19  ;;  %v3854_v14 = vmin.f32 %v9484_v63, 6.0  ;;  %v1855_v7 = vrot.slane %v1739_v58, 2  ;;  %v1353_v34 = vmul.f32 %v7522_v60, %v1299_v0  ;;  %v1737_v54 = vmul.f32 %v7371_v24, %v7434_v11  ;;  %v1146_v0 = vld [vmem:[#allocation2 + $0xf0] sm:$0x80] }
 0x2b8   : > { %v940_v36 = vmul.f32 %v908_v53, %v812_v20  ;;  %v1008_v27 = vadd.f32 %v6329_v39, %v9485_v4  ;;  %v1555_v22 = vsel %vm1525_vm1, %v1553_v8, %v1554_v16  ;;  %v1853_v41 = vrot.slane %v1738_v61, 2  ;;  %v9489_v61 = vld [vmem:[#allocation39_spill] sm:$0xff] }
 0x2b9   : > { %v1698_v56 = vunpack.c.l.bf16 %v1682_v9  ;;  %v7535_v35 = vadd.f32 %v6325_v38, %v9486_v25  ;;  %v971_v44 = vmul.f32 0.16666667, %v939_v1  ;;  %v2554_v42 = vunpack.c.l.bf16 %v2538_v18 }
 0x2ba   : > { %v972_v51 = vmul.f32 0.16666667, %v940_v36  ;;  %1040 = vst [vmem:[%s6339_s28 + $0x98] sm:$0xff] %v1008_v27  ;;  %v1009_v11 = vadd.f32 %v6329_v39, %v9487_v47  ;;  %v7541_v20 = vmul.f32 %v3854_v14, %v7283_v43  ;;  %v7543_v55 = vmul.f32 0.16666667, %v3901_v17 }
 0x2bb   : > { %v1649_v12 = vadd.f32 %v1553_v8, %v1352_v2  ;;  %v3410_v58 = vunpack.c.l.bf16 %v3394_v10  ;;  %v1852_v28 = vrot.slane %v1737_v54, 2  ;;  %v845_v48 = vadd.f32 3.0, %v7535_v35  ;;  %v7555_v2 = vld [vmem:[#allocation8 + $0x5] ss:$0 sm:$0xff]  ;;  %v2858_v54 = vld [vmem:[#allocation2 + $0xf0] sm:$0x80] }
 0x2bc   : > { %9488 = vst [vmem:[#allocation36_spill] sm:$0xff] %v7543_v55  ;;  %v1102_v26 = vpack.c.bf16 %v972_v51, %v971_v44  ;;  %1041 = vst [vmem:[%s6339_s28 + $0xa0] sm:$0xff] %v1009_v11  ;;  %v7549_v63 = vadd.f32 %v6325_v38, %v9489_v61  ;;  %v1650_v1 = vadd.f32 %v1555_v22, %v1353_v34  ;;  %v1221_v8 = vrot.slane %v1146_v0, 4  ;;  %v7614_v44 = vld [vmem:[#allocation8 + $0x4] ss:$0 sm:$0xff] }
 0x2bd   : > { %v1651_v53 = vadd.f32 %v1554_v16, %v1354_v3  ;;  %v1856_v43 = vsel %vm1806_vm2, %v1853_v41, %v1855_v7  ;;  %v7553_v14 = vmul.f32 %v7371_v24, %v1698_v56  ;;  %v2076_v9 = vrot.slane %v2003_v32, 4  ;;  %v7566_v16 = vld [vmem:[#allocation8 + $0x8] ss:$0 sm:$0xff] }
 0x2be   : > { %v1222_v17 = vrot.slane %v1102_v26, 4  ;;  %v7558_v18 = vmul.f32 %v7555_v2, %v2554_v42  ;;  %v7560_v36 = vmul.f32 0.16666667, %v3903_v23  ;;  %v7562_v10 = vunpack.c.l.bf16 %v1102_v26  ;;  %v7575_v56 = vld [vmem:[#allocation2 + $0x118] sm:$0x1] }
 0x2bf   : > { %v7564_v34 = vunpack.c.h.bf16 %v1102_v26  ;;  %v7569_v3 = vmul.f32 %v7566_v16, %v3410_v58  ;;  %v1854_v7 = vsel %vm1806_vm2, %v1852_v28, %v1853_v41  ;;  %v1962_v4 = vadd.f32 %v1852_v28, %v1649_v12  ;;  %v7583_v12 = vld [vmem:[#allocation2 + $0x118] sm:$0x1] }
 0x2c0   : > { %9490 = vst [vmem:[#allocation37_spill] sm:$0xff] %v7560_v36  ;;  %v877_v27 = vmax.f32 %v845_v48, 0.0  ;;  %v7573_v22 = vadd.f32 3.0, %v7549_v63  ;;  %v1963_v23 = vadd.f32 %v1854_v7, %v1650_v1  ;;  %v1964_v25 = vadd.f32 %v1856_v43, %v1651_v53 }
 0x2c1   : > { %v2930_v51 = vrot.slane %v2858_v54, 4  ;;  %v7579_v42 = vsel %vm1190_vm0, %v1221_v8, %v1222_v17  ;;  %v1303_v47 = vunpack.c.l.bf16 %v1222_v17  ;;  %v2078_v11 = vsel %vm1190_vm0, %v2076_v9, %v1222_v17  ;;  %v7607_v54 = vld [vmem:[#allocation8 + $0x3] ss:$0 sm:$0xff] }
 0x2c2   : > { %v2711_v41 = vrot.slane %v7558_v18, 2  ;;  %v7587_v0 = vmul.f32 %v7490_v13, %v7562_v10  ;;  %v7591_v32 = vmul.f32 %v7490_v13, %v7564_v34  ;;  %v2156_v26 = vunpack.c.l.bf16 %v2078_v11 }
 0x2c3   : > { %v2157_v48 = vunpack.c.h.bf16 %v2078_v11  ;;  %v909_v61 = vmin.f32 %v877_v27, 6.0  ;;  %v878_v1 = vmax.f32 %v7573_v22, 0.0  ;;  %v1301_v53 = vunpack.c.l.bf16 %v7579_v42 }
 0x2c4   : > { %v1302_v43 = vunpack.c.h.bf16 %v7579_v42  ;;  %v7600_v8 = vmul.f32 %v7371_v24, %v7562_v10  ;;  %v7605_v18 = vmul.f32 %v7371_v24, %v7564_v34  ;;  %v2210_v7 = vmul.f32 %v7607_v54, %v2156_v26 }
 0x2c5   : > { %v2211_v27 = vmul.f32 %v7607_v54, %v2157_v48  ;;  %v2212_v22 = vmul.f32 %v7607_v54, %v1303_v47  ;;  %v2337_v9 = vmul.f32 %v7614_v44, %v7562_v10  ;;  %v2338_v28 = vmul.f32 %v7614_v44, %v7564_v34 }
 0x2c6   : > { %v2258_v58 = vadd.f32 %v2210_v7, %v1962_v4  ;;  %v2594_v26 = vmul.f32 %v7555_v2, %v7562_v10  ;;  %v2595_v42 = vmul.f32 %v7555_v2, %v7564_v34  ;;  %v2932_v11 = vsel %vm1190_vm0, %v2930_v51, %v1222_v17 }
 0x2c7   : > { %v2259_v31 = vadd.f32 %v2211_v27, %v1963_v23  ;;  %v2260_v19 = vadd.f32 %v2212_v22, %v1964_v25  ;;  %v2410_v48 = vrot.slane %v2337_v9, 1  ;;  %v2411_v46 = vrot.slane %v2338_v28, 1 }
 0x2c8   : > { %v2708_v36 = vrot.slane %v2594_v26, 2  ;;  %v3010_v55 = vunpack.c.l.bf16 %v2932_v11  ;;  %v3011_v62 = vunpack.c.h.bf16 %v2932_v11  ;;  %v3066_v50 = vmul.f32 %v7625_v45, %v1303_v47  ;;  %v7636_v26 = vld [vmem:[#allocation8 + $0x7] ss:$0 sm:$0xff] }
 0x2c9   : > { %v2412_v4 = vsel %vm1525_vm1, %v2410_v48, %v2411_v46  ;;  %v2506_v23 = vadd.f32 %v2410_v48, %v2258_v58  ;;  %v2508_v25 = vadd.f32 %v2411_v46, %v2260_v19  ;;  %v2709_v7 = vrot.slane %v2595_v42, 2 }
 0x2ca   : > { %v2507_v27 = vadd.f32 %v2412_v4, %v2259_v31  ;;  %v3064_v28 = vmul.f32 %v7625_v45, %v3010_v55  ;;  %v3065_v9 = vmul.f32 %v7625_v45, %v3011_v62  ;;  %v3114_v22 = vadd.f32 %v3066_v50, %v7483_v15 }
 0x2cb   : > { %v2710_v17 = vsel %vm1806_vm2, %v2708_v36, %v2709_v7  ;;  %v2712_v51 = vsel %vm1806_vm2, %v2709_v7, %v2711_v41  ;;  %v7634_v11 = vadd.f32 %v2708_v36, %v2506_v23  ;;  %v3192_v58 = vmul.f32 %v7636_v26, %v7562_v10 }
 0x2cc   : > { %v7640_v46 = vadd.f32 %v2710_v17, %v2507_v27  ;;  %v7642_v31 = vadd.f32 %v2712_v51, %v2508_v25  ;;  %v3112_v19 = vadd.f32 %v3064_v28, %v7478_v21  ;;  %v3113_v62 = vadd.f32 %v3065_v9, %v7481_v57 }
 0x2cd   : > { %v3193_v50 = vmul.f32 %v7636_v26, %v7564_v34  ;;  %v3264_v15 = vrot.slane %v3192_v58, 1  ;;  %v3448_v55 = vmul.f32 %v7566_v16, %v7562_v10  ;;  %v3449_v36 = vmul.f32 %v7566_v16, %v7564_v34 }
 0x2ce   : > { %v1355_v41 = vmul.f32 %v7522_v60, %v1301_v53  ;;  %v1357_v42 = vmul.f32 %v7522_v60, %v1303_v47  ;;  %v941_v48 = vmul.f32 %v909_v61, %v7535_v35  ;;  %v910_v4 = vmin.f32 %v878_v1, 6.0 }
 0x2cf   : > { %v3265_v21 = vrot.slane %v3193_v50, 1  ;;  %v3360_v23 = vadd.f32 %v3264_v15, %v3112_v19  ;;  %v3560_v57 = vrot.slane %v3448_v55, 2  ;;  %v3561_v25 = vrot.slane %v3449_v36, 2 }
 0x2d0   : > { %v1356_v7 = vmul.f32 %v7522_v60, %v1302_v43  ;;  %v9491_v27 = vrot.slane %v7591_v32, 1  ;;  %v9492_v10 = vrot.slane %v7587_v0, 1  ;;  %v1858_v34 = vrot.slane %v7605_v18, 2  ;;  %v1148_v43 = vld [vmem:[#allocation2 + $0x108] sm:$0x80] }
 0x2d1   : > { %v942_v53 = vmul.f32 %v910_v4, %v7549_v63  ;;  %v3266_v47 = vsel %vm1525_vm1, %v3264_v15, %v3265_v21  ;;  %v3362_v35 = vadd.f32 %v3265_v21, %v3114_v22  ;;  %v9493_v61 = vrot.slane %v7569_v3, 2  ;;  %v9496_v22 = vld [vmem:[#allocation44_spill] sm:$0xff] }
 0x2d2   : > { %v1558_v28 = vsel %vm1525_vm1, %v9492_v10, %v9491_v27  ;;  %v973_v9 = vmul.f32 0.16666667, %v941_v48  ;;  %v3361_v17 = vadd.f32 %v3266_v47, %v3113_v62  ;;  %v7667_v51 = vadd.f32 %v3560_v57, %v3360_v23  ;;  %v2005_v23 = vld [vmem:[#allocation2 + $0x108] sm:$0x80] }
 0x2d3   : > { %v3564_v1 = vsel %vm1806_vm2, %v3561_v25, %v9493_v61  ;;  %v974_v58 = vmul.f32 0.16666667, %v942_v53  ;;  %v1010_v18 = vadd.f32 %v6329_v39, %v7078_v52  ;;  %v3562_v63 = vsel %vm1806_vm2, %v3560_v57, %v3561_v25  ;;  %v9501_v57 = vld [vmem:[#allocation22_spill] sm:$0xff]  ;;  %v9505_v61 = vld [vmem:[#allocation45_spill] sm:$0xff] }
 0x2d4   : > { %9494 = vst [vmem:[#allocation38_spill] sm:$0xff] %v7667_v51  ;;  %v7672_v19 = vadd.f32 %v3564_v1, %v3362_v35  ;;  %v7676_v3 = vadd.f32 %v6325_v38, %v7113_v40  ;;  %v1011_v50 = vadd.f32 %v6329_v39, %v9496_v22  ;;  %v7681_v62 = vmul.f32 0.16666667, %v7541_v20 }
 0x2d5   : > { %v7683_v15 = vadd.f32 %v3562_v63, %v3361_v17  ;;  %v1103_v55 = vpack.c.bf16 %v974_v58, %v973_v9  ;;  %v1224_v36 = vrot.slane %v1148_v43, 4  ;;  %1042 = vst [vmem:[%s6339_s28 + $0xa8] sm:$0xff] %v1010_v18  ;;  %v9499_v52 = vmov %v9491_v27  ;;  %v2860_v43 = vld [vmem:[#allocation2 + $0x108] sm:$0x80] }
 0x2d6   : > { %9495 = vst [vmem:[#allocation39_spill] sm:$0xff] %v7672_v19  ;;  %9497 = vst [vmem:[#allocation44_spill] sm:$0xff] %v7681_v62  ;;  %v1654_v48 = vadd.f32 %v9499_v52, %v1357_v42  ;;  %v1857_v4 = vrot.slane %v7600_v8, 2  ;;  %v9500_v21 = vunpack.c.l.bf16 %v7575_v56  ;;  %v7697_v20 = vadd.f32 %v6325_v38, %v9501_v57 }
 0x2d7   : > { %9498 = vst [vmem:[#allocation60_spill] sm:$0xff] %v7683_v15  ;;  %1043 = vst [vmem:[%s6339_s28 + $0xb0] sm:$0xff] %v1011_v50  ;;  %v9502_v25 = vmov %v9492_v10  ;;  %v1653_v10 = vadd.f32 %v1558_v28, %v1356_v7  ;;  %v9503_v32 = vrot.slane %v7553_v14, 2  ;;  %v1225_v42 = vrot.slane %v1103_v55, 4  ;;  %v9508_v14 = vld [vmem:[#allocation41_spill] sm:$0xff] }
 0x2d8   : > { %v7692_v40 = vmul.f32 %v7371_v24, %v9500_v21  ;;  %v1652_v27 = vadd.f32 %v9502_v25, %v1355_v41  ;;  %v7704_v56 = vunpack.c.l.bf16 %v1103_v55  ;;  %v9504_v53 = vunpack.c.l.bf16 %v7583_v12  ;;  %v9506_v41 = vld [vmem:[#allocation40_spill] sm:$0xff] }
 0x2d9   : > { %v1861_v8 = vsel %vm1806_vm2, %v1858_v34, %v9503_v32  ;;  %v7710_v35 = vadd.f32 3.0, %v7676_v3  ;;  %v1012_v0 = vadd.f32 %v6329_v39, %v9505_v61  ;;  %v7716_v7 = vadd.f32 %v6705_v59, %v9506_v41 }
 0x2da   : > { %v2599_v47 = vmul.f32 %v7555_v2, %v9504_v53  ;;  %v7720_v28 = vadd.f32 %v6705_v59, %v9508_v14  ;;  %v1306_v1 = vunpack.c.l.bf16 %v1225_v42  ;;  %v2079_v9 = vrot.slane %v2005_v23, 4 }
 0x2db   : > { %9507 = vst [vmem:[#allocation22_spill] sm:$0xff] %v7716_v7  ;;  %v1859_v12 = vsel %vm1806_vm2, %v1857_v4, %v1858_v34  ;;  %v1967_v17 = vadd.f32 %v1861_v8, %v1654_v48  ;;  %v1226_v58 = vsel %vm1190_vm0, %v1224_v36, %v1225_v42  ;;  %v848_v18 = vadd.f32 3.0, %v7697_v20  ;;  %1044 = vst [vmem:[%s6339_s28 + $0xb8] sm:$0xff] %v1012_v0 }
 0x2dc   : > { %9509 = vst [vmem:[#allocation45_spill] sm:$0xff] %v7720_v28  ;;  %v1965_v63 = vadd.f32 %v1857_v4, %v1652_v27  ;;  %v1966_v22 = vadd.f32 %v1859_v12, %v1653_v10  ;;  %v7726_v50 = vunpack.c.h.bf16 %v1103_v55  ;;  %v7731_v21 = vmul.f32 %v7490_v13, %v7704_v56 }
 0x2dd   : > { %v2716_v23 = vrot.slane %v2599_v47, 2  ;;  %v2933_v57 = vrot.slane %v2860_v43, 4  ;;  %v879_v34 = vmax.f32 %v7710_v35, 0.0  ;;  %v1304_v48 = vunpack.c.l.bf16 %v1226_v58 }
 0x2de   : > { %9510 = vst [vmem:[#allocation40_spill] sm:$0xff] %v7726_v50  ;;  %v2081_v36 = vsel %vm1190_vm0, %v2079_v9, %v1225_v42  ;;  %v2215_v25 = vmul.f32 %v7607_v54, %v1306_v1  ;;  %v2339_v4 = vmul.f32 %v7614_v44, %v7704_v56  ;;  %v1305_v55 = vunpack.c.h.bf16 %v1226_v58 }
 0x2df   : > { %v2159_v27 = vunpack.c.l.bf16 %v2081_v36  ;;  %v880_v10 = vmax.f32 %v848_v18, 0.0  ;;  %v7740_v32 = vadd.f32 %v6325_v38, %v7199_v6  ;;  %v7743_v8 = vmul.f32 %v7522_v60, %v1306_v1 }
 0x2e0   : > { %v7747_v53 = vmul.f32 %v7490_v13, %v7726_v50  ;;  %v7751_v47 = vmul.f32 %v7371_v24, %v7704_v56  ;;  %v2160_v35 = vunpack.c.h.bf16 %v2081_v36  ;;  %v1559_v61 = vrot.slane %v7731_v21, 1 }
 0x2e1   : > { %v7756_v0 = vmul.f32 %v7371_v24, %v7726_v50  ;;  %v2213_v6 = vmul.f32 %v7607_v54, %v2159_v27  ;;  %v2263_v41 = vadd.f32 %v2215_v25, %v1967_v17  ;;  %v1358_v14 = vmul.f32 %v7522_v60, %v1304_v48 }
 0x2e2   : > { %v2214_v9 = vmul.f32 %v7607_v54, %v2160_v35  ;;  %v2340_v43 = vmul.f32 %v7614_v44, %v7726_v50  ;;  %v2413_v12 = vrot.slane %v2339_v4, 1  ;;  %v7765_v18 = vmul.f32 %v7555_v2, %v7704_v56 }
 0x2e3   : > { %v2261_v58 = vadd.f32 %v2213_v6, %v1965_v63  ;;  %v7769_v21 = vmul.f32 %v7555_v2, %v7726_v50  ;;  %v2935_v36 = vsel %vm1190_vm0, %v2933_v57, %v1225_v42  ;;  %v3069_v63 = vmul.f32 %v7625_v45, %v1306_v1 }
 0x2e4   : > { %v2262_v17 = vadd.f32 %v2214_v9, %v1966_v22  ;;  %v2414_v25 = vrot.slane %v2340_v43, 1  ;;  %v3013_v48 = vunpack.c.l.bf16 %v2935_v36  ;;  %v3014_v27 = vunpack.c.h.bf16 %v2935_v36 }
 0x2e5   : > { %v2509_v35 = vadd.f32 %v2413_v12, %v2261_v58  ;;  %v2713_v52 = vrot.slane %v7765_v18, 2  ;;  %v2714_v4 = vrot.slane %v7769_v21, 2  ;;  %v1560_v42 = vrot.slane %v7747_v53, 1 }
 0x2e6   : > { %v2415_v6 = vsel %vm1525_vm1, %v2413_v12, %v2414_v25  ;;  %v2511_v19 = vadd.f32 %v2414_v25, %v2263_v41  ;;  %v3067_v15 = vmul.f32 %v7625_v45, %v3013_v48  ;;  %v3068_v51 = vmul.f32 %v7625_v45, %v3014_v27  ;;  %v9518_v48 = vld [vmem:[#allocation42_spill] sm:$0xff] }
 0x2e7   : > { %v7779_v22 = vadd.f32 %v2415_v6, %v2262_v17  ;;  %v2717_v57 = vsel %vm1806_vm2, %v2714_v4, %v2716_v23  ;;  %v7786_v9 = vadd.f32 %v2713_v52, %v2509_v35  ;;  %v3117_v12 = vadd.f32 %v3069_v63, %v7642_v31 }
 0x2e8   : > { %v7788_v1 = vadd.f32 %v2717_v57, %v2511_v19  ;;  %v3115_v41 = vadd.f32 %v3067_v15, %v7634_v11  ;;  %v7792_v43 = vadd.f32 %v3068_v51, %v7640_v46  ;;  %v1359_v53 = vmul.f32 %v7522_v60, %v1305_v55 }
 0x2e9   : > { %9511 = vst [vmem:[#allocation41_spill] sm:$0xff] %v7779_v22  ;;  %v7798_v58 = vmul.f32 %v7636_v26, %v7704_v56  ;;  %v7802_v23 = vmul.f32 %v7636_v26, %v7726_v50  ;;  %v7806_v19 = vmul.f32 %v7566_v16, %v7704_v56  ;;  %v911_v11 = vmin.f32 %v879_v34, 6.0  ;;  %v9517_v34 = vld [vmem:[#allocation47_spill] sm:$0xff] }
 0x2ea   : > { %9512 = vst [vmem:[#allocation61_spill] sm:$0xff] %v7788_v1  ;;  %9513 = vst [vmem:[#allocation62_spill] sm:$0xff] %v7792_v43  ;;  %v912_v46 = vmin.f32 %v880_v10, 6.0  ;;  %v849_v51 = vadd.f32 3.0, %v7740_v32  ;;  %v1013_v31 = vadd.f32 %v6329_v39, %v7204_v33  ;;  %v1561_v15 = vsel %vm1525_vm1, %v1559_v61, %v1560_v42 }
 0x2eb   : > { %9514 = vst [vmem:[#allocation63_spill] sm:$0xff] %v7798_v58  ;;  %9515 = vst [vmem:[#allocation64_spill] sm:$0xff] %v7802_v23  ;;  %v1863_v55 = vrot.slane %v7756_v0, 2  ;;  %v9333_v36 = vrot.slane %v7798_v58, 1  ;;  %v9334_v17 = vrot.slane %v7802_v23, 1  ;;  %v943_v25 = vmul.f32 %v911_v11, %v7676_v3 }
 0x2ec   : > { %9516 = vst [vmem:[#allocation65_spill] sm:$0xff] %v7806_v19  ;;  %v944_v16 = vmul.f32 %v912_v46, %v7697_v20  ;;  %v881_v56 = vmax.f32 %v849_v51, 0.0  ;;  %1045 = vst [vmem:[%s6339_s28 + $0xc0] sm:$0xff] %v1013_v31  ;;  %v7820_v10 = vadd.f32 %v6325_v38, %v9517_v34  ;;  %v7824_v33 = vadd.f32 %v6705_v59, %v9518_v48  ;;  %v1150_v20 = vld [vmem:[#allocation2 + $0x120] sm:$0x80] }
 0x2ed   : > { %v3363_v0 = vadd.f32 %v9333_v36, %v3115_v41  ;;  %v7830_v27 = vadd.f32 %v9334_v17, %v3117_v12  ;;  %v9332_v3 = vrot.slane %v7806_v19, 2  ;;  %v1655_v35 = vadd.f32 %v1559_v61, %v1358_v14  ;;  %v2007_v41 = vld [vmem:[#allocation2 + $0x120] sm:$0x80]  ;;  %v9522_v12 = vld [vmem:[#allocation26_spill] sm:$0xff]  ;;  %v7862_v36 = vld [vmem:[#allocation2 + $0x138] sm:$0x80] }
 0x2ee   : > { %9519 = vst [vmem:[#allocation47_spill] sm:$0xff] %v7824_v33  ;;  %v1862_v63 = vrot.slane %v7751_v47, 2  ;;  %v975_v6 = vmul.f32 0.16666667, %v943_v25  ;;  %v976_v57 = vmul.f32 0.16666667, %v944_v16  ;;  %v1656_v11 = vadd.f32 %v1561_v15, %v1359_v53 }
 0x2ef   : > { %9520 = vst [vmem:[#allocation42_spill] sm:$0xff] %v7830_v27  ;;  %v1657_v46 = vadd.f32 %v1560_v42, %v7743_v8  ;;  %v7837_v51 = vadd.f32 %v9332_v3, %v3363_v0  ;;  %v7839_v31 = vld [vmem:[#allocation2 + $0x120] sm:$0x80]  ;;  %v1014_v34 = vadd.f32 %v6329_v39, %v9522_v12  ;;  %v9523_v61 = vrot.slane %v7692_v40, 2  ;;  %v7860_v3 = vld [vmem:[#allocation2 + $0x138] sm:$0x80] }
 0x2f0   : > { %v1104_v14 = vpack.c.bf16 %v976_v57, %v975_v6  ;;  %v913_v25 = vmin.f32 %v881_v56, 6.0  ;;  %v850_v53 = vadd.f32 3.0, %v7820_v10  ;;  %v7848_v8 = vadd.f32 3.0, %v7716_v7  ;;  %v9526_v16 = vld [vmem:[#allocation49_spill] sm:$0xff] }
 0x2f1   : > { %9521 = vst [vmem:[#allocation66_spill] sm:$0xff] %v7837_v51  ;;  %v1866_v47 = vsel %vm1806_vm2, %v1863_v55, %v9523_v61  ;;  %v7851_v42 = vadd.f32 3.0, %v7720_v28  ;;  %v1227_v15 = vrot.slane %v1150_v20, 4  ;;  %1046 = vst [vmem:[%s6339_s28 + $0xc8] sm:$0xff] %v1014_v34  ;;  %v1015_v48 = vadd.f32 %v6329_v39, %v9526_v16  ;;  %v7864_v20 = vld [vmem:[#allocation2 + $0x138] sm:$0x80] }
 0x2f2   : > { %9524 = vst [vmem:[#allocation26_spill] sm:$0xff] %v7848_v8  ;;  %v1864_v40 = vsel %vm1806_vm2, %v1862_v63, %v1863_v55  ;;  %v1228_v0 = vrot.slane %v1104_v14, 4  ;;  %v2082_v12 = vrot.slane %v2007_v41, 4  ;;  %v2936_v56 = vrot.slane %v7839_v31, 4  ;;  %v9528_v34 = vld [vmem:[#allocation51_spill] sm:$0xff]  ;;  %v5629_v8 = vld [vmem:[#allocation9 + $0x10] sm:$0xff]  }
 0x2f3   : > { %9525 = vst [vmem:[#allocation67_spill] sm:$0xff] %v7851_v42  ;;  %v1968_v6 = vadd.f32 %v1862_v63, %v1655_v35  ;;  %v1970_v57 = vadd.f32 %v1866_v47, %v1657_v46  ;;  %v7858_v61 = vunpack.c.l.bf16 %v1104_v14  ;;  %1047 = vst [vmem:[%s6339_s28 + $0xd0] sm:$0xff] %v1015_v48  ;;  %v1016_v16 = vadd.f32 %v6329_v39, %v9528_v34  ;;  %v7879_v41 = vld [vmem:[#allocation2 + $0x150] sm:$0x80] }
 0x2f4   : > { %v7869_v55 = vadd.f32 %v1864_v40, %v1656_v11  ;;  %v7876_v35 = vsel %vm1806_vm2, %v2713_v52, %v2714_v4  ;;  %v945_v63 = vmul.f32 %v913_v25, %v7740_v32  ;;  %v882_v46 = vmax.f32 %v850_v53, 0.0  ;;  %v7881_v31 = vld [vmem:[#allocation2 + $0x150] sm:$0x80]  ;;  %v9532_v40 = vld [vmem:[#allocation29_spill] sm:$0xff]  ;;  %v9533_v53 = vld [vmem:[#allocation50_spill] sm:$0xff] }
 0x2f5   : > { %9527 = vst [vmem:[#allocation49_spill] sm:$0xff] %v7858_v61  ;;  %9529 = vst [vmem:[#allocation51_spill] sm:$0xff] %v7876_v35  ;;  %v1229_v47 = vsel %vm1190_vm0, %v1227_v15, %v1228_v0  ;;  %v7884_v48 = vunpack.c.l.bf16 %v1228_v0  ;;  %v7886_v11 = vunpack.c.h.bf16 %v1104_v14  ;;  %v7890_v21 = vadd.f32 %v6325_v38, %v9532_v40 }
 0x2f6   : > { %1048 = vst [vmem:[%s6339_s28 + $0xd8] sm:$0xff] %v1016_v16  ;;  %v2084_v52 = vsel %vm1190_vm0, %v2082_v12, %v1228_v0  ;;  %v1485_v25 = vmul.f32 %v7490_v13, %v7858_v61  ;;  %v7901_v14 = vadd.f32 %v6325_v38, %v9533_v53  ;;  %v1307_v16 = vunpack.c.l.bf16 %v1229_v47 }
 0x2f7   : > { %9530 = vst [vmem:[#allocation68_spill] sm:$0xff] %v7884_v48  ;;  %9531 = vst [vmem:[#allocation69_spill] sm:$0xff] %v7886_v11  ;;  %v2162_v40 = vunpack.c.l.bf16 %v2084_v52  ;;  %v977_v12 = vmul.f32 0.16666667, %v945_v63  ;;  %v914_v17 = vmin.f32 %v882_v46, 6.0  ;;  %v2218_v18 = vmul.f32 %v7607_v54, %v7884_v48 }
 0x2f8   : > { %v7909_v4 = vmul.f32 %v7614_v44, %v7858_v61  ;;  %v7913_v32 = vmul.f32 %v7614_v44, %v7886_v11  ;;  %v851_v53 = vadd.f32 3.0, %v7890_v21  ;;  %v1308_v15 = vunpack.c.h.bf16 %v1229_v47 }
 0x2f9   : > { %v1486_v34 = vmul.f32 %v7490_v13, %v7886_v11  ;;  %v2216_v63 = vmul.f32 %v7607_v54, %v2162_v40  ;;  %v7921_v46 = vmul.f32 %v7555_v2, %v7858_v61  ;;  %v1562_v51 = vrot.slane %v1485_v25, 1 }
 0x2fa   : > { %v7925_v28 = vmul.f32 %v7371_v24, %v7858_v61  ;;  %v2266_v7 = vadd.f32 %v2218_v18, %v1970_v57  ;;  %v9340_v27 = vrot.slane %v7913_v32, 1  ;;  %v1361_v19 = vmul.f32 %v7522_v60, %v1307_v16 }
 0x2fb   : > { %9534 = vst [vmem:[#allocation29_spill] sm:$0xff] %v7921_v46  ;;  %v2264_v47 = vadd.f32 %v2216_v63, %v1968_v6  ;;  %v9345_v59 = vrot.slane %v7909_v4, 1  ;;  %v7931_v43 = vsel %vm1190_vm0, %v2936_v56, %v1228_v0  ;;  %v7935_v40 = vmul.f32 %v7371_v24, %v7886_v11 }
 0x2fc   : > { %9535 = vst [vmem:[#allocation50_spill] sm:$0xff] %v7931_v43  ;;  %v7939_v25 = vadd.f32 %v9340_v27, %v2266_v7  ;;  %v3016_v57 = vunpack.c.l.bf16 %v7931_v43  ;;  %v852_v18 = vadd.f32 3.0, %v7901_v14  ;;  %v1363_v6 = vmul.f32 %v7522_v60, %v7884_v48  ;;  %v5627_v43 = vld [vmem:[#allocation9] sm:$0xff]  }
 0x2fd   : > { %v2512_v16 = vadd.f32 %v9345_v59, %v2264_v47  ;;  %v9348_v0 = vrot.slane %v7921_v46, 2  ;;  %v7950_v56 = vmul.f32 %v7636_v26, %v7858_v61  ;;  %v7953_v63 = vmul.f32 %v7522_v60, %v1308_v15 }
 0x2fe   : > { %9536 = vst [vmem:[#allocation70_spill] sm:$0xff] %v7939_v25  ;;  %v1563_v7 = vrot.slane %v1486_v34, 1  ;;  %v3070_v27 = vmul.f32 %v7625_v45, %v3016_v57  ;;  %v946_v50 = vmul.f32 %v914_v17, %v7820_v10  ;;  %v1658_v58 = vadd.f32 %v1562_v51, %v1361_v19 }
 0x2ff   : > { %9537 = vst [vmem:[#allocation71_spill] sm:$0xff] %v7950_v56  ;;  %v9349_v23 = vrot.slane %v7925_v28, 2  ;;  %v2163_v62 = vunpack.c.h.bf16 %v2084_v52  ;;  %v7960_v47 = vadd.f32 %v9348_v0, %v2512_v16  ;;  %v9347_v26 = vrot.slane %v7950_v56, 1 }
 0x300   : > { %v3118_v59 = vadd.f32 %v3070_v27, %v7786_v9  ;;  %v978_v15 = vmul.f32 0.16666667, %v946_v50  ;;  %v883_v61 = vmax.f32 %v851_v53, 0.0  ;;  %v7966_v45 = vmul.f32 %v7555_v2, %v7886_v11 }
 0x301   : > { %9538 = vst [vmem:[#allocation72_spill] sm:$0xff] %v7960_v47  ;;  %v884_v17 = vmax.f32 %v852_v18, 0.0  ;;  %v7970_v19 = vadd.f32 %v6325_v38, %v7331_v37  ;;  %v1017_v10 = vadd.f32 %v6329_v39, %v7333_v49  ;;  %v7980_v50 = vadd.f32 %v6325_v38, %v7340_v30 }
 0x302   : > { %9539 = vst [vmem:[#allocation73_spill] sm:$0xff] %v7966_v45  ;;  %v7976_v9 = vadd.f32 %v9347_v26, %v3118_v59  ;;  %v1105_v27 = vpack.c.bf16 %v978_v15, %v977_v12  ;;  %v1018_v52 = vadd.f32 %v6329_v39, %v7349_v29  ;;  %v7985_v34 = vsel %vm1525_vm1, %v1562_v51, %v1563_v7 }
 0x303   : > { %v7987_v37 = vadd.f32 %v1563_v7, %v1363_v6  ;;  %v915_v49 = vmin.f32 %v883_v61, 6.0  ;;  %1049 = vst [vmem:[%s6339_s28 + $0xe0] sm:$0xff] %v1017_v10  ;;  %v7992_v59 = vmul.f32 %v7607_v54, %v2163_v62  ;;  %v8001_v29 = vadd.f32 %v9349_v23, %v1658_v58 }
 0x304   : > { %9540 = vst [vmem:[#allocation74_spill] sm:$0xff] %v7976_v9  ;;  %v1231_v12 = vrot.slane %v1105_v27, 4  ;;  %v7994_v57 = vunpack.c.l.bf16 %v1105_v27  ;;  %v7996_v30 = vunpack.c.h.bf16 %v1105_v27  ;;  %1050 = vst [vmem:[%s6339_s28 + $0xe8] sm:$0xff] %v1018_v52  ;;  %v916_v6 = vmin.f32 %v884_v17, 6.0  ;;  %v9553_v9 = vld [vmem:[#allocation55_spill] sm:$0xff] }
 0x305   : > { %v9543_v61 = vrot.slane %v7860_v3, 4  ;;  %v853_v7 = vadd.f32 3.0, %v7970_v19  ;;  %v854_v15 = vadd.f32 3.0, %v7980_v50  ;;  %v947_v27 = vmul.f32 %v915_v49, %v7890_v21 }
 0x306   : > { %9541 = vst [vmem:[#allocation75_spill] sm:$0xff] %v7994_v57  ;;  %9542 = vst [vmem:[#allocation76_spill] sm:$0xff] %v7996_v30  ;;  %v8012_v16 = vmul.f32 %v7490_v13, %v7994_v57  ;;  %v8017_v10 = vunpack.c.l.bf16 %v1231_v12  ;;  %v823_v3 = vadd.f32 %v6325_v38, %v7369_v5  ;;  %v8024_v17 = vmul.f32 %v7490_v13, %v7996_v30 }
 0x307   : > { %v8008_v62 = vsel %vm1190_vm0, %v9543_v61, %v1231_v12  ;;  %v8028_v52 = vmul.f32 %v7371_v24, %v7994_v57  ;;  %v8032_v61 = vmul.f32 %v7371_v24, %v7996_v30  ;;  %v9545_v26 = vrot.slane %v7862_v36, 4 }
 0x308   : > { %v1310_v58 = vunpack.c.l.bf16 %v8008_v62  ;;  %9544 = vst [vmem:[#allocation77_spill] sm:$0xff] %v8017_v10  ;;  %v948_v0 = vmul.f32 %v916_v6, %v7901_v14  ;;  %v8045_v51 = vmul.f32 %v7614_v44, %v7994_v57  ;;  %v8049_v24 = vmul.f32 %v7614_v44, %v7996_v30 }
 0x309   : > { %v8037_v18 = vsel %vm1190_vm0, %v9545_v26, %v1231_v12  ;;  %v885_v36 = vmax.f32 %v853_v7, 0.0  ;;  %v886_v23 = vmax.f32 %v854_v15, 0.0  ;;  %v8058_v53 = vmul.f32 %v7555_v2, %v7994_v57 }
 0x30a   : > { %v1364_v21 = vmul.f32 %v7522_v60, %v1310_v58  ;;  %v2165_v49 = vunpack.c.l.bf16 %v8037_v18  ;;  %9546 = vst [vmem:[#allocation78_spill] sm:$0xff] %v8045_v51  ;;  %v8054_v58 = vmul.f32 %v7522_v60, %v8017_v10  ;;  %v855_v14 = vadd.f32 3.0, %v823_v3 }
 0x30b   : > { %9547 = vst [vmem:[#allocation79_spill] sm:$0xff] %v8058_v53  ;;  %v8065_v7 = vmul.f32 %v7555_v2, %v7996_v30  ;;  %v9549_v15 = vrot.slane %v8012_v16, 1  ;;  %v8077_v6 = vmul.f32 %v7607_v54, %v8017_v10  ;;  %v9550_v30 = vrot.slane %v7864_v20, 4  ;;  %v9552_v10 = vld [vmem:[#allocation53_spill] sm:$0xff] }
 0x30c   : > { %v8073_v47 = vmul.f32 %v7607_v54, %v2165_v49  ;;  %v980_v56 = vmul.f32 0.16666667, %v948_v0  ;;  %v917_v49 = vmin.f32 %v885_v36, 6.0  ;;  %v918_v1 = vmin.f32 %v886_v23, 6.0  ;;  %v1156_v23 = vld [vmem:[#allocation2 + $0x168] sm:$0x80] }
 0x30d   : > { %9548 = vst [vmem:[#allocation80_spill] sm:$0xff] %v8065_v7  ;;  %v8069_v26 = vadd.f32 %v9549_v15, %v1364_v21  ;;  %v8085_v21 = vsel %vm1190_vm0, %v9550_v30, %v1231_v12  ;;  %v979_v15 = vmul.f32 0.16666667, %v947_v27  ;;  %v887_v11 = vmax.f32 %v855_v14, 0.0  ;;  %v9554_v27 = vld [vmem:[#allocation30_spill] sm:$0xff] }
 0x30e   : > { %9551 = vst [vmem:[#allocation81_spill] sm:$0xff] %v8085_v21  ;;  %v1019_v5 = vadd.f32 %v6329_v39, %v9552_v10  ;;  %v824_v2 = vadd.f32 %v6325_v38, %v9553_v9  ;;  %v949_v12 = vmul.f32 %v917_v49, %v7970_v19  ;;  %v950_v30 = vmul.f32 %v918_v1, %v7980_v50  ;;  %v5628_v19 = vld [vmem:[#allocation9 + $0x8] sm:$0xff]  }
 0x30f   : > { %v1106_v20 = vpack.c.bf16 %v980_v56, %v979_v15  ;;  %v1020_v0 = vadd.f32 %v6329_v39, %v9554_v27  ;;  %v919_v36 = vmin.f32 %v887_v11, 6.0  ;;  %v9360_v56 = vmov 0.0   ;;  %v1685_v7 = vld [vmem:[#allocation2 + $0x148] sm:$0x1] }
 0x310   : > { %1051 = vst [vmem:[%s6339_s28 + $0xf0] sm:$0xff] %v1019_v5  ;;  %v856_v14 = vadd.f32 3.0, %v824_v2  ;;  %v981_v38 = vmul.f32 0.16666667, %v949_v12  ;;  %5391 = vmatprep.subr.bf16.mxu1 %v9360_v56  ;;  %5407 = vmatprep.mubr.msk.bf16.mxu1 %vm5940_vm4, %v9360_v56  ;;  %v982_v39 = vmul.f32 0.16666667, %v950_v30 }
 0x311   : > { %v8097_v57 = vrot.slane %v1106_v20, 4  ;;  %v8099_v48 = vunpack.c.l.bf16 %v1106_v20  ;;  %v8101_v10 = vunpack.c.h.bf16 %v1106_v20  ;;  %1052 = vst [vmem:[%s6339_s28 + $0xf8] sm:$0xff] %v1020_v0  ;;  %v951_v1 = vmul.f32 %v919_v36, %v823_v3  ;;  %5392 = vmatpush3.bf16.msra.mxu1 %v5627_v43  ;;  %v8119_v43 = vld [vmem:[#allocation8 + $0x2] ss:$0 sm:$0xff] }
 0x312   : > { %v888_v11 = vmax.f32 %v856_v14, 0.0  ;;  %v1236_v9 = vrot.slane %v1156_v23, 4  ;;  %v9557_v50 = vrot.slane %v7879_v41, 4  ;;  %5393 = vmatprep.subr.bf16.mxu1 %v9360_v56  ;;  %v9558_v30 = vrot.slane %v7881_v31, 4 }
 0x313   : > { %9555 = vst [vmem:[#allocation53_spill] sm:$0xff] %v8097_v57  ;;  %9556 = vst [vmem:[#allocation55_spill] sm:$0xff] %v8099_v48  ;;  %v8112_v15 = vunpack.c.l.bf16 %v8097_v57  ;;  %v1489_v49 = vmul.f32 %v7490_v13, %v8099_v48  ;;  %v1490_v20 = vmul.f32 %v7490_v13, %v8101_v10  ;;  %v8123_v12 = vmul.f32 %v8119_v43, %v8099_v48 }
 0x314   : > { %v1235_v5 = vsel %vm1190_vm0, %v9557_v50, %v8097_v57  ;;  %v8127_v41 = vmul.f32 %v8119_v43, %v8101_v10  ;;  %v8133_v27 = vsel %vm1190_vm0, %v9558_v30, %v8097_v57  ;;  %v8138_v36 = vmul.f32 %v7614_v44, %v8099_v48 }
 0x315   : > { %v1313_v3 = vunpack.c.l.bf16 %v1235_v5  ;;  %v1568_v0 = vrot.slane %v1489_v49, 1  ;;  %v1107_v14 = vpack.c.bf16 %v982_v39, %v981_v38  ;;  %v983_v56 = vmul.f32 0.16666667, %v951_v1  ;;  %5394 = vmatpush3.bf16.msra.mxu1 %v5628_v19 }
 0x316   : > { %9559 = vst [vmem:[#allocation30_spill] sm:$0xff] %v8138_v36  ;;  %v920_v42 = vmin.f32 %v888_v11, 6.0  ;;  %v1314_v33 = vunpack.c.h.bf16 %v1235_v5  ;;  %v9560_v49 = vmov 0.0   ;;  %v9561_v23 = vunpack.c.h.bf16 %v8008_v62 }
 0x317   : > { %v8141_v21 = vrot.slane %v1107_v14, 4  ;;  %v8143_v31 = vunpack.c.l.bf16 %v1107_v14  ;;  %v8145_v30 = vunpack.c.h.bf16 %v1107_v14  ;;  %5395 = vmatprep.subr.bf16.mxu1 %v9560_v49  ;;  %v1367_v39 = vmul.f32 %v7522_v60, %v1313_v3 }
 0x318   : > { %v1365_v57 = vmul.f32 %v7522_v60, %v9561_v23  ;;  %v952_v38 = vmul.f32 %v920_v42, %v824_v2  ;;  %v1368_v1 = vmul.f32 %v7522_v60, %v1314_v33  ;;  %v1369_v11 = vmul.f32 %v7522_v60, %v8112_v15  ;;  %v5630_v2 = vld [vmem:[#allocation9 + $0x18] sm:$0xff]  }
 0x319   : > { %v1238_v19 = vsel %vm1190_vm0, %v1236_v9, %v8141_v21  ;;  %v8158_v5 = vunpack.c.l.bf16 %v8141_v21  ;;  %v1491_v14 = vmul.f32 %v7490_v13, %v8143_v31  ;;  %v1492_v62 = vmul.f32 %v7490_v13, %v8145_v30  ;;  %5396 = vmatpush3.bf16.msra.mxu1 %v5629_v8 }
 0x31a   : > { %v984_v42 = vmul.f32 0.16666667, %v952_v38  ;;  %v1316_v3 = vunpack.c.l.bf16 %v1238_v19  ;;  %v1317_v33 = vunpack.c.h.bf16 %v1238_v19  ;;  %v9562_v23 = vrot.slane %v8024_v17, 1  ;;  %5397 = vmatprep.subr.bf16.mxu1 %v9560_v49 }
 0x31b   : > { %v9563_v50 = vrot.slane %v8012_v16, 1  ;;  %v1372_v25 = vmul.f32 %v7522_v60, %v8158_v5  ;;  %v1569_v35 = vrot.slane %v1490_v20, 1  ;;  %v1571_v22 = vrot.slane %v1491_v14, 1  ;;  %v1684_v16 = vld [vmem:[#allocation2 + $0x130] sm:$0x1] }
 0x31c   : > { %v1572_v53 = vrot.slane %v1492_v62, 1  ;;  %v8172_v13 = vpack.c.bf16 %v984_v42, %v983_v56  ;;  %v1370_v8 = vmul.f32 %v7522_v60, %v1316_v3  ;;  %v1371_v38 = vmul.f32 %v7522_v60, %v1317_v33  ;;  %v1686_v56 = vld [vmem:[#allocation2 + $0x160] sm:$0x1]  ;;  %v1687_v62 = vld [vmem:[#allocation2 + $0x178] sm:$0x1] }
 0x31d   : > { %v1567_v9 = vsel %vm1525_vm1, %v9563_v50, %v9562_v23  ;;  %v1659_v19 = vadd.f32 %v7985_v34, %v7953_v63  ;;  %v1570_v50 = vsel %vm1525_vm1, %v1568_v0, %v1569_v35  ;;  %v9564_v20 = vrot.slane %v8024_v17, 1  ;;  %5398 = vmatpush3.bf16.msra.mxu1 %v5630_v2  ;;  %v5631_v42 = vld [vmem:[#allocation9 + $0x20] sm:$0xff]  }
 0x31e   : > { %v1573_v23 = vsel %vm1525_vm1, %v1571_v22, %v1572_v53  ;;  %v1662_v46 = vadd.f32 %v1567_v9, %v1365_v57  ;;  %v1664_v3 = vadd.f32 %v1568_v0, %v1367_v39  ;;  %v1665_v60 = vadd.f32 %v1570_v50, %v1368_v1  ;;  %5399 = vmatprep.subr.bf16.mxu1 %v9560_v49  ;;  %v5632_v1 = vld [vmem:[#allocation9 + $0x28] sm:$0xff]  }
 0x31f   : > { %v1663_v14 = vadd.f32 %v9564_v20, %v8054_v58  ;;  %v1666_v33 = vadd.f32 %v1569_v35, %v1369_v11  ;;  %v1667_v45 = vadd.f32 %v1571_v22, %v1370_v8  ;;  %v1668_v63 = vadd.f32 %v1573_v23, %v1371_v38 }
 0x320   : > { %v1669_v34 = vadd.f32 %v1572_v53, %v1372_v25  ;;  %v1700_v48 = vunpack.c.l.bf16 %v1684_v16  ;;  %v1701_v36 = vunpack.c.l.bf16 %v1685_v7  ;;  %v1702_v51 = vunpack.c.l.bf16 %v1686_v56 }
 0x321   : > { %v1703_v57 = vunpack.c.l.bf16 %v1687_v62  ;;  %v1755_v17 = vmul.f32 %v8119_v43, %v8143_v31  ;;  %v1756_v58 = vmul.f32 %v8119_v43, %v8145_v30  ;;  %v9565_v22 = vrot.slane %v7935_v40, 2  ;;  %5400 = vmatpush3.bf16.msra.mxu1 %v5631_v42 }
 0x322   : > { %v1748_v2 = vmul.f32 %v8119_v43, %v1700_v48  ;;  %v1751_v0 = vmul.f32 %v8119_v43, %v1701_v36  ;;  %v9566_v35 = vrot.slane %v7925_v28, 2  ;;  %v9567_v53 = vrot.slane %v8032_v61, 2  ;;  %5401 = vmatprep.subr.bf16.mxu1 %v9560_v49 }
 0x323   : > { %v9568_v7 = vrot.slane %v8028_v52, 2  ;;  %v1754_v11 = vmul.f32 %v8119_v43, %v1702_v51  ;;  %v1757_v48 = vmul.f32 %v8119_v43, %v1703_v57  ;;  %v1877_v36 = vrot.slane %v8123_v12, 2 }
 0x324   : > { %v1869_v25 = vsel %vm1806_vm2, %v9566_v35, %v9565_v22  ;;  %v1882_v9 = vrot.slane %v1755_v17, 2  ;;  %v1870_v28 = vrot.slane %v1748_v2, 2  ;;  %v1875_v8 = vrot.slane %v1751_v0, 2  ;;  %v2015_v2 = vld [vmem:[#allocation2 + $0x180] sm:$0x80]  ;;  %v5633_v0 = vld [vmem:[#allocation9 + $0x30] sm:$0xff]  }
 0x325   : > { %v1874_v39 = vsel %vm1806_vm2, %v9568_v7, %v9567_v53  ;;  %v1883_v38 = vrot.slane %v1756_v58, 2  ;;  %v1972_v16 = vadd.f32 %v1869_v25, %v1659_v19  ;;  %v9569_v50 = vrot.slane %v8127_v41, 2  ;;  %v2013_v58 = vld [vmem:[#allocation2 + $0x168] sm:$0x80]  ;;  %5402 = vmatpush3.bf16.msra.mxu1 %v5632_v1 }
 0x326   : > { %v1880_v20 = vrot.slane %v1754_v11, 2  ;;  %v1885_v56 = vrot.slane %v1757_v48, 2  ;;  %v9570_v51 = vmov %v9568_v7  ;;  %v9571_v43 = vmov %v9565_v22  ;;  %5403 = vmatprep.subr.bf16.mxu1 %v9560_v49 }
 0x327   : > { %v1879_v23 = vsel %vm1806_vm2, %v1877_v36, %v9569_v50  ;;  %v1974_v62 = vadd.f32 %v9570_v51, %v8069_v26  ;;  %v1871_v12 = vsel %vm1806_vm2, %v9571_v43, %v1870_v28  ;;  %v9572_v42 = vmov %v9567_v53 }
 0x328   : > { %v1876_v57 = vsel %vm1806_vm2, %v9572_v42, %v1875_v8  ;;  %v1884_v19 = vsel %vm1806_vm2, %v1882_v9, %v1883_v38  ;;  %v1975_v17 = vadd.f32 %v1874_v39, %v1662_v46  ;;  %v9573_v22 = vmov %v9569_v50 }
 0x329   : > { %v1881_v52 = vsel %vm1806_vm2, %v9573_v22, %v1880_v20  ;;  %v1886_v26 = vsel %vm1806_vm2, %v1883_v38, %v1885_v56  ;;  %v1973_v40 = vadd.f32 %v1871_v12, %v7987_v37  ;;  %v1976_v35 = vadd.f32 %v1876_v57, %v1663_v14  ;;  %5404 = vmatpush3.bf16.msra.mxu1 %v5633_v0 }
 0x32a   : > { %v1977_v61 = vadd.f32 %v1877_v36, %v1664_v3  ;;  %v1978_v25 = vadd.f32 %v1879_v23, %v1665_v60  ;;  %v1979_v53 = vadd.f32 %v1881_v52, %v1666_v33  ;;  %v1980_v7 = vadd.f32 %v1882_v9, %v1667_v45  ;;  %v5634_v60 = vld [vmem:[#allocation9 + $0x38] sm:$0xff]   ;;  %5405 = vmatprep.subr.bf16.mxu1 %v9560_v49 }
 0x32b   : > { %v1981_v46 = vadd.f32 %v1884_v19, %v1668_v63  ;;  %v1982_v39 = vadd.f32 %v1886_v26, %v1669_v34  ;;  %v2091_v11 = vrot.slane %v2013_v58, 4  ;;  %v2094_v1 = vrot.slane %v2015_v2, 4 }
 0x32c   : > { %v8224_v48 = vrot.slane %v8172_v13, 4  ;;  %v2169_v41 = vunpack.c.h.bf16 %v8133_v27  ;;  %v9574_v28 = vunpack.c.h.bf16 %v8037_v18  ;;  %v9575_v14 = vunpack.c.l.bf16 %v8133_v27 }
 0x32d   : > { %v2093_v45 = vsel %vm1190_vm0, %v2091_v11, %v8141_v21  ;;  %v2224_v33 = vmul.f32 %v7607_v54, %v8112_v15  ;;  %v2227_v63 = vmul.f32 %v7607_v54, %v8158_v5  ;;  %v2265_v18 = vadd.f32 %v7992_v59, %v7869_v55  ;;  %5406 = vmatpush3.bf16.msra.mxu1 %v5634_v60 }
 0x32e   : > { %v2220_v37 = vmul.f32 %v7607_v54, %v9574_v28  ;;  %v2222_v3 = vmul.f32 %v7607_v54, %v9575_v14  ;;  %v2096_v27 = vsel %vm1190_vm0, %v2094_v1, %v8224_v48  ;;  %v2171_v34 = vunpack.c.l.bf16 %v2093_v45  ;;  %5411 = vmatprep.subr.bf16.mxu1 %v9560_v49  ;;  %v9613_v49 = vld [vmem:[#allocation76_spill] sm:$0xff] }
 0x32f   : > { %v2172_v36 = vunpack.c.h.bf16 %v2093_v45  ;;  %v2176_v9 = vunpack.c.l.bf16 %v8224_v48  ;;  %v2174_v8 = vunpack.c.l.bf16 %v2096_v27  ;;  %v2175_v38 = vunpack.c.h.bf16 %v2096_v27  ;;  %v2541_v27 = vld [vmem:[#allocation2 + $0x148] sm:$0x1] }
 0x330   : > { %v2223_v50 = vmul.f32 %v7607_v54, %v2169_v41  ;;  %v2267_v23 = vadd.f32 %v8073_v47, %v8001_v29  ;;  %v2225_v20 = vmul.f32 %v7607_v54, %v2171_v34  ;;  %v2268_v56 = vadd.f32 %v2220_v37, %v1972_v16 }
 0x331   : > { %v2226_v55 = vmul.f32 %v7607_v54, %v2172_v36  ;;  %v2230_v59 = vmul.f32 %v7607_v54, %v2176_v9  ;;  %v2228_v51 = vmul.f32 %v7607_v54, %v2174_v8  ;;  %v2229_v43 = vmul.f32 %v7607_v54, %v2175_v38  ;;  %v2542_v38 = vld [vmem:[#allocation2 + $0x160] sm:$0x1] }
 0x332   : > { %v2269_v12 = vadd.f32 %v8077_v6, %v1973_v40  ;;  %v2270_v42 = vadd.f32 %v2222_v3, %v1974_v62  ;;  %v2271_v57 = vadd.f32 %v2223_v50, %v1975_v17  ;;  %v2272_v19 = vadd.f32 %v2224_v33, %v1976_v35  ;;  %v2544_v50 = vld [vmem:[#allocation2 + $0x190] sm:$0x1] }
 0x333   : > { %v2273_v47 = vadd.f32 %v2225_v20, %v1977_v61  ;;  %v2274_v29 = vadd.f32 %v2226_v55, %v1978_v25  ;;  %v2275_v58 = vadd.f32 %v2227_v63, %v1979_v53  ;;  %v2276_v2 = vadd.f32 %v2228_v51, %v1980_v7  ;;  %v9579_v61 = vld [vmem:[#allocation78_spill] sm:$0xff] }
 0x334   : > { %v2277_v0 = vadd.f32 %v2229_v43, %v1981_v46  ;;  %v2278_v22 = vadd.f32 %v2230_v59, %v1982_v39  ;;  %v8258_v16 = vunpack.c.l.bf16 %v8172_v13  ;;  %v8261_v52 = vunpack.c.h.bf16 %v8172_v13  ;;  %v9581_v53 = vld [vmem:[#allocation30_spill] sm:$0xff] }
 0x335   : > { %v2346_v54 = vmul.f32 %v7614_v44, %v8101_v10  ;;  %v2347_v6 = vmul.f32 %v7614_v44, %v8143_v31  ;;  %v2348_v62 = vmul.f32 %v7614_v44, %v8145_v30  ;;  %v9576_v17 = vrot.slane %v7913_v32, 1  ;;  %v2540_v63 = vld [vmem:[#allocation2 + $0x130] sm:$0x1] }
 0x336   : > { %v9577_v26 = vrot.slane %v7909_v4, 1  ;;  %v9578_v35 = vrot.slane %v8049_v24, 1  ;;  %v9580_v13 = vrot.slane %v9579_v61, 1  ;;  %v2422_v7 = vrot.slane %v9581_v53, 1  ;;  %v9585_v61 = vld [vmem:[#allocation73_spill] sm:$0xff] }
 0x337   : > { %v2349_v46 = vmul.f32 %v7614_v44, %v8258_v16  ;;  %v2350_v39 = vmul.f32 %v7614_v44, %v8261_v52  ;;  %v2423_v11 = vrot.slane %v2346_v54, 1  ;;  %v2425_v32 = vrot.slane %v2347_v6, 1 }
 0x338   : > { %v2418_v40 = vsel %vm1525_vm1, %v9577_v26, %v9576_v17  ;;  %v2421_v25 = vsel %vm1525_vm1, %v9580_v13, %v9578_v35  ;;  %v2426_v1 = vrot.slane %v2348_v62, 1  ;;  %v9582_v41 = vmov %v9580_v13  ;;  %v5670_v17 = vld [vmem:[#allocation8 + $0x5] ss:$0 sm:$0xff] }
 0x339   : > { %v2513_v4 = vadd.f32 %v2418_v40, %v2265_v18  ;;  %v2515_v28 = vadd.f32 %v9582_v41, %v2267_v23  ;;  %v2516_v37 = vadd.f32 %v2421_v25, %v2268_v56  ;;  %v2424_v14 = vsel %vm1525_vm1, %v2422_v7, %v2423_v11  ;;  %v2543_v18 = vld [vmem:[#allocation2 + $0x178] sm:$0x1]  ;;  %v9587_v25 = vld [vmem:[#allocation29_spill] sm:$0xff] }
 0x33a   : > { %v2428_v3 = vrot.slane %v2349_v46, 1  ;;  %v2429_v60 = vrot.slane %v2350_v39, 1  ;;  %v9583_v45 = vmov %v9578_v35  ;;  %v2427_v34 = vsel %vm1525_vm1, %v2425_v32, %v2426_v1  ;;  %v9589_v39 = vld [vmem:[#allocation80_spill] sm:$0xff] }
 0x33b   : > { %v2517_v33 = vadd.f32 %v9583_v45, %v2269_v12  ;;  %v2518_v44 = vadd.f32 %v2422_v7, %v2270_v42  ;;  %v2519_v36 = vadd.f32 %v2424_v14, %v2271_v57  ;;  %v2520_v8 = vadd.f32 %v2423_v11, %v2272_v19  ;;  %v9584_v57 = vld [vmem:[#allocation55_spill] sm:$0xff] }
 0x33c   : > { %v2430_v23 = vsel %vm1525_vm1, %v2428_v3, %v2429_v60  ;;  %v2521_v20 = vadd.f32 %v2425_v32, %v2273_v47  ;;  %v2522_v55 = vadd.f32 %v2427_v34, %v2274_v29  ;;  %v2523_v59 = vadd.f32 %v2426_v1, %v2275_v58  ;;  %v9591_v32 = vld [vmem:[#allocation79_spill] sm:$0xff] }
 0x33d   : > { %v2524_v56 = vadd.f32 %v2428_v3, %v2276_v2  ;;  %v2525_v51 = vadd.f32 %v2430_v23, %v2277_v0  ;;  %v2526_v43 = vadd.f32 %v2429_v60, %v2278_v22  ;;  %v2556_v24 = vunpack.c.l.bf16 %v2540_v63 }
 0x33e   : > { %v2557_v12 = vunpack.c.l.bf16 %v2541_v27  ;;  %v2558_v54 = vunpack.c.l.bf16 %v2542_v38  ;;  %v2559_v6 = vunpack.c.l.bf16 %v2543_v18  ;;  %v2560_v62 = vunpack.c.l.bf16 %v2544_v50 }
 0x33f   : > { %v2602_v42 = vmul.f32 %v5670_v17, %v2556_v24  ;;  %v2606_v19 = vmul.f32 %v5670_v17, %v9584_v57  ;;  %v2607_v26 = vmul.f32 %v5670_v17, %v8101_v10  ;;  %v2609_v40 = vmul.f32 %v5670_v17, %v8143_v31 }
 0x340   : > { %v2605_v35 = vmul.f32 %v5670_v17, %v2557_v12  ;;  %v2608_v47 = vmul.f32 %v5670_v17, %v2558_v54  ;;  %v2610_v29 = vmul.f32 %v5670_v17, %v8145_v30  ;;  %v2611_v58 = vmul.f32 %v5670_v17, %v2559_v6 }
 0x341   : > { %v2612_v2 = vmul.f32 %v5670_v17, %v8258_v16  ;;  %v2613_v0 = vmul.f32 %v5670_v17, %v8261_v52  ;;  %v2614_v22 = vmul.f32 %v5670_v17, %v2560_v62  ;;  %v9586_v13 = vrot.slane %v9585_v61, 2 }
 0x342   : > { %v9588_v53 = vrot.slane %v9587_v25, 2  ;;  %v2721_v46 = vrot.slane %v2602_v42, 2  ;;  %v9590_v11 = vrot.slane %v9589_v39, 2  ;;  %v9592_v1 = vrot.slane %v9591_v32, 2  ;;  %v2866_v25 = vld [vmem:[#allocation2 + $0x150] sm:$0x80] }
 0x343   : > { %v2726_v14 = vrot.slane %v2605_v35, 2  ;;  %v2728_v3 = vrot.slane %v2606_v19, 2  ;;  %v2729_v60 = vrot.slane %v2607_v26, 2  ;;  %v2731_v45 = vrot.slane %v2608_v47, 2  ;;  %v9595_v19 = vld [vmem:[#allocation41_spill] sm:$0xff]  ;;  %v9596_v26 = vld [vmem:[#allocation51_spill] sm:$0xff] }
 0x344   : > { %v2720_v7 = vsel %vm1806_vm2, %v9588_v53, %v9586_v13  ;;  %v2725_v41 = vsel %vm1806_vm2, %v9592_v1, %v9590_v11  ;;  %v2733_v63 = vrot.slane %v2609_v40, 2  ;;  %v2734_v27 = vrot.slane %v2610_v29, 2  ;;  %v9597_v29 = vld [vmem:[#allocation70_spill] sm:$0xff] }
 0x345   : > { %v9593_v34 = vmov %v9586_v13  ;;  %v9594_v18 = vmov %v9590_v11  ;;  %v2736_v23 = vrot.slane %v2611_v58, 2  ;;  %v2738_v24 = vrot.slane %v2612_v2, 2  ;;  %v2868_v11 = vld [vmem:[#allocation2 + $0x168] sm:$0x80] }
 0x346   : > { %v2722_v38 = vsel %vm1806_vm2, %v9593_v34, %v2721_v46  ;;  %v2727_v50 = vsel %vm1806_vm2, %v9594_v18, %v2726_v14  ;;  %v2730_v12 = vsel %vm1806_vm2, %v2728_v3, %v2729_v60  ;;  %v2732_v54 = vsel %vm1806_vm2, %v2729_v60, %v2731_v45 }
 0x347   : > { %v2735_v6 = vsel %vm1806_vm2, %v2733_v63, %v2734_v27  ;;  %v2739_v62 = vrot.slane %v2613_v0, 2  ;;  %v2737_v17 = vsel %vm1806_vm2, %v2734_v27, %v2736_v23  ;;  %v2741_v42 = vrot.slane %v2614_v22, 2  ;;  %v2870_v22 = vld [vmem:[#allocation2 + $0x180] sm:$0x80] }
 0x348   : > { %v2822_v40 = vadd.f32 %v9596_v26, %v9595_v19  ;;  %v2825_v35 = vadd.f32 %v2720_v7, %v2513_v4  ;;  %v2826_v61 = vadd.f32 %v2722_v38, %v9597_v29  ;;  %v9598_v58 = vmov %v9592_v1 }
 0x349   : > { %v2740_v47 = vsel %vm1806_vm2, %v2738_v24, %v2739_v62  ;;  %v2827_v2 = vadd.f32 %v9598_v58, %v2515_v28  ;;  %v2828_v13 = vadd.f32 %v2725_v41, %v2516_v37  ;;  %v2742_v53 = vsel %vm1806_vm2, %v2739_v62, %v2741_v42  ;;  %v9599_v37 = vld [vmem:[#allocation81_spill] sm:$0xff] }
 0x34a   : > { %v2829_v46 = vadd.f32 %v2727_v50, %v2517_v33  ;;  %v2830_v0 = vadd.f32 %v2728_v3, %v2518_v44  ;;  %v2831_v39 = vadd.f32 %v2730_v12, %v2519_v36  ;;  %v2832_v1 = vadd.f32 %v2732_v54, %v2520_v8  ;;  %v9600_v36 = vld [vmem:[#allocation47_spill] sm:$0xff]  ;;  %v9601_v8 = vld [vmem:[#allocation26_spill] sm:$0xff] }
 0x34b   : > { %v2833_v14 = vadd.f32 %v2733_v63, %v2521_v20  ;;  %v2834_v60 = vadd.f32 %v2735_v6, %v2522_v55  ;;  %v2835_v4 = vadd.f32 %v2737_v17, %v2523_v59  ;;  %v8324_v7 = vadd.f32 %v2738_v24, %v2524_v56  ;;  %v9602_v55 = vld [vmem:[#allocation67_spill] sm:$0xff]  ;;  %v9603_v56 = vld [vmem:[#allocation53_spill] sm:$0xff]  ;;  %v9605_v6 = vld [vmem:[#allocation50_spill] sm:$0xff] }
 0x34c   : > { %v8326_v45 = vadd.f32 %v2740_v47, %v2525_v51  ;;  %v8328_v27 = vadd.f32 %v2742_v53, %v2526_v43  ;;  %v2942_v28 = vrot.slane %v2866_v25, 4  ;;  %v3019_v32 = vunpack.c.l.bf16 %v9599_v37  ;;  %v8339_v63 = vld [vmem:[#allocation8 + $0x6] ss:$0 sm:$0xff]  ;;  %v9604_v43 = vld [vmem:[#allocation68_spill] sm:$0xff]  ;;  %v9607_v47 = vld [vmem:[#allocation77_spill] sm:$0xff] }
 0x34d   : > { %v3020_v41 = vunpack.c.h.bf16 %v9599_v37  ;;  %v2945_v33 = vrot.slane %v2868_v11, 4  ;;  %v2948_v44 = vrot.slane %v2870_v22, 4  ;;  %v8333_v3 = vadd.f32 3.0, %v9600_v36  ;;  %v8363_v37 = vld [vmem:[#allocation8 + $0x7] ss:$0 sm:$0xff] }
 0x34e   : > { %v3808_v20 = vmax.f32 %v9601_v8, 0.0  ;;  %v3809_v59 = vmax.f32 %v9602_v55, 0.0  ;;  %v2944_v51 = vsel %vm1190_vm0, %v2942_v28, %v9603_v56  ;;  %v3072_v34 = vmul.f32 %v8339_v63, %v9604_v43  ;;  %v9610_v56 = vld [vmem:[#allocation61_spill] sm:$0xff] }
 0x34f   : > { %v2947_v38 = vsel %vm1190_vm0, %v2945_v33, %v8141_v21  ;;  %v2950_v18 = vsel %vm1190_vm0, %v2948_v44, %v8224_v48  ;;  %v3022_v50 = vunpack.c.l.bf16 %v2944_v51  ;;  %v3023_v23 = vunpack.c.h.bf16 %v2944_v51  ;;  %v9609_v33 = vld [vmem:[#allocation75_spill] sm:$0xff] }
 0x350   : > { %v3025_v24 = vunpack.c.l.bf16 %v2947_v38  ;;  %v3026_v12 = vunpack.c.h.bf16 %v2947_v38  ;;  %v3028_v54 = vunpack.c.l.bf16 %v2950_v18  ;;  %v9606_v62 = vunpack.c.h.bf16 %v9605_v6 }
 0x351   : > { %v3029_v42 = vunpack.c.h.bf16 %v2950_v18  ;;  %v3073_v19 = vmul.f32 %v8339_v63, %v3019_v32  ;;  %v3074_v26 = vmul.f32 %v8339_v63, %v3020_v41  ;;  %v3075_v21 = vmul.f32 %v8339_v63, %v9607_v47  ;;  %v9608_v32 = vld [vmem:[#allocation69_spill] sm:$0xff]  ;;  %v9612_v47 = vld [vmem:[#allocation36_spill] sm:$0xff] }
 0x352   : > { %v3071_v17 = vmul.f32 %v8339_v63, %v9606_v62  ;;  %v3076_v29 = vmul.f32 %v8339_v63, %v3022_v50  ;;  %v3077_v58 = vmul.f32 %v8339_v63, %v3023_v23  ;;  %v3078_v25 = vmul.f32 %v8339_v63, %v8112_v15 }
 0x353   : > { %v3079_v53 = vmul.f32 %v8339_v63, %v3025_v24  ;;  %v3080_v11 = vmul.f32 %v8339_v63, %v3026_v12  ;;  %v3081_v22 = vmul.f32 %v8339_v63, %v8158_v5  ;;  %v3082_v28 = vmul.f32 %v8339_v63, %v3028_v54  ;;  %v9611_v5 = vld [vmem:[#allocation72_spill] sm:$0xff] }
 0x354   : > { %v3197_v41 = vmul.f32 %v8363_v37, %v9608_v32  ;;  %v3198_v44 = vmul.f32 %v8363_v37, %v9609_v33  ;;  %v3083_v8 = vmul.f32 %v8339_v63, %v3029_v42  ;;  %v3084_v15 = vmul.f32 %v8339_v63, %v2176_v9 }
 0x355   : > { %v3119_v55 = vadd.f32 %v3071_v17, %v2822_v40  ;;  %v3120_v51 = vadd.f32 %v3072_v34, %v9610_v56  ;;  %v3121_v43 = vadd.f32 %v3073_v19, %v9611_v5  ;;  %v3122_v38 = vadd.f32 %v3074_v26, %v2825_v35  ;;  %v9614_v17 = vld [vmem:[#allocation44_spill] sm:$0xff] }
 0x356   : > { %v3123_v18 = vadd.f32 %v3075_v21, %v2826_v61  ;;  %v3124_v50 = vadd.f32 %v3076_v29, %v2827_v2  ;;  %v3125_v23 = vadd.f32 %v3077_v58, %v2828_v13  ;;  %v3126_v24 = vadd.f32 %v3078_v25, %v2829_v46  ;;  %v9615_v29 = vld [vmem:[#allocation64_spill] sm:$0xff]  ;;  %v9617_v25 = vld [vmem:[#allocation63_spill] sm:$0xff] }
 0x357   : > { %v3127_v12 = vadd.f32 %v3079_v53, %v2830_v0  ;;  %v3128_v54 = vadd.f32 %v3080_v11, %v2831_v39  ;;  %v3129_v6 = vadd.f32 %v3081_v22, %v2832_v1  ;;  %v3130_v62 = vadd.f32 %v3082_v28, %v2833_v14 }
 0x358   : > { %v4052_v42 = vrot.slane %v9612_v47, 7  ;;  %v3199_v48 = vmul.f32 %v8363_v37, %v9613_v49  ;;  %v3131_v9 = vadd.f32 %v3083_v8, %v2834_v60  ;;  %v3132_v40 = vadd.f32 %v3084_v15, %v2835_v4 }
 0x359   : > { %v4053_v34 = vrot.slane %v9614_v17, 7  ;;  %v3271_v56 = vrot.slane %v3197_v41, 1  ;;  %v3273_v19 = vrot.slane %v3198_v44, 1  ;;  %v3200_v35 = vmul.f32 %v8363_v37, %v9584_v57  ;;  %v9620_v44 = vld [vmem:[#allocation71_spill] sm:$0xff] }
 0x35a   : > { %v3201_v61 = vmul.f32 %v8363_v37, %v8101_v10  ;;  %v3202_v2 = vmul.f32 %v8363_v37, %v8143_v31  ;;  %v3203_v13 = vmul.f32 %v8363_v37, %v8145_v30  ;;  %v3204_v46 = vmul.f32 %v8363_v37, %v8258_v16 }
 0x35b   : > { %v3810_v0 = vmax.f32 %v8333_v3, 0.0  ;;  %v8390_v39 = vmin.f32 %v3808_v20, 6.0  ;;  %v8392_v1 = vmin.f32 %v3809_v59, 6.0  ;;  %v3205_v14 = vmul.f32 %v8363_v37, %v8261_v52  ;;  %v8401_v20 = vld [vmem:[#allocation8 + $0x8] ss:$0 sm:$0xff]  ;;  %v9619_v59 = vld [vmem:[#allocation40_spill] sm:$0xff] }
 0x35c   : > { %v3274_v60 = vrot.slane %v3199_v48, 1  ;;  %v3276_v4 = vrot.slane %v3200_v35, 1  ;;  %v3277_v26 = vrot.slane %v3201_v61, 1  ;;  %v3279_v21 = vrot.slane %v3202_v2, 1  ;;  %v9622_v48 = vld [vmem:[#allocation62_spill] sm:$0xff] }
 0x35d   : > { %v9616_v58 = vrot.slane %v9615_v29, 1  ;;  %v9618_v53 = vrot.slane %v9617_v25, 1  ;;  %v3280_v22 = vrot.slane %v3203_v13, 1  ;;  %v3282_v28 = vrot.slane %v3204_v46, 1 }
 0x35e   : > { %v3283_v3 = vrot.slane %v3205_v14, 1  ;;  %v8405_v41 = vmul.f32 %v8401_v20, %v9619_v59  ;;  %v9621_v8 = vrot.slane %v9620_v44, 1  ;;  %v3275_v5 = vsel %vm1525_vm1, %v3273_v19, %v3274_v60 }
 0x35f   : > { %v3269_v11 = vsel %vm1525_vm1, %v9618_v53, %v9616_v58  ;;  %v3278_v61 = vsel %vm1525_vm1, %v3276_v4, %v3277_v26  ;;  %v3281_v2 = vsel %vm1525_vm1, %v3279_v21, %v3280_v22  ;;  %v8418_v46 = vadd.f32 %v3271_v56, %v3120_v51  ;;  %v3395_v53 = vld [vmem:[#allocation2 + $0x118] sm:$0x1]  ;;  %v3397_v51 = vld [vmem:[#allocation2 + $0x148] sm:$0x1] }
 0x360   : > { %v3272_v15 = vsel %vm1525_vm1, %v9621_v8, %v3271_v56  ;;  %v8412_v35 = vadd.f32 %v3269_v11, %v9622_v48  ;;  %v3284_v14 = vsel %vm1525_vm1, %v3282_v28, %v3283_v3  ;;  %v8421_v29 = vadd.f32 %v3273_v19, %v3121_v43  ;;  %v3398_v56 = vld [vmem:[#allocation2 + $0x160] sm:$0x1]  ;;  %v3399_v19 = vld [vmem:[#allocation2 + $0x178] sm:$0x1] }
 0x361   : > { %v8416_v13 = vadd.f32 %v3272_v15, %v3119_v55  ;;  %v8423_v58 = vadd.f32 %v3275_v5, %v3122_v38  ;;  %v8425_v25 = vadd.f32 %v3274_v60, %v3123_v18  ;;  %v8427_v59 = vadd.f32 %v3276_v4, %v3124_v50  ;;  %v3396_v55 = vld [vmem:[#allocation2 + $0x130] sm:$0x1]  ;;  %v9623_v50 = vld [vmem:[#allocation49_spill] sm:$0xff] }
 0x362   : > { %v8429_v11 = vadd.f32 %v3278_v61, %v3125_v23  ;;  %v8431_v44 = vadd.f32 %v3277_v26, %v3126_v24  ;;  %v8433_v8 = vadd.f32 %v3279_v21, %v3127_v12  ;;  %v8435_v15 = vadd.f32 %v3281_v2, %v3128_v54  ;;  %v3400_v54 = vld [vmem:[#allocation2 + $0x190] sm:$0x1] }
 0x363   : > { %v8437_v43 = vadd.f32 %v3280_v22, %v3129_v6  ;;  %v8439_v38 = vadd.f32 %v3282_v28, %v3130_v62  ;;  %v8441_v18 = vadd.f32 %v3284_v14, %v3131_v9  ;;  %v3454_v23 = vmul.f32 %v8401_v20, %v9623_v50  ;;  %v9624_v9 = vld [vmem:[#allocation24_spill] sm:$0xff]  ;;  %v9625_v22 = vld [vmem:[#allocation27_spill] sm:$0xff] }
 0x364   : > { %v3455_v24 = vmul.f32 %v8401_v20, %v9608_v32  ;;  %v3458_v12 = vmul.f32 %v8401_v20, %v9613_v49  ;;  %v8449_v60 = vadd.f32 %v3283_v3, %v3132_v40  ;;  %v3411_v4 = vunpack.c.l.bf16 %v3395_v53 }
 0x365   : > { %v3412_v6 = vunpack.c.l.bf16 %v3396_v55  ;;  %v3413_v26 = vunpack.c.l.bf16 %v3397_v51  ;;  %v3414_v62 = vunpack.c.l.bf16 %v3398_v56  ;;  %v8451_v21 = vmin.f32 %v3810_v0, 6.0 }
 0x366   : > { %v8455_v28 = vadd.f32 %v9625_v22, %v9624_v9  ;;  %v3566_v5 = vrot.slane %v8405_v41, 2  ;;  %v3415_v48 = vunpack.c.l.bf16 %v3399_v19  ;;  %v3457_v32 = vmul.f32 %v8401_v20, %v9609_v33 }
 0x367   : > { %v3416_v49 = vunpack.c.l.bf16 %v3400_v54  ;;  %v3453_v40 = vmul.f32 %v8401_v20, %v3411_v4  ;;  %v3456_v3 = vmul.f32 %v8401_v20, %v3412_v6  ;;  %v3459_v61 = vmul.f32 %v8401_v20, %v3413_v26  ;;  %v9626_v6 = vld [vmem:[#allocation48_spill] sm:$0xff]  ;;  %v9627_v26 = vld [vmem:[#allocation46_spill] sm:$0xff] }
 0x368   : > { %v3460_v0 = vmul.f32 %v8401_v20, %v9584_v57  ;;  %v3461_v2 = vmul.f32 %v8401_v20, %v8101_v10  ;;  %v3462_v14 = vmul.f32 %v8401_v20, %v3414_v62  ;;  %v3570_v41 = vrot.slane %v3454_v23, 2 }
 0x369   : > { %v3571_v53 = vrot.slane %v3455_v24, 2  ;;  %v3576_v55 = vrot.slane %v3458_v12, 2  ;;  %v3463_v33 = vmul.f32 %v8401_v20, %v8143_v31  ;;  %v3464_v51 = vmul.f32 %v8401_v20, %v8145_v30 }
 0x36a   : > { %v3465_v56 = vmul.f32 %v8401_v20, %v3415_v48  ;;  %v3466_v19 = vmul.f32 %v8401_v20, %v8258_v16  ;;  %v3568_v57 = vrot.slane %v3453_v40, 2  ;;  %v3467_v10 = vmul.f32 %v8401_v20, %v8261_v52  ;;  %v9628_v16 = vld [vmem:[#allocation65_spill] sm:$0xff] }
 0x36b   : > { %v3468_v50 = vmul.f32 %v8401_v20, %v3416_v49  ;;  %v3573_v23 = vrot.slane %v3456_v3, 2  ;;  %v3575_v24 = vrot.slane %v3457_v32, 2  ;;  %v3578_v12 = vrot.slane %v3459_v61, 2 }
 0x36c   : > { %v3580_v54 = vrot.slane %v3460_v0, 2  ;;  %v3581_v4 = vrot.slane %v3461_v2, 2  ;;  %v3583_v31 = vrot.slane %v3462_v14, 2  ;;  %v8480_v30 = vadd.f32 %v9625_v22, %v9626_v6 }
 0x36d   : > { %v8484_v62 = vadd.f32 %v9625_v22, %v9627_v26  ;;  %v9629_v9 = vrot.slane %v9628_v16, 2  ;;  %v3585_v48 = vrot.slane %v3463_v33, 2  ;;  %v3569_v49 = vsel %vm1806_vm2, %v3566_v5, %v3568_v57 }
 0x36e   : > { %v3572_v32 = vsel %vm1806_vm2, %v3570_v41, %v3571_v53  ;;  %v3586_v40 = vrot.slane %v3464_v51, 2  ;;  %v3588_v3 = vrot.slane %v3465_v56, 2  ;;  %v3574_v61 = vsel %vm1806_vm2, %v3571_v53, %v3573_v23  ;;  %v9630_v56 = vld [vmem:[#allocation42_spill] sm:$0xff] }
 0x36f   : > { %v3567_v52 = vsel %vm1806_vm2, %v9629_v9, %v3566_v5  ;;  %v3590_v0 = vrot.slane %v3466_v19, 2  ;;  %v3591_v2 = vrot.slane %v3467_v10, 2  ;;  %v3593_v14 = vrot.slane %v3468_v50, 2  ;;  %v9631_v10 = vld [vmem:[#allocation74_spill] sm:$0xff] }
 0x370   : > { %v3577_v6 = vsel %vm1806_vm2, %v3575_v24, %v3576_v55  ;;  %v3579_v26 = vsel %vm1806_vm2, %v3576_v55, %v3578_v12  ;;  %v3582_v16 = vsel %vm1806_vm2, %v3580_v54, %v3581_v4  ;;  %v3584_v9 = vsel %vm1806_vm2, %v3581_v4, %v3583_v31 }
 0x371   : > { %v3587_v33 = vsel %vm1806_vm2, %v3585_v48, %v3586_v40  ;;  %v3589_v5 = vsel %vm1806_vm2, %v3586_v40, %v3588_v3  ;;  %v8499_v51 = vadd.f32 %v3567_v52, %v8412_v35  ;;  %v8502_v53 = vadd.f32 %v3569_v49, %v9630_v56  ;;  %v9637_v49 = vld [vmem:[#allocation22_spill] sm:$0xff] }
 0x372   : > { %v3592_v19 = vsel %vm1806_vm2, %v3590_v0, %v3591_v2  ;;  %v3594_v57 = vsel %vm1806_vm2, %v3591_v2, %v3593_v14  ;;  %v8507_v55 = vadd.f32 %v3570_v41, %v9631_v10  ;;  %v8510_v50 = vadd.f32 %v3572_v32, %v8416_v13  ;;  %v9638_v32 = vld [vmem:[#allocation45_spill] sm:$0xff]  ;;  %v9640_v2 = vld [vmem:[#allocation58_spill] sm:$0xff] }
 0x373   : > { %v8513_v23 = vadd.f32 %v3574_v61, %v8418_v46  ;;  %v8516_v12 = vadd.f32 %v3575_v24, %v8421_v29  ;;  %v8519_v35 = vadd.f32 %v3577_v6, %v8423_v58  ;;  %v8522_v4 = vadd.f32 %v3579_v26, %v8425_v25  ;;  %v9632_v24 = vld [vmem:[#allocation52_spill] sm:$0xff]  ;;  %v9639_v61 = vld [vmem:[#allocation37_spill] sm:$0xff]  ;;  %v9642_v56 = vld [vmem:[#allocation54_spill] sm:$0xff] }
 0x374   : > { %v8525_v31 = vadd.f32 %v3580_v54, %v8427_v59  ;;  %v8528_v41 = vadd.f32 %v3582_v16, %v8429_v11  ;;  %v8531_v13 = vadd.f32 %v3584_v9, %v8431_v44  ;;  %v8534_v46 = vadd.f32 %v3585_v48, %v8433_v8  ;;  %v2872_v8 = vld [vmem:[#allocation2 + $0x198] sm:$0x80]  ;;  %v5674_v16 = vld [vmem:[#allocation2] sm:$0xff] }
 0x375   : > { %v8537_v29 = vadd.f32 %v3587_v33, %v8435_v15  ;;  %v8540_v58 = vadd.f32 %v3589_v5, %v8437_v43  ;;  %v8543_v25 = vadd.f32 %v3590_v0, %v8439_v38  ;;  %v8546_v59 = vadd.f32 %v3592_v19, %v8441_v18  ;;  %v9633_v15 = vld [vmem:[#allocation57_spill] sm:$0xff]  ;;  %v9635_v43 = vld [vmem:[#allocation28_spill] sm:$0xff] }
 0x376   : > { %v3763_v11 = vadd.f32 3.0, %v8455_v28  ;;  %v8551_v44 = vadd.f32 %v9625_v22, %v9632_v24  ;;  %v8554_v54 = vadd.f32 %v3594_v57, %v8449_v60  ;;  %v9634_v52 = vrot.slane %v9633_v15, 7  ;;  %v9641_v33 = vld [vmem:[#allocation56_spill] sm:$0xff] }
 0x377   : > { %v9636_v48 = vrot.slane %v9635_v43, 7  ;;  %v3904_v18 = vmul.f32 %v8390_v39, %v9637_v49  ;;  %v3905_v40 = vmul.f32 %v8392_v1, %v9638_v32  ;;  %v3765_v3 = vadd.f32 3.0, %v8484_v62 }
 0x378   : > { %v4054_v60 = vsel %vm4036_vm3, %v4052_v42, %v4053_v34  ;;  %v4055_v0 = vrot.slane %v9639_v61, 7  ;;  %v3906_v6 = vmul.f32 %v8451_v21, %v9600_v36  ;;  %v3764_v39 = vadd.f32 3.0, %v8480_v30  ;;  %v9644_v21 = vld [vmem:[#allocation31_spill] sm:$0xff] }
 0x379   : > { %v4051_v38 = vsel %vm4036_vm3, %v9636_v48, %v9634_v52  ;;  %v2951_v26 = vrot.slane %v2872_v8, 4  ;;  %v2952_v1 = vrot.slane %v5674_v16, 4  ;;  %v3811_v9 = vmax.f32 %v3763_v11, 0.0 }
 0x37a   : > { %v4153_v14 = vadd.f32 %v9640_v2, %v4051_v38  ;;  %v8578_v5 = vadd.f32 %v9625_v22, %v9641_v33  ;;  %v8582_v42 = vadd.f32 %v9625_v22, %v9642_v56  ;;  %v3766_v19 = vadd.f32 3.0, %v8551_v44  ;;  %v3401_v33 = vld [vmem:[#allocation2 + $0x1a8] sm:$0x1] }
 0x37b   : > { %v8585_v57 = vmul.f32 0.16666667, %v3904_v18  ;;  %v8587_v10 = vmul.f32 0.16666667, %v3905_v40  ;;  %v3813_v36 = vmax.f32 %v3765_v3, 0.0  ;;  %v8591_v24 = vadd.f32 %v9625_v22, %v9644_v21 }
 0x37c   : > { %v8596_v11 = vsel %vm4036_vm3, %v4053_v34, %v4055_v0  ;;  %v8598_v8 = vadd.f32 %v4153_v14, %v4054_v60  ;;  %v3168_v52 = vunpack.c.l.bf16 %v5674_v16  ;;  %v8600_v48 = vmul.f32 0.16666667, %v3906_v6  ;;  %v9645_v34 = vld [vmem:[#allocation59_spill] sm:$0xff] }
 0x37d   : > { %9643 = vst [vmem:[#allocation78_spill] sm:$0xff] %v8585_v57  ;;  %v3812_v38 = vmax.f32 %v3764_v39, 0.0  ;;  %v2953_v49 = vsel %vm1190_vm0, %v2951_v26, %v2952_v1  ;;  %v3169_v18 = vunpack.c.h.bf16 %v5674_v16  ;;  %v3859_v32 = vmin.f32 %v3811_v9, 6.0 }
 0x37e   : > { %v3767_v40 = vadd.f32 3.0, %v8578_v5  ;;  %v3768_v3 = vadd.f32 3.0, %v8582_v42  ;;  %v3814_v2 = vmax.f32 %v3766_v19, 0.0  ;;  %v4057_v56 = vrot.slane %v8585_v57, 7 }
 0x37f   : > { %v3861_v60 = vmin.f32 %v3813_v36, 6.0  ;;  %v3769_v0 = vadd.f32 3.0, %v8591_v24  ;;  %v3031_v14 = vunpack.c.l.bf16 %v2953_v49  ;;  %v3032_v6 = vunpack.c.h.bf16 %v2953_v49  ;;  %v9646_v49 = vld [vmem:[#allocation38_spill] sm:$0xff] }
 0x380   : > { %v3033_v39 = vunpack.c.l.bf16 %v2952_v1  ;;  %v3206_v26 = vmul.f32 %v8363_v37, %v3168_v52  ;;  %v3860_v9 = vmin.f32 %v3812_v38, 6.0  ;;  %v3207_v21 = vmul.f32 %v8363_v37, %v3169_v18 }
 0x381   : > { %v3417_v61 = vunpack.c.l.bf16 %v3401_v33  ;;  %v3907_v19 = vmul.f32 %v3859_v32, %v8455_v28  ;;  %v3815_v17 = vmax.f32 %v3767_v40, 0.0  ;;  %v3816_v57 = vmax.f32 %v3768_v3, 0.0 }
 0x382   : > { %v3862_v47 = vmin.f32 %v3814_v2, 6.0  ;;  %v3909_v36 = vmul.f32 %v3861_v60, %v8484_v62  ;;  %v8615_v15 = vadd.f32 %v9625_v22, %v9645_v34  ;;  %v3817_v1 = vmax.f32 %v3769_v0, 0.0 }
 0x383   : > { %v8619_v43 = vadd.f32 %v9625_v22, %v9646_v49  ;;  %v3085_v38 = vmul.f32 %v8339_v63, %v3031_v14  ;;  %v3086_v37 = vmul.f32 %v8339_v63, %v3032_v6  ;;  %v3087_v28 = vmul.f32 %v8339_v63, %v3033_v39 }
 0x384   : > { %v3285_v32 = vrot.slane %v3206_v26, 1  ;;  %v3286_v40 = vrot.slane %v3207_v21, 1  ;;  %v3469_v3 = vmul.f32 %v8401_v20, %v3168_v52  ;;  %v3470_v62 = vmul.f32 %v8401_v20, %v3169_v18  ;;  %v9647_v21 = vld [vmem:[#allocation32_spill] sm:$0xff] }
 0x385   : > { %v3471_v2 = vmul.f32 %v8401_v20, %v3417_v61  ;;  %v3908_v33 = vmul.f32 %v3860_v9, %v8480_v30  ;;  %v3863_v34 = vmin.f32 %v3815_v17, 6.0  ;;  %v3864_v60 = vmin.f32 %v3816_v57, 6.0 }
 0x386   : > { %v3910_v0 = vmul.f32 %v3862_v47, %v8551_v44  ;;  %v8629_v49 = vmul.f32 0.16666667, %v3907_v19  ;;  %v3771_v14 = vadd.f32 3.0, %v8615_v15  ;;  %v3865_v6 = vmin.f32 %v3817_v1, 6.0 }
 0x387   : > { %v3772_v63 = vadd.f32 3.0, %v8619_v43  ;;  %v8633_v39 = vmul.f32 0.16666667, %v3909_v36  ;;  %v3133_v52 = vadd.f32 %v3085_v38, %v8324_v7  ;;  %v3134_v18 = vadd.f32 %v3086_v37, %v8326_v45 }
 0x388   : > { %v3135_v20 = vadd.f32 %v3087_v28, %v8328_v27  ;;  %v3287_v17 = vsel %vm1525_vm1, %v3285_v32, %v3286_v40  ;;  %v3595_v30 = vrot.slane %v3469_v3, 2  ;;  %v3596_v61 = vrot.slane %v3470_v62, 2 }
 0x389   : > { %v3598_v47 = vrot.slane %v3471_v2, 2  ;;  %v8639_v44 = vmul.f32 0.16666667, %v3908_v33  ;;  %v3911_v57 = vmul.f32 %v3863_v34, %v8578_v5  ;;  %v3912_v26 = vmul.f32 %v3864_v60, %v8582_v42 }
 0x38a   : > { %v8643_v9 = vmul.f32 0.16666667, %v3910_v0  ;;  %v8647_v7 = vadd.f32 %v9625_v22, %v9647_v21  ;;  %v3819_v45 = vmax.f32 %v3771_v14, 0.0  ;;  %v3913_v27 = vmul.f32 %v3865_v6, %v8591_v24 }
 0x38b   : > { %v3820_v19 = vmax.f32 %v3772_v63, 0.0  ;;  %v9648_v36 = vrot.slane %v8587_v10, 7  ;;  %v3381_v38 = vadd.f32 %v3285_v32, %v3133_v52  ;;  %v3382_v37 = vadd.f32 %v3287_v17, %v3134_v18  ;;  %v9649_v63 = vld [vmem:[#allocation60_spill] sm:$0xff]  ;;  %v9650_v18 = vld [vmem:[#allocation39_spill] sm:$0xff]  ;;  %v9651_v17 = vld [vmem:[#allocation66_spill] sm:$0xff] }
 0x38c   : > { %v3383_v5 = vadd.f32 %v3286_v40, %v3135_v20  ;;  %v3597_v3 = vsel %vm1806_vm2, %v3595_v30, %v3596_v61  ;;  %v3599_v62 = vsel %vm1806_vm2, %v3596_v61, %v3598_v47  ;;  %v8660_v24 = vmul.f32 0.16666667, %v3911_v57 }
 0x38d   : > { %v8653_v1 = vsel %vm4036_vm3, %v4057_v56, %v9648_v36  ;;  %v8662_v33 = vmul.f32 0.16666667, %v3912_v26  ;;  %v3770_v32 = vadd.f32 3.0, %v8647_v7  ;;  %v8666_v34 = vmin.f32 %v3819_v45, 6.0 }
 0x38e   : > { %v8668_v40 = vmul.f32 0.16666667, %v3913_v27  ;;  %v8670_v60 = vmin.f32 %v3820_v19, 6.0  ;;  %v3693_v0 = vadd.f32 %v3595_v30, %v3381_v38  ;;  %v3694_v14 = vadd.f32 %v3597_v3, %v3382_v37 }
 0x38f   : > { %v3695_v6 = vadd.f32 %v3599_v62, %v3383_v5  ;;  %v8674_v52 = vadd.f32 %v9625_v22, %v9649_v63  ;;  %v8678_v20 = vadd.f32 %v9625_v22, %v9650_v18  ;;  %v8682_v61 = vadd.f32 %v9625_v22, %v9651_v17 }
 0x390   : > { %v8686_v47 = vadd.f32 %v9625_v22, %v8499_v51  ;;  %v8690_v30 = vadd.f32 %v9625_v22, %v8502_v53  ;;  %v8694_v57 = vadd.f32 %v9625_v22, %v8507_v55  ;;  %v8698_v26 = vadd.f32 %v9625_v22, %v8510_v50 }
 0x391   : > { %v8702_v21 = vadd.f32 %v9625_v22, %v8513_v23  ;;  %v8706_v51 = vadd.f32 %v9625_v22, %v8516_v12  ;;  %v8710_v53 = vadd.f32 %v9625_v22, %v8519_v35  ;;  %v8714_v55 = vadd.f32 %v9625_v22, %v8522_v4 }
 0x392   : > { %v8718_v50 = vadd.f32 %v9625_v22, %v8525_v31  ;;  %v8722_v23 = vadd.f32 %v9625_v22, %v8528_v41  ;;  %v8726_v12 = vadd.f32 %v9625_v22, %v8531_v13  ;;  %v8730_v35 = vadd.f32 %v9625_v22, %v8534_v46 }
 0x393   : > { %9652 = vst [vmem:[#allocation30_spill] sm:$0xff] %v8710_v53  ;;  %9653 = vst [vmem:[#allocation55_spill] sm:$0xff] %v8714_v55  ;;  %v8734_v4 = vadd.f32 %v9625_v22, %v8537_v29  ;;  %v8738_v31 = vadd.f32 %v9625_v22, %v8540_v58  ;;  %v8742_v41 = vadd.f32 %v9625_v22, %v8543_v25  ;;  %v3773_v25 = vadd.f32 3.0, %v8674_v52 }
 0x394   : > { %9654 = vst [vmem:[#allocation73_spill] sm:$0xff] %v8718_v50  ;;  %9655 = vst [vmem:[#allocation29_spill] sm:$0xff] %v8722_v23  ;;  %v8746_v13 = vadd.f32 %v9625_v22, %v8546_v59  ;;  %v8750_v46 = vadd.f32 %v9625_v22, %v8554_v54  ;;  %v8753_v45 = vadd.f32 %v9625_v22, %v3693_v0  ;;  %v3774_v27 = vadd.f32 3.0, %v8678_v20 }
 0x395   : > { %9656 = vst [vmem:[#allocation80_spill] sm:$0xff] %v8726_v12  ;;  %9657 = vst [vmem:[#allocation79_spill] sm:$0xff] %v8730_v35  ;;  %v8756_v29 = vadd.f32 %v9625_v22, %v3694_v14  ;;  %v8759_v58 = vadd.f32 %v9625_v22, %v3695_v6  ;;  %v3775_v59 = vadd.f32 3.0, %v8682_v61  ;;  %v3776_v19 = vadd.f32 3.0, %v8686_v47 }
 0x396   : > { %9658 = vst [vmem:[#allocation41_spill] sm:$0xff] %v8734_v4  ;;  %9659 = vst [vmem:[#allocation51_spill] sm:$0xff] %v8738_v31  ;;  %v3777_v54 = vadd.f32 3.0, %v8690_v30  ;;  %v3778_v36 = vadd.f32 3.0, %v8694_v57  ;;  %v3779_v38 = vadd.f32 3.0, %v8698_v26  ;;  %v8769_v37 = vadd.f32 3.0, %v8702_v21 }
 0x397   : > { %9660 = vst [vmem:[#allocation70_spill] sm:$0xff] %v8742_v41  ;;  %9661 = vst [vmem:[#allocation81_spill] sm:$0xff] %v8746_v13  ;;  %v8772_v22 = vadd.f32 3.0, %v8706_v51  ;;  %v8775_v5 = vadd.f32 3.0, %v8710_v53  ;;  %v8778_v3 = vadd.f32 3.0, %v8714_v55  ;;  %v8781_v62 = vadd.f32 3.0, %v8718_v50 }
 0x398   : > { %9662 = vst [vmem:[#allocation47_spill] sm:$0xff] %v8750_v46  ;;  %9663 = vst [vmem:[#allocation26_spill] sm:$0xff] %v8753_v45  ;;  %v8784_v0 = vadd.f32 3.0, %v8722_v23  ;;  %v3818_v14 = vmax.f32 %v3770_v32, 0.0  ;;  %v8787_v6 = vadd.f32 3.0, %v8726_v12  ;;  %v8790_v63 = vadd.f32 3.0, %v8730_v35 }
 0x399   : > { %9664 = vst [vmem:[#allocation67_spill] sm:$0xff] %v8756_v29  ;;  %9665 = vst [vmem:[#allocation53_spill] sm:$0xff] %v8759_v58  ;;  %v8793_v18 = vadd.f32 3.0, %v8734_v4  ;;  %v8796_v17 = vadd.f32 3.0, %v8738_v31  ;;  %v8799_v56 = vadd.f32 3.0, %v8742_v41  ;;  %v8802_v28 = vadd.f32 3.0, %v8746_v13 }
 0x39a   : > { %v8805_v32 = vadd.f32 3.0, %v8750_v46  ;;  %v8808_v42 = vadd.f32 3.0, %v8753_v45  ;;  %v8811_v2 = vadd.f32 3.0, %v8756_v29  ;;  %v8814_v16 = vadd.f32 3.0, %v8759_v58 }
 0x39b   : > { %v3821_v31 = vmax.f32 %v3773_v25, 0.0  ;;  %v3822_v4 = vmax.f32 %v3774_v27, 0.0  ;;  %v3823_v35 = vmax.f32 %v3775_v59, 0.0  ;;  %v3824_v41 = vmax.f32 %v3776_v19, 0.0 }
 0x39c   : > { %v3825_v12 = vmax.f32 %v3777_v54, 0.0  ;;  %v3866_v23 = vmin.f32 %v3818_v14, 6.0  ;;  %v3826_v13 = vmax.f32 %v3778_v36, 0.0  ;;  %v3827_v50 = vmax.f32 %v3779_v38, 0.0 }
 0x39d   : > { %v3828_v46 = vmax.f32 %v8769_v37, 0.0  ;;  %v3829_v55 = vmax.f32 %v8772_v22, 0.0  ;;  %v3830_v45 = vmax.f32 %v8775_v5, 0.0  ;;  %v3831_v29 = vmax.f32 %v8778_v3, 0.0 }
 0x39e   : > { %v3832_v53 = vmax.f32 %v8781_v62, 0.0  ;;  %v3833_v58 = vmax.f32 %v8784_v0, 0.0  ;;  %v3834_v25 = vmax.f32 %v8787_v6, 0.0  ;;  %v3835_v27 = vmax.f32 %v8790_v63, 0.0 }
 0x39f   : > { %v3869_v59 = vmin.f32 %v3821_v31, 6.0  ;;  %v4155_v19 = vadd.f32 %v8598_v8, %v8596_v11  ;;  %v3836_v54 = vmax.f32 %v8793_v18, 0.0  ;;  %v3837_v36 = vmax.f32 %v8796_v17, 0.0 }
 0x3a0   : > { %v3914_v37 = vmul.f32 %v3866_v23, %v8647_v7  ;;  %v3839_v22 = vmax.f32 %v8802_v28, 0.0  ;;  %v3870_v31 = vmin.f32 %v3822_v4, 6.0  ;;  %v3871_v0 = vmin.f32 %v3823_v35, 6.0 }
 0x3a1   : > { %v4156_v62 = vadd.f32 %v4155_v19, %v8653_v1  ;;  %v3872_v14 = vmin.f32 %v3824_v41, 6.0  ;;  %v3915_v11 = vmul.f32 %v8666_v34, %v8615_v15  ;;  %v3916_v7 = vmul.f32 %v8670_v60, %v8619_v43 }
 0x3a2   : > { %v3917_v23 = vmul.f32 %v3869_v59, %v8674_v52  ;;  %v8841_v5 = vmul.f32 0.16666667, %v3914_v37  ;;  %v9666_v3 = vrot.slane %v8600_v48, 7  ;;  %v9667_v1 = vrot.slane %v8587_v10, 7 }
 0x3a3   : > { %v9668_v4 = vrot.slane %v8639_v44, 7  ;;  %v9669_v15 = vrot.slane %v8629_v49, 7  ;;  %v4068_v41 = vrot.slane %v8660_v24, 7  ;;  %v3873_v19 = vmin.f32 %v3825_v12, 6.0 }
 0x3a4   : > { %v4061_v35 = vsel %vm4036_vm3, %v9667_v1, %v9666_v3  ;;  %v3874_v43 = vmin.f32 %v3826_v13, 6.0  ;;  %v3875_v60 = vmin.f32 %v3827_v50, 6.0  ;;  %v3918_v59 = vmul.f32 %v3870_v31, %v8678_v20 }
 0x3a5   : > { %v4064_v34 = vsel %vm4036_vm3, %v9669_v15, %v9668_v4  ;;  %v4157_v52 = vadd.f32 %v4156_v62, %v4061_v35  ;;  %v3919_v37 = vmul.f32 %v3871_v0, %v8682_v61  ;;  %v3920_v38 = vmul.f32 %v3872_v14, %v8686_v47 }
 0x3a6   : > { %v8857_v8 = vmul.f32 0.16666667, %v3915_v11  ;;  %v8859_v3 = vmul.f32 0.16666667, %v3916_v7  ;;  %v8861_v1 = vmul.f32 0.16666667, %v3917_v23  ;;  %v3921_v7 = vmul.f32 %v3873_v19, %v8690_v30 }
 0x3a7   : > { %v9670_v4 = vrot.slane %v8633_v39, 7  ;;  %v9671_v15 = vrot.slane %v8639_v44, 7  ;;  %v4158_v50 = vadd.f32 %v4157_v52, %v4064_v34  ;;  %v9672_v13 = vrot.slane %v8643_v9, 7 }
 0x3a8   : > { %v4070_v61 = vrot.slane %v8662_v33, 7  ;;  %v4072_v47 = vrot.slane %v8668_v40, 7  ;;  %v4073_v62 = vrot.slane %v8841_v5, 7  ;;  %v3876_v31 = vmin.f32 %v3828_v46, 6.0 }
 0x3a9   : > { %v4066_v12 = vsel %vm4036_vm3, %v9671_v15, %v9670_v4  ;;  %v4069_v20 = vsel %vm4036_vm3, %v9672_v13, %v4068_v41  ;;  %v3877_v0 = vmin.f32 %v3829_v55, 6.0  ;;  %v3878_v14 = vmin.f32 %v3830_v45, 6.0 }
 0x3aa   : > { %v4159_v11 = vadd.f32 %v4158_v50, %v4066_v12  ;;  %v3922_v23 = vmul.f32 %v3874_v43, %v8694_v57  ;;  %v3923_v35 = vmul.f32 %v3875_v60, %v8698_v26  ;;  %v8877_v34 = vmul.f32 0.16666667, %v3918_v59  ;;  %v9673_v59 = vld [vmem:[#allocation30_spill] sm:$0xff] }
 0x3ab   : > { %v8879_v52 = vmul.f32 0.16666667, %v3919_v37  ;;  %v8881_v4 = vmul.f32 0.16666667, %v3920_v38  ;;  %v4075_v15 = vrot.slane %v8857_v8, 7  ;;  %v4071_v46 = vsel %vm4036_vm3, %v4068_v41, %v4070_v61 }
 0x3ac   : > { %v4160_v13 = vadd.f32 %v4159_v11, %v4069_v20  ;;  %v4074_v55 = vsel %vm4036_vm3, %v4072_v47, %v4073_v62  ;;  %v4077_v45 = vrot.slane %v8859_v3, 7  ;;  %v4078_v30 = vrot.slane %v8861_v1, 7 }
 0x3ad   : > { %v3879_v57 = vmin.f32 %v3831_v29, 6.0  ;;  %v3880_v19 = vmin.f32 %v3832_v53, 6.0  ;;  %v3881_v26 = vmin.f32 %v3833_v58, 6.0  ;;  %v3924_v60 = vmul.f32 %v3876_v31, %v8702_v21 }
 0x3ae   : > { %v4161_v43 = vadd.f32 %v4160_v13, %v4071_v46  ;;  %v3925_v38 = vmul.f32 %v3877_v0, %v8706_v51  ;;  %v3926_v37 = vmul.f32 %v3878_v14, %v9673_v59  ;;  %v8891_v12 = vmul.f32 0.16666667, %v3921_v7  ;;  %v9674_v14 = vld [vmem:[#allocation55_spill] sm:$0xff]  ;;  %v9675_v7 = vld [vmem:[#allocation73_spill] sm:$0xff] }
 0x3af   : > { %v8893_v50 = vmul.f32 0.16666667, %v3922_v23  ;;  %v8895_v41 = vmul.f32 0.16666667, %v3923_v35  ;;  %v4080_v20 = vrot.slane %v8877_v34, 7  ;;  %v4076_v29 = vsel %vm4036_vm3, %v4073_v62, %v4075_v15  ;;  %v9676_v23 = vld [vmem:[#allocation29_spill] sm:$0xff] }
 0x3b0   : > { %v4162_v61 = vadd.f32 %v4161_v43, %v4074_v55  ;;  %v4079_v53 = vsel %vm4036_vm3, %v4077_v45, %v4078_v30  ;;  %v4082_v58 = vrot.slane %v8879_v52, 7  ;;  %v4083_v21 = vrot.slane %v8881_v4, 7  ;;  %v9680_v59 = vld [vmem:[#allocation41_spill] sm:$0xff] }
 0x3b1   : > { %v3882_v51 = vmin.f32 %v3834_v25, 6.0  ;;  %v3883_v47 = vmin.f32 %v3835_v27, 6.0  ;;  %v3884_v31 = vmin.f32 %v3836_v54, 6.0  ;;  %v3927_v11 = vmul.f32 %v3879_v57, %v9674_v14 }
 0x3b2   : > { %v4163_v0 = vadd.f32 %v4162_v61, %v4076_v29  ;;  %v3928_v62 = vmul.f32 %v3880_v19, %v9675_v7  ;;  %v3929_v35 = vmul.f32 %v3881_v26, %v9676_v23  ;;  %v8911_v15 = vmul.f32 0.16666667, %v3924_v60  ;;  %v9679_v60 = vld [vmem:[#allocation79_spill] sm:$0xff]  ;;  %v9685_v23 = vld [vmem:[#allocation70_spill] sm:$0xff] }
 0x3b3   : > { %v8913_v13 = vmul.f32 0.16666667, %v3925_v38  ;;  %v8915_v46 = vmul.f32 0.16666667, %v3926_v37  ;;  %v4081_v6 = vsel %vm4036_vm3, %v4078_v30, %v4080_v20  ;;  %v4084_v25 = vsel %vm4036_vm3, %v4082_v58, %v4083_v21  ;;  %v9678_v30 = vld [vmem:[#allocation80_spill] sm:$0xff]  ;;  %v9684_v7 = vld [vmem:[#allocation51_spill] sm:$0xff] }
 0x3b4   : > { %v4164_v63 = vadd.f32 %v4163_v0, %v4079_v53  ;;  %v4085_v18 = vrot.slane %v8891_v12, 7  ;;  %v4087_v27 = vrot.slane %v8893_v50, 7  ;;  %v4088_v54 = vrot.slane %v8895_v41, 7 }
 0x3b5   : > { %v3885_v55 = vmin.f32 %v3837_v36, 6.0  ;;  %v9677_v45 = vmax.f32 %v8799_v56, 0.0  ;;  %v3887_v19 = vmin.f32 %v3839_v22, 6.0  ;;  %v3930_v43 = vmul.f32 %v3882_v51, %v9678_v30  ;;  %v9688_v30 = vld [vmem:[#allocation47_spill] sm:$0xff] }
 0x3b6   : > { %v4165_v26 = vadd.f32 %v4164_v63, %v4081_v6  ;;  %v3931_v38 = vmul.f32 %v3883_v47, %v9679_v60  ;;  %v3932_v37 = vmul.f32 %v3884_v31, %v9680_v59  ;;  %v8931_v20 = vmul.f32 0.16666667, %v3927_v11  ;;  %v9689_v60 = vld [vmem:[#allocation26_spill] sm:$0xff]  ;;  %v9690_v59 = vld [vmem:[#allocation67_spill] sm:$0xff] }
 0x3b7   : > { %v3886_v57 = vmin.f32 %v9677_v45, 6.0  ;;  %v8933_v61 = vmul.f32 0.16666667, %v3928_v62  ;;  %v8935_v29 = vmul.f32 0.16666667, %v3929_v35  ;;  %v4090_v17 = vrot.slane %v8911_v15, 7 }
 0x3b8   : > { %v4166_v56 = vadd.f32 %v4165_v26, %v4084_v25  ;;  %v4086_v36 = vsel %vm4036_vm3, %v4083_v21, %v4085_v18  ;;  %v4089_v28 = vsel %vm4036_vm3, %v4087_v27, %v4088_v54  ;;  %v4092_v22 = vrot.slane %v8913_v13, 7  ;;  %v9686_v35 = vld [vmem:[#allocation81_spill] sm:$0xff] }
 0x3b9   : > { %v4093_v53 = vrot.slane %v8915_v46, 7  ;;  %v9681_v58 = vmax.f32 %v8805_v32, 0.0  ;;  %v9682_v47 = vmax.f32 %v8808_v42, 0.0  ;;  %v9683_v0 = vmax.f32 %v8811_v2, 0.0 }
 0x3ba   : > { %v4167_v11 = vadd.f32 %v4166_v56, %v4086_v36  ;;  %v3933_v62 = vmul.f32 %v3885_v55, %v9684_v7  ;;  %v3934_v21 = vmul.f32 %v3886_v57, %v9685_v23  ;;  %v3935_v6 = vmul.f32 %v3887_v19, %v9686_v35 }
 0x3bb   : > { %v3888_v51 = vmin.f32 %v9681_v58, 6.0  ;;  %v3889_v31 = vmin.f32 %v9682_v47, 6.0  ;;  %v3890_v14 = vmin.f32 %v9683_v0, 6.0  ;;  %v8951_v63 = vmul.f32 0.16666667, %v3930_v43 }
 0x3bc   : > { %v8953_v25 = vmul.f32 0.16666667, %v3931_v38  ;;  %v8955_v18 = vmul.f32 0.16666667, %v3932_v37  ;;  %v4095_v32 = vrot.slane %v8931_v20, 7  ;;  %v4168_v42 = vadd.f32 %v4167_v11, %v4089_v28 }
 0x3bd   : > { %v4091_v27 = vsel %vm4036_vm3, %v4088_v54, %v4090_v17  ;;  %v4094_v2 = vsel %vm4036_vm3, %v4092_v22, %v4093_v53  ;;  %v4097_v45 = vrot.slane %v8933_v61, 7  ;;  %v4098_v55 = vrot.slane %v8935_v29, 7 }
 0x3be   : > { %v9687_v57 = vmax.f32 %v8814_v16, 0.0  ;;  %v4169_v26 = vadd.f32 %v4168_v42, %v4091_v27  ;;  %v3936_v43 = vmul.f32 %v3888_v51, %v9688_v30  ;;  %v3937_v38 = vmul.f32 %v3889_v31, %v9689_v60  ;;  %v9691_v31 = vld [vmem:[#allocation53_spill] sm:$0xff] }
 0x3bf   : > { %v3938_v37 = vmul.f32 %v3890_v14, %v9690_v59  ;;  %v8967_v56 = vmul.f32 0.16666667, %v3933_v62  ;;  %v8969_v36 = vmul.f32 0.16666667, %v3934_v21  ;;  %v8971_v54 = vmul.f32 0.16666667, %v3935_v6 }
 0x3c0   : > { %v3891_v19 = vmin.f32 %v9687_v57, 6.0  ;;  %v4100_v17 = vrot.slane %v8951_v63, 7  ;;  %v4170_v28 = vadd.f32 %v4169_v26, %v4094_v2  ;;  %v4096_v22 = vsel %vm4036_vm3, %v4093_v53, %v4095_v32 }
 0x3c1   : > { %v4099_v16 = vsel %vm4036_vm3, %v4097_v45, %v4098_v55  ;;  %v4102_v58 = vrot.slane %v8953_v25, 7  ;;  %v4103_v51 = vrot.slane %v8955_v18, 7  ;;  %v8979_v14 = vmul.f32 0.16666667, %v3936_v43 }
 0x3c2   : > { %v4171_v47 = vadd.f32 %v4170_v28, %v4096_v22  ;;  %v3939_v0 = vmul.f32 %v3891_v19, %v9691_v31  ;;  %v8981_v11 = vmul.f32 0.16666667, %v3937_v38  ;;  %v8983_v7 = vmul.f32 0.16666667, %v3938_v37 }
 0x3c3   : > { %v4101_v62 = vsel %vm4036_vm3, %v4098_v55, %v4100_v17  ;;  %v4104_v53 = vsel %vm4036_vm3, %v4102_v58, %v4103_v51  ;;  %v4105_v21 = vrot.slane %v8967_v56, 7  ;;  %v4107_v35 = vrot.slane %v8969_v36, 7 }
 0x3c4   : > { %v4172_v23 = vadd.f32 %v4171_v47, %v4099_v16  ;;  %v4108_v6 = vrot.slane %v8971_v54, 7  ;;  %v8990_v42 = vmul.f32 0.16666667, %v3939_v0  ;;  %v4110_v27 = vrot.slane %v8979_v14, 7 }
 0x3c5   : > { %v4106_v45 = vsel %vm4036_vm3, %v4103_v51, %v4105_v21  ;;  %v4112_v55 = vrot.slane %v8981_v11, 7  ;;  %v4113_v19 = vrot.slane %v8983_v7, 7  ;;  %v9692_v21 = vmov 0.0  }
 0x3c6   : > { %v4173_v32 = vadd.f32 %v4172_v23, %v4101_v62  ;;  %v4109_v57 = vsel %vm4036_vm3, %v4107_v35, %v4108_v6  ;;  %v4111_v43 = vsel %vm4036_vm3, %v4108_v6, %v4110_v27  ;;  %v4115_v38 = vrot.slane %v8990_v42, 7  ;;  %v5635_v62 = vld [vmem:[#allocation11] sm:$0xff]   ;;  %v5637_v35 = vld [vmem:[#allocation11 + $0x10] sm:$0xff]   ;;  %v5638_v6 = vld [vmem:[#allocation11 + $0x18] sm:$0xff]  }
 0x3c7   : > { %v4114_v60 = vsel %vm4036_vm3, %v4112_v55, %v4113_v19  ;;  %v5640_v27 = vld [vmem:[#allocation11 + $0x28] sm:$0xff]  }
 0x3c8   : > { %v4174_v2 = vadd.f32 %v4173_v32, %v4104_v53  ;;  %v4116_v17 = vsel %vm4036_vm3, %v4113_v19, %v4115_v38  ;;  %v5636_v53 = vld [vmem:[#allocation11 + $0x8] sm:$0xff]   ;;  %v5639_v32 = vld [vmem:[#allocation11 + $0x20] sm:$0xff]  }
 0x3c9   : > { %v9013_v55 = vld [vmem:[%s9306_s6] sm:$0xff] }
 0x3ca   : > { %v4175_v26 = vadd.f32 %v4174_v2, %v4106_v45  ;;  %v5641_v2 = vld [vmem:[#allocation11 + $0x30] sm:$0xff]   ;;  %v5642_v45 = vld [vmem:[#allocation11 + $0x38] sm:$0xff]   ;;  %v4254_v19 = vrot.slane %v9013_v55, 2 }
 0x3cc   : > { %v4176_v30 = vadd.f32 %v4175_v26, %v4109_v57  ;;  %v5643_v57 = vld [vmem:[#allocation12] sm:$0xff]  }
 0x3ce   : > { %v4177_v59 = vadd.f32 %v4176_v30, %v4111_v43 }
 0x3d0   : > { %v4178_v37 = vadd.f32 %v4177_v59, %v4114_v60 }
 0x3d2   : > { %v4179_v28 = vadd.f32 %v4178_v37, %v4116_v17 }
 0x3d4   : > { %v4180_v22 = vrot.slane %v4179_v28, 4 }
 0x3d6   : > { %v4181_v16 = vadd.f32 %v4180_v22, %v4179_v28  ;;  %v5644_v28 = vld [vmem:[#allocation12 + $0x8] sm:$0xff]   ;;  %v5645_v22 = vld [vmem:[#allocation12 + $0x10] sm:$0xff]  }
 0x3d8   : > { %v4182_v58 = vrot.slane %v4181_v16, 2 }
 0x3da   : > { %v4183_v51 = vadd.f32 %v4182_v58, %v4181_v16  ;;  %v5646_v16 = vld [vmem:[#allocation12 + $0x18] sm:$0xff]   ;;  %v5647_v58 = vld [vmem:[#allocation12 + $0x20] sm:$0xff]  }
 0x3dc   : > { %v4184_v47 = vrot.slane %v4183_v51, 1 }
 0x3de   : > { %v4185_v31 = vadd.f32 %v4184_v47, %v4183_v51  ;;  %v5648_v51 = vld [vmem:[#allocation12 + $0x28] sm:$0xff]   ;;  %v5649_v47 = vld [vmem:[#allocation12 + $0x30] sm:$0xff]  }
 0x3e0   : > { %v4187_v0 = vmul.f32 0.00390625, %v4185_v31  ;;  %v5650_v31 = vld [vmem:[#allocation12 + $0x38] sm:$0xff]  }
 0x3e2   : > { %v4188_v23 = vpack.c.bf16 %v4187_v0, %v4187_v0  ;;  %v4363_v0 = vrot.slane %v9013_v55, 3 }
 0x3e4   : > { %5408 = vmatmul.mubr.bf16.vlgmr.msra.gmra.mrb[0].mxu1 %v4188_v23 }
 0x3e5   : > { %5412 = vmatpush3.bf16.msra.mxu1 %v5635_v62  ;;  %5427 = vmatprep.mubr.msk.bf16.mxu1 %vm5940_vm4, %v9692_v21 }
 0x3e6   : > { %5413 = vmatprep.subr.bf16.mxu1 %v9692_v21 }
 0x3e9   : > { %5414 = vmatpush3.bf16.msra.mxu1 %v5636_v53 }
 0x3ea   : > { %5415 = vmatprep.subr.bf16.mxu1 %v9692_v21 }
 0x3ed   : > { %5416 = vmatpush3.bf16.msra.mxu1 %v5637_v35 }
 0x3ee   : > { %5417 = vmatprep.subr.bf16.mxu1 %v9692_v21 }
 0x3f1   : > { %5418 = vmatpush3.bf16.msra.mxu1 %v5638_v6 }
 0x3f2   : > { %5419 = vmatprep.subr.bf16.mxu1 %v9692_v21 }
 0x3f5   : > { %5420 = vmatpush3.bf16.msra.mxu1 %v5639_v32 }
 0x3f6   : > { %5421 = vmatprep.subr.bf16.mxu1 %v9692_v21 }
 0x3f9   : > { %5422 = vmatpush3.bf16.msra.mxu1 %v5640_v27 }
 0x3fa   : > { %5423 = vmatprep.subr.bf16.mxu1 %v9692_v21 }
 0x3fd   : > { %5424 = vmatpush3.bf16.msra.mxu1 %v5641_v2 }
 0x3fe   : > { %5425 = vmatprep.subr.bf16.mxu1 %v9692_v21 }
 0x401   : > { %5426 = vmatpush3.bf16.msra.mxu1 %v5642_v45 }
 0x402   : > { %5431 = vmatprep.subr.bf16.mxu1 %v5643_v57 }
 0x4b7   : > { %v4290_v26 = vpop.f32.mrb[0].mxu1 }
 0x4b8   : > { %v4291_v30 = vadd.f32 %v4290_v26, %v4254_v19  ;;  %v5409_v43 = vpop.f32.mrb[1].mxu1 }
 0x4b9   : > { %v4293_v60 = vpop.f32.mrb[2].mxu1 }
 0x4ba   : > { %v4296_v38 = vmax.f32 %v4291_v30, 0.0  ;;  %v5410_v59 = vpop.f32.mrb[3].mxu1  ;;  %v9695_v30 = vld [vmem:[#allocation33_spill] sm:$0xff]  ;;  %v9696_v60 = vld [vmem:[#allocation34_spill] sm:$0xff] }
 0x4bb   : > { %v9697_v59 = vld [vmem:[#allocation35_spill] sm:$0xff] }
 0x4bc   : > { %v4297_v37 = vmin.f32 %v4296_v38, 6.0 }
 0x4be   : > { %v4298_v17 = vpack.c.bf16 %v4297_v37, %v4297_v37 }
 0x4c0   : > { %5428 = vmatmul.mubr.bf16.vlgmr.msra.gmra.mrb[4].mxu1 %v4298_v17  ;;  %v9698_v17 = vld [vmem:[#allocation21_spill] sm:$0xff] }
 0x4c1   : > { %5432 = vmatpush3.bf16.msra.mxu1 %v5643_v57  ;;  %v9693_v57 = vld [vmem:[#allocation20_spill] sm:$0xff] }
 0x4c2   : > { %5433 = vmatprep.subr.bf16.mxu1 %v5644_v28  ;;  %v9694_v19 = vsub.s32 0, %v9693_v57 }
 0x4c5   : > { %5434 = vmatpush3.bf16.msra.mxu1 %v5644_v28 }
 0x4c6   : > { %5435 = vmatprep.subr.bf16.mxu1 %v5645_v22 }
 0x4c9   : > { %5436 = vmatpush3.bf16.msra.mxu1 %v5645_v22  ;;  %v9699_v22 = vld [vmem:[#allocation23_spill] sm:$0xff] }
 0x4ca   : > { %5437 = vmatprep.subr.bf16.mxu1 %v5646_v16 }
 0x4cd   : > { %5438 = vmatpush3.bf16.msra.mxu1 %v5646_v16 }
 0x4ce   : > { %5439 = vmatprep.subr.bf16.mxu1 %v5647_v58 }
 0x4d1   : > { %5440 = vmatpush3.bf16.msra.mxu1 %v5647_v58  ;;  %v9700_v58 = vld [vmem:[#allocation43_spill] sm:$0xff] }
 0x4d2   : > { %5441 = vmatprep.subr.bf16.mxu1 %v5648_v51 }
 0x4d5   : > { %5442 = vmatpush3.bf16.msra.mxu1 %v5648_v51 }
 0x4d6   : > { %5443 = vmatprep.subr.bf16.mxu1 %v5649_v47 }
 0x4d9   : > { %5444 = vmatpush3.bf16.msra.mxu1 %v5649_v47  ;;  %v9701_v47 = vld [vmem:[#allocation25_spill] sm:$0xff] }
 0x4da   : > { %5445 = vmatprep.subr.bf16.mxu1 %v5650_v31 }
 0x4dd   : > { %5446 = vmatpush3.bf16.msra.mxu1 %v5650_v31 }
 0x593   : > { %v4399_v62 = vpop.f32.mrb[4].mxu1 }
 0x594   : > { %v4400_v23 = vadd.f32 %v4399_v62, %v4363_v0  ;;  %v5429_v53 = vpop.f32.mrb[5].mxu1  ;;  %v9702_v0 = vld [vmem:[#allocation28_spill] sm:$0xff] }
 0x595   : > { %v4402_v21 = vpop.f32.mrb[6].mxu1 }
 0x596   : > { %v4405_v35 = vadd.f32 3.0, %v4400_v23  ;;  %v5430_v6 = vpop.f32.mrb[7].mxu1 }
 0x598   : > { %v4406_v32 = vmax.f32 %v4405_v35, 0.0 }
 0x59a   : > { %v4407_v27 = vmin.f32 %v4406_v32, 6.0 }
 0x59c   : > { %v4408_v2 = vmul.f32 %v4407_v27, %v4400_v23  ;;  %v9703_v27 = vld [vmem:[#allocation57_spill] sm:$0xff] }
 0x59e   : > { %v4409_v45 = vmul.f32 0.16666667, %v4408_v2 }
 0x5a0   : > { %v9019_v26 = vrot.slane %v4409_v45, %v9694_v19 }
 0x5a2   : > { %v4414_v43 = vmul.f32 %v9019_v26, %v9695_v30  ;;  %v4415_v38 = vmul.f32 %v9019_v26, %v9696_v60  ;;  %v4416_v37 = vmul.f32 %v9019_v26, %v9697_v59  ;;  %v4417_v28 = vmul.f32 %v9019_v26, %v9698_v17  ;;  %v9704_v59 = vld [vmem:[#allocation36_spill] sm:$0xff] }
 0x5a3   : > { %v4418_v16 = vmul.f32 %v9019_v26, %v9699_v22  ;;  %v4419_v51 = vmul.f32 %v9019_v26, %v9700_v58  ;;  %v4420_v31 = vmul.f32 %v9019_v26, %v9701_v47  ;;  %v4421_v62 = vmul.f32 %v9019_v26, %v9702_v0  ;;  %v9705_v58 = vld [vmem:[#allocation44_spill] sm:$0xff]  ;;  %v9706_v47 = vld [vmem:[#allocation37_spill] sm:$0xff] }
 0x5a4   : > { %v4510_v23 = vrot.slane %v4414_v43, 7  ;;  %v4511_v53 = vrot.slane %v4415_v38, 7  ;;  %v4513_v21 = vrot.slane %v4416_v37, 7  ;;  %v4515_v35 = vrot.slane %v4417_v28, 7 }
 0x5a5   : > { %v4516_v6 = vrot.slane %v4418_v16, 7  ;;  %v4518_v32 = vrot.slane %v4419_v51, 7  ;;  %v4422_v2 = vmul.f32 %v9019_v26, %v9703_v27  ;;  %v4520_v45 = vrot.slane %v4420_v31, 7 }
 0x5a6   : > { %v4512_v19 = vsel %vm4036_vm3, %v4510_v23, %v4511_v53  ;;  %v4514_v30 = vsel %vm4036_vm3, %v4511_v53, %v4513_v21  ;;  %v4521_v60 = vrot.slane %v4421_v62, 7  ;;  %v4423_v17 = vmul.f32 %v9019_v26, %v9704_v59  ;;  %v9707_v23 = vld [vmem:[#allocation78_spill] sm:$0xff] }
 0x5a7   : > { %v4622_v22 = vpack.c.bf16 %v4514_v30, %v4512_v19  ;;  %v4517_v43 = vsel %vm4036_vm3, %v4515_v35, %v4516_v6  ;;  %v4519_v38 = vsel %vm4036_vm3, %v4516_v6, %v4518_v32  ;;  %v4523_v37 = vrot.slane %v4422_v2, 7 }
 0x5a8   : > { %v4623_v28 = vpack.c.bf16 %v4519_v38, %v4517_v43  ;;  %v4522_v16 = vsel %vm4036_vm3, %v4520_v45, %v4521_v60  ;;  %v4424_v51 = vmul.f32 %v9019_v26, %v9705_v58  ;;  %v4425_v31 = vmul.f32 %v9019_v26, %v9706_v47 }
 0x5a9   : > { %5447 = vmatprep.mubr.bf16.mxu1 %v4622_v22  ;;  %v4524_v0 = vsel %vm4036_vm3, %v4521_v60, %v4523_v37  ;;  %v4525_v62 = vrot.slane %v4423_v17, 7  ;;  %v4426_v53 = vmul.f32 %v9019_v26, %v9707_v23  ;;  %v4427_v21 = vmul.f32 %v9019_v26, %v8587_v10 }
 0x5aa   : > { %5448 = vmatmul.mubr.bf16.vlgmr.msra.gmra.mrb[8].mxu1 %v4623_v28  ;;  %v4624_v35 = vpack.c.bf16 %v4524_v0, %v4522_v16  ;;  %v4526_v6 = vrot.slane %v4424_v51, 7  ;;  %v4528_v32 = vrot.slane %v4425_v31, 7  ;;  %v4428_v27 = vmul.f32 %v9019_v26, %v8600_v48 }
 0x5ab   : > { %v4530_v2 = vrot.slane %v4426_v53, 7  ;;  %v4531_v45 = vrot.slane %v4427_v21, 7  ;;  %v4429_v30 = vmul.f32 %v9019_v26, %v8629_v49  ;;  %v4430_v60 = vmul.f32 %v9019_v26, %v8639_v44 }
 0x5ac   : > { %5451 = vmatprep.mubr.bf16.mxu1 %v4624_v35  ;;  %v4533_v19 = vrot.slane %v4428_v27, 7  ;;  %v4527_v59 = vsel %vm4036_vm3, %v4525_v62, %v4526_v6  ;;  %v4529_v10 = vsel %vm4036_vm3, %v4526_v6, %v4528_v32  ;;  %v4431_v17 = vmul.f32 %v9019_v26, %v8633_v39 }
 0x5ad   : > { %v4532_v22 = vsel %vm4036_vm3, %v4530_v2, %v4531_v45  ;;  %v4432_v43 = vmul.f32 %v9019_v26, %v8643_v9  ;;  %v4433_v49 = vmul.f32 %v9019_v26, %v8660_v24  ;;  %v4434_v44 = vmul.f32 %v9019_v26, %v8662_v33 }
 0x5ae   : > { %v4534_v48 = vsel %vm4036_vm3, %v4531_v45, %v4533_v19  ;;  %v4625_v38 = vpack.c.bf16 %v4529_v10, %v4527_v59  ;;  %v4535_v37 = vrot.slane %v4429_v30, 7  ;;  %v4536_v28 = vrot.slane %v4430_v60, 7 }
 0x5af   : > { %v4626_v16 = vpack.c.bf16 %v4534_v48, %v4532_v22  ;;  %v4538_v58 = vrot.slane %v4431_v17, 7  ;;  %v4540_v39 = vrot.slane %v4432_v43, 7  ;;  %v4541_v51 = vrot.slane %v4433_v49, 7 }
 0x5b0   : > { %v4543_v47 = vrot.slane %v4434_v44, 7  ;;  %v4537_v31 = vsel %vm4036_vm3, %v4535_v37, %v4536_v28  ;;  %v4435_v9 = vmul.f32 %v9019_v26, %v8668_v40  ;;  %v4436_v24 = vmul.f32 %v9019_v26, %v8841_v5 }
 0x5b1   : > { %v4539_v33 = vsel %vm4036_vm3, %v4536_v28, %v4538_v58  ;;  %v4437_v0 = vmul.f32 %v9019_v26, %v8857_v8  ;;  %v4438_v62 = vmul.f32 %v9019_v26, %v8859_v3  ;;  %v4439_v23 = vmul.f32 %v9019_v26, %v8861_v1 }
 0x5b2   : > { %5452 = vmatmul.mubr.bf16.gmra.mrb[12].mxu1 %v4625_v38  ;;  %v4542_v53 = vsel %vm4036_vm3, %v4540_v39, %v4541_v51  ;;  %v4544_v21 = vsel %vm4036_vm3, %v4541_v51, %v4543_v47  ;;  %v4440_v40 = vmul.f32 %v9019_v26, %v8877_v34  ;;  %v4627_v35 = vpack.c.bf16 %v4539_v33, %v4537_v31 }
 0x5b3   : > { %5455 = vmatprep.mubr.bf16.mxu1 %v4626_v16  ;;  %v4545_v5 = vrot.slane %v4435_v9, 7  ;;  %v4546_v6 = vrot.slane %v4436_v24, 7  ;;  %v4628_v32 = vpack.c.bf16 %v4544_v21, %v4542_v53  ;;  %v4548_v27 = vrot.slane %v4437_v0, 7 }
 0x5b4   : > { %v4550_v2 = vrot.slane %v4438_v62, 7  ;;  %v4551_v8 = vrot.slane %v4439_v23, 7  ;;  %v4553_v45 = vrot.slane %v4440_v40, 7  ;;  %v4441_v3 = vmul.f32 %v9019_v26, %v8879_v52 }
 0x5b5   : > { %v4442_v1 = vmul.f32 %v9019_v26, %v8881_v4  ;;  %v4547_v19 = vsel %vm4036_vm3, %v4545_v5, %v4546_v6  ;;  %v4549_v34 = vsel %vm4036_vm3, %v4546_v6, %v4548_v27  ;;  %v4443_v60 = vmul.f32 %v9019_v26, %v8891_v12 }
 0x5b6   : > { %v4552_v30 = vsel %vm4036_vm3, %v4550_v2, %v4551_v8  ;;  %v4554_v59 = vsel %vm4036_vm3, %v4551_v8, %v4553_v45  ;;  %v4444_v10 = vmul.f32 %v9019_v26, %v8893_v50  ;;  %v4445_v52 = vmul.f32 %v9019_v26, %v8895_v41 }
 0x5b7   : > { %v4446_v4 = vmul.f32 %v9019_v26, %v8911_v15  ;;  %v4629_v17 = vpack.c.bf16 %v4549_v34, %v4547_v19  ;;  %v4555_v22 = vrot.slane %v4441_v3, 7  ;;  %v4556_v48 = vrot.slane %v4442_v1, 7 }
 0x5b8   : > { %v4630_v43 = vpack.c.bf16 %v4554_v59, %v4552_v30  ;;  %v4558_v49 = vrot.slane %v4443_v60, 7  ;;  %v4560_v44 = vrot.slane %v4444_v10, 7  ;;  %v4561_v38 = vrot.slane %v4445_v52, 7 }
 0x5b9   : > { %v4563_v12 = vrot.slane %v4446_v4, 7  ;;  %v4557_v37 = vsel %vm4036_vm3, %v4555_v22, %v4556_v48  ;;  %v4447_v50 = vmul.f32 %v9019_v26, %v8913_v13  ;;  %v4448_v41 = vmul.f32 %v9019_v26, %v8915_v46 }
 0x5ba   : > { %5456 = vmatmul.mubr.bf16.gmra.mrb[16].mxu1 %v4627_v35  ;;  %v4559_v15 = vsel %vm4036_vm3, %v4556_v48, %v4558_v49  ;;  %v4449_v28 = vmul.f32 %v9019_v26, %v8931_v20  ;;  %v4450_v16 = vmul.f32 %v9019_v26, %v8933_v61  ;;  %v4451_v58 = vmul.f32 %v9019_v26, %v8935_v29 }
 0x5bb   : > { %5459 = vmatprep.mubr.bf16.mxu1 %v4628_v32  ;;  %v4562_v39 = vsel %vm4036_vm3, %v4560_v44, %v4561_v38  ;;  %v4564_v51 = vsel %vm4036_vm3, %v4561_v38, %v4563_v12  ;;  %v4452_v13 = vmul.f32 %v9019_v26, %v8951_v63  ;;  %v4631_v47 = vpack.c.bf16 %v4559_v15, %v4557_v37 }
 0x5bc   : > { %v4565_v46 = vrot.slane %v4447_v50, 7  ;;  %v4566_v31 = vrot.slane %v4448_v41, 7  ;;  %v4632_v9 = vpack.c.bf16 %v4564_v51, %v4562_v39  ;;  %v4568_v24 = vrot.slane %v4449_v28, 7 }
 0x5bd   : > { %v4570_v33 = vrot.slane %v4450_v16, 7  ;;  %v4571_v20 = vrot.slane %v4451_v58, 7  ;;  %v4573_v0 = vrot.slane %v4452_v13, 7  ;;  %v4453_v29 = vmul.f32 %v9019_v26, %v8953_v25 }
 0x5be   : > { %v4567_v61 = vsel %vm4036_vm3, %v4565_v46, %v4566_v31  ;;  %v4569_v62 = vsel %vm4036_vm3, %v4566_v31, %v4568_v24  ;;  %v4454_v63 = vmul.f32 %v9019_v26, %v8955_v18  ;;  %v4455_v53 = vmul.f32 %v9019_v26, %v8967_v56 }
 0x5bf   : > { %v4572_v23 = vsel %vm4036_vm3, %v4570_v33, %v4571_v20  ;;  %v4574_v21 = vsel %vm4036_vm3, %v4571_v20, %v4573_v0  ;;  %v4456_v40 = vmul.f32 %v9019_v26, %v8969_v36  ;;  %v4457_v35 = vmul.f32 %v9019_v26, %v8971_v54 }
 0x5c0   : > { %v4458_v25 = vmul.f32 %v9019_v26, %v8979_v14  ;;  %v4633_v5 = vpack.c.bf16 %v4569_v62, %v4567_v61  ;;  %v4634_v6 = vpack.c.bf16 %v4574_v21, %v4572_v23  ;;  %v4575_v32 = vrot.slane %v4453_v29, 7  ;;  %v5029_v23 = vld [vmem:[%s6339_s28 + $0x10] sm:$0xff] }
 0x5c1   : > { %v4576_v27 = vrot.slane %v4454_v63, 7  ;;  %v4578_v2 = vrot.slane %v4455_v53, 7  ;;  %v4580_v18 = vrot.slane %v4456_v40, 7  ;;  %v4581_v8 = vrot.slane %v4457_v35, 7 }
 0x5c2   : > { %5460 = vmatmul.mubr.bf16.gmra.mrb[20].mxu1 %v4629_v17  ;;  %v4583_v56 = vrot.slane %v4458_v25, 7  ;;  %v4459_v45 = vmul.f32 %v9019_v26, %v8981_v11  ;;  %v4460_v14 = vmul.f32 %v9019_v26, %v8983_v7  ;;  %v4461_v3 = vmul.f32 %v9019_v26, %v8990_v42  ;;  %v5027_v25 = vld [vmem:[%s6339_s28] sm:$0xff] }
 0x5c3   : > { %5463 = vmatprep.mubr.bf16.mxu1 %v4630_v43  ;;  %v4577_v36 = vsel %vm4036_vm3, %v4575_v32, %v4576_v27  ;;  %v4579_v54 = vsel %vm4036_vm3, %v4576_v27, %v4578_v2  ;;  %v4582_v1 = vsel %vm4036_vm3, %v4580_v18, %v4581_v8  ;;  %v4656_v7 = vsub.s32 4, %v9693_v57  ;;  %v5030_v2 = vld [vmem:[%s6339_s28 + $0x18] sm:$0xff] }
 0x5c4   : > { %v4584_v19 = vsel %vm4036_vm3, %v4581_v8, %v4583_v56  ;;  %v4635_v34 = vpack.c.bf16 %v4579_v54, %v4577_v36  ;;  %v4585_v60 = vrot.slane %v4459_v45, 7  ;;  %v4586_v59 = vrot.slane %v4460_v14, 7  ;;  %v5028_v36 = vld [vmem:[%s6339_s28 + $0x8] sm:$0xff] }
 0x5c5   : > { %v4636_v30 = vpack.c.bf16 %v4584_v19, %v4582_v1  ;;  %v4588_v10 = vrot.slane %v4461_v3, 7  ;;  %v9151_v42 = vrot.slane %v9013_v55, %v4656_v7 }
 0x5c6   : > { %v4587_v11 = vsel %vm4036_vm3, %v4585_v60, %v4586_v59 }
 0x5c7   : > { %v4589_v52 = vsel %vm4036_vm3, %v4586_v59, %v4588_v10 }
 0x5c8   : > { %v4637_v4 = vpack.c.bf16 %v4589_v52, %v4587_v11 }
 0x5ca   : > { %5464 = vmatmul.mubr.bf16.gmra.mrb[24].mxu1 %v4631_v47 }
 0x5cb   : > { %5467 = vmatprep.mubr.bf16.mxu1 %v4632_v9 }
 0x5d2   : > { %5468 = vmatmul.mubr.bf16.gmra.mrb[28].mxu1 %v4633_v5 }
 0x5d3   : > { %5471 = vmatprep.mubr.bf16.mxu1 %v4634_v6 }
 0x5da   : > { %5472 = vmatmul.mubr.bf16.gmra.mrb[32].mxu1 %v4635_v34 }
 0x5db   : > { %5475 = vmatprep.mubr.bf16.mxu1 %v4636_v30 }
 0x5e2   : > { %5476 = vmatmul.mubr.bf16.gmra.mrb[36].mxu1 %v4637_v4 }
 0x67d   : > { %v5449_v26 = vpop.f32.mrb[8].mxu1 }
 0x67e   : > { %v4749_v17 = vadd.f32 %v5449_v26, %v9151_v42  ;;  %v4740_v22 = vpop.f32.mrb[9].mxu1 }
 0x67f   : > { %v4741_v48 = vadd.f32 %v4740_v22, %v9151_v42  ;;  %v5450_v43 = vpop.f32.mrb[10].mxu1 }
 0x680   : > { %v4869_v49 = vadd.f32 3.0, %v4749_v17  ;;  %v4752_v44 = vadd.f32 %v5450_v43, %v9151_v42  ;;  %v4743_v38 = vpop.f32.mrb[11].mxu1 }
 0x681   : > { %v4867_v12 = vadd.f32 3.0, %v4741_v48  ;;  %v4744_v37 = vadd.f32 %v4743_v38, %v9151_v42 }
 0x682   : > { %v4901_v50 = vmax.f32 %v4869_v49, 0.0  ;;  %v4870_v41 = vadd.f32 3.0, %v4752_v44  ;;  %v5033_v49 = vld [vmem:[%s6339_s28 + $0x30] sm:$0xff] }
 0x683   : > { %v4899_v57 = vmax.f32 %v4867_v12, 0.0  ;;  %v4868_v15 = vadd.f32 3.0, %v4744_v37 }
 0x684   : > { %v4933_v55 = vmin.f32 %v4901_v50, 6.0  ;;  %v4902_v28 = vmax.f32 %v4870_v41, 0.0  ;;  %v5031_v41 = vld [vmem:[%s6339_s28 + $0x20] sm:$0xff] }
 0x685   : > { %v4931_v16 = vmin.f32 %v4899_v57, 6.0  ;;  %v4900_v58 = vmax.f32 %v4868_v15, 0.0  ;;  %v5453_v39 = vpop.f32.mrb[12].mxu1 }
 0x686   : > { %v4965_v51 = vmul.f32 %v4933_v55, %v4749_v17  ;;  %v4934_v13 = vmin.f32 %v4902_v28, 6.0  ;;  %v4765_v47 = vadd.f32 %v5453_v39, %v9151_v42  ;;  %v4756_v46 = vpop.f32.mrb[13].mxu1 }
 0x687   : > { %v4963_v31 = vmul.f32 %v4931_v16, %v4741_v48  ;;  %v4932_v9 = vmin.f32 %v4900_v58, 6.0  ;;  %v4757_v24 = vadd.f32 %v4756_v46, %v9151_v42  ;;  %v5454_v33 = vpop.f32.mrb[14].mxu1  ;;  %v5034_v16 = vld [vmem:[%s6339_s28 + $0x38] sm:$0xff] }
 0x688   : > { %v4997_v20 = vmul.f32 0.16666667, %v4965_v51  ;;  %v4966_v0 = vmul.f32 %v4934_v13, %v4752_v44  ;;  %v4873_v61 = vadd.f32 3.0, %v4765_v47  ;;  %v4768_v29 = vadd.f32 %v5454_v33, %v9151_v42  ;;  %v4759_v62 = vpop.f32.mrb[15].mxu1 }
 0x689   : > { %v4995_v63 = vmul.f32 0.16666667, %v4963_v31  ;;  %v4964_v53 = vmul.f32 %v4932_v9, %v4744_v37  ;;  %v4871_v21 = vadd.f32 3.0, %v4757_v24  ;;  %v4760_v40 = vadd.f32 %v4759_v62, %v9151_v42 }
 0x68a   : > { %v5061_v35 = vadd.f32 %v5029_v23, %v4997_v20  ;;  %v4998_v5 = vmul.f32 0.16666667, %v4966_v0  ;;  %v4905_v6 = vmax.f32 %v4873_v61, 0.0  ;;  %v4874_v32 = vadd.f32 3.0, %v4768_v29 }
 0x68b   : > { %v5059_v27 = vadd.f32 %v5027_v25, %v4995_v63  ;;  %v4996_v18 = vmul.f32 0.16666667, %v4964_v53  ;;  %v4903_v8 = vmax.f32 %v4871_v21, 0.0  ;;  %v4872_v56 = vadd.f32 3.0, %v4760_v40 }
 0x68c   : > { %5093 = vst [vmem:[%s6339_s28 + $0x10] sm:$0xff] %v5061_v35  ;;  %v5062_v45 = vadd.f32 %v5030_v2, %v4998_v5  ;;  %v4937_v54 = vmin.f32 %v4905_v6, 6.0  ;;  %v4906_v14 = vmax.f32 %v4874_v32, 0.0  ;;  %v5037_v32 = vld [vmem:[%s6339_s28 + $0x50] sm:$0xff] }
 0x68d   : > { %5091 = vst [vmem:[%s6339_s28] sm:$0xff] %v5059_v27  ;;  %v5060_v3 = vadd.f32 %v5028_v36, %v4996_v18  ;;  %v4935_v1 = vmin.f32 %v4903_v8, 6.0  ;;  %v4904_v19 = vmax.f32 %v4872_v56, 0.0  ;;  %v5457_v34 = vpop.f32.mrb[16].mxu1 }
 0x68e   : > { %5094 = vst [vmem:[%s6339_s28 + $0x18] sm:$0xff] %v5062_v45  ;;  %v4969_v30 = vmul.f32 %v4937_v54, %v4765_v47  ;;  %v4938_v60 = vmin.f32 %v4906_v14, 6.0  ;;  %v4781_v59 = vadd.f32 %v5457_v34, %v9151_v42  ;;  %v4772_v10 = vpop.f32.mrb[17].mxu1  ;;  %v5032_v47 = vld [vmem:[%s6339_s28 + $0x28] sm:$0xff]  ;;  %v5035_v45 = vld [vmem:[%s6339_s28 + $0x40] sm:$0xff] }
 0x68f   : > { %5092 = vst [vmem:[%s6339_s28 + $0x8] sm:$0xff] %v5060_v3  ;;  %v4967_v11 = vmul.f32 %v4935_v1, %v4757_v24  ;;  %v4936_v52 = vmin.f32 %v4904_v19, 6.0  ;;  %v4773_v4 = vadd.f32 %v4772_v10, %v9151_v42  ;;  %v5458_v7 = vpop.f32.mrb[18].mxu1  ;;  %v5038_v1 = vld [vmem:[%s6339_s28 + $0x58] sm:$0xff] }
 0x690   : > { %v5001_v26 = vmul.f32 0.16666667, %v4969_v30  ;;  %v4970_v17 = vmul.f32 %v4938_v60, %v4768_v29  ;;  %v4877_v22 = vadd.f32 3.0, %v4781_v59  ;;  %v4784_v48 = vadd.f32 %v5458_v7, %v9151_v42  ;;  %v4775_v43 = vpop.f32.mrb[19].mxu1 }
 0x691   : > { %v4999_v44 = vmul.f32 0.16666667, %v4967_v11  ;;  %v4968_v38 = vmul.f32 %v4936_v52, %v4760_v40  ;;  %v4875_v12 = vadd.f32 3.0, %v4773_v4  ;;  %v4776_v37 = vadd.f32 %v4775_v43, %v9151_v42 }
 0x692   : > { %v5065_v50 = vadd.f32 %v5033_v49, %v5001_v26  ;;  %v5002_v57 = vmul.f32 0.16666667, %v4970_v17  ;;  %v4909_v15 = vmax.f32 %v4877_v22, 0.0  ;;  %v4878_v55 = vadd.f32 3.0, %v4784_v48 }
 0x693   : > { %v5063_v28 = vadd.f32 %v5031_v41, %v4999_v44  ;;  %v5000_v58 = vmul.f32 0.16666667, %v4968_v38  ;;  %v4907_v39 = vmax.f32 %v4875_v12, 0.0  ;;  %v4876_v51 = vadd.f32 3.0, %v4776_v37 }
 0x694   : > { %5097 = vst [vmem:[%s6339_s28 + $0x30] sm:$0xff] %v5065_v50  ;;  %v5066_v13 = vadd.f32 %v5034_v16, %v5002_v57  ;;  %v4941_v46 = vmin.f32 %v4909_v15, 6.0  ;;  %v4910_v31 = vmax.f32 %v4878_v55, 0.0  ;;  %v5041_v55 = vld [vmem:[%s6339_s28 + $0x70] sm:$0xff] }
 0x695   : > { %5095 = vst [vmem:[%s6339_s28 + $0x20] sm:$0xff] %v5063_v28  ;;  %v5064_v9 = vadd.f32 %v5032_v47, %v5000_v58  ;;  %v4939_v24 = vmin.f32 %v4907_v39, 6.0  ;;  %v4908_v33 = vmax.f32 %v4876_v51, 0.0  ;;  %v5461_v20 = vpop.f32.mrb[20].mxu1 }
 0x696   : > { %5098 = vst [vmem:[%s6339_s28 + $0x38] sm:$0xff] %v5066_v13  ;;  %v4973_v0 = vmul.f32 %v4941_v46, %v4781_v59  ;;  %v4942_v61 = vmin.f32 %v4910_v31, 6.0  ;;  %v4797_v29 = vadd.f32 %v5461_v20, %v9151_v42  ;;  %v4788_v62 = vpop.f32.mrb[21].mxu1  ;;  %v5036_v59 = vld [vmem:[%s6339_s28 + $0x48] sm:$0xff]  ;;  %v5039_v13 = vld [vmem:[%s6339_s28 + $0x60] sm:$0xff] }
 0x697   : > { %5096 = vst [vmem:[%s6339_s28 + $0x28] sm:$0xff] %v5064_v9  ;;  %v4971_v23 = vmul.f32 %v4939_v24, %v4773_v4  ;;  %v4940_v63 = vmin.f32 %v4908_v33, 6.0  ;;  %v4789_v53 = vadd.f32 %v4788_v62, %v9151_v42  ;;  %v5462_v21 = vpop.f32.mrb[22].mxu1  ;;  %v5042_v24 = vld [vmem:[%s6339_s28 + $0x78] sm:$0xff] }
 0x698   : > { %v5005_v40 = vmul.f32 0.16666667, %v4973_v0  ;;  %v4974_v35 = vmul.f32 %v4942_v61, %v4784_v48  ;;  %v4881_v25 = vadd.f32 3.0, %v4797_v29  ;;  %v4800_v5 = vadd.f32 %v5462_v21, %v9151_v42  ;;  %v4791_v6 = vpop.f32.mrb[23].mxu1 }
 0x699   : > { %v5003_v27 = vmul.f32 0.16666667, %v4971_v23  ;;  %v4972_v2 = vmul.f32 %v4940_v63, %v4776_v37  ;;  %v4879_v18 = vadd.f32 3.0, %v4789_v53  ;;  %v4792_v8 = vadd.f32 %v4791_v6, %v9151_v42 }
 0x69a   : > { %v5069_v56 = vadd.f32 %v5037_v32, %v5005_v40  ;;  %v5006_v36 = vmul.f32 0.16666667, %v4974_v35  ;;  %v4913_v54 = vmax.f32 %v4881_v25, 0.0  ;;  %v4882_v14 = vadd.f32 3.0, %v4800_v5 }
 0x69b   : > { %v5067_v3 = vadd.f32 %v5035_v45, %v5003_v27  ;;  %v5004_v19 = vmul.f32 0.16666667, %v4972_v2  ;;  %v4911_v34 = vmax.f32 %v4879_v18, 0.0  ;;  %v4880_v30 = vadd.f32 3.0, %v4792_v8 }
 0x69c   : > { %5101 = vst [vmem:[%s6339_s28 + $0x50] sm:$0xff] %v5069_v56  ;;  %v5070_v60 = vadd.f32 %v5038_v1, %v5006_v36  ;;  %v4945_v10 = vmin.f32 %v4913_v54, 6.0  ;;  %v4914_v11 = vmax.f32 %v4882_v14, 0.0  ;;  %v5045_v14 = vld [vmem:[%s6339_s28 + $0x90] sm:$0xff] }
 0x69d   : > { %5099 = vst [vmem:[%s6339_s28 + $0x40] sm:$0xff] %v5067_v3  ;;  %v5068_v52 = vadd.f32 %v5036_v59, %v5004_v19  ;;  %v4943_v4 = vmin.f32 %v4911_v34, 6.0  ;;  %v4912_v7 = vmax.f32 %v4880_v30, 0.0  ;;  %v5465_v26 = vpop.f32.mrb[24].mxu1 }
 0x69e   : > { %5102 = vst [vmem:[%s6339_s28 + $0x58] sm:$0xff] %v5070_v60  ;;  %v4977_v17 = vmul.f32 %v4945_v10, %v4797_v29  ;;  %v4946_v22 = vmin.f32 %v4914_v11, 6.0  ;;  %v4813_v48 = vadd.f32 %v5465_v26, %v9151_v42  ;;  %v4804_v43 = vpop.f32.mrb[25].mxu1  ;;  %v5040_v29 = vld [vmem:[%s6339_s28 + $0x68] sm:$0xff]  ;;  %v5043_v60 = vld [vmem:[%s6339_s28 + $0x80] sm:$0xff] }
 0x69f   : > { %5100 = vst [vmem:[%s6339_s28 + $0x48] sm:$0xff] %v5068_v52  ;;  %v4975_v49 = vmul.f32 %v4943_v4, %v4789_v53  ;;  %v4944_v44 = vmin.f32 %v4912_v7, 6.0  ;;  %v4805_v38 = vadd.f32 %v4804_v43, %v9151_v42  ;;  %v5466_v12 = vpop.f32.mrb[26].mxu1  ;;  %v5046_v4 = vld [vmem:[%s6339_s28 + $0x98] sm:$0xff] }
 0x6a0   : > { %v5009_v37 = vmul.f32 0.16666667, %v4977_v17  ;;  %v4978_v50 = vmul.f32 %v4946_v22, %v4800_v5  ;;  %v4885_v41 = vadd.f32 3.0, %v4813_v48  ;;  %v4816_v57 = vadd.f32 %v5466_v12, %v9151_v42  ;;  %v4807_v15 = vpop.f32.mrb[27].mxu1 }
 0x6a1   : > { %v5007_v28 = vmul.f32 0.16666667, %v4975_v49  ;;  %v4976_v16 = vmul.f32 %v4944_v44, %v4792_v8  ;;  %v4883_v58 = vadd.f32 3.0, %v4805_v38  ;;  %v4808_v39 = vadd.f32 %v4807_v15, %v9151_v42 }
 0x6a2   : > { %v5073_v51 = vadd.f32 %v5041_v55, %v5009_v37  ;;  %v5010_v47 = vmul.f32 0.16666667, %v4978_v50  ;;  %v4917_v46 = vmax.f32 %v4885_v41, 0.0  ;;  %v4886_v31 = vadd.f32 3.0, %v4816_v57 }
 0x6a3   : > { %v5071_v9 = vadd.f32 %v5039_v13, %v5007_v28  ;;  %v5008_v33 = vmul.f32 0.16666667, %v4976_v16  ;;  %v4915_v20 = vmax.f32 %v4883_v58, 0.0  ;;  %v4884_v0 = vadd.f32 3.0, %v4808_v39 }
 0x6a4   : > { %5105 = vst [vmem:[%s6339_s28 + $0x70] sm:$0xff] %v5073_v51  ;;  %v5074_v61 = vadd.f32 %v5042_v24, %v5010_v47  ;;  %v4949_v62 = vmin.f32 %v4917_v46, 6.0  ;;  %v4918_v23 = vmax.f32 %v4886_v31, 0.0  ;;  %v5049_v31 = vld [vmem:[%s6339_s28 + $0xb0] sm:$0xff] }
 0x6a5   : > { %5103 = vst [vmem:[%s6339_s28 + $0x60] sm:$0xff] %v5071_v9  ;;  %v5072_v63 = vadd.f32 %v5040_v29, %v5008_v33  ;;  %v4947_v53 = vmin.f32 %v4915_v20, 6.0  ;;  %v4916_v21 = vmax.f32 %v4884_v0, 0.0  ;;  %v5469_v40 = vpop.f32.mrb[28].mxu1 }
 0x6a6   : > { %5106 = vst [vmem:[%s6339_s28 + $0x78] sm:$0xff] %v5074_v61  ;;  %v4981_v35 = vmul.f32 %v4949_v62, %v4813_v48  ;;  %v4950_v25 = vmin.f32 %v4918_v23, 6.0  ;;  %v4829_v5 = vadd.f32 %v5469_v40, %v9151_v42  ;;  %v4820_v6 = vpop.f32.mrb[29].mxu1  ;;  %v5044_v48 = vld [vmem:[%s6339_s28 + $0x88] sm:$0xff]  ;;  %v5047_v61 = vld [vmem:[%s6339_s28 + $0xa0] sm:$0xff] }
 0x6a7   : > { %5104 = vst [vmem:[%s6339_s28 + $0x68] sm:$0xff] %v5072_v63  ;;  %v4979_v32 = vmul.f32 %v4947_v53, %v4805_v38  ;;  %v4948_v27 = vmin.f32 %v4916_v21, 6.0  ;;  %v4821_v2 = vadd.f32 %v4820_v6, %v9151_v42  ;;  %v5470_v18 = vpop.f32.mrb[30].mxu1  ;;  %v5050_v53 = vld [vmem:[%s6339_s28 + $0xb8] sm:$0xff] }
 0x6a8   : > { %v5013_v8 = vmul.f32 0.16666667, %v4981_v35  ;;  %v4982_v56 = vmul.f32 %v4950_v25, %v4816_v57  ;;  %v4889_v45 = vadd.f32 3.0, %v4829_v5  ;;  %v4832_v36 = vadd.f32 %v5470_v18, %v9151_v42  ;;  %v4823_v54 = vpop.f32.mrb[31].mxu1 }
 0x6a9   : > { %v5011_v3 = vmul.f32 0.16666667, %v4979_v32  ;;  %v4980_v1 = vmul.f32 %v4948_v27, %v4808_v39  ;;  %v4887_v19 = vadd.f32 3.0, %v4821_v2  ;;  %v4824_v34 = vadd.f32 %v4823_v54, %v9151_v42 }
 0x6aa   : > { %v5077_v30 = vadd.f32 %v5045_v14, %v5013_v8  ;;  %v5014_v59 = vmul.f32 0.16666667, %v4982_v56  ;;  %v4921_v10 = vmax.f32 %v4889_v45, 0.0  ;;  %v4890_v11 = vadd.f32 3.0, %v4832_v36 }
 0x6ab   : > { %v5075_v52 = vadd.f32 %v5043_v60, %v5011_v3  ;;  %v5012_v7 = vmul.f32 0.16666667, %v4980_v1  ;;  %v4919_v26 = vmax.f32 %v4887_v19, 0.0  ;;  %v4888_v17 = vadd.f32 3.0, %v4824_v34 }
 0x6ac   : > { %5109 = vst [vmem:[%s6339_s28 + $0x90] sm:$0xff] %v5077_v30  ;;  %v5078_v22 = vadd.f32 %v5046_v4, %v5014_v59  ;;  %v4953_v43 = vmin.f32 %v4921_v10, 6.0  ;;  %v4922_v49 = vmax.f32 %v4890_v11, 0.0  ;;  %v5053_v11 = vld [vmem:[%s6339_s28 + $0xd0] sm:$0xff] }
 0x6ad   : > { %5107 = vst [vmem:[%s6339_s28 + $0x80] sm:$0xff] %v5075_v52  ;;  %v5076_v44 = vadd.f32 %v5044_v48, %v5012_v7  ;;  %v4951_v38 = vmin.f32 %v4919_v26, 6.0  ;;  %v4920_v12 = vmax.f32 %v4888_v17, 0.0  ;;  %v5473_v37 = vpop.f32.mrb[32].mxu1 }
 0x6ae   : > { %5110 = vst [vmem:[%s6339_s28 + $0x98] sm:$0xff] %v5078_v22  ;;  %v4985_v50 = vmul.f32 %v4953_v43, %v4829_v5  ;;  %v4954_v41 = vmin.f32 %v4922_v49, 6.0  ;;  %v4845_v57 = vadd.f32 %v5473_v37, %v9151_v42  ;;  %v4836_v15 = vpop.f32.mrb[33].mxu1  ;;  %v5048_v5 = vld [vmem:[%s6339_s28 + $0xa8] sm:$0xff]  ;;  %v5051_v22 = vld [vmem:[%s6339_s28 + $0xc0] sm:$0xff] }
 0x6af   : > { %5108 = vst [vmem:[%s6339_s28 + $0x88] sm:$0xff] %v5076_v44  ;;  %v4983_v55 = vmul.f32 %v4951_v38, %v4821_v2  ;;  %v4952_v28 = vmin.f32 %v4920_v12, 6.0  ;;  %v4837_v16 = vadd.f32 %v4836_v15, %v9151_v42  ;;  %v5474_v58 = vpop.f32.mrb[34].mxu1  ;;  %v5054_v38 = vld [vmem:[%s6339_s28 + $0xd8] sm:$0xff] }
 0x6b0   : > { %v5017_v39 = vmul.f32 0.16666667, %v4985_v50  ;;  %v4986_v51 = vmul.f32 %v4954_v41, %v4832_v36  ;;  %v4893_v13 = vadd.f32 3.0, %v4845_v57  ;;  %v4848_v47 = vadd.f32 %v5474_v58, %v9151_v42  ;;  %v4839_v46 = vpop.f32.mrb[35].mxu1 }
 0x6b1   : > { %v5015_v9 = vmul.f32 0.16666667, %v4983_v55  ;;  %v4984_v24 = vmul.f32 %v4952_v28, %v4824_v34  ;;  %v4891_v33 = vadd.f32 3.0, %v4837_v16  ;;  %v4840_v20 = vadd.f32 %v4839_v46, %v9151_v42 }
 0x6b2   : > { %v5081_v0 = vadd.f32 %v5049_v31, %v5017_v39  ;;  %v5018_v29 = vmul.f32 0.16666667, %v4986_v51  ;;  %v4925_v62 = vmax.f32 %v4893_v13, 0.0  ;;  %v4894_v23 = vadd.f32 3.0, %v4848_v47  ;;  %v5057_v31 = vld [vmem:[%s6339_s28 + $0xf0] sm:$0xff] }
 0x6b3   : > { %v5079_v63 = vadd.f32 %v5047_v61, %v5015_v9  ;;  %v5016_v21 = vmul.f32 0.16666667, %v4984_v24  ;;  %v4923_v40 = vmax.f32 %v4891_v33, 0.0  ;;  %v4892_v35 = vadd.f32 3.0, %v4840_v20 }
 0x6b4   : > { %5113 = vst [vmem:[%s6339_s28 + $0xb0] sm:$0xff] %v5081_v0  ;;  %v5082_v25 = vadd.f32 %v5050_v53, %v5018_v29  ;;  %v4957_v6 = vmin.f32 %v4925_v62, 6.0  ;;  %v4926_v32 = vmax.f32 %v4894_v23, 0.0  ;;  %v5058_v29 = vld [vmem:[%s6339_s28 + $0xf8] sm:$0xff] }
 0x6b5   : > { %5111 = vst [vmem:[%s6339_s28 + $0xa0] sm:$0xff] %v5079_v63  ;;  %v5080_v27 = vadd.f32 %v5048_v5, %v5016_v21  ;;  %v4955_v2 = vmin.f32 %v4923_v40, 6.0  ;;  %v4924_v18 = vmax.f32 %v4892_v35, 0.0  ;;  %v5477_v8 = vpop.f32.mrb[36].mxu1  ;;  %v5056_v63 = vld [vmem:[%s6339_s28 + $0xe8] sm:$0xff] }
 0x6b6   : > { %5114 = vst [vmem:[%s6339_s28 + $0xb8] sm:$0xff] %v5082_v25  ;;  %v4989_v56 = vmul.f32 %v4957_v6, %v4845_v57  ;;  %v4958_v45 = vmin.f32 %v4926_v32, 6.0  ;;  %v4861_v36 = vadd.f32 %v5477_v8, %v9151_v42  ;;  %v4852_v54 = vpop.f32.mrb[37].mxu1  ;;  %v5052_v57 = vld [vmem:[%s6339_s28 + $0xc8] sm:$0xff] }
 0x6b7   : > { %5112 = vst [vmem:[%s6339_s28 + $0xa8] sm:$0xff] %v5080_v27  ;;  %v4987_v14 = vmul.f32 %v4955_v2, %v4837_v16  ;;  %v4956_v3 = vmin.f32 %v4924_v18, 6.0  ;;  %v4853_v1 = vadd.f32 %v4852_v54, %v9151_v42  ;;  %v5478_v19 = vpop.f32.mrb[38].mxu1 }
 0x6b8   : > { %v5021_v34 = vmul.f32 0.16666667, %v4989_v56  ;;  %v4990_v30 = vmul.f32 %v4958_v45, %v4848_v47  ;;  %v4897_v60 = vadd.f32 3.0, %v4861_v36  ;;  %v4864_v59 = vadd.f32 %v5478_v19, %v9151_v42  ;;  %v4855_v10 = vpop.f32.mrb[39].mxu1 }
 0x6b9   : > { %v5019_v52 = vmul.f32 0.16666667, %v4987_v14  ;;  %v4988_v4 = vmul.f32 %v4956_v3, %v4840_v20  ;;  %v4895_v7 = vadd.f32 3.0, %v4853_v1  ;;  %v4856_v26 = vadd.f32 %v4855_v10, %v9151_v42  ;;  %v5055_v20 = vld [vmem:[%s6339_s28 + $0xe0] sm:$0xff] }
 0x6ba   : > { %v5085_v17 = vadd.f32 %v5053_v11, %v5021_v34  ;;  %v5022_v48 = vmul.f32 0.16666667, %v4990_v30  ;;  %v4929_v43 = vmax.f32 %v4897_v60, 0.0  ;;  %v4898_v49 = vadd.f32 3.0, %v4864_v59 }
 0x6bb   : > { %v5083_v44 = vadd.f32 %v5051_v22, %v5019_v52  ;;  %v5020_v12 = vmul.f32 0.16666667, %v4988_v4  ;;  %v4927_v37 = vmax.f32 %v4895_v7, 0.0  ;;  %v4896_v50 = vadd.f32 3.0, %v4856_v26 }
 0x6bc   : > { %5117 = vst [vmem:[%s6339_s28 + $0xd0] sm:$0xff] %v5085_v17  ;;  %v5086_v41 = vadd.f32 %v5054_v38, %v5022_v48  ;;  %v4961_v15 = vmin.f32 %v4929_v43, 6.0  ;;  %v4930_v55 = vmax.f32 %v4898_v49, 0.0 }
 0x6bd   : > { %5115 = vst [vmem:[%s6339_s28 + $0xc0] sm:$0xff] %v5083_v44  ;;  %v5084_v42 = vadd.f32 %v5052_v57, %v5020_v12  ;;  %v4959_v28 = vmin.f32 %v4927_v37, 6.0  ;;  %v4928_v16 = vmax.f32 %v4896_v50, 0.0 }
 0x6be   : > { %5118 = vst [vmem:[%s6339_s28 + $0xd8] sm:$0xff] %v5086_v41  ;;  %v4993_v58 = vmul.f32 %v4961_v15, %v4861_v36  ;;  %v4962_v39 = vmin.f32 %v4930_v55, 6.0 }
 0x6bf   : > { %5116 = vst [vmem:[%s6339_s28 + $0xc8] sm:$0xff] %v5084_v42  ;;  %v4991_v51 = vmul.f32 %v4959_v28, %v4853_v1  ;;  %v4960_v13 = vmin.f32 %v4928_v16, 6.0 }
 0x6c0   : > { %v5025_v47 = vmul.f32 0.16666667, %v4993_v58  ;;  %v4994_v46 = vmul.f32 %v4962_v39, %v4864_v59 }
 0x6c1   : > { %v5023_v9 = vmul.f32 0.16666667, %v4991_v51  ;;  %v4992_v24 = vmul.f32 %v4960_v13, %v4856_v26 }
 0x6c2   : > { %v5089_v33 = vadd.f32 %v5057_v31, %v5025_v47  ;;  %v5026_v0 = vmul.f32 0.16666667, %v4994_v46 }
 0x6c3   : > { %v5087_v61 = vadd.f32 %v5055_v20, %v5023_v9  ;;  %v5024_v62 = vmul.f32 0.16666667, %v4992_v24 }
 0x6c4   : > { %5121 = vst [vmem:[%s6339_s28 + $0xf0] sm:$0xff] %v5089_v33  ;;  %v5090_v23 = vadd.f32 %v5058_v29, %v5026_v0 }
 0x6c5   : > { %5119 = vst [vmem:[%s6339_s28 + $0xe0] sm:$0xff] %v5087_v61  ;;  %v5088_v53 = vadd.f32 %v5056_v63, %v5024_v62 }
 0x6c6   : > { %5122 = vst [vmem:[%s6339_s28 + $0xf8] sm:$0xff] %v5090_v23 }
 0x6c7   : > { %5120 = vst [vmem:[%s6339_s28 + $0xe8] sm:$0xff] %v5088_v53 }
 0x6c8   : > { %5859 = shalt.err (!%p5856_p8)
}
 0x6c9   : > { %s5860_s22 = scalar_lea.hbm %s9251_s20, 4096  ;;  %s5864_s21 = scalar_lea.hbm %s9307_s7, 8192 }
 0x6ca   : > { %p5861_p6 = scmp.ne.s32.totalorder %s9251_s20, %s5860_s22  ;;  %p5865_p3 = scmp.lt.u32.totalorder %s9251_s20, %s9307_s7 }
 0x6cb   : > { %p5866_p0 = scmp.lt.u32.totalorder %s5864_s21, %s5860_s22  ;;  %p5868_p2 = scmp.lt.u32.totalorder %s5860_s22, %s9251_s20 }
 0x6cc   : > { %p5862_p9 = pnand %p5861_p6, %p9708_p7 }
 0x6cd   : > { %p5867_p5 = por %p5866_p0, %p5865_p3 }
 0x6ce   : > { %p5863_p4 = pneg %p5862_p9 }
 0x6cf   : > { %p5869_p10 = por %p5868_p2, %p5867_p5 }
 0x6d1   : > { %p5870_p1 = pnand %p5869_p10, %p5863_p4 }
 0x6d3   : > { %5873 = shalt.err (!%p5870_p1)
}
 0x6d4   : > { %s5942_s14 = smov 128   ;;  %s5943_s16 = smov 8  }
 0x6d5   : > { %5501 = dma.vmem_to_hbm [thread:$0]  (%p9708_p7), %s9253_s13, 4096, %s9251_s20, %s5124_s30, %s5942_s14, %s5942_s14, %s5943_s16  }
 0x6d6 PF: > { %s5152_s18 = sand.u32 1, %s5912_s24   ;;  %p9709_p11 = scmp.ne.s32.totalorder %s9404_s12, 0 }
 0x6d7   : > { %p9710_p12 = scmp.ge.s32.totalorder %s5924_s27, 2  ;;  %s5153_s15 = scalar_lea.sflag [#allocation5], %s5152_s18 }
 0x6d9   : > { %p5524_p13 = pnand %p9710_p12, %p9709_p11 }
 0x6db   : > { %5907 = dma.done.wait (!%p5524_p13), %s5153_s15, 4096  }
 0x6dc   : > { %5909 = vsyncadd (!%p5524_p13), %s5153_s15, 4294963200  ;;  %p23_p8 = scmp.ge.s32.totalorder %s6147_s19, 4   ;;  %s9711_s24 = smov %s5916_s25 }
 0x6dd   : > { %s9712_s25 = smov %s5920_s26  ;;  %s9713_s26 = smov %s6159_s23 }
 0x6de   : > { %s9714_s27 = smov %s6147_s19  ;;  %25 = sbr.rel (!%p23_p8) target bundleno = 10 (0xa), region = 124 }
 0x6e5   :  { %5158 = vsyncpa [#allocation4], 1 }
 0x6e6   :  { %5160 = vsyncpa [#allocation4 + $0x1], 1 }
 0x6e7   :  { %5161 = vsyncpa [#allocation7], 1 }
 0x6e8   :  { %5162 = vsyncpa [#allocation10], 1 }
 0x6e9   :  { %5163 = vsyncpa [#allocation13], 1 }
 0x6ea   :  { %5164 = vsyncpa [#allocation5], 1 }
 0x6eb   :  { %5166 = vsyncpa [#allocation5 + $0x1], 1 }

</bundles_post_ra>
